<compile_context>
chip_gen: v5e
topology: v5e:2x2
jax: 0.10.0
libtpu: 0.0.40
codegen_flags: <defaults>
</compile_context>

<pallas_src>
import functools

import jax
import jax.numpy as jnp
import numpy as np
from jax.experimental import pallas as pl
from jax.experimental.pallas import tpu as pltpu


# ----------------------------- Config (synthetic) -----------------------------
class Config:
    hidden_size = 64
    num_feature = 2            # D = hidden_size * num_feature = 128 (lane-dense)
    rel_num = 8
    training = False
    eval_bag = True
    bag_type = "att"


MAX_BAG = 8                    # static upper bound on sentences per bag
BAGS_PER_STEP = 64             # bags per grid step -> 512-row blocks, 512-lane out


# --------------------------------- kernel -------------------------------------
def _selector_att_eval_kernel(bp, mb, rel_num,
                              bags_ref,    # VMEM (bp*mb, D)   packed bag rows
                              cmask_ref,   # VMEM (1, 1, bp*mb) 1.0 valid / 0.0 pad
                              rel_ref,     # VMEM (D, R)
                              bias_ref,    # VMEM (1, R)
                              out_ref):    # VMEM (1, 1, bp*R)
    f32 = jnp.float32
    bags = bags_ref[...]                                            # (bp*mb, D)
    rel = rel_ref[...]                                              # (D, R)
    cmask = cmask_ref[...][0]                                       # (1, bp*mb)

    # (1) attention scores for all bp bags: one MXU matmul, then one transpose
    #     to the dense (R, bp*mb) layout.
    att = jnp.dot(bags, rel, preferred_element_type=f32)            # (bp*mb, R)
    att_t = att.T                                                    # (R, bp*mb)

    # Per-rel row max over ALL columns is a valid softmax shift (numerator and
    # denominator share it); exp() only touches the compact (R, bp*mb) matrix.
    m = jnp.max(att_t, axis=-1, keepdims=True)                       # (R, 1)
    e_t = jnp.exp(att_t - m) * cmask                                 # pads -> 0

    # (2) block-diagonal weight matrix W[b*R+r, b*mb+s] = e_t[r, b*mb+s]
    #     (VPU tile + iota mask only — no exp on the (bp*R, bp*mb) matrix).
    E = jnp.broadcast_to(e_t[None], (bp, rel_num, bp * mb)).reshape(
        bp * rel_num, bp * mb)
    rows = jax.lax.broadcasted_iota(jnp.int32, (bp * rel_num, bp * mb), 0)
    cols = jax.lax.broadcasted_iota(jnp.int32, (bp * rel_num, bp * mb), 1)
    if (rel_num & (rel_num - 1)) == 0 and (mb & (mb - 1)) == 0:
        same_bag = (jnp.right_shift(rows, rel_num.bit_length() - 1) ==
                    jnp.right_shift(cols, mb.bit_length() - 1))
    else:
        same_bag = (rows // rel_num) == (cols // mb)
    W = jnp.where(same_bag, E, 0.0)                                  # (bp*R, bp*mb)

    # Row sums (softmax denominators, per (bag, rel)); exact reciprocal.
    s = jnp.sum(W, axis=-1, keepdims=True)                           # (bp*R, 1)
    inv_s = 1.0 / jnp.maximum(s, 1e-30)                              # pad bags stay finite

    # (3) bag representations: ONE full-tile MXU matmul (normalization folded
    #     after the next matmul — per-row scale commutes with the contraction).
    rep = jnp.dot(W, bags, preferred_element_type=f32)               # (bp*R, D)

    # (4) logits + diag(softmax), exact division.
    logit = jnp.dot(rep, rel, preferred_element_type=f32) * inv_s + bias_ref[...]
    z = logit - jnp.max(logit, axis=-1, keepdims=True)               # (bp*R, R)
    ez = jnp.exp(z)
    denom = jnp.sum(ez, axis=-1, keepdims=True)                      # (bp*R, 1)
    r_idx = jax.lax.broadcasted_iota(jnp.int32, (bp * rel_num, rel_num), 0)
    c_idx = jax.lax.broadcasted_iota(jnp.int32, (bp * rel_num, rel_num), 1)
    if (rel_num & (rel_num - 1)) == 0:
        diag = c_idx == jnp.bitwise_and(r_idx, rel_num - 1)          # col == row % R
    else:
        diag = c_idx == (r_idx % rel_num)
    Lm = jnp.where(diag, ez, 0.0) / denom                            # only diag nonzero

    # Lane-dense output row: transpose the skinny (bp*R, R) matrix and sublane-
    # reduce -> (1, bp*R) unmasked store.
    out_ref[...] = jnp.sum(Lm.T, axis=0, keepdims=True)[None]        # (1, 1, bp*R)


# -------------------------------- wrapper --------------------------------------
def selector_forward(x, scope, rel_mat, bias, *,
                     max_bag=MAX_BAG, bags_per_step=BAGS_PER_STEP):
    """Eval-bag / 'att' branch of Selector.forward.

    x: (N, D) f32, scope: (B, 2) int32 rows of [start, end),
    rel_mat: (D, R) f32, bias: (R,) f32. Returns (B, R) f32.
    """
    x = x.astype(jnp.float32)
    rel_mat = rel_mat.astype(jnp.float32)
    N, D = x.shape
    R = int(rel_mat.shape[1])
    B = int(scope.shape[0])
    G = int(pl.cdiv(B, bags_per_step))
    B_pad = G * bags_per_step

    scope_np = np.asarray(scope).astype(np.int32)
    sizes_np = scope_np[:, 1] - scope_np[:, 0]
    # Bags larger than max_bag would otherwise be silently truncated.
    assert int(sizes_np.max()) <= max_bag, "bag larger than MAX_BAG"

    starts_np = np.zeros((B_pad,), np.int32)
    lengths_np = np.zeros((B_pad,), np.int32)
    starts_np[:B] = scope_np[:, 0]
    lengths_np[:B] = sizes_np
    starts = jnp.asarray(starts_np)
    lengths = jnp.asarray(lengths_np)

    # --- pre-pack bags into a dense (B_pad*max_bag, D) slab (no zeroing, no
    # --- concat: pad rows/bags are neutralized in-kernel via the column mask).
    slot = jnp.arange(max_bag, dtype=jnp.int32)
    idx = starts[:, None] + slot[None, :]                       # (B_pad, mb)
    valid = slot[None, :] < lengths[:, None]                    # (B_pad, mb)
    idx = jnp.where(valid, idx, 0).reshape(-1)                  # clamp pad rows
    packed = jnp.take(x, idx, axis=0)                           # (B_pad*mb, D)

    rows_per_step = bags_per_step * max_bag                     # 512
    out_lanes = bags_per_step * R                               # 512
    col_mask = valid.reshape(G, 1, rows_per_step).astype(jnp.float32)
    bias2 = bias.reshape(1, R).astype(jnp.float32)

    kernel = functools.partial(_selector_att_eval_kernel,
                               bags_per_step, max_bag, R)

    grid_spec = pltpu.PrefetchScalarGridSpec(
        num_scalar_prefetch=0,
        grid=(G,),
        in_specs=[
            pl.BlockSpec((rows_per_step, D), lambda g: (g, 0)),         # bags
            pl.BlockSpec((1, 1, rows_per_step), lambda g: (g, 0, 0)),   # col mask
            pl.BlockSpec((D, R), lambda g: (0, 0)),                     # rel_mat
            pl.BlockSpec((1, R), lambda g: (0, 0)),                     # bias
        ],
        out_specs=pl.BlockSpec((1, 1, out_lanes), lambda g: (g, 0, 0)),
    )

    out = pl.pallas_call(
        kernel,
        out_shape=jax.ShapeDtypeStruct((G, 1, out_lanes), jnp.float32),
        grid_spec=grid_spec,
        compiler_params=pltpu.CompilerParams(
            dimension_semantics=("parallel",)),
    )(packed, col_mask, rel_mat, bias2)

    return out.reshape(B_pad, R)[:B]


# ---------------------------- pure-JAX reference --------------------------------
def selector_reference(x, scope_np, rel_mat, bias):
    hi = jax.lax.Precision.HIGHEST
    outs = []
    for i in range(scope_np.shape[0]):
        s, e = int(scope_np[i, 0]), int(scope_np[i, 1])
        bag = x[s:e]
        att = jnp.matmul(bag, rel_mat, precision=hi)
        a = jax.nn.softmax(att.T, axis=-1)
        rep = jnp.matmul(a, bag, precision=hi)
        logit = jax.nn.softmax(jnp.matmul(rep, rel_mat, precision=hi) + bias,
                               axis=-1)
        outs.append(jnp.diag(logit))
    return jnp.stack(outs, axis=0)


# ---------------------------------- main ----------------------------------------
if __name__ == "__main__":
    D = Config.hidden_size * Config.num_feature      # 128
    R = Config.rel_num                                # 8

    # 100 bags with sizes in [1, MAX_BAG] -> B_pad = 128, grid = (2,).
    rng = np.random.RandomState(0)
    B = 100
    sizes = rng.randint(1, MAX_BAG + 1, size=B).astype(np.int32)
    starts = np.concatenate([[0], np.cumsum(sizes)[:-1]]).astype(np.int32)
    scope_np = np.stack([starts, starts + sizes], axis=1).astype(np.int32)
    N = int(sizes.sum())

    key = jax.random.PRNGKey(0)
    kx, krel, kbias = jax.random.split(key, 3)

    # Deterministic parameter init matching the module's __init__ shapes:
    #   rel_mat: xavier_uniform_((D, R)),  bias: normal_((R,))
    xavier_bound = float(np.sqrt(6.0 / (D + R)))
    rel_mat = jax.random.uniform(krel, (D, R), jnp.float32,
                                 minval=-xavier_bound, maxval=xavier_bound)
    bias = jax.random.normal(kbias, (R,), jnp.float32)
    # att_mat / na_mask are not used on this forward path.
    # TODO(synk): training-path dropout / GumbalSoftmax are stochastic and unused
    # in the chosen (eval_bag, 'att') branch; not reproduced here.

    x = jax.random.normal(kx, (N, D), jnp.float32)
    scope = jnp.asarray(scope_np)

    out = jax.block_until_ready(selector_forward(x, scope, rel_mat, bias))
    ref = selector_reference(x, scope_np, rel_mat, bias)

    assert out.shape == (B, R)
    # Exact softmax divisions in-kernel -> agreement is ~1e-6; 1e-3 keeps margin.
    np.testing.assert_allclose(np.asarray(out), np.asarray(ref),
                               atol=1e-3, rtol=1e-3)

    print("KERNEL_OK")
</pallas_src>

<mosaic_0001>
module attributes {stable_mosaic.version = 11 : i64} {
  func.func @_selector_att_eval_kernel(%arg0: i32, %arg1: memref<512x128xf32, #tpu.memory_space<vmem>>, %arg2: memref<1x1x512xf32, #tpu.memory_space<vmem>>, %arg3: memref<128x8xf32, #tpu.memory_space<vmem>>, %arg4: memref<1x8xf32, #tpu.memory_space<vmem>>, %arg5: memref<1x1x512xf32, #tpu.memory_space<vmem>>) attributes {dimension_semantics = [#tpu.dimension_semantics<parallel>], iteration_bounds = array<i64: 2>, scalar_prefetch = 0 : i64, scratch_operands = 0 : i64, tpu.core_type = #tpu.core_type<tc>, window_params = [{transform_indices = @transform_0, window_bounds = array<i64: 512, 128>}, {transform_indices = @transform_1, window_bounds = array<i64: 1, 1, 512>}, {pipeline_mode = #tpu.pipeline_mode<synchronous>, transform_indices = @transform_2, window_bounds = array<i64: 128, 8>}, {pipeline_mode = #tpu.pipeline_mode<synchronous>, transform_indices = @transform_3, window_bounds = array<i64: 1, 8>}, {transform_indices = @transform_4, window_bounds = array<i64: 1, 1, 512>}]} {
    %c0 = arith.constant 0 : index
    %c0_0 = arith.constant 0 : index
    %0 = vector.load %arg1[%c0, %c0_0] : memref<512x128xf32, #tpu.memory_space<vmem>>, vector<512x128xf32>
    %c0_1 = arith.constant 0 : index
    %c0_2 = arith.constant 0 : index
    %1 = vector.load %arg3[%c0_1, %c0_2] : memref<128x8xf32, #tpu.memory_space<vmem>>, vector<128x8xf32>
    %c0_3 = arith.constant 0 : index
    %c0_4 = arith.constant 0 : index
    %c0_5 = arith.constant 0 : index
    %2 = vector.load %arg2[%c0_3, %c0_4, %c0_5] : memref<1x1x512xf32, #tpu.memory_space<vmem>>, vector<1x1x512xf32>
    %3 = vector.shape_cast %2 : vector<1x1x512xf32> to vector<1x512xf32>
    %cst = arith.constant dense<0.000000e+00> : vector<512x8xf32>
    %4 = tpu.matmul %0, %1, %cst {dimension_numbers = #tpu.dot_dimension_numbers<[1], [0], [0], [1], [0, 0, 1, 1], [], []>} : vector<512x128xf32>, vector<128x8xf32>, vector<512x8xf32> -> vector<512x8xf32>
    %5 = tpu.transpose %4, [1, 0] : vector<512x8xf32> -> vector<8x512xf32>
    %cst_6 = arith.constant dense<0xFF800000> : vector<8xf32>
    %6 = vector.multi_reduction <maximumf>, %5, %cst_6 [1] : vector<8x512xf32> to vector<8xf32>
    %7 = vector.shape_cast %6 : vector<8xf32> to vector<8x1xf32>
    %8 = vector.broadcast %7 : vector<8x1xf32> to vector<8x512xf32>
    %9 = arith.subf %5, %8 : vector<8x512xf32>
    %10 = math.exp %9 : vector<8x512xf32>
    %11 = vector.broadcast %3 : vector<1x512xf32> to vector<8x512xf32>
    %12 = arith.mulf %10, %11 : vector<8x512xf32>
    %13 = vector.shape_cast %12 : vector<8x512xf32> to vector<1x8x512xf32>
    %14 = vector.shape_cast %13 : vector<1x8x512xf32> to vector<1x8x512xf32>
    %15 = vector.broadcast %14 : vector<1x8x512xf32> to vector<64x8x512xf32>
    %16 = vector.shape_cast %15 : vector<64x8x512xf32> to vector<512x512xf32>
    %17 = tpu.iota {dimensions = array<i32: 0>} : vector<512x512xi32>
    %18 = tpu.iota {dimensions = array<i32: 1>} : vector<512x512xi32>
    %c3_i32 = arith.constant 3 : i32
    %19 = vector.broadcast %c3_i32 : i32 to vector<512x512xi32>
    %20 = arith.shrsi %17, %19 : vector<512x512xi32>
    %c3_i32_7 = arith.constant 3 : i32
    %21 = vector.broadcast %c3_i32_7 : i32 to vector<512x512xi32>
    %22 = arith.shrsi %18, %21 : vector<512x512xi32>
    %23 = arith.cmpi eq, %20, %22 : vector<512x512xi32>
    %cst_8 = arith.constant 0.000000e+00 : f32
    %24 = vector.broadcast %cst_8 : f32 to vector<512x512xf32>
    %25 = arith.select %23, %16, %24 : vector<512x512xi1>, vector<512x512xf32>
    %cst_9 = arith.constant dense<0.000000e+00> : vector<512xf32>
    %26 = vector.multi_reduction <add>, %25, %cst_9 [1] : vector<512x512xf32> to vector<512xf32>
    %27 = vector.shape_cast %26 : vector<512xf32> to vector<512x1xf32>
    %cst_10 = arith.constant 1.000000e-30 : f32
    %28 = vector.broadcast %cst_10 : f32 to vector<512x1xf32>
    %29 = arith.maximumf %27, %28 : vector<512x1xf32>
    %cst_11 = arith.constant 1.000000e+00 : f32
    %30 = vector.broadcast %cst_11 : f32 to vector<512x1xf32>
    %31 = arith.divf %30, %29 : vector<512x1xf32>
    %cst_12 = arith.constant dense<0.000000e+00> : vector<512x128xf32>
    %32 = tpu.matmul %25, %0, %cst_12 {dimension_numbers = #tpu.dot_dimension_numbers<[1], [0], [0], [1], [0, 0, 1, 1], [], []>} : vector<512x512xf32>, vector<512x128xf32>, vector<512x128xf32> -> vector<512x128xf32>
    %cst_13 = arith.constant dense<0.000000e+00> : vector<512x8xf32>
    %33 = tpu.matmul %32, %1, %cst_13 {dimension_numbers = #tpu.dot_dimension_numbers<[1], [0], [0], [1], [0, 0, 1, 1], [], []>} : vector<512x128xf32>, vector<128x8xf32>, vector<512x8xf32> -> vector<512x8xf32>
    %34 = vector.broadcast %31 : vector<512x1xf32> to vector<512x8xf32>
    %35 = arith.mulf %33, %34 : vector<512x8xf32>
    %c0_14 = arith.constant 0 : index
    %c0_15 = arith.constant 0 : index
    %36 = vector.load %arg4[%c0_14, %c0_15] : memref<1x8xf32, #tpu.memory_space<vmem>>, vector<1x8xf32>
    %37 = vector.broadcast %36 : vector<1x8xf32> to vector<512x8xf32>
    %38 = arith.addf %35, %37 : vector<512x8xf32>
    %cst_16 = arith.constant dense<0xFF800000> : vector<512xf32>
    %39 = vector.multi_reduction <maximumf>, %38, %cst_16 [1] : vector<512x8xf32> to vector<512xf32>
    %40 = vector.shape_cast %39 : vector<512xf32> to vector<512x1xf32>
    %41 = vector.broadcast %40 : vector<512x1xf32> to vector<512x8xf32>
    %42 = arith.subf %38, %41 : vector<512x8xf32>
    %43 = math.exp %42 : vector<512x8xf32>
    %cst_17 = arith.constant dense<0.000000e+00> : vector<512xf32>
    %44 = vector.multi_reduction <add>, %43, %cst_17 [1] : vector<512x8xf32> to vector<512xf32>
    %45 = vector.shape_cast %44 : vector<512xf32> to vector<512x1xf32>
    %46 = tpu.iota {dimensions = array<i32: 0>} : vector<512x8xi32>
    %47 = tpu.iota {dimensions = array<i32: 1>} : vector<512x8xi32>
    %c7_i32 = arith.constant 7 : i32
    %48 = vector.broadcast %c7_i32 : i32 to vector<512x8xi32>
    %49 = arith.andi %46, %48 : vector<512x8xi32>
    %50 = arith.cmpi eq, %47, %49 : vector<512x8xi32>
    %cst_18 = arith.constant 0.000000e+00 : f32
    %51 = vector.broadcast %cst_18 : f32 to vector<512x8xf32>
    %52 = arith.select %50, %43, %51 : vector<512x8xi1>, vector<512x8xf32>
    %53 = vector.broadcast %45 : vector<512x1xf32> to vector<512x8xf32>
    %54 = arith.divf %52, %53 : vector<512x8xf32>
    %55 = tpu.transpose %54, [1, 0] : vector<512x8xf32> -> vector<8x512xf32>
    %cst_19 = arith.constant dense<0.000000e+00> : vector<512xf32>
    %56 = vector.multi_reduction <add>, %55, %cst_19 [0] : vector<8x512xf32> to vector<512xf32>
    %57 = vector.shape_cast %56 : vector<512xf32> to vector<1x512xf32>
    %58 = vector.shape_cast %57 : vector<1x512xf32> to vector<1x1x512xf32>
    %c0_20 = arith.constant 0 : index
    %c0_21 = arith.constant 0 : index
    %c0_22 = arith.constant 0 : index
    %59 = vector.load %arg5[%c0_20, %c0_21, %c0_22] : memref<1x1x512xf32, #tpu.memory_space<vmem>>, vector<1x1x512xf32>
    tpu.vector_store %arg5[%c0_20, %c0_21, %c0_22], %58 {strides = array<i32>} : memref<1x1x512xf32, #tpu.memory_space<vmem>>, vector<1x1x512xf32>,
    return
  }
  func.func @transform_0(%arg0: i32) -> (i32, i32) {
    %c0_i32 = arith.constant 0 : i32
    %c0_i32_0 = arith.constant 0 : i32
    return %arg0, %c0_i32 : i32, i32
  }
  func.func @transform_1(%arg0: i32) -> (i32, i32, i32) {
    %c0_i32 = arith.constant 0 : i32
    %c0_i32_0 = arith.constant 0 : i32
    %c0_i32_1 = arith.constant 0 : i32
    return %arg0, %c0_i32, %c0_i32_0 : i32, i32, i32
  }
  func.func @transform_2(%arg0: i32) -> (i32, i32) {
    %c0_i32 = arith.constant 0 : i32
    %c0_i32_0 = arith.constant 0 : i32
    %c0_i32_1 = arith.constant 0 : i32
    return %c0_i32, %c0_i32_0 : i32, i32
  }
  func.func @transform_3(%arg0: i32) -> (i32, i32) {
    %c0_i32 = arith.constant 0 : i32
    %c0_i32_0 = arith.constant 0 : i32
    %c0_i32_1 = arith.constant 0 : i32
    return %c0_i32, %c0_i32_0 : i32, i32
  }
  func.func @transform_4(%arg0: i32) -> (i32, i32, i32) {
    %c0_i32 = arith.constant 0 : i32
    %c0_i32_0 = arith.constant 0 : i32
    %c0_i32_1 = arith.constant 0 : i32
    return %arg0, %c0_i32, %c0_i32_0 : i32, i32, i32
  }
}

</mosaic_0001>

<bundles_post_ra>
// kernel: tpu_custom_call.1
= control target key start
LH: loop header
LB: loop body
LE: loop exit
PB: predicated region body
PF: predicated region fallthrough
CT: control target
= control target key end

     0   :  { %9 = vsyncpa [#allocation3], 0  ;;  %s13969_s0 = inlined_call_operand.hbm [shape: f32[1024,128], index: 0, kind: input, shape index: {}]   ;;  %s13970_s1 = inlined_call_operand.vmem [shape: f32[2,1,512], index: 1, kind: input, shape index: {}]   ;;  %s13971_s2 = inlined_call_operand.vmem [shape: f32[128,8], index: 2, kind: input, shape index: {}]   ;;  %s13972_s3 = inlined_call_operand.vmem [shape: f32[1,8], index: 3, kind: input, shape index: {}]   ;;  %s13973_s4 = inlined_call_operand.hbm [shape: f32[2,1,512], index: 4, kind: output, shape index: {}]  }
   0x1   :  { %11 = vsyncpa [#allocation3 + $0x1], 0 }
   0x2   :  { %12 = vsyncpa [#allocation4], 0 }
   0x3   :  { %14 = vsyncpa [#allocation4 + $0x1], 0  ;;  %s6725_s15 = smov 0   ;;  %s6727_s16 = smov 0  }
   0x4   :  { %s6729_s17 = smov 0   ;;  %s6731_s18 = smov 0  }
   0x5 LB: > { %s6746_s19 = sadd.s32 4294967295, %s6696_s18   ;;  %s5853_s20 = sadd.s32 4294967294, %s6696_s18   ;;  %s6696_s18 = sphi %s6731_s18, %s15352_s18   ;;  %s6692_s17 = sphi %s6729_s17, %s15351_s17   ;;  %s6688_s16 = sphi %s6727_s16, %s15350_s16   ;;  %s6684_s15 = sphi %s6725_s15, %s15349_s15  }
   0x6   : > { %s6750_s21 = sadd.s32 1, %s6696_s18   ;;  %s27_s22 = sadd.s32 1, %s6692_s17 }
   0x7   : > { %s24_s23 = ssub.s32 %s6696_s18, %s6750_s21  ;;  %p34_p0 = scmp.ne.s32.totalorder %s6692_s17, %s6688_s16 }
   0x8   : > { %p25_p1 = scmp.eq.s32.totalorder %s24_s23, 0  ;;  %p35_p2 = scmp.eq.s32.totalorder %s6696_s18, 0 }
   0x9   : > { %p40_p3 = scmp.ne.s32.totalorder %s6688_s16, %s6684_s15  ;;  %p41_p4 = scmp.eq.s32.totalorder %s6746_s19, 0 }
   0xa   : > { %s6762_s24 = scalar_select %p25_p1, %s6692_s17, %s27_s22  }
   0xb   : > { %p6764_p5 = por %p35_p2, %p34_p0  ;;  %p6768_p6 = por %p41_p4, %p40_p3 }
   0xc   : > { %p132_p7 = scmp.eq.s32.totalorder %s6746_s19, 1  ;;  %p138_p8 = scmp.eq.s32.totalorder %s5853_s20, 1 }
   0xd   : > { %p6168_p10 = scmp.lt.s32.totalorder %s6696_s18, 2  ;;  %s164_s29 = sand.u32 1, %s6692_s17  }
   0xe   : > { %p6775_p11 = por %p132_p7, %p34_p0  ;;  %p6779_p12 = por %p138_p8, %p40_p3 }
   0xf   : > { %s6123_s30 = sshll.u32 %s6696_s18, 9  ;;  %s5856_s5 = sshll.u32 %s164_s29, 9 }
  0x10   : > { %s173_s8 = scalar_lea.hbm %s13969_s0, %s6123_s30  ;;  %s168_s10 = scalar_lea.vmem [#allocation2], %s5856_s5 }
  0x11   : > { %s174_s9 = sshll.u32 %s173_s8, 4  ;;  %s176_s11 = sshll.u32 %s168_s10, 4  ;;  %s175_s9 = int_to_ptr.hbm [resolvable:$true] %s174_s9  ;;  %s177_s11 = int_to_ptr.vmem [resolvable:$true] %s176_s11 }
  0x12   : > { %p6790_p13 = pnand %p6168_p10, %p6764_p5  ;;  %p5859_p0 = scmp.ge.s32.totalorder %s6696_s18, 1 }
  0x13   : > { %p191_p1 = scmp.lt.s32.totalorder %s6696_s18, 3  ;;  %s165_s13 = scalar_lea.sflag [#allocation3], %s164_s29 }
  0x14   : > { %s6600_s14 = sshra.s32 %s175_s9, 4  ;;  %p6604_p3 = pneg %p6790_p13  ;;  %s6601_s14 = int_to_ptr.hbm [resolvable:$true] %s6600_s14 }
  0x15   : > { %s6602_s20 = scalar_lea.hbm %s6601_s14, 512  ;;  %s6607_s25 = scalar_lea.hbm %s13969_s0, 1024 }
  0x16   : > { %p6603_p2 = scmp.ne.s32.totalorder %s6601_s14, %s6602_s20  ;;  %p6608_p5 = scmp.lt.s32.totalorder %s6601_s14, %s13969_s0 }
  0x17   : > { %p6609_p8 = scmp.lt.s32.totalorder %s6607_s25, %s6602_s20 }
  0x18   : > { %p6605_p4 = pnand %p6604_p3, %p6603_p2 }
  0x19   : > { %p6610_p10 = por %p6609_p8, %p6608_p5 }
  0x1a   : > { %p6606_p7 = pneg %p6605_p4 }
  0x1c   : > { %p6611_p9 = pnand %p6610_p10, %p6606_p7 }
  0x1e   : > { %6614 = shalt.err (!%p6611_p9)
}
  0x1f   : > { %s6698_s29 = smov 128   ;;  %s6699_s6 = smov 8  }
  0x20   : > { %6163 = dma.hbm_to_vmem [thread:$0]  (!%p6790_p13), %s175_s9, 8192, %s177_s11, %s165_s13, %s6698_s29, %s6698_s29, %s6699_s6  }
  0x21   : > { %p192_p2 = pnand %p5859_p0, %p191_p1 }
  0x23   : > { %195 = sbr.rel (%p192_p2) target bundleno = 2343 (0x927), region = 36 }
  0x28   : > { %s6811_s7 = sand.u32 1, %s6688_s16  }
  0x29   : > { %s5860_s8 = sshll.u32 %s6811_s7, 9  ;;  %s198_s10 = scalar_lea.sflag [#allocation3], %s6811_s7 }
  0x2a   : > { %s6815_s14 = scalar_lea.vmem [#allocation2], %s5860_s8 }
  0x2b   : > { %6675 = dma.done.wait (%p6768_p6), %s198_s10, 8192  }
  0x2c   : > { %6677 = vsyncadd (%p6768_p6), %s198_s10, 4294959104  ;;  %v6824_v0 = vld [vmem:[%s13971_s2 + $0x78] sm:$0xff]  ;;  %v6829_v1 = vld [vmem:[%s13971_s2 + $0x70] sm:$0xff]  ;;  %p232_p6 = scmp.lt.s32.totalorder %s6746_s19, 1  ;;  %s5861_s10 = sshll.u32 %s6811_s7, 2 }
  0x2d   : > { %317 = vmatpush.msra.mxu0 %v6824_v0  ;;  %6124 = vmatpush.msra.mxu2 %v6824_v0  ;;  %v6836_v2 = vld [vmem:[%s13971_s2 + $0x68] sm:$0xff]  ;;  %v6843_v3 = vld [vmem:[%s13971_s2 + $0x60] sm:$0xff]  ;;  %v6850_v4 = vld [vmem:[%s13971_s2 + $0x58] sm:$0xff]  ;;  %s6120_s9 = sshll.u32 %s6746_s19, 2  ;;  %s230_s13 = scalar_lea.vmem [#allocation5], %s5861_s10 }
  0x2e   : > { %v6857_v5 = vld [vmem:[%s13971_s2 + $0x50] sm:$0xff]  ;;  %v6864_v6 = vld [vmem:[%s13971_s2 + $0x48] sm:$0xff]  ;;  %v6871_v7 = vld [vmem:[%s13971_s2 + $0x40] sm:$0xff]  ;;  %s5768_s20 = sshll.u32 %s230_s13, 4  ;;  %s6650_s5 = scalar_lea.hbm %s13973_s4, 8  ;;  %s5769_s20 = int_to_ptr.vmem [resolvable:$true] %s5768_s20 }
  0x2f   : > { %318 = vmatpush.msra.mxu0 %v6829_v1  ;;  %6125 = vmatpush.msra.mxu2 %v6829_v1  ;;  %v6878_v8 = vld [vmem:[%s13971_s2 + $0x38] sm:$0xff]  ;;  %v6885_v9 = vld [vmem:[%s13971_s2 + $0x30] sm:$0xff]  ;;  %v6892_v10 = vld [vmem:[%s13971_s2 + $0x28] sm:$0xff] }
  0x30   : > { %v6899_v11 = vld [vmem:[%s13971_s2 + $0x20] sm:$0xff]  ;;  %v6906_v12 = vld [vmem:[%s13971_s2 + $0x18] sm:$0xff]  ;;  %v6913_v13 = vld [vmem:[%s13971_s2 + $0x10] sm:$0xff] }
  0x31   : > { %319 = vmatpush.msra.mxu0 %v6836_v2  ;;  %6126 = vmatpush.msra.mxu2 %v6836_v2  ;;  %v6920_v14 = vld [vmem:[%s13971_s2 + $0x8] sm:$0xff]  ;;  %v6927_v15 = vld [vmem:[%s13971_s2] sm:$0xff]  ;;  %v6950_v20 = vld [vmem:[%s6815_s14 + $0x10] sm:$0xff] }
  0x32   : > { %v6931_v16 = vld [vmem:[%s6815_s14] sm:$0xff]  ;;  %v6942_v18 = vld [vmem:[%s6815_s14 + $0x8] sm:$0xff]  ;;  %v6954_v21 = vld [vmem:[%s6815_s14 + $0x110] sm:$0xff] }
  0x33   : > { %320 = vmatpush.msra.mxu0 %v6843_v3  ;;  %6127 = vmatpush.msra.mxu2 %v6843_v3  ;;  %v6938_v17 = vld [vmem:[%s6815_s14 + $0x100] sm:$0xff]  ;;  %v6946_v19 = vld [vmem:[%s6815_s14 + $0x108] sm:$0xff]  ;;  %v6958_v22 = vld [vmem:[%s6815_s14 + $0x18] sm:$0xff] }
  0x34   : > { %v6962_v23 = vld [vmem:[%s6815_s14 + $0x118] sm:$0xff]  ;;  %v6966_v24 = vld [vmem:[%s6815_s14 + $0x20] sm:$0xff]  ;;  %v241_v26 = vld [vmem:[%s6815_s14 + $0x28] sm:$0xff] }
  0x35   : > { %321 = vmatpush.msra.mxu0 %v6850_v4  ;;  %6128 = vmatpush.msra.mxu2 %v6850_v4  ;;  %v6970_v25 = vld [vmem:[%s6815_s14 + $0x120] sm:$0xff]  ;;  %v6975_v27 = vld [vmem:[%s6815_s14 + $0x128] sm:$0xff]  ;;  %v242_v28 = vld [vmem:[%s6815_s14 + $0x30] sm:$0xff] }
  0x36   : > { %v6980_v29 = vld [vmem:[%s6815_s14 + $0x130] sm:$0xff]  ;;  %v243_v30 = vld [vmem:[%s6815_s14 + $0x38] sm:$0xff]  ;;  %v244_v32 = vld [vmem:[%s6815_s14 + $0x40] sm:$0xff] }
  0x37   : > { %322 = vmatpush.msra.mxu0 %v6857_v5  ;;  %6129 = vmatpush.msra.mxu2 %v6857_v5  ;;  %v6985_v31 = vld [vmem:[%s6815_s14 + $0x138] sm:$0xff]  ;;  %v6990_v33 = vld [vmem:[%s6815_s14 + $0x140] sm:$0xff]  ;;  %v245_v34 = vld [vmem:[%s6815_s14 + $0x48] sm:$0xff] }
  0x38   : > { %v6995_v35 = vld [vmem:[%s6815_s14 + $0x148] sm:$0xff]  ;;  %v246_v36 = vld [vmem:[%s6815_s14 + $0x50] sm:$0xff]  ;;  %v251_v38 = vld [vmem:[%s6815_s14 + $0x78] sm:$0xff] }
  0x39   : > { %323 = vmatpush.msra.mxu0 %v6864_v6  ;;  %6130 = vmatpush.msra.mxu2 %v6864_v6  ;;  %v7000_v37 = vld [vmem:[%s6815_s14 + $0x150] sm:$0xff]  ;;  %v249_v40 = vld [vmem:[%s6815_s14 + $0x68] sm:$0xff]  ;;  %v247_v41 = vld [vmem:[%s6815_s14 + $0x58] sm:$0xff] }
  0x3a   : > { %2678 = vmatpush.msra.mxu1 %v251_v38  ;;  %v250_v39 = vld [vmem:[%s6815_s14 + $0x70] sm:$0xff]  ;;  %6140 = vmatpush.msra.mxu3 %v251_v38  ;;  %v248_v42 = vld [vmem:[%s6815_s14 + $0x60] sm:$0xff]  ;;  %v279_v43 = vld [vmem:[%s6815_s14 + $0x158] sm:$0xff] }
  0x3b   : > { %324 = vmatpush.msra.mxu0 %v6871_v7  ;;  %6131 = vmatpush.msra.mxu2 %v6871_v7  ;;  %v280_v44 = vld [vmem:[%s6815_s14 + $0x160] sm:$0xff]  ;;  %v281_v45 = vld [vmem:[%s6815_s14 + $0x168] sm:$0xff]  ;;  %v282_v46 = vld [vmem:[%s6815_s14 + $0x170] sm:$0xff] }
  0x3c   : > { %2679 = vmatpush.msra.mxu1 %v250_v39  ;;  %6141 = vmatpush.msra.mxu3 %v250_v39  ;;  %v283_v47 = vld [vmem:[%s6815_s14 + $0x178] sm:$0xff]  ;;  %v7030_v49 = vld [vmem:[%s6815_s14 + $0x80] sm:$0xff]  ;;  %v7043_v53 = vld [vmem:[%s6815_s14 + $0x88] sm:$0xff] }
  0x3d   : > { %325 = vmatpush.msra.mxu0 %v6878_v8  ;;  %6132 = vmatpush.msra.mxu2 %v6878_v8  ;;  %v7035_v50 = vld [vmem:[%s6815_s14 + $0x180] sm:$0xff]  ;;  %v7050_v54 = vld [vmem:[%s6815_s14 + $0x188] sm:$0xff]  ;;  %v7059_v57 = vld [vmem:[%s6815_s14 + $0x90] sm:$0xff] }
  0x3e   : > { %2680 = vmatpush.msra.mxu1 %v249_v40  ;;  %6142 = vmatpush.msra.mxu3 %v249_v40  ;;  %v7066_v58 = vld [vmem:[%s6815_s14 + $0x190] sm:$0xff]  ;;  %v7073_v61 = vld [vmem:[%s6815_s14 + $0x98] sm:$0xff] }
  0x3f   : > { %326 = vmatpush.msra.mxu0 %v6885_v9  ;;  %6133 = vmatpush.msra.mxu2 %v6885_v9  ;;  %v7079_v62 = vld [vmem:[%s6815_s14 + $0x198] sm:$0xff] }
  0x40   : > { %2681 = vmatpush.msra.mxu1 %v248_v42  ;;  %6143 = vmatpush.msra.mxu3 %v248_v42 }
  0x41   : > { %327 = vmatpush.msra.mxu0 %v6892_v10  ;;  %6134 = vmatpush.msra.mxu2 %v6892_v10 }
  0x42   : > { %2682 = vmatpush.msra.mxu1 %v247_v41  ;;  %6144 = vmatpush.msra.mxu3 %v247_v41 }
  0x43   : > { %328 = vmatpush.msra.mxu0 %v6899_v11  ;;  %6135 = vmatpush.msra.mxu2 %v6899_v11 }
  0x44   : > { %2683 = vmatpush.msra.mxu1 %v246_v36  ;;  %6145 = vmatpush.msra.mxu3 %v246_v36 }
  0x45   : > { %329 = vmatpush.msra.mxu0 %v6906_v12  ;;  %6136 = vmatpush.msra.mxu2 %v6906_v12 }
  0x46   : > { %2684 = vmatpush.msra.mxu1 %v245_v34  ;;  %6146 = vmatpush.msra.mxu3 %v245_v34 }
  0x47   : > { %330 = vmatpush.msra.mxu0 %v6913_v13  ;;  %6137 = vmatpush.msra.mxu2 %v6913_v13 }
  0x48   : > { %2685 = vmatpush.msra.mxu1 %v244_v32  ;;  %6147 = vmatpush.msra.mxu3 %v244_v32 }
  0x49   : > { %331 = vmatpush.msra.mxu0 %v6920_v14  ;;  %6138 = vmatpush.msra.mxu2 %v6920_v14 }
  0x4a   : > { %2686 = vmatpush.msra.mxu1 %v243_v30  ;;  %6148 = vmatpush.msra.mxu3 %v243_v30 }
  0x4b   : > { %332 = vmatpush.msra.mxu0 %v6927_v15  ;;  %6139 = vmatpush.msra.mxu2 %v6927_v15 }
  0x4c   : > { %333 = vmatmul.f32.vlgmr.msra.gmra.mxu0 %v6931_v16  ;;  %429 = vmatmul.f32.vlgmr.msra.gmra.mxu2 %v6938_v17 }
  0x4d   : > { %2687 = vmatpush.msra.mxu1 %v242_v28  ;;  %6149 = vmatpush.msra.mxu3 %v242_v28 }
  0x4f   : > { %2688 = vmatpush.msra.mxu1 %v241_v26  ;;  %6150 = vmatpush.msra.mxu3 %v241_v26 }
  0x51   : > { %2689 = vmatpush.msra.mxu1 %v6966_v24  ;;  %6151 = vmatpush.msra.mxu3 %v6966_v24 }
  0x53   : > { %2690 = vmatpush.msra.mxu1 %v6958_v22  ;;  %6152 = vmatpush.msra.mxu3 %v6958_v22 }
  0x54   : > { %336 = vmatmul.f32.gmra.mxu0 %v6942_v18  ;;  %432 = vmatmul.f32.gmra.mxu2 %v6946_v19 }
  0x55   : > { %2691 = vmatpush.msra.mxu1 %v6950_v20  ;;  %6153 = vmatpush.msra.mxu3 %v6950_v20 }
  0x57   : > { %2692 = vmatpush.msra.mxu1 %v6942_v18  ;;  %6154 = vmatpush.msra.mxu3 %v6942_v18  ;;  %v7113_v18 = vld [vmem:[%s6815_s14 + $0x1c0] sm:$0xff] }
  0x59   : > { %2693 = vmatpush.msra.mxu1 %v6931_v16  ;;  %6155 = vmatpush.msra.mxu3 %v6931_v16 }
  0x5b   : > { %3514 = vmatpush.msrb.mxu1 %v6824_v0  ;;  %3096 = vmatpush.msrb.mxu3 %v283_v47 }
  0x5c   : > { %339 = vmatmul.f32.gmra.mxu0 %v6950_v20  ;;  %435 = vmatmul.f32.gmra.mxu2 %v6954_v21 }
  0x5d   : > { %3515 = vmatpush.msrb.mxu1 %v6829_v1  ;;  %3097 = vmatpush.msrb.mxu3 %v282_v46  ;;  %v7083_v1 = vld [vmem:[%s6815_s14 + $0xa0] sm:$0xff] }
  0x5f   : > { %3516 = vmatpush.msrb.mxu1 %v6836_v2  ;;  %3098 = vmatpush.msrb.mxu3 %v281_v45  ;;  %v7087_v2 = vld [vmem:[%s6815_s14 + $0x1a0] sm:$0xff] }
  0x61   : > { %3517 = vmatpush.msrb.mxu1 %v6843_v3  ;;  %3099 = vmatpush.msrb.mxu3 %v280_v44 }
  0x63   : > { %3518 = vmatpush.msrb.mxu1 %v6850_v4  ;;  %3100 = vmatpush.msrb.mxu3 %v279_v43 }
  0x64   : > { %342 = vmatmul.f32.gmra.mxu0 %v6958_v22  ;;  %438 = vmatmul.f32.gmra.mxu2 %v6962_v23  ;;  %v7118_v22 = vld [vmem:[%s6815_s14 + $0x1c8] sm:$0xff] }
  0x65   : > { %3519 = vmatpush.msrb.mxu1 %v6857_v5  ;;  %3101 = vmatpush.msrb.mxu3 %v7000_v37  ;;  %v7091_v5 = vld [vmem:[%s6815_s14 + $0xa8] sm:$0xff] }
  0x67   : > { %3520 = vmatpush.msrb.mxu1 %v6864_v6  ;;  %3102 = vmatpush.msrb.mxu3 %v6995_v35  ;;  %v7095_v6 = vld [vmem:[%s6815_s14 + $0x1a8] sm:$0xff] }
  0x69   : > { %3521 = vmatpush.msrb.mxu1 %v6871_v7  ;;  %3103 = vmatpush.msrb.mxu3 %v6990_v33 }
  0x6b   : > { %3522 = vmatpush.msrb.mxu1 %v6878_v8  ;;  %3104 = vmatpush.msrb.mxu3 %v6985_v31 }
  0x6c   : > { %345 = vmatmul.f32.gmra.mxu0 %v6966_v24  ;;  %441 = vmatmul.f32.gmra.mxu2 %v6970_v25 }
  0x6d   : > { %3523 = vmatpush.msrb.mxu1 %v6885_v9  ;;  %3105 = vmatpush.msrb.mxu3 %v6980_v29  ;;  %v7099_v9 = vld [vmem:[%s6815_s14 + $0xb0] sm:$0xff] }
  0x6f   : > { %3524 = vmatpush.msrb.mxu1 %v6892_v10  ;;  %3106 = vmatpush.msrb.mxu3 %v6975_v27  ;;  %v7103_v10 = vld [vmem:[%s6815_s14 + $0x1b0] sm:$0xff] }
  0x71   : > { %3525 = vmatpush.msrb.mxu1 %v6899_v11  ;;  %3107 = vmatpush.msrb.mxu3 %v6970_v25  ;;  %v262_v25 = vld [vmem:[%s6815_s14 + $0xd0] sm:$0xff] }
  0x73   : > { %3526 = vmatpush.msrb.mxu1 %v6906_v12  ;;  %3108 = vmatpush.msrb.mxu3 %v6962_v23 }
  0x74   : > { %348 = vmatmul.f32.gmra.mxu0 %v241_v26  ;;  %444 = vmatmul.f32.gmra.mxu2 %v6975_v27  ;;  %v7123_v26 = vld [vmem:[%s6815_s14 + $0x1d0] sm:$0xff] }
  0x75   : > { %3527 = vmatpush.msrb.mxu1 %v6913_v13  ;;  %3109 = vmatpush.msrb.mxu3 %v6954_v21  ;;  %v259_v13 = vld [vmem:[%s6815_s14 + $0xb8] sm:$0xff]  ;;  %v261_v21 = vld [vmem:[%s6815_s14 + $0xc8] sm:$0xff] }
  0x77   : > { %3528 = vmatpush.msrb.mxu1 %v6920_v14  ;;  %3110 = vmatpush.msrb.mxu3 %v6946_v19  ;;  %v7108_v14 = vld [vmem:[%s6815_s14 + $0x1b8] sm:$0xff] }
  0x79   : > { %3529 = vmatpush.msrb.mxu1 %v6927_v15  ;;  %3111 = vmatpush.msrb.mxu3 %v6938_v17  ;;  %v260_v17 = vld [vmem:[%s6815_s14 + $0xc0] sm:$0xff] }
  0x7c   : > { %351 = vmatmul.f32.gmra.mxu0 %v242_v28  ;;  %447 = vmatmul.f32.gmra.mxu2 %v6980_v29  ;;  %v263_v29 = vld [vmem:[%s6815_s14 + $0xd8] sm:$0xff] }
  0x84   : > { %354 = vmatmul.f32.gmra.mxu0 %v243_v30  ;;  %450 = vmatmul.f32.gmra.mxu2 %v6985_v31  ;;  %v267_v30 = vld [vmem:[%s6815_s14 + $0xf8] sm:$0xff] }
  0x85   : > { %2887 = vmatpush.msrb.mxu2 %v267_v30  ;;  %v295_v31 = vld [vmem:[%s6815_s14 + $0x1d8] sm:$0xff] }
  0x8c   : > { %357 = vmatmul.f32.gmra.mxu0 %v244_v32  ;;  %453 = vmatmul.f32.gmra.mxu2 %v6990_v33  ;;  %v266_v32 = vld [vmem:[%s6815_s14 + $0xf0] sm:$0xff]  ;;  %v265_v33 = vld [vmem:[%s6815_s14 + $0xe8] sm:$0xff] }
  0x8d   : > { %2888 = vmatpush.msrb.mxu2 %v266_v32 }
  0x8f   : > { %2889 = vmatpush.msrb.mxu2 %v265_v33 }
  0x94   : > { %360 = vmatmul.f32.gmra.mxu0 %v245_v34  ;;  %456 = vmatmul.f32.gmra.mxu2 %v6995_v35 }
  0x9c   : > { %363 = vmatmul.f32.gmra.mxu0 %v246_v36  ;;  %459 = vmatmul.f32.gmra.mxu2 %v7000_v37  ;;  %v264_v36 = vld [vmem:[%s6815_s14 + $0xe0] sm:$0xff] }
  0x9d   : > { %v296_v37 = vld [vmem:[%s6815_s14 + $0x1e0] sm:$0xff]  ;;  %2890 = vmatpush.msrb.mxu2 %v264_v36 }
  0x9f   : > { %2891 = vmatpush.msrb.mxu2 %v263_v29 }
  0xa1   : > { %2892 = vmatpush.msrb.mxu2 %v262_v25 }
  0xa3   : > { %2893 = vmatpush.msrb.mxu2 %v261_v21 }
  0xa4   : > { %366 = vmatmul.f32.gmra.mxu0 %v247_v41  ;;  %462 = vmatmul.f32.gmra.mxu2 %v279_v43  ;;  %v298_v43 = vld [vmem:[%s6815_s14 + $0x1f0] sm:$0xff] }
  0xa5   : > { %2894 = vmatpush.msrb.mxu2 %v260_v17 }
  0xa7   : > { %2895 = vmatpush.msrb.mxu2 %v259_v13 }
  0xa9   : > { %2896 = vmatpush.msrb.mxu2 %v7099_v9 }
  0xab   : > { %2897 = vmatpush.msrb.mxu2 %v7091_v5 }
  0xac   : > { %369 = vmatmul.f32.gmra.mxu0 %v248_v42  ;;  %465 = vmatmul.f32.gmra.mxu2 %v280_v44 }
  0xad   : > { %2898 = vmatpush.msrb.mxu2 %v7083_v1 }
  0xaf   : > { %2899 = vmatpush.msrb.mxu2 %v7073_v61 }
  0xb1   : > { %2900 = vmatpush.msrb.mxu2 %v7059_v57 }
  0xb3   : > { %2901 = vmatpush.msrb.mxu2 %v7043_v53 }
  0xb4   : > { %372 = vmatmul.f32.gmra.mxu0 %v249_v40  ;;  %468 = vmatmul.f32.gmra.mxu2 %v281_v45  ;;  %v297_v40 = vld [vmem:[%s6815_s14 + $0x1e8] sm:$0xff] }
  0xb5   : > { %2902 = vmatpush.msrb.mxu2 %v7030_v49 }
  0xbc   : > { %375 = vmatmul.f32.gmra.mxu0 %v250_v39  ;;  %471 = vmatmul.f32.gmra.mxu2 %v282_v46  ;;  %v299_v46 = vld [vmem:[%s6815_s14 + $0x1f8] sm:$0xff]  ;;  %s233_s14 = scalar_select %p232_p6, %s6746_s19, 1 }
  0xbd   : > { %3305 = vmatpush.msrb.mxu0 %v299_v46  ;;  %s5756_s19 = scalar_lea.sflag [#allocation4], %s6811_s7 }
  0xbe   : > { %s5862_s12 = sshll.u32 %s233_s14, 2 }
  0xbf   : > { %3306 = vmatpush.msrb.mxu0 %v298_v43  ;;  %s235_s22 = scalar_lea.vmem %s13970_s1, %s5862_s12  ;;  %s5766_s12 = scalar_lea.hbm %s13973_s4, %s6120_s9 }
  0xc1   : > { %3307 = vmatpush.msrb.mxu0 %v297_v40 }
  0xc3   : > { %3308 = vmatpush.msrb.mxu0 %v296_v37 }
  0xc4   : > { %378 = vmatmul.f32.gmra.mxu0 %v251_v38  ;;  %474 = vmatmul.f32.gmra.mxu2 %v283_v47 }
  0xc5   : > { %3309 = vmatpush.msrb.mxu0 %v295_v31 }
  0xc7   : > { %3310 = vmatpush.msrb.mxu0 %v7123_v26 }
  0xc9   : > { %v334_v48 = vpop.f32.mrf.mxu0  ;;  %3311 = vmatpush.msrb.mxu0 %v7118_v22 }
  0xca   : > { %526 = vxpose.xlu0.b32.start [1/16] (narrow) %v334_v48, 8 }
  0xcb   : > { %3312 = vmatpush.msrb.mxu0 %v7113_v18 }
  0xcc   : > { %381 = vmatmul.f32.gmra.mxu0 %v7030_v49  ;;  %477 = vmatmul.f32.gmra.mxu2 %v7035_v50 }
  0xcd   : > { %3313 = vmatpush.msrb.mxu0 %v7108_v14 }
  0xcf   : > { %v430_v51 = vpop.f32.mrf.mxu2  ;;  %3314 = vmatpush.msrb.mxu0 %v7103_v10 }
  0xd0   : > { %590 = vxpose.xlu2.b32.start [1/16] (narrow) %v430_v51, 8 }
  0xd1   : > { %v337_v52 = vpop.f32.mrf.mxu0  ;;  %3315 = vmatpush.msrb.mxu0 %v7095_v6 }
  0xd2   : > { %527 = vxpose.xlu0.b32.cont [2/16] (narrow) %v337_v52, 8 }
  0xd3   : > { %3316 = vmatpush.msrb.mxu0 %v7087_v2 }
  0xd4   : > { %384 = vmatmul.f32.gmra.mxu0 %v7043_v53  ;;  %480 = vmatmul.f32.gmra.mxu2 %v7050_v54 }
  0xd5   : > { %3317 = vmatpush.msrb.mxu0 %v7079_v62 }
  0xd7   : > { %v433_v55 = vpop.f32.mrf.mxu2  ;;  %3318 = vmatpush.msrb.mxu0 %v7066_v58 }
  0xd8   : > { %591 = vxpose.xlu2.b32.cont [2/16] (narrow) %v433_v55, 8 }
  0xd9   : > { %v340_v56 = vpop.f32.mrf.mxu0  ;;  %3319 = vmatpush.msrb.mxu0 %v7050_v54 }
  0xda   : > { %528 = vxpose.xlu0.b32.cont [3/16] (narrow) %v340_v56, 8 }
  0xdb   : > { %3320 = vmatpush.msrb.mxu0 %v7035_v50 }
  0xdc   : > { %387 = vmatmul.f32.gmra.mxu0 %v7059_v57  ;;  %483 = vmatmul.f32.gmra.mxu2 %v7066_v58 }
  0xdf   : > { %v436_v59 = vpop.f32.mrf.mxu2 }
  0xe0   : > { %592 = vxpose.xlu2.b32.cont [3/16] (narrow) %v436_v59, 8 }
  0xe1   : > { %v343_v60 = vpop.f32.mrf.mxu0 }
  0xe2   : > { %529 = vxpose.xlu0.b32.cont [4/16] (narrow) %v343_v60, 8 }
  0xe4   : > { %390 = vmatmul.f32.gmra.mxu0 %v7073_v61  ;;  %486 = vmatmul.f32.gmra.mxu2 %v7079_v62 }
  0xe7   : > { %v439_v63 = vpop.f32.mrf.mxu2 }
  0xe8   : > { %593 = vxpose.xlu2.b32.cont [4/16] (narrow) %v439_v63, 8 }
  0xe9   : > { %v346_v0 = vpop.f32.mrf.mxu0 }
  0xea   : > { %530 = vxpose.xlu0.b32.cont [5/16] (narrow) %v346_v0, 8 }
  0xec   : > { %393 = vmatmul.f32.gmra.mxu0 %v7083_v1  ;;  %489 = vmatmul.f32.gmra.mxu2 %v7087_v2 }
  0xef   : > { %v442_v3 = vpop.f32.mrf.mxu2 }
  0xf0   : > { %594 = vxpose.xlu2.b32.cont [5/16] (narrow) %v442_v3, 8 }
  0xf1   : > { %v349_v4 = vpop.f32.mrf.mxu0 }
  0xf2   : > { %531 = vxpose.xlu0.b32.cont [6/16] (narrow) %v349_v4, 8 }
  0xf4   : > { %396 = vmatmul.f32.gmra.mxu0 %v7091_v5  ;;  %492 = vmatmul.f32.gmra.mxu2 %v7095_v6 }
  0xf7   : > { %v445_v7 = vpop.f32.mrf.mxu2 }
  0xf8   : > { %595 = vxpose.xlu2.b32.cont [6/16] (narrow) %v445_v7, 8 }
  0xf9   : > { %v352_v8 = vpop.f32.mrf.mxu0 }
  0xfa   : > { %532 = vxpose.xlu0.b32.cont [7/16] (narrow) %v352_v8, 8 }
  0xfc   : > { %399 = vmatmul.f32.gmra.mxu0 %v7099_v9  ;;  %495 = vmatmul.f32.gmra.mxu2 %v7103_v10 }
  0xff   : > { %v448_v11 = vpop.f32.mrf.mxu2 }
 0x100   : > { %596 = vxpose.xlu2.b32.cont [7/16] (narrow) %v448_v11, 8 }
 0x101   : > { %v355_v12 = vpop.f32.mrf.mxu0 }
 0x102   : > { %533 = vxpose.xlu0.b32.cont [8/16] (narrow) %v355_v12, 8 }
 0x104   : > { %402 = vmatmul.f32.gmra.mxu0 %v259_v13  ;;  %498 = vmatmul.f32.gmra.mxu2 %v7108_v14 }
 0x107   : > { %v451_v15 = vpop.f32.mrf.mxu2 }
 0x108   : > { %597 = vxpose.xlu2.b32.cont [8/16] (narrow) %v451_v15, 8 }
 0x109   : > { %v358_v16 = vpop.f32.mrf.mxu0 }
 0x10a   : > { %534 = vxpose.xlu0.b32.cont [9/16] (narrow) %v358_v16, 8 }
 0x10c   : > { %405 = vmatmul.f32.gmra.mxu0 %v260_v17  ;;  %501 = vmatmul.f32.gmra.mxu2 %v7113_v18 }
 0x10f   : > { %v454_v19 = vpop.f32.mrf.mxu2 }
 0x110   : > { %598 = vxpose.xlu2.b32.cont [9/16] (narrow) %v454_v19, 8 }
 0x111   : > { %v361_v20 = vpop.f32.mrf.mxu0 }
 0x112   : > { %535 = vxpose.xlu0.b32.cont [10/16] (narrow) %v361_v20, 8 }
 0x114   : > { %408 = vmatmul.f32.gmra.mxu0 %v261_v21  ;;  %504 = vmatmul.f32.gmra.mxu2 %v7118_v22 }
 0x117   : > { %v457_v23 = vpop.f32.mrf.mxu2 }
 0x118   : > { %599 = vxpose.xlu2.b32.cont [10/16] (narrow) %v457_v23, 8  ;;  %v13984_v23 = vlaneseq }
 0x119   : > { %v364_v24 = vpop.f32.mrf.mxu0 }
 0x11a   : > { %536 = vxpose.xlu0.b32.cont [11/16] (narrow) %v364_v24, 8  ;;  %v7160_v24 = vshrl.u32 %v13984_v23, 7 }
 0x11c   : > { %411 = vmatmul.f32.gmra.mxu0 %v262_v25  ;;  %507 = vmatmul.f32.gmra.mxu2 %v7123_v26  ;;  %14341 = vst [vmem:[#allocation8_spill] sm:$0xff] %v7160_v24  ;;  %v7163_v25 = vand.u32 127, %v13984_v23  ;;  %v7165_v26 = vld [vmem:[%s235_s22] sm:$0xf]  ;;  %s5770_s22 = sshll.u32 %s5766_s12, 4  ;;  %s5771_s22 = int_to_ptr.hbm [resolvable:$true] %s5770_s22 }
 0x11d   : > { %s6644_s26 = sshra.s32 %s5771_s22, 4  ;;  %s6645_s26 = int_to_ptr.hbm [resolvable:$true] %s6644_s26 }
 0x11e   : > { %14342 = vst [vmem:[#allocation9_spill] sm:$0xff] %v7163_v25  ;;  %s6646_s23 = scalar_lea.hbm %s6645_s26, 4  ;;  %p6651_p1 = scmp.lt.s32.totalorder %s6645_s26, %s13973_s4 }
 0x11f   : > { %v460_v27 = vpop.f32.mrf.mxu2  ;;  %p6647_p9 = scmp.ne.s32.totalorder %s6645_s26, %s6646_s23  ;;  %p6652_p3 = scmp.lt.s32.totalorder %s6650_s5, %s6646_s23 }
 0x120   : > { %600 = vxpose.xlu2.b32.cont [11/16] (narrow) %v460_v27, 8  ;;  %v751_v27 = vadd.s32 128, %v7163_v25 }
 0x121   : > { %v367_v28 = vpop.f32.mrf.mxu0  ;;  %p6648_p13 = pnand %p6647_p9, %p6775_p11  ;;  %p6653_p4 = por %p6652_p3, %p6651_p1 }
 0x122   : > { %537 = vxpose.xlu0.b32.cont [12/16] (narrow) %v367_v28, 8  ;;  %v7169_v28 = vadd.s32 256, %v7160_v24 }
 0x123   : > { %p6649_p0 = pneg %p6648_p13 }
 0x124   : > { %414 = vmatmul.f32.gmra.mxu0 %v263_v29  ;;  %510 = vmatmul.f32.gmra.mxu2 %v295_v31  ;;  %14343 = vst [vmem:[#allocation10_spill] sm:$0xff] %v7169_v28  ;;  %v753_v29 = vadd.s32 384, %v7163_v25  ;;  %v672_v31 = vperm.slane %v7165_v26, 0 }
 0x125   : > { %p6654_p7 = pnand %p6653_p4, %p6649_p0 }
 0x127   : > { %v463_v34 = vpop.f32.mrf.mxu2 }
 0x128   : > { %601 = vxpose.xlu2.b32.cont [12/16] (narrow) %v463_v34, 8  ;;  %v7179_v34 = vadd.s32 8, %v7160_v24 }
 0x129   : > { %v370_v35 = vpop.f32.mrf.mxu0 }
 0x12a   : > { %538 = vxpose.xlu0.b32.cont [13/16] (narrow) %v370_v35, 8  ;;  %14345 = vst [vmem:[#allocation12_spill] sm:$0xff] %v7179_v34  ;;  %v674_v35 = vperm.slane %v7165_v26, 2 }
 0x12c   : > { %417 = vmatmul.f32.gmra.mxu0 %v264_v36  ;;  %513 = vmatmul.f32.gmra.mxu2 %v296_v37  ;;  %v675_v36 = vperm.slane %v7165_v26, 3  ;;  %v7184_v37 = vshra.s32 %v7160_v24, 3 }
 0x12f   : > { %v466_v38 = vpop.f32.mrf.mxu2 }
 0x130   : > { %602 = vxpose.xlu2.b32.cont [13/16] (narrow) %v466_v38, 8  ;;  %v7187_v38 = vshra.s32 %v7163_v25, 3 }
 0x131   : > { %v373_v39 = vpop.f32.mrf.mxu0 }
 0x132   : > { %539 = vxpose.xlu0.b32.cont [14/16] (narrow) %v373_v39, 8  ;;  %vm822_vm0 = vcmp.eq.s32.totalorder %v7184_v37, %v7187_v38 }
 0x134   : > { %420 = vmatmul.f32.gmra.mxu0 %v265_v33  ;;  %516 = vmatmul.f32.gmra.mxu2 %v297_v40  ;;  %v752_v33 = vadd.s32 256, %v7163_v25  ;;  %v7189_v40 = vshra.s32 %v751_v27, 3 }
 0x136   : > { %vm823_vm1 = vcmp.eq.s32.totalorder %v7184_v37, %v7189_v40 }
 0x137   : > { %v469_v41 = vpop.f32.mrf.mxu2 }
 0x138   : > { %603 = vxpose.xlu2.b32.cont [14/16] (narrow) %v469_v41, 8  ;;  %v7192_v41 = vshra.s32 %v7169_v28, 3 }
 0x139   : > { %v376_v42 = vpop.f32.mrf.mxu0 }
 0x13a   : > { %540 = vxpose.xlu0.b32.cont [15/16] (narrow) %v376_v42, 8  ;;  %v7194_v42 = vshra.s32 %v753_v29, 3  ;;  %vm13974_vm2 = vcmp.eq.s32.totalorder %v7192_v41, %v7187_v38 }
 0x13c   : > { %423 = vmatmul.f32.gmra.mxu0 %v266_v32  ;;  %519 = vmatmul.f32.gmra.mxu2 %v298_v43  ;;  %v673_v32 = vperm.slane %v7165_v26, 1  ;;  %vm825_vm5 = vcmp.eq.s32.totalorder %v7184_v37, %v7194_v42 }
 0x13f   : > { %v472_v44 = vpop.f32.mrf.mxu2 }
 0x140   : > { %604 = vxpose.xlu2.b32.cont [15/16] (narrow) %v472_v44, 8 }
 0x141   : > { %v379_v45 = vpop.f32.mrf.mxu0 }
 0x142   : > { %541 = vxpose.xlu0.b32.end [16/16] (narrow) %v379_v45, 8 }
 0x144   : > { %426 = vmatmul.f32.gmra.mxu0 %v267_v30  ;;  %522 = vmatmul.f32.gmra.mxu2 %v299_v46  ;;  %v7173_v30 = vadd.s32 56, %v7160_v24 }
 0x146   : > { %14344 = vst [vmem:[#allocation11_spill] sm:$0xff] %v7173_v30  ;;  %v7197_v43 = vshra.s32 %v7173_v30, 3  ;;  %v8214_v30 = vadd.s32 168, %v7160_v24 }
 0x147   : > { %v475_v47 = vpop.f32.mrf.mxu2 }
 0x148   : > { %605 = vxpose.xlu2.b32.end [16/16] (narrow) %v475_v47, 8  ;;  %vm13975_vm3 = vcmp.eq.s32.totalorder %v7197_v43, %v7187_v38  ;;  %vm13976_vm4 = vcmp.eq.s32.totalorder %v7197_v43, %v7189_v40  ;;  %vm13979_vm8 = vcmp.eq.s32.totalorder %v7197_v43, %v7194_v42  ;;  %14442 = vst [vmem:[#allocation70_spill] sm:$0xff] %v8214_v30 }
 0x149   : > { %v382_v48 = vpop.f32.mrf.mxu0 }
 0x14a   : > { %558 = vxpose.xlu1.b32.start [1/16] (narrow) %v382_v48, 8  ;;  %v7199_v48 = vshra.s32 %v752_v33, 3 }
 0x14c   : > { %vm13977_vm6 = vcmp.eq.s32.totalorder %v7197_v43, %v7199_v48  ;;  %vm13978_vm11 = vcmp.eq.s32.totalorder %v7184_v37, %v7199_v48 }
 0x14f   : > { %v478_v51 = vpop.f32.mrf.mxu2 }
 0x150   : > { %622 = vxpose.xlu0.b32.start [1/16] (narrow) %v478_v51, 8  ;;  %v7202_v51 = vshra.s32 %v7179_v34, 3 }
 0x151   : > { %v385_v52 = vpop.f32.mrf.mxu0 }
 0x152   : > { %559 = vxpose.xlu1.b32.cont [2/16] (narrow) %v385_v52, 8  ;;  %v7205_v52 = vadd.s32 296, %v7160_v24  ;;  %vm826_vm7 = vcmp.eq.s32.totalorder %v7202_v51, %v7187_v38  ;;  %vm827_vm9 = vcmp.eq.s32.totalorder %v7202_v51, %v7189_v40 }
 0x154   : > { %14346 = vst [vmem:[#allocation13_spill] sm:$0xff] %v7205_v52 }
 0x157   : > { %v481_v49 = vpop.f32.mrf.mxu2 }
 0x158   : > { %623 = vxpose.xlu0.b32.cont [2/16] (narrow) %v481_v49, 8  ;;  %v7208_v49 = vadd.s32 16, %v7160_v24 }
 0x159   : > { %v388_v53 = vpop.f32.mrf.mxu0 }
 0x15a   : > { %560 = vxpose.xlu1.b32.cont [3/16] (narrow) %v388_v53, 8  ;;  %14347 = vst [vmem:[#allocation14_spill] sm:$0xff] %v7208_v49 }
 0x15f   : > { %v484_v55 = vpop.f32.mrf.mxu2 }
 0x160   : > { %624 = vxpose.xlu0.b32.cont [3/16] (narrow) %v484_v55, 8 }
 0x161   : > { %v391_v56 = vpop.f32.mrf.mxu0 }
 0x162   : > { %561 = vxpose.xlu1.b32.cont [4/16] (narrow) %v391_v56, 8 }
 0x167   : > { %v487_v57 = vpop.f32.mrf.mxu2 }
 0x168   : > { %625 = vxpose.xlu0.b32.cont [4/16] (narrow) %v487_v57, 8 }
 0x169   : > { %v394_v59 = vpop.f32.mrf.mxu0  ;;  %v606_v17 = vpop.trf.xlu2 }
 0x16a   : > { %562 = vxpose.xlu1.b32.cont [5/16] (narrow) %v394_v59, 8  ;;  %v7217_v59 = vadd.s32 32, %v7160_v24 }
 0x16c   : > { %14348 = vst [vmem:[#allocation15_spill] sm:$0xff] %v7217_v59 }
 0x16e   : > { %v542_v16 = vpop.trf.xlu0 }
 0x16f   : > { %v490_v60 = vpop.f32.mrf.mxu2 }
 0x170   : > { %626 = vxpose.xlu0.b32.cont [5/16] (narrow) %v490_v60, 8  ;;  %v7224_v60 = vadd.s32 264, %v7160_v24 }
 0x171   : > { %v397_v61 = vpop.f32.mrf.mxu0 }
 0x172   : > { %563 = vxpose.xlu1.b32.cont [6/16] (narrow) %v397_v61, 8  ;;  %14349 = vst [vmem:[#allocation16_spill] sm:$0xff] %v7224_v60  ;;  %v7229_v61 = vshra.s32 %v7205_v52, 3 }
 0x174   : > { %14350 = vst [vmem:[#allocation17_spill] sm:$0xff] %v7229_v61  ;;  %vm13980_vm14 = vcmp.eq.s32.totalorder %v7229_v61, %v7189_v40  ;;  %vm13981_vm13 = vcmp.eq.s32.totalorder %v7229_v61, %v7199_v48 }
 0x177   : > { %v493_v63 = vpop.f32.mrf.mxu2 }
 0x178   : > { %627 = vxpose.xlu0.b32.cont [6/16] (narrow) %v493_v63, 8  ;;  %v7232_v63 = vadd.s32 272, %v7160_v24 }
 0x179   : > { %v400_v62 = vpop.f32.mrf.mxu0 }
 0x17a   : > { %564 = vxpose.xlu1.b32.cont [7/16] (narrow) %v400_v62, 8  ;;  %14351 = vst [vmem:[#allocation18_spill] sm:$0xff] %v7232_v63  ;;  %v7235_v62 = vadd.s32 320, %v7160_v24 }
 0x17c   : > { %14352 = vst [vmem:[#allocation19_spill] sm:$0xff] %v7235_v62 }
 0x17f   : > { %v496_v58 = vpop.f32.mrf.mxu2 }
 0x180   : > { %628 = vxpose.xlu0.b32.cont [7/16] (narrow) %v496_v58, 8  ;;  %v7242_v58 = vshra.s32 %v7208_v49, 3 }
 0x181   : > { %v403_v54 = vpop.f32.mrf.mxu0 }
 0x182   : > { %565 = vxpose.xlu1.b32.cont [8/16] (narrow) %v403_v54, 8  ;;  %v7251_v54 = vshra.s32 %v7217_v59, 3  ;;  %vm830_vm15 = vcmp.eq.s32.totalorder %v7242_v58, %v7187_v38  ;;  %vm13983_vm10 = vcmp.eq.s32.totalorder %v7242_v58, %v7199_v48 }
 0x187   : > { %v499_v0 = vpop.f32.mrf.mxu2 }
 0x188   : > { %629 = vxpose.xlu0.b32.cont [8/16] (narrow) %v499_v0, 8  ;;  %v7256_v0 = vshra.s32 %v7224_v60, 3 }
 0x189   : > { %v406_v1 = vpop.f32.mrf.mxu0 }
 0x18a   : > { %566 = vxpose.xlu1.b32.cont [9/16] (narrow) %v406_v1, 8  ;;  %14353 = vst [vmem:[#allocation20_spill] sm:$0xff] %v7256_v0  ;;  %v7259_v1 = vadd.s32 24, %v7160_v24  ;;  %vm13982_vm12 = vcmp.eq.s32.totalorder %v7256_v0, %v7187_v38 }
 0x18c   : > { %14354 = vst [vmem:[#allocation21_spill] sm:$0xff] %v7259_v1 }
 0x18f   : > { %v502_v50 = vpop.f32.mrf.mxu2 }
 0x190   : > { %630 = vxpose.xlu0.b32.cont [9/16] (narrow) %v502_v50, 8  ;;  %v7262_v50 = vadd.s32 48, %v7160_v24 }
 0x191   : > { %v409_v2 = vpop.f32.mrf.mxu0 }
 0x192   : > { %567 = vxpose.xlu1.b32.cont [10/16] (narrow) %v409_v2, 8  ;;  %14355 = vst [vmem:[#allocation22_spill] sm:$0xff] %v7262_v50  ;;  %v7269_v2 = vshra.s32 %v7232_v63, 3  ;;  %v7835_v63 = vadd.s32 120, %v7160_v24 }
 0x194   : > { %14356 = vst [vmem:[#allocation23_spill] sm:$0xff] %v7269_v2 }
 0x195   : > { %14411 = vst [vmem:[#allocation50_spill] sm:$0xff] %v7835_v63 }
 0x197   : > { %v505_v3 = vpop.f32.mrf.mxu2 }
 0x198   : > { %631 = vxpose.xlu0.b32.cont [10/16] (narrow) %v505_v3, 8  ;;  %v7272_v3 = vshra.s32 %v7235_v62, 3 }
 0x199   : > { %v412_v4 = vpop.f32.mrf.mxu0 }
 0x19a   : > { %568 = vxpose.xlu1.b32.cont [11/16] (narrow) %v412_v4, 8  ;;  %14357 = vst [vmem:[#allocation24_spill] sm:$0xff] %v7272_v3  ;;  %v7275_v4 = vadd.s32 280, %v7160_v24 }
 0x19c   : > { %14358 = vst [vmem:[#allocation25_spill] sm:$0xff] %v7275_v4 }
 0x19f   : > { %v508_v5 = vpop.f32.mrf.mxu2 }
 0x1a0   : > { %632 = vxpose.xlu0.b32.cont [11/16] (narrow) %v508_v5, 8 }
 0x1a1   : > { %v415_v6 = vpop.f32.mrf.mxu0 }
 0x1a2   : > { %569 = vxpose.xlu1.b32.cont [12/16] (narrow) %v415_v6, 8  ;;  %v7284_v6 = vadd.s32 344, %v7160_v24 }
 0x1a4   : > { %14359 = vst [vmem:[#allocation26_spill] sm:$0xff] %v7284_v6  ;;  %v7363_v26 = vshra.s32 %v7284_v6, 3 }
 0x1a6   : > { %14364 = vst [vmem:[#allocation31_spill] sm:$0xff] %v7363_v26 }
 0x1a7   : > { %v511_v7 = vpop.f32.mrf.mxu2 }
 0x1a8   : > { %633 = vxpose.xlu0.b32.cont [12/16] (narrow) %v511_v7, 8 }
 0x1a9   : > { %v418_v8 = vpop.f32.mrf.mxu0 }
 0x1aa   : > { %570 = vxpose.xlu1.b32.cont [13/16] (narrow) %v418_v8, 8 }
 0x1af   : > { %v514_v9 = vpop.f32.mrf.mxu2 }
 0x1b0   : > { %634 = vxpose.xlu0.b32.cont [13/16] (narrow) %v514_v9, 8  ;;  %v7293_v9 = vadd.s32 40, %v7160_v24 }
 0x1b1   : > { %v421_v10 = vpop.f32.mrf.mxu0 }
 0x1b2   : > { %571 = vxpose.xlu1.b32.cont [14/16] (narrow) %v421_v10, 8  ;;  %14360 = vst [vmem:[#allocation27_spill] sm:$0xff] %v7293_v9  ;;  %v7296_v10 = vadd.s32 72, %v7160_v24 }
 0x1b4   : > { %14361 = vst [vmem:[#allocation28_spill] sm:$0xff] %v7296_v10  ;;  %v7373_v33 = vshra.s32 %v7296_v10, 3 }
 0x1b6   : > { %14365 = vst [vmem:[#allocation32_spill] sm:$0xff] %v7373_v33 }
 0x1b7   : > { %v517_v11 = vpop.f32.mrf.mxu2 }
 0x1b8   : > { %635 = vxpose.xlu0.b32.cont [14/16] (narrow) %v517_v11, 8 }
 0x1b9   : > { %v424_v12 = vpop.f32.mrf.mxu0 }
 0x1ba   : > { %572 = vxpose.xlu1.b32.cont [15/16] (narrow) %v424_v12, 8 }
 0x1bf   : > { %v520_v13 = vpop.f32.mrf.mxu2 }
 0x1c0   : > { %636 = vxpose.xlu0.b32.cont [15/16] (narrow) %v520_v13, 8  ;;  %v7305_v13 = vshra.s32 %v7259_v1, 3 }
 0x1c1   : > { %v427_v14 = vpop.f32.mrf.mxu0 }
 0x1c2   : > { %573 = vxpose.xlu1.b32.end [16/16] (narrow) %v427_v14, 8  ;;  %v7308_v14 = vshra.s32 %v7262_v50, 3 }
 0x1c7   : > { %v523_v15 = vpop.f32.mrf.mxu2 }
 0x1c8   : > { %637 = vxpose.xlu0.b32.end [16/16] (narrow) %v523_v15, 8  ;;  %v7311_v15 = vadd.s32 288, %v7160_v24 }
 0x1ca   : > { %14362 = vst [vmem:[#allocation29_spill] sm:$0xff] %v7311_v15 }
 0x1ee   : > { %v574_v19 = vpop.trf.xlu1 }
 0x1ef   : > { %v654_v20 = vmax.f32 %v542_v16, %v574_v19 }
 0x1f4   : > { %v638_v18 = vpop.trf.xlu0 }
 0x1f5   : > { %v655_v21 = vmax.f32 %v606_v17, %v638_v18 }
 0x1f7   : > { %v656_v22 = vmax.f32 %v654_v20, %v655_v21  ;;  %v7338_v20 = vshra.s32 %v7275_v4, 3 }
 0x1f9   : > { %14363 = vst [vmem:[#allocation30_spill] sm:$0xff] %v7338_v20 }
 0x222   : > { %657 = vmax.xlane.f32.xlu1 %v656_v22 }
 0x295   : > { %v658_v39 = vpop.xlane.xlu1 %657 }
 0x296   : > { %v659_v44 = vsub.f32 %v542_v16, %v658_v39  ;;  %v660_v45 = vsub.f32 %v574_v19, %v658_v39  ;;  %v661_v46 = vsub.f32 %v606_v17, %v658_v39  ;;  %v662_v47 = vsub.f32 %v638_v18, %v658_v39 }
 0x298   : > { %v663_v53 = vmul.f32 1.442695, %v659_v44  ;;  %v665_v55 = vmul.f32 1.442695, %v660_v45  ;;  %v667_v56 = vmul.f32 1.442695, %v661_v46 }
 0x299   : > { %v669_v57 = vmul.f32 1.442695, %v662_v47  ;;  %v7396_v44 = vshra.s32 %v7311_v15, 3 }
 0x29a   : > { %6205 = vpow2.f32 %v663_v53  ;;  %v7407_v53 = vadd.s32 368, %v7160_v24 }
 0x29b   : > { %6207 = vpow2.f32 %v665_v55  ;;  %14366 = vst [vmem:[#allocation33_spill] sm:$0xff] %v7396_v44 }
 0x29c   : > { %6209 = vpow2.f32 %v667_v56  ;;  %14367 = vst [vmem:[#allocation34_spill] sm:$0xff] %v7407_v53 }
 0x29d   : > { %6211 = vpow2.f32 %v669_v57 }
 0x2a0   : > { %v6206_v5 = vpop.eup %6205 }
 0x2a1   : > { %v6208_v7 = vpop.eup %6207  ;;  %v7286_v8 = vmul.f32 %v6206_v5, %v672_v31  ;;  %v7420_v5 = vadd.s32 64, %v7160_v24 }
 0x2a2   : > { %v6210_v11 = vpop.eup %6209  ;;  %v7300_v12 = vmul.f32 %v6208_v7, %v673_v32  ;;  %v7370_v32 = vshra.s32 %v7293_v9, 3 }
 0x2a3   : > { %v6212_v16 = vpop.eup %6211  ;;  %v7315_v17 = vmul.f32 %v6210_v11, %v674_v35  ;;  %v1078_v18 = vsel %vm822_vm0, %v7286_v8, 0.0  ;;  %5863 = vmatmul.msk.f32.vlgmr.msra.gmra.mxu1 %vm822_vm0, %v7286_v8  ;;  %5895 = vmatmul.msk.f32.vlgmr.msra.gmra.mxu3 %vm13974_vm2, %v7286_v8  ;;  %v1106_v19 = vsel %vm13975_vm3, %v7286_v8, 0.0  ;;  %vm13985_vm0 = vcmp.eq.s32.totalorder %v7251_v54, %v7199_v48  ;;  %14369 = vst [vmem:[#allocation35_spill] sm:$0xff] %v7420_v5 }
 0x2a4   : > { %v7342_v21 = vmul.f32 %v6212_v16, %v675_v36  ;;  %v1079_v22 = vsel %vm823_vm1, %v7300_v12, 0.0  ;;  %5927 = vmatmul.msk.f32.vlgmr.msrb.gmra.mxu2 %vm823_vm1, %v7300_v12  ;;  %v1107_v27 = vsel %vm13976_vm4, %v7300_v12, 0.0  ;;  %vm13986_vm2 = vcmp.eq.s32.totalorder %v7272_v3, %v7187_v38 }
 0x2a5   : > { %v1334_v29 = vadd.f32 %v1079_v22, %v1078_v18  ;;  %v1369_v31 = vadd.f32 %v1107_v27, %v1106_v19  ;;  %v1108_v35 = vsel %vm13977_vm6, %v7315_v17, 0.0  ;;  %v1082_v36 = vsel %vm826_vm7, %v7286_v8, 0.0 }
 0x2a6   : > { %6055 = vmatmul.msk.f32.vlgmr.msrb.gmra.mxu0 %vm825_vm5, %v7342_v21  ;;  %v1083_v39 = vsel %vm827_vm9, %v7300_v12, 0.0  ;;  %vm834_vm4 = vcmp.eq.s32.totalorder %v7305_v13, %v7187_v38  ;;  %v1080_v47 = vsel %vm13978_vm11, %v7315_v17, 0.0  ;;  %vm833_vm6 = vcmp.eq.s32.totalorder %v7242_v58, %v7194_v42 }
 0x2a7   : > { %v1370_v45 = vadd.f32 %v1369_v31, %v1108_v35  ;;  %v1339_v46 = vadd.f32 %v1083_v39, %v1082_v36  ;;  %vm13987_vm3 = vcmp.eq.s32.totalorder %v7308_v14, %v7187_v38  ;;  %v1109_v55 = vsel %vm13979_vm8, %v7342_v21, 0.0 }
 0x2a8   : > { %vm14368_vm1 = vcmp.eq.s32.totalorder %v7202_v51, %v7199_v48  ;;  %v1335_v57 = vadd.f32 %v1334_v29, %v1080_v47  ;;  %v1081_v16 = vsel %vm825_vm5, %v7342_v21, 0.0  ;;  %vm14370_vm8 = vcmp.eq.s32.totalorder %v7229_v61, %v7187_v38 }
 0x2a9   : > { %v1084_v56 = vsel %vm14368_vm1, %v7315_v17, 0.0  ;;  %v1371_v7 = vadd.f32 %v1370_v45, %v1109_v55  ;;  %v1226_v18 = vsel %vm14370_vm8, %v7286_v8, 0.0  ;;  %vm14371_vm11 = vcmp.eq.s32.totalorder %v7202_v51, %v7194_v42 }
 0x2aa   : > { %v1340_v11 = vadd.f32 %v1339_v46, %v1084_v56  ;;  %v1085_v19 = vsel %vm14371_vm11, %v7342_v21, 0.0  ;;  %v1336_v22 = vadd.f32 %v1335_v57, %v1081_v16  ;;  %v1227_v27 = vsel %vm13980_vm14, %v7300_v12, 0.0 }
 0x2ab   : > { %vm13988_vm5 = vcmp.eq.s32.totalorder %v7308_v14, %v7199_v48  ;;  %vm14022_vm8 = vcmp.eq.s32.totalorder %v7363_v26, %v7187_v38  ;;  %v7447_v29 = vadd.s32 88, %v7160_v24  ;;  %1372 = vadd.xlane.f32.xlu0 %v1371_v7  ;;  %5864 = vmatmul.msk.f32.gmra.mxu1 %vm826_vm7, %v7286_v8  ;;  %v1519_v35 = vadd.f32 %v1227_v27, %v1226_v18 }
 0x2ac   : > { %v1341_v31 = vadd.f32 %v1340_v11, %v1085_v19  ;;  %v1086_v36 = vsel %vm830_vm15, %v7286_v8, 0.0  ;;  %vm14373_vm11 = vcmp.eq.s32.totalorder %v7242_v58, %v7189_v40  ;;  %vm13989_vm14 = vcmp.eq.s32.totalorder %v7269_v2, %v7187_v38  ;;  %1337 = vadd.xlane.f32.xlu2 %v1336_v22  ;;  %5896 = vmatmul.msk.f32.gmra.mxu3 %vm13982_vm12, %v7286_v8 }
 0x2ad   : > { %14372 = vst [vmem:[#allocation36_spill] sm:$0xff] %v7447_v29  ;;  %v1087_v39 = vsel %vm14373_vm11, %v7300_v12, 0.0  ;;  %v1228_v45 = vsel %vm13981_vm13, %v7315_v17, 0.0  ;;  %vm14374_vm11 = vcmp.eq.s32.totalorder %v7251_v54, %v7187_v38  ;;  %vm842_vm7 = vcmp.eq.s32.totalorder %v7370_v32, %v7187_v38  ;;  %5928 = vmatmul.msk.f32.gmra.mxu2 %vm827_vm9, %v7300_v12 }
 0x2ae   : > { %v1344_v46 = vadd.f32 %v1087_v39, %v1086_v36  ;;  %v1094_v47 = vsel %vm14374_vm11, %v7286_v8, 0.0  ;;  %v7484_v55 = vadd.s32 392, %v7160_v24  ;;  %1342 = vadd.xlane.f32.xlu1 %v1341_v31  ;;  %v1520_v56 = vadd.f32 %v1519_v35, %v1228_v45 }
 0x2af   : > { %vm14376_vm11 = vcmp.eq.s32.totalorder %v7251_v54, %v7189_v40  ;;  %vm837_vm13 = vcmp.eq.s32.totalorder %v7305_v13, %v7194_v42  ;;  %v7501_v7 = vshra.s32 %v7407_v53, 3  ;;  %vm14378_vm9 = vcmp.eq.s32.totalorder %v7202_v51, %v7194_v42 }
 0x2b0   : > { %14375 = vst [vmem:[#allocation37_spill] sm:$0xff] %v7484_v55  ;;  %v1095_v57 = vsel %vm14376_vm11, %v7300_v12, 0.0  ;;  %6056 = vmatmul.msk.f32.gmra.mxu0 %vm14378_vm9, %v7342_v21  ;;  %v1088_v11 = vsel %vm13983_vm10, %v7315_v17, 0.0  ;;  %vm13995_vm11 = vcmp.eq.s32.totalorder %v7363_v26, %v7199_v48  ;;  %vm14000_vm1 = vcmp.eq.s32.totalorder %v7370_v32, %v7199_v48 }
 0x2b1   : > { %14377 = vst [vmem:[#allocation38_spill] sm:$0xff] %v7501_v7  ;;  %v1354_v16 = vadd.f32 %v1095_v57, %v1094_v47  ;;  %v7518_v18 = vshra.s32 %v7420_v5, 3  ;;  %v7521_v19 = vshra.s32 %v7447_v29, 3  ;;  %v1345_v22 = vadd.f32 %v1344_v46, %v1088_v11 }
 0x2b2   : > { %v1096_v27 = vsel %vm13985_vm0, %v7315_v17, 0.0  ;;  %v1238_v31 = vsel %vm13986_vm2, %v7286_v8, 0.0  ;;  %vm14381_vm9 = vcmp.eq.s32.totalorder %v7272_v3, %v7189_v40  ;;  %vm14382_vm10 = vcmp.eq.s32.totalorder %v7229_v61, %v7194_v42 }
 0x2b3   : > { %14379 = vst [vmem:[#allocation39_spill] sm:$0xff] %v7518_v18  ;;  %v1239_v35 = vsel %vm14381_vm9, %v7300_v12, 0.0  ;;  %v1229_v36 = vsel %vm14382_vm10, %v7342_v21, 0.0  ;;  %vm14383_vm12 = vcmp.eq.s32.totalorder %v7251_v54, %v7194_v42  ;;  %v1355_v45 = vadd.f32 %v1354_v16, %v1096_v27  ;;  %5865 = vmatmul.msk.f32.gmra.mxu1 %vm830_vm15, %v7286_v8 }
 0x2b4   : > { %14380 = vst [vmem:[#allocation40_spill] sm:$0xff] %v7521_v19  ;;  %v1097_v39 = vsel %vm14383_vm12, %v7342_v21, 0.0  ;;  %v7544_v46 = vshra.s32 %v7484_v55, 3  ;;  %v1521_v47 = vadd.f32 %v1520_v56, %v1229_v36  ;;  %v1534_v57 = vadd.f32 %v1239_v35, %v1238_v31  ;;  %5897 = vmatmul.msk.f32.gmra.mxu3 %vm13989_vm14, %v7286_v8 }
 0x2b5   : > { %v1090_v11 = vsel %vm834_vm4, %v7286_v8, 0.0  ;;  %vm14385_vm10 = vcmp.eq.s32.totalorder %v7305_v13, %v7189_v40  ;;  %vm13999_vm9 = vcmp.eq.s32.totalorder %v7363_v26, %v7194_v42  ;;  %v1089_v56 = vsel %vm833_vm6, %v7342_v21, 0.0 }
 0x2b6   : > { %14384 = vst [vmem:[#allocation41_spill] sm:$0xff] %v7544_v46  ;;  %v1091_v23 = vsel %vm14385_vm10, %v7300_v12, 0.0  ;;  %v1356_v16 = vadd.f32 %v1355_v45, %v1097_v39  ;;  %v1102_v27 = vsel %vm13987_vm3, %v7286_v8, 0.0  ;;  %v7571_v31 = vadd.s32 80, %v7160_v24  ;;  %1522 = vadd.xlane.f32.xlu0 %v1521_v47 }
 0x2b7   : > { %v1346_v35 = vadd.f32 %v1345_v22, %v1089_v56  ;;  %v1349_v36 = vadd.f32 %v1091_v23, %v1090_v11  ;;  %vm14387_vm2 = vcmp.eq.s32.totalorder %v7308_v14, %v7189_v40  ;;  %vm14011_vm3 = vcmp.eq.s32.totalorder %v7338_v20, %v7187_v38 }
 0x2b8   : > { %14386 = vst [vmem:[#allocation42_spill] sm:$0xff] %v7571_v31  ;;  %v1103_v39 = vsel %vm14387_vm2, %v7300_v12, 0.0  ;;  %vm14012_vm10 = vcmp.eq.s32.totalorder %v7501_v7, %v7187_v38  ;;  %1357 = vadd.xlane.f32.xlu2 %v1356_v16  ;;  %vm14388_vm15 = vcmp.eq.s32.totalorder %v7272_v3, %v7199_v48  ;;  %vm13996_vm2 = vcmp.eq.s32.totalorder %v7501_v7, %v7189_v40 }
 0x2b9   : > { %v1240_v23 = vsel %vm14388_vm15, %v7315_v17, 0.0  ;;  %v1364_v22 = vadd.f32 %v1103_v39, %v1102_v27  ;;  %vm13997_vm0 = vcmp.eq.s32.totalorder %v7501_v7, %v7199_v48  ;;  %1347 = vadd.xlane.f32.xlu1 %v1346_v35  ;;  %vm14389_vm12 = vcmp.eq.s32.totalorder %v7242_v58, %v7189_v40  ;;  %6057 = vmatmul.msk.f32.gmra.mxu0 %vm833_vm6, %v7342_v21 }
 0x2ba   : > { %5929 = vmatmul.msk.f32.gmra.mxu2 %vm14389_vm12, %v7300_v12  ;;  %v1535_v45 = vadd.f32 %v1534_v57, %v1240_v23  ;;  %v1104_v47 = vsel %vm13988_vm5, %v7315_v17, 0.0  ;;  %v1250_v11 = vsel %vm14022_vm8, %v7286_v8, 0.0  ;;  %vm14390_vm15 = vcmp.eq.s32.totalorder %v7363_v26, %v7189_v40 }
 0x2bb   : > { %v1251_v56 = vsel %vm14390_vm15, %v7300_v12, 0.0  ;;  %vm14391_vm12 = vcmp.eq.s32.totalorder %v7272_v3, %v7194_v42  ;;  %vm14392_vm5 = vcmp.eq.s32.totalorder %v7305_v13, %v7199_v48  ;;  %v1365_v27 = vadd.f32 %v1364_v22, %v1104_v47  ;;  %5866 = vmatmul.msk.f32.gmra.mxu1 %vm834_vm4, %v7286_v8 }
 0x2bc   : > { %v1241_v57 = vsel %vm14391_vm12, %v7342_v21, 0.0  ;;  %v1092_v16 = vsel %vm14392_vm5, %v7315_v17, 0.0  ;;  %vm854_vm14 = vcmp.eq.s32.totalorder %v7518_v18, %v7187_v38  ;;  %v1549_v39 = vadd.f32 %v1251_v56, %v1250_v11  ;;  %5898 = vmatmul.msk.f32.gmra.mxu3 %vm14011_vm3, %v7286_v8 }
 0x2bd   : > { %v1350_v35 = vadd.f32 %v1349_v36, %v1092_v16  ;;  %v1098_v23 = vsel %vm842_vm7, %v7286_v8, 0.0  ;;  %vm14393_vm6 = vcmp.eq.s32.totalorder %v7370_v32, %v7189_v40  ;;  %v1093_v22 = vsel %vm837_vm13, %v7342_v21, 0.0 }
 0x2be   : > { %v1099_v53 = vsel %vm14393_vm6, %v7300_v12, 0.0  ;;  %vm14394_vm5 = vcmp.eq.s32.totalorder %v7308_v14, %v7194_v42  ;;  %vm14395_vm15 = vcmp.eq.s32.totalorder %v7373_v33, %v7187_v38  ;;  %v1536_v56 = vadd.f32 %v1535_v45, %v1241_v57 }
 0x2bf   : > { %v1105_v36 = vsel %vm14394_vm5, %v7342_v21, 0.0  ;;  %v1359_v47 = vadd.f32 %v1099_v53, %v1098_v23  ;;  %v1114_v11 = vsel %vm14395_vm15, %v7286_v8, 0.0  ;;  %v1252_v16 = vsel %vm13995_vm11, %v7315_v17, 0.0 }
 0x2c0   : > { %v1100_v6 = vsel %vm14000_vm1, %v7315_v17, 0.0  ;;  %vm14396_vm12 = vcmp.eq.s32.totalorder %v7373_v33, %v7189_v40  ;;  %v1366_v23 = vadd.f32 %v1365_v27, %v1105_v36  ;;  %v1550_v62 = vadd.f32 %v1549_v39, %v1252_v16  ;;  %1537 = vadd.xlane.f32.xlu0 %v1536_v56 }
 0x2c1   : > { %v1115_v53 = vsel %vm14396_vm12, %v7300_v12, 0.0  ;;  %v1360_v52 = vadd.f32 %v1359_v47, %v1100_v6  ;;  %v1351_v45 = vadd.f32 %v1350_v35, %v1093_v22  ;;  %vm14005_vm6 = vcmp.eq.s32.totalorder %v7396_v44, %v7187_v38  ;;  %6058 = vmatmul.msk.f32.gmra.mxu0 %vm837_vm13, %v7342_v21 }
 0x2c2   : > { %v1379_v15 = vadd.f32 %v1115_v53, %v1114_v11  ;;  %v1262_v57 = vsel %vm14012_vm10, %v7286_v8, 0.0  ;;  %v1263_v6 = vsel %vm13996_vm2, %v7300_v12, 0.0  ;;  %vm855_vm5 = vcmp.eq.s32.totalorder %v7518_v18, %v7189_v40  ;;  %1367 = vadd.xlane.f32.xlu2 %v1366_v23 }
 0x2c3   : > { %v1253_v27 = vsel %vm13999_vm9, %v7342_v21, 0.0  ;;  %vm14397_vm4 = vcmp.eq.s32.totalorder %v7370_v32, %v7194_v42  ;;  %vm14398_vm15 = vcmp.eq.s32.totalorder %v7373_v33, %v7199_v48  ;;  %vm13998_vm12 = vcmp.eq.s32.totalorder %v7501_v7, %v7194_v42  ;;  %1352 = vadd.xlane.f32.xlu1 %v1351_v45 }
 0x2c4   : > { %v1101_v35 = vsel %vm14397_vm4, %v7342_v21, 0.0  ;;  %v1116_v39 = vsel %vm14398_vm15, %v7315_v17, 0.0  ;;  %vm14399_vm11 = vcmp.eq.s32.totalorder %v7305_v13, %v7189_v40  ;;  %vm14400_vm2 = vcmp.eq.s32.totalorder %v7373_v33, %v7194_v42  ;;  %5899 = vmatmul.msk.f32.gmra.mxu3 %vm14005_vm6, %v7286_v8 }
 0x2c5   : > { %5930 = vmatmul.msk.f32.gmra.mxu2 %vm14399_vm11, %v7300_v12  ;;  %v1117_v22 = vsel %vm14400_vm2, %v7342_v21, 0.0  ;;  %v1380_v36 = vadd.f32 %v1379_v15, %v1116_v39  ;;  %v1564_v47 = vadd.f32 %v1263_v6, %v1262_v57  ;;  %v1110_v11 = vsel %vm854_vm14, %v7286_v8, 0.0 }
 0x2c6   : > { %v1551_v56 = vadd.f32 %v1550_v62, %v1253_v27  ;;  %v1361_v16 = vadd.f32 %v1360_v52, %v1101_v35  ;;  %vm14001_vm11 = vcmp.eq.s32.totalorder %v7518_v18, %v7199_v48  ;;  %v1111_v15 = vsel %vm855_vm5, %v7300_v12, 0.0 }
 0x2c7   : > { %v1264_v53 = vsel %vm13997_vm0, %v7315_v17, 0.0  ;;  %v1374_v23 = vadd.f32 %v1111_v15, %v1110_v11  ;;  %vm866_vm2 = vcmp.eq.s32.totalorder %v7521_v19, %v7187_v38  ;;  %vm867_vm13 = vcmp.eq.s32.totalorder %v7521_v19, %v7189_v40 }
 0x2c8   : > { %v1265_v52 = vsel %vm13998_vm12, %v7342_v21, 0.0  ;;  %v1565_v62 = vadd.f32 %v1564_v47, %v1264_v53  ;;  %v1122_v45 = vsel %vm866_vm2, %v7286_v8, 0.0  ;;  %v1123_v57 = vsel %vm867_vm13, %v7300_v12, 0.0  ;;  %1552 = vadd.xlane.f32.xlu0 %v1551_v56 }
 0x2c9   : > { %v1381_v6 = vadd.f32 %v1380_v36, %v1117_v22  ;;  %vm857_vm4 = vcmp.eq.s32.totalorder %v7518_v18, %v7194_v42  ;;  %v1112_v27 = vsel %vm14001_vm11, %v7315_v17, 0.0  ;;  %vm14004_vm15 = vcmp.eq.s32.totalorder %v7521_v19, %v7199_v48 }
 0x2ca   : > { %v1389_v35 = vadd.f32 %v1123_v57, %v1122_v45  ;;  %vm14009_vm0 = vcmp.eq.s32.totalorder %v7544_v46, %v7187_v38  ;;  %vm14002_vm12 = vcmp.eq.s32.totalorder %v7544_v46, %v7189_v40  ;;  %vm14003_vm9 = vcmp.eq.s32.totalorder %v7544_v46, %v7199_v48 }
 0x2cb   : > { %vm14401_vm1 = vcmp.eq.s32.totalorder %v7251_v54, %v7187_v38  ;;  %v1375_v39 = vadd.f32 %v1374_v23, %v1112_v27  ;;  %vm14023_vm11 = vcmp.eq.s32.totalorder %v7521_v19, %v7194_v42  ;;  %v1274_v22 = vsel %vm14009_vm0, %v7286_v8, 0.0  ;;  %1382 = vadd.xlane.f32.xlu2 %v1381_v6  ;;  %1362 = vadd.xlane.f32.xlu1 %v1361_v16 }
 0x2cc   : > { %5867 = vmatmul.msk.f32.gmra.mxu1 %vm14401_vm1, %v7286_v8  ;;  %v1275_v36 = vsel %vm14002_vm12, %v7300_v12, 0.0  ;;  %v1566_v47 = vadd.f32 %v1565_v62, %v1265_v52  ;;  %v1113_v11 = vsel %vm857_vm4, %v7342_v21, 0.0  ;;  %vm14008_vm1 = vcmp.eq.s32.totalorder %v7544_v46, %v7194_v42 }
 0x2cd   : > { %v1579_v56 = vadd.f32 %v1275_v36, %v1274_v22  ;;  %vm14402_vm12 = vcmp.eq.s32.totalorder %v7251_v54, %v7189_v40  ;;  %v1124_v15 = vsel %vm14004_vm15, %v7315_v17, 0.0  ;;  %v1276_v53 = vsel %vm14003_vm9, %v7315_v17, 0.0 }
 0x2ce   : > { %5931 = vmatmul.msk.f32.gmra.mxu2 %vm14402_vm12, %v7300_v12  ;;  %v7786_v23 = vshra.s32 %v7571_v31, 3  ;;  %v7789_v16 = vadd.s32 104, %v7160_v24  ;;  %vm14405_vm12 = vcmp.eq.s32.totalorder %v7251_v54, %v7194_v42  ;;  %v1125_v52 = vsel %vm14023_vm11, %v7342_v21, 0.0 }
 0x2cf   : > { %6059 = vmatmul.msk.f32.gmra.mxu0 %vm14405_vm12, %v7342_v21  ;;  %v1390_v62 = vadd.f32 %v1389_v35, %v1124_v15  ;;  %v1580_v45 = vadd.f32 %v1579_v56, %v1276_v53  ;;  %v7800_v57 = vadd.s32 416, %v7160_v24  ;;  %v1376_v6 = vadd.f32 %v1375_v39, %v1113_v11 }
 0x2d0   : > { %14403 = vst [vmem:[#allocation43_spill] sm:$0xff] %v7786_v23  ;;  %v1277_v27 = vsel %vm14008_vm1, %v7342_v21, 0.0  ;;  %vm862_vm9 = vcmp.eq.s32.totalorder %v7786_v23, %v7187_v38  ;;  %vm863_vm12 = vcmp.eq.s32.totalorder %v7786_v23, %v7189_v40  ;;  %vm14010_vm15 = vcmp.eq.s32.totalorder %v7786_v23, %v7199_v48  ;;  %1567 = vadd.xlane.f32.xlu0 %v1566_v47 }
 0x2d1   : > { %14404 = vst [vmem:[#allocation44_spill] sm:$0xff] %v7789_v16  ;;  %vm865_vm6 = vcmp.eq.s32.totalorder %v7786_v23, %v7194_v42  ;;  %v1118_v35 = vsel %vm862_vm9, %v7286_v8, 0.0  ;;  %v1119_v39 = vsel %vm863_vm12, %v7300_v12, 0.0  ;;  %v7823_v36 = vshra.s32 %v7789_v16, 3 }
 0x2d2   : > { %14406 = vst [vmem:[#allocation45_spill] sm:$0xff] %v7800_v57  ;;  %v1384_v22 = vadd.f32 %v1119_v39, %v1118_v35  ;;  %v7826_v11 = vadd.s32 304, %v7160_v24  ;;  %v7829_v56 = vadd.s32 96, %v7160_v24  ;;  %v1391_v15 = vadd.f32 %v1390_v62, %v1125_v52 }
 0x2d3   : > { %14407 = vst [vmem:[#allocation46_spill] sm:$0xff] %v7823_v36  ;;  %v1581_v53 = vadd.f32 %v1580_v45, %v1277_v27  ;;  %v7832_v4 = vshra.s32 %v7800_v57, 3  ;;  %v1120_v35 = vsel %vm14010_vm15, %v7315_v17, 0.0  ;;  %v1121_v52 = vsel %vm865_vm6, %v7342_v21, 0.0  ;;  %1377 = vadd.xlane.f32.xlu1 %v1376_v6 }
 0x2d4   : > { %14408 = vst [vmem:[#allocation47_spill] sm:$0xff] %v7826_v11  ;;  %5868 = vmatmul.msk.f32.gmra.mxu1 %vm842_vm7, %v7286_v8  ;;  %vm14014_vm1 = vcmp.eq.s32.totalorder %v7823_v36, %v7187_v38  ;;  %vm14013_vm0 = vcmp.eq.s32.totalorder %v7823_v36, %v7189_v40  ;;  %1392 = vadd.xlane.f32.xlu2 %v1391_v15  ;;  %v7874_v39 = vshra.s32 %v7826_v11, 3  ;;  %v7892_v15 = vshra.s32 %v7835_v63, 3 }
 0x2d5   : > { %14409 = vst [vmem:[#allocation48_spill] sm:$0xff] %v7829_v56  ;;  %vm14412_vm7 = vcmp.eq.s32.totalorder %v7229_v61, %v7187_v38  ;;  %v1385_v47 = vadd.f32 %v1384_v22, %v1120_v35  ;;  %vm14018_vm15 = vcmp.eq.s32.totalorder %v7823_v36, %v7199_v48  ;;  %v1130_v62 = vsel %vm14014_vm1, %v7286_v8, 0.0 }
 0x2d6   : > { %14410 = vst [vmem:[#allocation49_spill] sm:$0xff] %v7832_v4  ;;  %5900 = vmatmul.msk.f32.gmra.mxu3 %vm14412_vm7, %v7286_v8  ;;  %v1131_v45 = vsel %vm14013_vm0, %v7300_v12, 0.0  ;;  %vm14413_vm3 = vcmp.eq.s32.totalorder %v7370_v32, %v7189_v40  ;;  %vm14020_vm7 = vcmp.eq.s32.totalorder %v7823_v36, %v7194_v42  ;;  %v7877_v22 = vshra.s32 %v7829_v56, 3 }
 0x2d7   : > { %5932 = vmatmul.msk.f32.gmra.mxu2 %vm14413_vm3, %v7300_v12  ;;  %v1399_v27 = vadd.f32 %v1131_v45, %v1130_v62  ;;  %14414 = vst [vmem:[#allocation51_spill] sm:$0xff] %v7874_v39  ;;  %vm14416_vm10 = vcmp.eq.s32.totalorder %v7370_v32, %v7194_v42  ;;  %v1132_v6 = vsel %vm14018_vm15, %v7315_v17, 0.0  ;;  %vm14019_vm3 = vcmp.eq.s32.totalorder %v7832_v4, %v7187_v38 }
 0x2d8   : > { %14415 = vst [vmem:[#allocation52_spill] sm:$0xff] %v7877_v22  ;;  %6060 = vmatmul.msk.f32.gmra.mxu0 %vm14416_vm10, %v7342_v21  ;;  %vm14021_vm0 = vcmp.eq.s32.totalorder %v7832_v4, %v7189_v40  ;;  %vm14024_vm1 = vcmp.eq.s32.totalorder %v7832_v4, %v7199_v48  ;;  %v7897_v62 = vadd.s32 312, %v7160_v24  ;;  %v7900_v45 = vadd.s32 440, %v7160_v24  ;;  %1582 = vadd.xlane.f32.xlu0 %v1581_v53 }
 0x2d9   : > { %14417 = vst [vmem:[#allocation53_spill] sm:$0xff] %v7892_v15  ;;  %v1400_v35 = vadd.f32 %v1399_v27, %v1132_v6  ;;  %v1386_v57 = vadd.f32 %v1385_v47, %v1121_v52  ;;  %v1133_v11 = vsel %vm14020_vm7, %v7342_v21, 0.0  ;;  %v1286_v27 = vsel %vm14019_vm3, %v7286_v8, 0.0 }
 0x2da   : > { %14418 = vst [vmem:[#allocation54_spill] sm:$0xff] %v7897_v62  ;;  %v1287_v6 = vsel %vm14021_vm0, %v7300_v12, 0.0  ;;  %vm14026_vm10 = vcmp.eq.s32.totalorder %v7874_v39, %v7187_v38  ;;  %vm14032_vm15 = vcmp.eq.s32.totalorder %v7832_v4, %v7194_v42  ;;  %v1288_v47 = vsel %vm14024_vm1, %v7315_v17, 0.0 }
 0x2db   : > { %14419 = vst [vmem:[#allocation55_spill] sm:$0xff] %v7900_v45  ;;  %v1401_v60 = vadd.f32 %v1400_v35, %v1133_v11  ;;  %v1594_v52 = vadd.f32 %v1287_v6, %v1286_v27  ;;  %vm14025_vm3 = vcmp.eq.s32.totalorder %v7877_v22, %v7187_v38  ;;  %vm14027_vm7 = vcmp.eq.s32.totalorder %v7877_v22, %v7189_v40 }
 0x2dc   : > { %vm14035_vm0 = vcmp.eq.s32.totalorder %v7877_v22, %v7199_v48  ;;  %vm14420_vm8 = vcmp.eq.s32.totalorder %v7308_v14, %v7187_v38  ;;  %vm873_vm11 = vcmp.eq.s32.totalorder %v7877_v22, %v7194_v42  ;;  %v1126_v35 = vsel %vm14025_vm3, %v7286_v8, 0.0  ;;  %1387 = vadd.xlane.f32.xlu1 %v1386_v57 }
 0x2dd   : > { %5869 = vmatmul.msk.f32.gmra.mxu1 %vm14420_vm8, %v7286_v8  ;;  %v1595_v11 = vadd.f32 %v1594_v52, %v1288_v47  ;;  %v1127_v27 = vsel %vm14027_vm7, %v7300_v12, 0.0  ;;  %1402 = vadd.xlane.f32.xlu2 %v1401_v60  ;;  %vm14047_vm8 = vcmp.eq.s32.totalorder %v7892_v15, %v7187_v38  ;;  %vm14037_vm1 = vcmp.eq.s32.totalorder %v7892_v15, %v7189_v40 }
 0x2de   : > { %5901 = vmatmul.msk.f32.gmra.mxu3 %vm14026_vm10, %v7286_v8  ;;  %v1394_v53 = vadd.f32 %v1127_v27, %v1126_v35  ;;  %vm14421_vm3 = vcmp.eq.s32.totalorder %v7308_v14, %v7189_v40  ;;  %v1128_v60 = vsel %vm14035_vm0, %v7315_v17, 0.0  ;;  %vm14033_vm10 = vcmp.eq.s32.totalorder %v7892_v15, %v7199_v48 }
 0x2df   : > { %5933 = vmatmul.msk.f32.gmra.mxu2 %vm14421_vm3, %v7300_v12  ;;  %vm14036_vm7 = vcmp.eq.s32.totalorder %v7892_v15, %v7194_v42  ;;  %v1138_v57 = vsel %vm14047_vm8, %v7286_v8, 0.0  ;;  %vm14422_vm3 = vcmp.eq.s32.totalorder %v7308_v14, %v7194_v42  ;;  %v1289_v6 = vsel %vm14032_vm15, %v7342_v21, 0.0 }
 0x2e0   : > { %6061 = vmatmul.msk.f32.gmra.mxu0 %vm14422_vm3, %v7342_v21  ;;  %v1395_v52 = vadd.f32 %v1394_v53, %v1128_v60  ;;  %v1139_v47 = vsel %vm14037_vm1, %v7300_v12, 0.0  ;;  %v1129_v35 = vsel %vm873_vm11, %v7342_v21, 0.0  ;;  %v7983_v28 = vshra.s32 %v7897_v62, 3 }
 0x2e1   : > { %v1409_v27 = vadd.f32 %v1139_v47, %v1138_v57  ;;  %v7986_v55 = vshra.s32 %v7900_v45, 3  ;;  %v1596_v63 = vadd.f32 %v1595_v11, %v1289_v6  ;;  %v1140_v53 = vsel %vm14033_vm10, %v7315_v17, 0.0 }
 0x2e2   : > { %14423 = vst [vmem:[#allocation56_spill] sm:$0xff] %v7983_v28  ;;  %v1141_v60 = vsel %vm14036_vm7, %v7342_v21, 0.0  ;;  %v7997_v16 = vadd.s32 112, %v7160_v24  ;;  %v1396_v57 = vadd.f32 %v1395_v52, %v1129_v35  ;;  %v8002_v11 = vadd.s32 136, %v7160_v24 }
 0x2e3   : > { %14424 = vst [vmem:[#allocation57_spill] sm:$0xff] %v7986_v55  ;;  %v1410_v47 = vadd.f32 %v1409_v27, %v1140_v53  ;;  %vm14042_vm3 = vcmp.eq.s32.totalorder %v7986_v55, %v7187_v38  ;;  %vm14039_vm15 = vcmp.eq.s32.totalorder %v7986_v55, %v7189_v40  ;;  %vm14040_vm10 = vcmp.eq.s32.totalorder %v7986_v55, %v7199_v48 }
 0x2e4   : > { %14425 = vst [vmem:[#allocation58_spill] sm:$0xff] %v7997_v16  ;;  %v8009_v6 = vadd.s32 464, %v7160_v24  ;;  %v8012_v45 = vadd.s32 128, %v7160_v24  ;;  %1597 = vadd.xlane.f32.xlu0 %v1596_v63  ;;  %vm14429_vm0 = vcmp.eq.s32.totalorder %v7197_v43, %v7187_v38  ;;  %vm14046_vm7 = vcmp.eq.s32.totalorder %v7983_v28, %v7187_v38  ;;  %1397 = vadd.xlane.f32.xlu1 %v1396_v57 }
 0x2e5   : > { %14426 = vst [vmem:[#allocation59_spill] sm:$0xff] %v8002_v11  ;;  %v1411_v52 = vadd.f32 %v1410_v47, %v1141_v60  ;;  %5870 = vmatmul.msk.f32.gmra.mxu1 %vm14429_vm0, %v7286_v8  ;;  %vm14041_vm1 = vcmp.eq.s32.totalorder %v7986_v55, %v7194_v42  ;;  %v1298_v35 = vsel %vm14042_vm3, %v7286_v8, 0.0  ;;  %v1299_v63 = vsel %vm14039_vm15, %v7300_v12, 0.0 }
 0x2e6   : > { %14427 = vst [vmem:[#allocation60_spill] sm:$0xff] %v8009_v6  ;;  %5902 = vmatmul.msk.f32.gmra.mxu3 %vm14046_vm7, %v7286_v8  ;;  %v8035_v27 = vshra.s32 %v7997_v16, 3  ;;  %v1300_v53 = vsel %vm14040_vm10, %v7315_v17, 0.0  ;;  %v1301_v60 = vsel %vm14041_vm1, %v7342_v21, 0.0  ;;  %v1609_v47 = vadd.f32 %v1299_v63, %v1298_v35 }
 0x2e7   : > { %14428 = vst [vmem:[#allocation61_spill] sm:$0xff] %v8012_v45  ;;  %1412 = vadd.xlane.f32.xlu2 %v1411_v52  ;;  %v8046_v62 = vshra.s32 %v8002_v11, 3  ;;  %vm14432_vm0 = vcmp.eq.s32.totalorder %v7197_v43, %v7189_v40  ;;  %vm14433_vm15 = vcmp.eq.s32.totalorder %v7197_v43, %v7194_v42  ;;  %v8063_v57 = vshra.s32 %v8009_v6, 3 }
 0x2e8   : > { %14430 = vst [vmem:[#allocation62_spill] sm:$0xff] %v8035_v27  ;;  %5934 = vmatmul.msk.f32.gmra.mxu2 %vm14432_vm0, %v7300_v12  ;;  %6062 = vmatmul.msk.f32.gmra.mxu0 %vm14433_vm15, %v7342_v21  ;;  %vm878_vm10 = vcmp.eq.s32.totalorder %v8035_v27, %v7187_v38  ;;  %vm14049_vm1 = vcmp.eq.s32.totalorder %v8035_v27, %v7189_v40  ;;  %v8074_v16 = vshra.s32 %v8012_v45, 3  ;;  %v8205_v5 = vadd.s32 328, %v7160_v24 }
 0x2e9   : > { %14431 = vst [vmem:[#allocation63_spill] sm:$0xff] %v8046_v62  ;;  %vm14050_vm3 = vcmp.eq.s32.totalorder %v8035_v27, %v7199_v48  ;;  %v1610_v52 = vadd.f32 %v1609_v47, %v1300_v53  ;;  %v1134_v35 = vsel %vm878_vm10, %v7286_v8, 0.0  ;;  %v1135_v63 = vsel %vm14049_vm1, %v7300_v12, 0.0 }
 0x2ea   : > { %14434 = vst [vmem:[#allocation64_spill] sm:$0xff] %v8063_v57  ;;  %vm881_vm15 = vcmp.eq.s32.totalorder %v8035_v27, %v7194_v42  ;;  %v1404_v56 = vadd.f32 %v1135_v63, %v1134_v35  ;;  %vm14051_vm0 = vcmp.eq.s32.totalorder %v8046_v62, %v7187_v38  ;;  %v8081_v53 = vadd.s32 152, %v7160_v24 }
 0x2eb   : > { %14435 = vst [vmem:[#allocation65_spill] sm:$0xff] %v8074_v16  ;;  %v1611_v47 = vadd.f32 %v1610_v52, %v1301_v60  ;;  %v1136_v6 = vsel %vm14050_vm3, %v7315_v17, 0.0  ;;  %vm14052_vm7 = vcmp.eq.s32.totalorder %v8046_v62, %v7189_v40  ;;  %vm14053_vm8 = vcmp.eq.s32.totalorder %v8046_v62, %v7199_v48 }
 0x2ec   : > { %14436 = vst [vmem:[#allocation66_spill] sm:$0xff] %v8081_v53  ;;  %v1405_v29 = vadd.f32 %v1404_v56, %v1136_v6  ;;  %vm14059_vm1 = vcmp.eq.s32.totalorder %v8046_v62, %v7194_v42  ;;  %v1146_v60 = vsel %vm14051_vm0, %v7286_v8, 0.0  ;;  %v1147_v52 = vsel %vm14052_vm7, %v7300_v12, 0.0 }
 0x2ed   : > { %1612 = vadd.xlane.f32.xlu0 %v1611_v47  ;;  %v1137_v35 = vsel %vm881_vm15, %v7342_v21, 0.0  ;;  %v1419_v56 = vadd.f32 %v1147_v52, %v1146_v60  ;;  %5871 = vmatmul.msk.f32.gmra.mxu1 %vm854_vm14, %v7286_v8  ;;  %vm14054_vm3 = vcmp.eq.s32.totalorder %v8063_v57, %v7187_v38  ;;  %vm14057_vm0 = vcmp.eq.s32.totalorder %v8063_v57, %v7189_v40 }
 0x2ee   : > { %v1406_v6 = vadd.f32 %v1405_v29, %v1137_v35  ;;  %v1148_v63 = vsel %vm14053_vm8, %v7315_v17, 0.0  ;;  %vm14437_vm7 = vcmp.eq.s32.totalorder %v7272_v3, %v7187_v38  ;;  %vm14056_vm14 = vcmp.eq.s32.totalorder %v8063_v57, %v7199_v48  ;;  %14439 = vst [vmem:[#allocation67_spill] sm:$0xff] %v8205_v5 }
 0x2ef   : > { %5903 = vmatmul.msk.f32.gmra.mxu3 %vm14437_vm7, %v7286_v8  ;;  %v1310_v47 = vsel %vm14054_vm3, %v7286_v8, 0.0  ;;  %v1149_v29 = vsel %vm14059_vm1, %v7342_v21, 0.0  ;;  %v1420_v60 = vadd.f32 %v1419_v56, %v1148_v63  ;;  %vm14058_vm8 = vcmp.eq.s32.totalorder %v8063_v57, %v7194_v42 }
 0x2f0   : > { %v1311_v52 = vsel %vm14057_vm0, %v7300_v12, 0.0  ;;  %1407 = vadd.xlane.f32.xlu1 %v1406_v6  ;;  %5935 = vmatmul.msk.f32.gmra.mxu2 %vm855_vm5, %v7300_v12  ;;  %vm886_vm7 = vcmp.eq.s32.totalorder %v8074_v16, %v7187_v38  ;;  %vm887_vm3 = vcmp.eq.s32.totalorder %v8074_v16, %v7189_v40  ;;  %v8146_v56 = vshra.s32 %v8081_v53, 3 }
 0x2f1   : > { %v1624_v35 = vadd.f32 %v1311_v52, %v1310_v47  ;;  %v1421_v63 = vadd.f32 %v1420_v60, %v1149_v29  ;;  %6063 = vmatmul.msk.f32.gmra.mxu0 %vm857_vm4, %v7342_v21  ;;  %v1312_v6 = vsel %vm14056_vm14, %v7315_v17, 0.0  ;;  %vm14060_vm5 = vcmp.eq.s32.totalorder %v8074_v16, %v7199_v48 }
 0x2f2   : > { %v1142_v47 = vsel %vm886_vm7, %v7286_v8, 0.0  ;;  %v1313_v29 = vsel %vm14058_vm8, %v7342_v21, 0.0  ;;  %vm14072_vm4 = vcmp.eq.s32.totalorder %v8074_v16, %v7194_v42  ;;  %v1143_v52 = vsel %vm887_vm3, %v7300_v12, 0.0 }
 0x2f3   : > { %v1625_v60 = vadd.f32 %v1624_v35, %v1312_v6  ;;  %1422 = vadd.xlane.f32.xlu2 %v1421_v63  ;;  %v1414_v31 = vadd.f32 %v1143_v52, %v1142_v47  ;;  %vm14069_vm14 = vcmp.eq.s32.totalorder %v8146_v56, %v7187_v38  ;;  %vm14068_vm0 = vcmp.eq.s32.totalorder %v8146_v56, %v7189_v40 }
 0x2f4   : > { %vm14066_vm8 = vcmp.eq.s32.totalorder %v8146_v56, %v7199_v48  ;;  %v1144_v6 = vsel %vm14060_vm5, %v7315_v17, 0.0  ;;  %v1154_v63 = vsel %vm14069_vm14, %v7286_v8, 0.0  ;;  %v1155_v47 = vsel %vm14068_vm0, %v7300_v12, 0.0 }
 0x2f5   : > { %v1626_v35 = vadd.f32 %v1625_v60, %v1313_v29  ;;  %v1145_v29 = vsel %vm14072_vm4, %v7342_v21, 0.0  ;;  %v1415_v60 = vadd.f32 %v1414_v31, %v1144_v6  ;;  %vm14067_vm1 = vcmp.eq.s32.totalorder %v8146_v56, %v7194_v42 }
 0x2f6   : > { %v1429_v52 = vadd.f32 %v1155_v47, %v1154_v63  ;;  %vm14438_vm5 = vcmp.eq.s32.totalorder %v7373_v33, %v7187_v38  ;;  %v1156_v10 = vsel %vm14066_vm8, %v7315_v17, 0.0  ;;  %v8208_v31 = vadd.s32 488, %v7160_v24 }
 0x2f7   : > { %5872 = vmatmul.msk.f32.gmra.mxu1 %vm14438_vm5, %v7286_v8  ;;  %1627 = vadd.xlane.f32.xlu0 %v1626_v35  ;;  %v8211_v6 = vadd.s32 144, %v7160_v24  ;;  %v1416_v63 = vadd.f32 %v1415_v60, %v1145_v29  ;;  %v1157_v35 = vsel %vm14067_vm1, %v7342_v21, 0.0  ;;  %v8221_v50 = vshra.s32 %v8205_v5, 3 }
 0x2f8   : > { %14440 = vst [vmem:[#allocation68_spill] sm:$0xff] %v8208_v31  ;;  %v1430_v47 = vadd.f32 %v1429_v52, %v1156_v10  ;;  %vm14444_vm5 = vcmp.eq.s32.totalorder %v7373_v33, %v7189_v40  ;;  %v8228_v9 = vshra.s32 %v8208_v31, 3  ;;  %v8231_v10 = vadd.s32 336, %v7160_v24 }
 0x2f9   : > { %14441 = vst [vmem:[#allocation69_spill] sm:$0xff] %v8211_v6  ;;  %5936 = vmatmul.msk.f32.gmra.mxu2 %vm14444_vm5, %v7300_v12  ;;  %1417 = vadd.xlane.f32.xlu1 %v1416_v63  ;;  %vm14447_vm8 = vcmp.eq.s32.totalorder %v7373_v33, %v7194_v42  ;;  %v8238_v60 = vshra.s32 %v8211_v6, 3  ;;  %v8241_v52 = vadd.s32 160, %v7160_v24  ;;  %vm14071_vm5 = vcmp.eq.s32.totalorder %v8221_v50, %v7187_v38 }
 0x2fa   : > { %14443 = vst [vmem:[#allocation71_spill] sm:$0xff] %v8221_v50  ;;  %v1431_v29 = vadd.f32 %v1430_v47, %v1157_v35  ;;  %6064 = vmatmul.msk.f32.gmra.mxu0 %vm14447_vm8, %v7342_v21  ;;  %vm14081_vm1 = vcmp.eq.s32.totalorder %v8228_v9, %v7187_v38  ;;  %vm14075_vm0 = vcmp.eq.s32.totalorder %v8228_v9, %v7189_v40  ;;  %v8256_v63 = vshra.s32 %v8214_v30, 3 }
 0x2fb   : > { %14445 = vst [vmem:[#allocation72_spill] sm:$0xff] %v8228_v9  ;;  %5904 = vmatmul.msk.f32.gmra.mxu3 %vm14071_vm5, %v7286_v8  ;;  %vm14080_vm8 = vcmp.eq.s32.totalorder %v8228_v9, %v7199_v48  ;;  %vm14083_vm14 = vcmp.eq.s32.totalorder %v8228_v9, %v7194_v42  ;;  %v1322_v47 = vsel %vm14081_vm1, %v7286_v8, 0.0  ;;  %v1323_v35 = vsel %vm14075_vm0, %v7300_v12, 0.0 }
 0x2fc   : > { %14446 = vst [vmem:[#allocation73_spill] sm:$0xff] %v8231_v10  ;;  %1432 = vadd.xlane.f32.xlu2 %v1431_v29  ;;  %v8269_v29 = vshra.s32 %v8231_v10, 3  ;;  %v1639_v31 = vadd.f32 %v1323_v35, %v1322_v47  ;;  %vm894_vm5 = vcmp.eq.s32.totalorder %v8238_v60, %v7187_v38  ;;  %vm14082_vm4 = vcmp.eq.s32.totalorder %v8238_v60, %v7189_v40 }
 0x2fd   : > { %14448 = vst [vmem:[#allocation74_spill] sm:$0xff] %v8238_v60  ;;  %v8280_v5 = vshra.s32 %v8241_v52, 3  ;;  %v1324_v10 = vsel %vm14080_vm8, %v7315_v17, 0.0  ;;  %vm14084_vm0 = vcmp.eq.s32.totalorder %v8238_v60, %v7199_v48  ;;  %v1150_v47 = vsel %vm894_vm5, %v7286_v8, 0.0 }
 0x2fe   : > { %14449 = vst [vmem:[#allocation75_spill] sm:$0xff] %v8241_v52  ;;  %v1151_v35 = vsel %vm14082_vm4, %v7300_v12, 0.0  ;;  %v1325_v59 = vsel %vm14083_vm14, %v7342_v21, 0.0  ;;  %v1640_v1 = vadd.f32 %v1639_v31, %v1324_v10  ;;  %v1152_v34 = vsel %vm14084_vm0, %v7315_v17, 0.0 }
 0x2ff   : > { %14450 = vst [vmem:[#allocation76_spill] sm:$0xff] %v8256_v63  ;;  %5873 = vmatmul.msk.f32.gmra.mxu1 %vm862_vm9, %v7286_v8  ;;  %vm897_vm9 = vcmp.eq.s32.totalorder %v8238_v60, %v7194_v42  ;;  %v1424_v49 = vadd.f32 %v1151_v35, %v1150_v47  ;;  %vm14092_vm8 = vcmp.eq.s32.totalorder %v8256_v63, %v7187_v38  ;;  %v8379_v52 = vadd.s32 176, %v7160_v24 }
 0x300   : > { %14451 = vst [vmem:[#allocation77_spill] sm:$0xff] %v8269_v29  ;;  %vm14085_vm1 = vcmp.eq.s32.totalorder %v8256_v63, %v7189_v40  ;;  %vm14086_vm4 = vcmp.eq.s32.totalorder %v8256_v63, %v7199_v48  ;;  %v1641_v31 = vadd.f32 %v1640_v1, %v1325_v59  ;;  %v1162_v47 = vsel %vm14092_vm8, %v7286_v8, 0.0 }
 0x301   : > { %14452 = vst [vmem:[#allocation78_spill] sm:$0xff] %v8280_v5  ;;  %5937 = vmatmul.msk.f32.gmra.mxu2 %vm863_vm12, %v7300_v12  ;;  %v1425_v10 = vadd.f32 %v1424_v49, %v1152_v34  ;;  %v1163_v35 = vsel %vm14085_vm1, %v7300_v12, 0.0  ;;  %v1153_v34 = vsel %vm897_vm9, %v7342_v21, 0.0  ;;  %vm14091_vm12 = vcmp.eq.s32.totalorder %v8256_v63, %v7194_v42 }
 0x302   : > { %6065 = vmatmul.msk.f32.gmra.mxu0 %vm865_vm6, %v7342_v21  ;;  %v1439_v49 = vadd.f32 %v1163_v35, %v1162_v47  ;;  %vm990_vm14 = vcmp.eq.s32.totalorder %v8269_v29, %v7187_v38  ;;  %1642 = vadd.xlane.f32.xlu0 %v1641_v31  ;;  %v1164_v1 = vsel %vm14086_vm4, %v7315_v17, 0.0  ;;  %vm902_vm6 = vcmp.eq.s32.totalorder %v8280_v5, %v7187_v38 }
 0x303   : > { %v1426_v59 = vadd.f32 %v1425_v10, %v1153_v34  ;;  %5905 = vmatmul.msk.f32.gmra.mxu3 %vm990_vm14, %v7286_v8  ;;  %v8347_v47 = vadd.s32 184, %v7160_v24  ;;  %vm14093_vm0 = vcmp.eq.s32.totalorder %v8280_v5, %v7189_v40  ;;  %vm14090_vm1 = vcmp.eq.s32.totalorder %v8280_v5, %v7199_v48  ;;  %14455 = vst [vmem:[#allocation81_spill] sm:$0xff] %v8379_v52 }
 0x304   : > { %v1440_v35 = vadd.f32 %v1439_v49, %v1164_v1  ;;  %v1165_v31 = vsel %vm14091_vm12, %v7342_v21, 0.0  ;;  %v1158_v10 = vsel %vm902_vm6, %v7286_v8, 0.0  ;;  %v1159_v34 = vsel %vm14093_vm0, %v7300_v12, 0.0 }
 0x305   : > { %14453 = vst [vmem:[#allocation79_spill] sm:$0xff] %v8347_v47  ;;  %1427 = vadd.xlane.f32.xlu1 %v1426_v59  ;;  %vm905_vm4 = vcmp.eq.s32.totalorder %v8280_v5, %v7194_v42  ;;  %v1434_v59 = vadd.f32 %v1159_v34, %v1158_v10  ;;  %v1160_v1 = vsel %vm14090_vm1, %v7315_v17, 0.0  ;;  %v8376_v30 = vshra.s32 %v8347_v47, 3 }
 0x306   : > { %v1441_v49 = vadd.f32 %v1440_v35, %v1165_v31  ;;  %v8382_v53 = vadd.s32 200, %v7160_v24  ;;  %v8389_v31 = vadd.s32 352, %v7160_v24  ;;  %vm14458_vm0 = vcmp.eq.s32.totalorder %v7521_v19, %v7194_v42 }
 0x307   : > { %5874 = vmatmul.msk.f32.gmra.mxu1 %vm866_vm2, %v7286_v8  ;;  %14454 = vst [vmem:[#allocation80_spill] sm:$0xff] %v8376_v30  ;;  %v1435_v35 = vadd.f32 %v1434_v59, %v1160_v1  ;;  %vm14104_vm2 = vcmp.eq.s32.totalorder %v8376_v30, %v7187_v38  ;;  %vm14102_vm1 = vcmp.eq.s32.totalorder %v8376_v30, %v7189_v40  ;;  %v1161_v10 = vsel %vm905_vm4, %v7342_v21, 0.0 }
 0x308   : > { %14456 = vst [vmem:[#allocation82_spill] sm:$0xff] %v8382_v53  ;;  %1442 = vadd.xlane.f32.xlu2 %v1441_v49  ;;  %vm14099_vm12 = vcmp.eq.s32.totalorder %v8376_v30, %v7199_v48  ;;  %vm14100_vm8 = vcmp.eq.s32.totalorder %v8376_v30, %v7194_v42  ;;  %v1170_v34 = vsel %vm14104_vm2, %v7286_v8, 0.0  ;;  %v1171_v49 = vsel %vm14102_vm1, %v7300_v12, 0.0 }
 0x309   : > { %5938 = vmatmul.msk.f32.gmra.mxu2 %vm867_vm13, %v7300_v12  ;;  %14457 = vst [vmem:[#allocation83_spill] sm:$0xff] %v8389_v31  ;;  %v8416_v59 = vadd.s32 192, %v7160_v24  ;;  %v1436_v1 = vadd.f32 %v1435_v35, %v1161_v10  ;;  %v1449_v47 = vadd.f32 %v1171_v49, %v1170_v34  ;;  %vm14460_vm13 = vcmp.eq.s32.totalorder %v7363_v26, %v7187_v38 }
 0x30a   : > { %6066 = vmatmul.msk.f32.gmra.mxu0 %vm14458_vm0, %v7342_v21  ;;  %v8423_v6 = vshra.s32 %v8379_v52, 3  ;;  %v8426_v11 = vshra.s32 %v8382_v53, 3  ;;  %v1172_v25 = vsel %vm14099_vm12, %v7315_v17, 0.0  ;;  %v1173_v35 = vsel %vm14100_vm8, %v7342_v21, 0.0 }
 0x30b   : > { %14459 = vst [vmem:[#allocation84_spill] sm:$0xff] %v8416_v59  ;;  %5906 = vmatmul.msk.f32.gmra.mxu3 %vm14460_vm13, %v7286_v8  ;;  %v8437_v10 = vshra.s32 %v8389_v31, 3  ;;  %v8440_v34 = vadd.s32 216, %v7160_v24  ;;  %v1450_v49 = vadd.f32 %v1449_v47, %v1172_v25  ;;  %vm14463_vm1 = vcmp.eq.s32.totalorder %v7877_v22, %v7187_v38 }
 0x30c   : > { %vm14108_vm0 = vcmp.eq.s32.totalorder %v8423_v6, %v7187_v38  ;;  %vm14107_vm13 = vcmp.eq.s32.totalorder %v8423_v6, %v7189_v40  ;;  %vm14110_vm12 = vcmp.eq.s32.totalorder %v8423_v6, %v7199_v48  ;;  %vm14115_vm8 = vcmp.eq.s32.totalorder %v8423_v6, %v7194_v42 }
 0x30d   : > { %14461 = vst [vmem:[#allocation85_spill] sm:$0xff] %v8437_v10  ;;  %1437 = vadd.xlane.f32.xlu1 %v1436_v1  ;;  %v1166_v31 = vsel %vm14108_vm0, %v7286_v8, 0.0  ;;  %v1167_v25 = vsel %vm14107_vm13, %v7300_v12, 0.0  ;;  %v8463_v47 = vshra.s32 %v8416_v59, 3  ;;  %v1451_v1 = vadd.f32 %v1450_v49, %v1173_v35 }
 0x30e   : > { %14462 = vst [vmem:[#allocation86_spill] sm:$0xff] %v8440_v34  ;;  %v1444_v53 = vadd.f32 %v1167_v25, %v1166_v31  ;;  %vm14111_vm2 = vcmp.eq.s32.totalorder %v8426_v11, %v7187_v38  ;;  %v8468_v52 = vadd.s32 360, %v7160_v24  ;;  %v1168_v45 = vsel %vm14110_vm12, %v7315_v17, 0.0 }
 0x30f   : > { %5875 = vmatmul.msk.f32.gmra.mxu1 %vm14463_vm1, %v7286_v8  ;;  %14464 = vst [vmem:[#allocation87_spill] sm:$0xff] %v8463_v47  ;;  %vm14112_vm13 = vcmp.eq.s32.totalorder %v8426_v11, %v7189_v40  ;;  %vm14113_vm1 = vcmp.eq.s32.totalorder %v8426_v11, %v7199_v48  ;;  %v1178_v31 = vsel %vm14111_vm2, %v7286_v8, 0.0  ;;  %vm14466_vm0 = vcmp.eq.s32.totalorder %v7877_v22, %v7189_v40 }
 0x310   : > { %14465 = vst [vmem:[#allocation88_spill] sm:$0xff] %v8468_v52  ;;  %1452 = vadd.xlane.f32.xlu2 %v1451_v1  ;;  %v1169_v35 = vsel %vm14115_vm8, %v7342_v21, 0.0  ;;  %v1445_v49 = vadd.f32 %v1444_v53, %v1168_v45  ;;  %v1179_v25 = vsel %vm14112_vm13, %v7300_v12, 0.0  ;;  %v8499_v59 = vshra.s32 %v8440_v34, 3 }
 0x311   : > { %5939 = vmatmul.msk.f32.gmra.mxu2 %vm14466_vm0, %v7300_v12  ;;  %vm14114_vm0 = vcmp.eq.s32.totalorder %v8426_v11, %v7194_v42  ;;  %v1459_v1 = vadd.f32 %v1179_v25, %v1178_v31  ;;  %vm998_vm12 = vcmp.eq.s32.totalorder %v8437_v10, %v7187_v38  ;;  %vm14116_vm2 = vcmp.eq.s32.totalorder %v8463_v47, %v7187_v38 }
 0x312   : > { %6067 = vmatmul.msk.f32.gmra.mxu0 %vm873_vm11, %v7342_v21  ;;  %v1446_v45 = vadd.f32 %v1445_v49, %v1169_v35  ;;  %v1180_v53 = vsel %vm14113_vm1, %v7315_v17, 0.0  ;;  %vm14118_vm11 = vcmp.eq.s32.totalorder %v8463_v47, %v7189_v40  ;;  %vm14120_vm13 = vcmp.eq.s32.totalorder %v8463_v47, %v7199_v48 }
 0x313   : > { %5907 = vmatmul.msk.f32.gmra.mxu3 %vm998_vm12, %v7286_v8  ;;  %v1460_v31 = vadd.f32 %v1459_v1, %v1180_v53  ;;  %v8520_v25 = vshra.s32 %v8468_v52, 3  ;;  %v1181_v35 = vsel %vm14114_vm0, %v7342_v21, 0.0  ;;  %vm14128_vm1 = vcmp.eq.s32.totalorder %v8463_v47, %v7194_v42 }
 0x314   : > { %v1174_v49 = vsel %vm14116_vm2, %v7286_v8, 0.0  ;;  %v1175_v1 = vsel %vm14118_vm11, %v7300_v12, 0.0  ;;  %vm14127_vm0 = vcmp.eq.s32.totalorder %v8499_v59, %v7187_v38  ;;  %vm14122_vm8 = vcmp.eq.s32.totalorder %v8499_v59, %v7189_v40 }
 0x315   : > { %14467 = vst [vmem:[#allocation89_spill] sm:$0xff] %v8520_v25  ;;  %1447 = vadd.xlane.f32.xlu1 %v1446_v45  ;;  %v1176_v45 = vsel %vm14120_vm13, %v7315_v17, 0.0  ;;  %v1454_v53 = vadd.f32 %v1175_v1, %v1174_v49  ;;  %vm14468_vm2 = vcmp.eq.s32.totalorder %v7823_v36, %v7187_v38  ;;  %v1461_v52 = vadd.f32 %v1460_v31, %v1181_v35 }
 0x316   : > { %vm14125_vm11 = vcmp.eq.s32.totalorder %v8499_v59, %v7199_v48  ;;  %v1186_v49 = vsel %vm14127_vm0, %v7286_v8, 0.0  ;;  %v1187_v1 = vsel %vm14122_vm8, %v7300_v12, 0.0  ;;  %vm14126_vm13 = vcmp.eq.s32.totalorder %v8499_v59, %v7194_v42 }
 0x317   : > { %5876 = vmatmul.msk.f32.gmra.mxu1 %vm14468_vm2, %v7286_v8  ;;  %v1455_v34 = vadd.f32 %v1454_v53, %v1176_v45  ;;  %v1469_v22 = vadd.f32 %v1187_v1, %v1186_v49  ;;  %vm14469_vm2 = vcmp.eq.s32.totalorder %v7823_v36, %v7189_v40  ;;  %v1188_v31 = vsel %vm14125_vm11, %v7315_v17, 0.0 }
 0x318   : > { %1462 = vadd.xlane.f32.xlu2 %v1461_v52  ;;  %vm14470_vm8 = vcmp.eq.s32.totalorder %v7823_v36, %v7194_v42  ;;  %v8573_v35 = vadd.s32 208, %v7160_v24  ;;  %v8576_v45 = vadd.s32 232, %v7160_v24  ;;  %v1177_v52 = vsel %vm14128_vm1, %v7342_v21, 0.0 }
 0x319   : > { %5940 = vmatmul.msk.f32.gmra.mxu2 %vm14469_vm2, %v7300_v12  ;;  %v1470_v53 = vadd.f32 %v1469_v22, %v1188_v31  ;;  %vm14130_vm2 = vcmp.eq.s32.totalorder %v8520_v25, %v7187_v38  ;;  %v1456_v49 = vadd.f32 %v1455_v34, %v1177_v52  ;;  %v1189_v1 = vsel %vm14126_vm13, %v7342_v21, 0.0 }
 0x31a   : > { %6068 = vmatmul.msk.f32.gmra.mxu0 %vm14470_vm8, %v7342_v21  ;;  %14471 = vst [vmem:[#allocation90_spill] sm:$0xff] %v8573_v35  ;;  %v8593_v36 = vshra.s32 %v8573_v35, 3  ;;  %v8596_v19 = vshra.s32 %v8576_v45, 3  ;;  %v8599_v31 = vadd.s32 224, %v7160_v24  ;;  %v8608_v34 = vadd.s32 248, %v7160_v24 }
 0x31b   : > { %14472 = vst [vmem:[#allocation91_spill] sm:$0xff] %v8576_v45  ;;  %5908 = vmatmul.msk.f32.gmra.mxu3 %vm14130_vm2, %v7286_v8  ;;  %v1471_v22 = vadd.f32 %v1470_v53, %v1189_v1 }
 0x31c   : > { %14473 = vst [vmem:[#allocation92_spill] sm:$0xff] %v8599_v31  ;;  %vm14129_vm8 = vcmp.eq.s32.totalorder %v8593_v36, %v7187_v38  ;;  %vm14151_vm11 = vcmp.eq.s32.totalorder %v8593_v36, %v7189_v40  ;;  %vm14135_vm13 = vcmp.eq.s32.totalorder %v8593_v36, %v7199_v48  ;;  %vm14149_vm0 = vcmp.eq.s32.totalorder %v8593_v36, %v7194_v42 }
 0x31d   : > { %1457 = vadd.xlane.f32.xlu1 %v1456_v49  ;;  %14474 = vst [vmem:[#allocation93_spill] sm:$0xff] %v8608_v34  ;;  %v1182_v52 = vsel %vm14129_vm8, %v7286_v8, 0.0  ;;  %v1183_v53 = vsel %vm14151_vm11, %v7300_v12, 0.0  ;;  %v8625_v49 = vadd.s32 376, %v7160_v24  ;;  %vm14139_vm1 = vcmp.eq.s32.totalorder %v8596_v19, %v7187_v38 }
 0x31e   : > { %v1464_v1 = vadd.f32 %v1183_v53, %v1182_v52  ;;  %vm14138_vm8 = vcmp.eq.s32.totalorder %v8596_v19, %v7189_v40  ;;  %vm14141_vm2 = vcmp.eq.s32.totalorder %v8596_v19, %v7199_v48  ;;  %v1184_v45 = vsel %vm14135_vm13, %v7315_v17, 0.0 }
 0x31f   : > { %5877 = vmatmul.msk.f32.gmra.mxu1 %vm878_vm10, %v7286_v8  ;;  %14475 = vst [vmem:[#allocation94_spill] sm:$0xff] %v8625_v49  ;;  %v1194_v35 = vsel %vm14139_vm1, %v7286_v8, 0.0  ;;  %v1195_v52 = vsel %vm14138_vm8, %v7300_v12, 0.0  ;;  %vm14476_vm10 = vcmp.eq.s32.totalorder %v8035_v27, %v7189_v40  ;;  %v8650_v53 = vadd.s32 240, %v7160_v24 }
 0x320   : > { %1472 = vadd.xlane.f32.xlu2 %v1471_v22  ;;  %v1465_v26 = vadd.f32 %v1464_v1, %v1184_v45  ;;  %vm14146_vm13 = vcmp.eq.s32.totalorder %v8596_v19, %v7194_v42  ;;  %v1479_v23 = vadd.f32 %v1195_v52, %v1194_v35  ;;  %v8659_v33 = vshra.s32 %v8599_v31, 3 }
 0x321   : > { %5941 = vmatmul.msk.f32.gmra.mxu2 %vm14476_vm10, %v7300_v12  ;;  %14477 = vst [vmem:[#allocation95_spill] sm:$0xff] %v8650_v53  ;;  %vm14155_vm10 = vcmp.eq.s32.totalorder %v7256_v0, %v7189_v40  ;;  %v1185_v45 = vsel %vm14149_vm0, %v7342_v21, 0.0  ;;  %v1196_v35 = vsel %vm14141_vm2, %v7315_v17, 0.0  ;;  %v8672_v22 = vshra.s32 %v8608_v34, 3 }
 0x322   : > { %6069 = vmatmul.msk.f32.gmra.mxu0 %vm881_vm15, %v7342_v21  ;;  %v1466_v1 = vadd.f32 %v1465_v26, %v1185_v45  ;;  %v1480_v52 = vadd.f32 %v1479_v23, %v1196_v35  ;;  %vm14478_vm15 = vcmp.eq.s32.totalorder %v7501_v7, %v7187_v38  ;;  %vm14148_vm8 = vcmp.eq.s32.totalorder %v8659_v33, %v7187_v38 }
 0x323   : > { %5909 = vmatmul.msk.f32.gmra.mxu3 %vm14478_vm15, %v7286_v8  ;;  %vm14147_vm1 = vcmp.eq.s32.totalorder %v8659_v33, %v7189_v40  ;;  %v1197_v31 = vsel %vm14146_vm13, %v7342_v21, 0.0  ;;  %vm14150_vm2 = vcmp.eq.s32.totalorder %v8659_v33, %v7199_v48  ;;  %v1190_v26 = vsel %vm14148_vm8, %v7286_v8, 0.0 }
 0x324   : > { %v1191_v23 = vsel %vm14147_vm1, %v7300_v12, 0.0  ;;  %vm937_vm15 = vcmp.eq.s32.totalorder %v8659_v33, %v7194_v42  ;;  %v8699_v35 = vshra.s32 %v8625_v49, 3  ;;  %v8702_v34 = vshra.s32 %v8650_v53, 3 }
 0x325   : > { %1467 = vadd.xlane.f32.xlu1 %v1466_v1  ;;  %v1474_v45 = vadd.f32 %v1191_v23, %v1190_v26  ;;  %v1481_v27 = vadd.f32 %v1480_v52, %v1197_v31  ;;  %v1192_v7 = vsel %vm14150_vm2, %v7315_v17, 0.0  ;;  %vm14156_vm13 = vcmp.eq.s32.totalorder %v8672_v22, %v7187_v38 }
 0x326   : > { %14479 = vst [vmem:[#allocation96_spill] sm:$0xff] %v8699_v35  ;;  %vm14152_vm1 = vcmp.eq.s32.totalorder %v8672_v22, %v7189_v40  ;;  %vm14481_vm8 = vcmp.eq.s32.totalorder %v7892_v15, %v7187_v38  ;;  %vm14154_vm0 = vcmp.eq.s32.totalorder %v8672_v22, %v7199_v48  ;;  %v1202_v31 = vsel %vm14156_vm13, %v7286_v8, 0.0 }
 0x327   : > { %14480 = vst [vmem:[#allocation97_spill] sm:$0xff] %v8702_v34  ;;  %5878 = vmatmul.msk.f32.gmra.mxu1 %vm14481_vm8, %v7286_v8  ;;  %v1475_v1 = vadd.f32 %v1474_v45, %v1192_v7  ;;  %v1203_v52 = vsel %vm14152_vm1, %v7300_v12, 0.0  ;;  %vm14482_vm2 = vcmp.eq.s32.totalorder %v7892_v15, %v7189_v40  ;;  %vm14162_vm8 = vcmp.eq.s32.totalorder %v7192_v41, %v7189_v40 }
 0x328   : > { %v1489_v26 = vadd.f32 %v1203_v52, %v1202_v31  ;;  %vm14483_vm11 = vcmp.eq.s32.totalorder %v7256_v0, %v7187_v38  ;;  %v1211_v23 = vsel %vm14155_vm10, %v7300_v12, 0.0  ;;  %1482 = vadd.xlane.f32.xlu2 %v1481_v27  ;;  %vm14484_vm1 = vcmp.eq.s32.totalorder %v7892_v15, %v7194_v42  ;;  %v2695_v52 = vpop.f32.mrf.mxu1 }
 0x329   : > { %5942 = vmatmul.msk.f32.gmra.mxu2 %vm14482_vm2, %v7300_v12  ;;  %v1210_v7 = vsel %vm14483_vm11, %v7286_v8, 0.0  ;;  %v1193_v45 = vsel %vm937_vm15, %v7342_v21, 0.0  ;;  %v1204_v31 = vsel %vm14154_vm0, %v7315_v17, 0.0  ;;  %vm1010_vm11 = vcmp.eq.s32.totalorder %v8699_v35, %v7187_v38 }
 0x32a   : > { %6070 = vmatmul.msk.f32.gmra.mxu0 %vm14484_vm1, %v7342_v21  ;;  %vm14176_vm2 = vcmp.eq.s32.totalorder %v8702_v34, %v7187_v38  ;;  %v1476_v27 = vadd.f32 %v1475_v1, %v1193_v45  ;;  %vm14164_vm1 = vcmp.eq.s32.totalorder %v8672_v22, %v7194_v42  ;;  %v1490_v49 = vadd.f32 %v1489_v26, %v1204_v31  ;;  %v8778_v31 = vpop.f32.mrf.mxu0 }
 0x32b   : > { %5910 = vmatmul.msk.f32.gmra.mxu3 %vm1010_vm11, %v7286_v8  ;;  %vm14168_vm0 = vcmp.eq.s32.totalorder %v8702_v34, %v7189_v40  ;;  %vm14163_vm10 = vcmp.eq.s32.totalorder %v8702_v34, %v7199_v48  ;;  %v1198_v1 = vsel %vm14176_vm2, %v7286_v8, 0.0  ;;  %vm14485_vm13 = vcmp.eq.s32.totalorder %v7192_v41, %v7187_v38  ;;  %14486 = vst [vmem:[#allocation98_spill] sm:$0xff] %v8778_v31 }
 0x32c   : > { %v1206_v26 = vsel %vm14485_vm13, %v7286_v8, 0.0  ;;  %v1207_v45 = vsel %vm14162_vm8, %v7300_v12, 0.0  ;;  %v1199_v53 = vsel %vm14168_vm0, %v7300_v12, 0.0  ;;  %v1499_v15 = vadd.f32 %v1211_v23, %v1210_v7 }
 0x32d   : > { %1477 = vadd.xlane.f32.xlu1 %v1476_v27  ;;  %v1205_v18 = vsel %vm14164_vm1, %v7342_v21, 0.0  ;;  %v1484_v3 = vadd.f32 %v1199_v53, %v1198_v1  ;;  %v8793_v27 = vadd.s32 384, %v7160_v24  ;;  %vm14166_vm13 = vcmp.eq.s32.totalorder %v8702_v34, %v7194_v42 }
 0x32e   : > { %v1491_v31 = vadd.f32 %v1490_v49, %v1205_v18  ;;  %v1200_v7 = vsel %vm14163_vm10, %v7315_v17, 0.0  ;;  %vm14165_vm8 = vcmp.eq.s32.totalorder %v7256_v0, %v7199_v48  ;;  %v8810_v18 = vpop.f32.mrf.mxu3  ;;  %v1494_v49 = vadd.f32 %v1207_v45, %v1206_v26 }
 0x32f   : > { %5879 = vmatmul.msk.f32.gmra.mxu1 %vm886_vm7, %v7286_v8  ;;  %14487 = vst [vmem:[#allocation99_spill] sm:$0xff] %v8793_v27  ;;  %v1485_v53 = vadd.f32 %v1484_v3, %v1200_v7  ;;  %v8804_v23 = vshra.s32 %v8793_v27, 3  ;;  %vm14170_vm7 = vcmp.eq.s32.totalorder %v7338_v20, %v7189_v40  ;;  %vm14490_vm10 = vcmp.eq.s32.totalorder %v8074_v16, %v7194_v42  ;;  %v2904_v3 = vpop.f32.mrf.mxu2 }
 0x330   : > { %14489 = vst [vmem:[#allocation101_spill] sm:$0xff] %v8810_v18  ;;  %1492 = vadd.xlane.f32.xlu2 %v1491_v31  ;;  %v1201_v1 = vsel %vm14166_vm13, %v7342_v21, 0.0  ;;  %v1212_v26 = vsel %vm14165_vm8, %v7315_v17, 0.0  ;;  %v2698_v45 = vpop.f32.mrf.mxu1  ;;  %vm14171_vm1 = vcmp.eq.s32.totalorder %v7192_v41, %v7199_v48  ;;  %vm14173_vm8 = vcmp.eq.s32.totalorder %v7269_v2, %v7189_v40 }
 0x331   : > { %14488 = vst [vmem:[#allocation100_spill] sm:$0xff] %v8804_v23  ;;  %5943 = vmatmul.msk.f32.gmra.mxu2 %vm887_vm3, %v7300_v12  ;;  %vm1014_vm3 = vcmp.eq.s32.totalorder %v8804_v23, %v7187_v38  ;;  %v1486_v31 = vadd.f32 %v1485_v53, %v1201_v1  ;;  %v1500_v7 = vadd.f32 %v1499_v15, %v1212_v26  ;;  %v1219_v53 = vsel %vm14170_vm7, %v7300_v12, 0.0 }
 0x332   : > { %6071 = vmatmul.msk.f32.gmra.mxu0 %vm14490_vm10, %v7342_v21  ;;  %vm14172_vm10 = vcmp.eq.s32.totalorder %v7256_v0, %v7194_v42  ;;  %vm14491_vm13 = vcmp.eq.s32.totalorder %v7338_v20, %v7187_v38  ;;  %v8846_v1 = vadd.f32 %v2904_v3, %v2695_v52  ;;  %v8848_v15 = vpop.f32.mrf.mxu0  ;;  %v1208_v26 = vsel %vm14171_vm1, %v7315_v17, 0.0 }
 0x333   : > { %5911 = vmatmul.msk.f32.gmra.mxu3 %vm1014_vm3, %v7286_v8  ;;  %v1218_v27 = vsel %vm14491_vm13, %v7286_v8, 0.0  ;;  %14493 = vst [vmem:[#allocation103_spill] sm:$0xff] %v8848_v15  ;;  %vm14494_vm0 = vcmp.eq.s32.totalorder %v7269_v2, %v7187_v38  ;;  %v1213_v16 = vsel %vm14172_vm10, %v7342_v21, 0.0  ;;  %vm14174_vm13 = vcmp.eq.s32.totalorder %v7192_v41, %v7194_v42 }
 0x334   : > { %14492 = vst [vmem:[#allocation102_spill] sm:$0xff] %v8846_v1  ;;  %v1214_v18 = vsel %vm14494_vm0, %v7286_v8, 0.0  ;;  %v1495_v52 = vadd.f32 %v1494_v49, %v1208_v26  ;;  %vm14495_vm7 = vcmp.eq.s32.totalorder %v8046_v62, %v7187_v38  ;;  %v1215_v3 = vsel %vm14173_vm8, %v7300_v12, 0.0 }
 0x335   : > { %1487 = vadd.xlane.f32.xlu1 %v1486_v31  ;;  %v1509_v31 = vadd.f32 %v1219_v53, %v1218_v27  ;;  %v1501_v15 = vadd.f32 %v1500_v7, %v1213_v16  ;;  %vm14175_vm0 = vcmp.eq.s32.totalorder %v7338_v20, %v7199_v48  ;;  %vm14496_vm1 = vcmp.eq.s32.totalorder %v8046_v62, %v7189_v40 }
 0x336   : > { %vm14189_vm10 = vcmp.eq.s32.totalorder %v7396_v44, %v7189_v40  ;;  %v1209_v16 = vsel %vm14174_vm13, %v7342_v21, 0.0  ;;  %vm14497_vm8 = vcmp.eq.s32.totalorder %v8046_v62, %v7194_v42  ;;  %v8890_v27 = vpop.f32.mrf.mxu3  ;;  %v1504_v49 = vadd.f32 %v1215_v3, %v1214_v18 }
 0x337   : > { %5880 = vmatmul.msk.f32.gmra.mxu1 %vm14495_vm7, %v7286_v8  ;;  %vm14180_vm7 = vcmp.eq.s32.totalorder %v7874_v39, %v7189_v40  ;;  %14498 = vst [vmem:[#allocation104_spill] sm:$0xff] %v8890_v27  ;;  %v1496_v7 = vadd.f32 %v1495_v52, %v1209_v16  ;;  %v1220_v53 = vsel %vm14175_vm0, %v7315_v17, 0.0  ;;  %v8897_v26 = vadd.s32 400, %v7160_v24 }
 0x338   : > { %1502 = vadd.xlane.f32.xlu2 %v1501_v15  ;;  %v2907_v15 = vpop.f32.mrf.mxu2  ;;  %v1510_v1 = vadd.f32 %v1509_v31, %v1220_v53  ;;  %v2701_v52 = vpop.f32.mrf.mxu1  ;;  %vm14181_vm13 = vcmp.eq.s32.totalorder %v7269_v2, %v7199_v48  ;;  %vm14502_vm0 = vcmp.eq.s32.totalorder %v7874_v39, %v7187_v38  ;;  %v1231_v31 = vsel %vm14180_vm7, %v7300_v12, 0.0 }
 0x339   : > { %5944 = vmatmul.msk.f32.gmra.mxu2 %vm14496_vm1, %v7300_v12  ;;  %14499 = vst [vmem:[#allocation105_spill] sm:$0xff] %v8897_v26  ;;  %vm14190_vm1 = vcmp.eq.s32.totalorder %v7338_v20, %v7194_v42  ;;  %v8905_v18 = vadd.f32 %v2907_v15, %v2698_v45  ;;  %v1230_v3 = vsel %vm14502_vm0, %v7286_v8, 0.0  ;;  %v1223_v16 = vsel %vm14189_vm10, %v7300_v12, 0.0 }
 0x33a   : > { %6072 = vmatmul.msk.f32.gmra.mxu0 %vm14497_vm8, %v7342_v21  ;;  %vm14500_vm8 = vcmp.eq.s32.totalorder %v7544_v46, %v7187_v38  ;;  %vm14185_vm2 = vcmp.eq.s32.totalorder %v8221_v50, %v7189_v40  ;;  %v8927_v53 = vpop.f32.mrf.mxu0  ;;  %v1221_v15 = vsel %vm14190_vm1, %v7342_v21, 0.0  ;;  %vm961_vm0 = vcmp.eq.s32.totalorder %v7269_v2, %v7194_v42 }
 0x33b   : > { %5912 = vmatmul.msk.f32.gmra.mxu3 %vm14500_vm8, %v7286_v8  ;;  %14501 = vst [vmem:[#allocation106_spill] sm:$0xff] %v8905_v18  ;;  %vm14503_vm8 = vcmp.eq.s32.totalorder %v7396_v44, %v7187_v38  ;;  %v1216_v27 = vsel %vm14181_vm13, %v7315_v17, 0.0  ;;  %v1511_v18 = vadd.f32 %v1510_v1, %v1221_v15  ;;  %vm14506_vm7 = vcmp.eq.s32.totalorder %v8238_v60, %v7189_v40 }
 0x33c   : > { %v1222_v45 = vsel %vm14503_vm8, %v7286_v8, 0.0  ;;  %14504 = vst [vmem:[#allocation107_spill] sm:$0xff] %v8927_v53  ;;  %v1524_v53 = vadd.f32 %v1231_v31, %v1230_v3  ;;  %v1505_v62 = vadd.f32 %v1504_v49, %v1216_v27  ;;  %vm14183_vm8 = vcmp.eq.s32.totalorder %v7874_v39, %v7199_v48 }
 0x33d   : > { %1497 = vadd.xlane.f32.xlu1 %v1496_v7  ;;  %v8944_v7 = vshra.s32 %v8897_v26, 3  ;;  %v1514_v46 = vadd.f32 %v1223_v16, %v1222_v45  ;;  %vm14186_vm13 = vcmp.eq.s32.totalorder %v7983_v28, %v7189_v40  ;;  %v1243_v1 = vsel %vm14185_vm2, %v7300_v12, 0.0 }
 0x33e   : > { %v1217_v27 = vsel %vm961_vm0, %v7342_v21, 0.0  ;;  %v8970_v49 = vpop.f32.mrf.mxu3  ;;  %v8981_v31 = vadd.s32 408, %v7160_v24  ;;  %vm969_vm2 = vcmp.eq.s32.totalorder %v7396_v44, %v7194_v42  ;;  %vm14515_vm10 = vcmp.eq.s32.totalorder %v8146_v56, %v7194_v42 }
 0x33f   : > { %5881 = vmatmul.msk.f32.gmra.mxu1 %vm894_vm5, %v7286_v8  ;;  %14505 = vst [vmem:[#allocation108_spill] sm:$0xff] %v8944_v7  ;;  %vm14507_vm5 = vcmp.eq.s32.totalorder %v8221_v50, %v7187_v38  ;;  %v1506_v45 = vadd.f32 %v1505_v62, %v1217_v27  ;;  %v1235_v62 = vsel %vm14186_vm13, %v7300_v12, 0.0  ;;  %vm14192_vm13 = vcmp.eq.s32.totalorder %v8221_v50, %v7199_v48 }
 0x340   : > { %v1242_v26 = vsel %vm14507_vm5, %v7286_v8, 0.0  ;;  %1512 = vadd.xlane.f32.xlu2 %v1511_v18  ;;  %14508 = vst [vmem:[#allocation109_spill] sm:$0xff] %v8970_v49  ;;  %v1232_v18 = vsel %vm14183_vm8, %v7315_v17, 0.0  ;;  %vm1022_vm5 = vcmp.eq.s32.totalorder %v8944_v7, %v7187_v38  ;;  %v2910_v3 = vpop.f32.mrf.mxu2  ;;  %v2704_v49 = vpop.f32.mrf.mxu1  ;;  %vm14510_vm8 = vcmp.eq.s32.totalorder %v7983_v28, %v7187_v38 }
 0x341   : > { %5945 = vmatmul.msk.f32.gmra.mxu2 %vm14506_vm7, %v7300_v12  ;;  %vm14188_vm7 = vcmp.eq.s32.totalorder %v7874_v39, %v7194_v42  ;;  %14509 = vst [vmem:[#allocation110_spill] sm:$0xff] %v8981_v31  ;;  %v1525_v16 = vadd.f32 %v1524_v53, %v1232_v18  ;;  %v8987_v15 = vadd.f32 %v2910_v3, %v2701_v52  ;;  %v1234_v60 = vsel %vm14510_vm8, %v7286_v8, 0.0 }
 0x342   : > { %6073 = vmatmul.msk.f32.gmra.mxu0 %vm897_vm9, %v7342_v21  ;;  %vm14187_vm9 = vcmp.eq.s32.totalorder %v7396_v44, %v7199_v48  ;;  %v8999_v53 = vpop.f32.mrf.mxu0  ;;  %v1539_v27 = vadd.f32 %v1243_v1, %v1242_v26  ;;  %v1233_v52 = vsel %vm14188_vm7, %v7342_v21, 0.0  ;;  %vm14512_vm8 = vcmp.eq.s32.totalorder %v8146_v56, %v7187_v38 }
 0x343   : > { %5913 = vmatmul.msk.f32.gmra.mxu3 %vm1022_vm5, %v7286_v8  ;;  %14511 = vst [vmem:[#allocation111_spill] sm:$0xff] %v8999_v53  ;;  %v1224_v18 = vsel %vm14187_vm9, %v7315_v17, 0.0  ;;  %v9014_v3 = vshra.s32 %v8981_v31, 3  ;;  %vm14514_vm9 = vcmp.eq.s32.totalorder %v8146_v56, %v7189_v40  ;;  %v1529_v1 = vadd.f32 %v1235_v62, %v1234_v60 }
 0x344   : > { %v1515_v26 = vadd.f32 %v1514_v46, %v1224_v18  ;;  %vm14194_vm7 = vcmp.eq.s32.totalorder %v8437_v10, %v7189_v40  ;;  %v1244_v60 = vsel %vm14192_vm13, %v7315_v17, 0.0  ;;  %vm14193_vm1 = vcmp.eq.s32.totalorder %v7983_v28, %v7199_v48 }
 0x345   : > { %1507 = vadd.xlane.f32.xlu1 %v1506_v45  ;;  %14513 = vst [vmem:[#allocation112_spill] sm:$0xff] %v9014_v3  ;;  %v1526_v45 = vadd.f32 %v1525_v16, %v1233_v52  ;;  %v1225_v16 = vsel %vm969_vm2, %v7342_v21, 0.0  ;;  %v1540_v18 = vadd.f32 %v1539_v27, %v1244_v60  ;;  %v1254_v31 = vsel %vm998_vm12, %v7286_v8, 0.0 }
 0x346   : > { %v9032_v46 = vpop.f32.mrf.mxu3  ;;  %v1516_v52 = vadd.f32 %v1515_v26, %v1225_v16  ;;  %v1255_v26 = vsel %vm14194_vm7, %v7300_v12, 0.0  ;;  %v1246_v27 = vsel %vm990_vm14, %v7286_v8, 0.0  ;;  %vm981_vm14 = vcmp.eq.s32.totalorder %v7983_v28, %v7194_v42 }
 0x347   : > { %5882 = vmatmul.msk.f32.gmra.mxu1 %vm14512_vm8, %v7286_v8  ;;  %vm991_vm8 = vcmp.eq.s32.totalorder %v8269_v29, %v7189_v40  ;;  %14516 = vst [vmem:[#allocation113_spill] sm:$0xff] %v9032_v46  ;;  %vm14197_vm12 = vcmp.eq.s32.totalorder %v8699_v35, %v7189_v40  ;;  %vm14195_vm13 = vcmp.eq.s32.totalorder %v8437_v10, %v7199_v48 }
 0x348   : > { %1527 = vadd.xlane.f32.xlu2 %v1526_v45  ;;  %v2913_v62 = vpop.f32.mrf.mxu2  ;;  %vm14198_vm7 = vcmp.eq.s32.totalorder %v8520_v25, %v7189_v40 }
 0x349   : > { %5946 = vmatmul.msk.f32.gmra.mxu2 %vm14514_vm9, %v7300_v12  ;;  %vm1026_vm9 = vcmp.eq.s32.totalorder %v9014_v3, %v7187_v38  ;;  %v9052_v45 = vadd.f32 %v2913_v62, %v2704_v49  ;;  %v2707_v16 = vpop.f32.mrf.mxu1  ;;  %v1236_v49 = vsel %vm14193_vm1, %v7315_v17, 0.0  ;;  %v1247_v62 = vsel %vm991_vm8, %v7300_v12, 0.0 }
 0x34a   : > { %6074 = vmatmul.msk.f32.gmra.mxu0 %vm14515_vm10, %v7342_v21  ;;  %vm989_vm10 = vcmp.eq.s32.totalorder %v8221_v50, %v7194_v42  ;;  %vm14519_vm1 = vcmp.eq.s32.totalorder %v8280_v5, %v7189_v40 }
 0x34b   : > { %5914 = vmatmul.msk.f32.gmra.mxu3 %vm1026_vm9, %v7286_v8  ;;  %14517 = vst [vmem:[#allocation114_spill] sm:$0xff] %v9052_v45  ;;  %v1245_v46 = vsel %vm989_vm10, %v7342_v21, 0.0  ;;  %v1544_v45 = vadd.f32 %v1247_v62, %v1246_v27 }
 0x34c   : > { %v9066_v60 = vpop.f32.mrf.mxu0  ;;  %v1541_v53 = vadd.f32 %v1540_v18, %v1245_v46  ;;  %v1267_v18 = vsel %vm14197_vm12, %v7300_v12, 0.0  ;;  %vm14203_vm12 = vcmp.eq.s32.totalorder %v8944_v7, %v7189_v40 }
 0x34d   : > { %1517 = vadd.xlane.f32.xlu1 %v1516_v52  ;;  %14518 = vst [vmem:[#allocation115_spill] sm:$0xff] %v9066_v60  ;;  %v1530_v52 = vadd.f32 %v1529_v1, %v1236_v49  ;;  %v1554_v60 = vadd.f32 %v1255_v26, %v1254_v31  ;;  %v1266_v31 = vsel %vm1010_vm11, %v7286_v8, 0.0  ;;  %v1237_v1 = vsel %vm981_vm14, %v7342_v21, 0.0 }
 0x34e   : > { %v9108_v46 = vpop.f32.mrf.mxu3  ;;  %v9119_v49 = vadd.s32 424, %v7160_v24  ;;  %vm14196_vm11 = vcmp.eq.s32.totalorder %v8269_v29, %v7199_v48 }
 0x34f   : > { %5883 = vmatmul.msk.f32.gmra.mxu1 %vm902_vm6, %v7286_v8  ;;  %14520 = vst [vmem:[#allocation116_spill] sm:$0xff] %v9108_v46  ;;  %v1531_v26 = vadd.f32 %v1530_v52, %v1237_v1  ;;  %vm14522_vm6 = vcmp.eq.s32.totalorder %v7832_v4, %v7187_v38 }
 0x350   : > { %1542 = vadd.xlane.f32.xlu2 %v1541_v53  ;;  %v1256_v53 = vsel %vm14195_vm13, %v7315_v17, 0.0  ;;  %14521 = vst [vmem:[#allocation117_spill] sm:$0xff] %v9119_v49  ;;  %vm14199_vm13 = vcmp.eq.s32.totalorder %v8699_v35, %v7199_v48 }
 0x351   : > { %5947 = vmatmul.msk.f32.gmra.mxu2 %vm14519_vm1, %v7300_v12  ;;  %v2916_v27 = vpop.f32.mrf.mxu2  ;;  %v1555_v62 = vadd.f32 %v1554_v60, %v1256_v53  ;;  %vm14524_vm1 = vcmp.eq.s32.totalorder %v8520_v25, %v7187_v38  ;;  %v1259_v60 = vsel %vm14198_vm7, %v7300_v12, 0.0  ;;  %v1569_v53 = vadd.f32 %v1267_v18, %v1266_v31  ;;  %v2710_v31 = vpop.f32.mrf.mxu1 }
 0x352   : > { %6075 = vmatmul.msk.f32.gmra.mxu0 %vm905_vm4, %v7342_v21  ;;  %vm14240_vm4 = vcmp.eq.s32.totalorder %v8437_v10, %v7194_v42  ;;  %v9127_v46 = vadd.f32 %v2916_v27, %v2707_v16  ;;  %v1258_v52 = vsel %vm14524_vm1, %v7286_v8, 0.0  ;;  %v1248_v27 = vsel %vm14196_vm11, %v7315_v17, 0.0 }
 0x353   : > { %5915 = vmatmul.msk.f32.gmra.mxu3 %vm14522_vm6, %v7286_v8  ;;  %v1257_v16 = vsel %vm14240_vm4, %v7342_v21, 0.0  ;;  %vm14526_vm6 = vcmp.eq.s32.totalorder %v8256_v63, %v7187_v38  ;;  %vm993_vm1 = vcmp.eq.s32.totalorder %v8269_v29, %v7194_v42  ;;  %v1545_v18 = vadd.f32 %v1544_v45, %v1248_v27 }
 0x354   : > { %14523 = vst [vmem:[#allocation118_spill] sm:$0xff] %v9127_v46  ;;  %vm14528_vm11 = vcmp.eq.s32.totalorder %v8256_v63, %v7189_v40  ;;  %v1559_v46 = vadd.f32 %v1259_v60, %v1258_v52  ;;  %vm14529_vm7 = vcmp.eq.s32.totalorder %v8256_v63, %v7194_v42  ;;  %v1268_v52 = vsel %vm14199_vm13, %v7315_v17, 0.0 }
 0x355   : > { %1532 = vadd.xlane.f32.xlu1 %v1531_v26  ;;  %v9139_v1 = vpop.f32.mrf.mxu0  ;;  %v9154_v26 = vshra.s32 %v9119_v49, 3  ;;  %v9185_v60 = vadd.s32 432, %v7160_v24  ;;  %vm14205_vm13 = vcmp.eq.s32.totalorder %v8520_v25, %v7199_v48  ;;  %v1278_v49 = vsel %vm1022_vm5, %v7286_v8, 0.0 }
 0x356   : > { %14525 = vst [vmem:[#allocation119_spill] sm:$0xff] %v9139_v1  ;;  %v1556_v1 = vadd.f32 %v1555_v62, %v1257_v16  ;;  %v1249_v62 = vsel %vm993_vm1, %v7342_v21, 0.0  ;;  %v1570_v16 = vadd.f32 %v1569_v53, %v1268_v52  ;;  %vm14217_vm5 = vcmp.eq.s32.totalorder %v8520_v25, %v7194_v42 }
 0x357   : > { %5884 = vmatmul.msk.f32.gmra.mxu1 %vm14526_vm6, %v7286_v8  ;;  %14527 = vst [vmem:[#allocation120_spill] sm:$0xff] %v9154_v26  ;;  %vm14204_vm6 = vcmp.eq.s32.totalorder %v8804_v23, %v7189_v40  ;;  %vm14570_vm4 = vcmp.eq.s32.totalorder %v8593_v36, %v7189_v40 }
 0x358   : > { %1557 = vadd.xlane.f32.xlu2 %v1556_v1  ;;  %14531 = vst [vmem:[#allocation122_spill] sm:$0xff] %v9185_v60  ;;  %v1546_v1 = vadd.f32 %v1545_v18, %v1249_v62  ;;  %v1279_v18 = vsel %vm14203_vm12, %v7300_v12, 0.0  ;;  %v1270_v62 = vsel %vm1014_vm3, %v7286_v8, 0.0  ;;  %v1271_v52 = vsel %vm14204_vm6, %v7300_v12, 0.0 }
 0x359   : > { %5948 = vmatmul.msk.f32.gmra.mxu2 %vm14528_vm11, %v7300_v12  ;;  %v9172_v45 = vpop.f32.mrf.mxu3  ;;  %vm1034_vm11 = vcmp.eq.s32.totalorder %v9154_v26, %v7187_v38  ;;  %vm14533_vm3 = vcmp.eq.s32.totalorder %v8423_v6, %v7187_v38  ;;  %vm14210_vm12 = vcmp.eq.s32.totalorder %v8944_v7, %v7199_v48  ;;  %vm14211_vm6 = vcmp.eq.s32.totalorder %v9154_v26, %v7189_v40 }
 0x35a   : > { %6076 = vmatmul.msk.f32.gmra.mxu0 %vm14529_vm7, %v7342_v21  ;;  %14530 = vst [vmem:[#allocation121_spill] sm:$0xff] %v9172_v45  ;;  %vm14208_vm7 = vcmp.eq.s32.totalorder %v8699_v35, %v7194_v42  ;;  %v2919_v27 = vpop.f32.mrf.mxu2  ;;  %v1574_v4 = vadd.f32 %v1271_v52, %v1270_v62  ;;  %v1291_v62 = vsel %vm14211_vm6, %v7300_v12, 0.0  ;;  %vm14219_vm6 = vcmp.eq.s32.totalorder %v9154_v26, %v7199_v48 }
 0x35b   : > { %5916 = vmatmul.msk.f32.gmra.mxu3 %vm1034_vm11, %v7286_v8  ;;  %v9203_v53 = vadd.f32 %v2919_v27, %v2710_v31  ;;  %v1269_v45 = vsel %vm14208_vm7, %v7342_v21, 0.0  ;;  %v1260_v31 = vsel %vm14205_vm13, %v7315_v17, 0.0  ;;  %v1584_v27 = vadd.f32 %v1279_v18, %v1278_v49  ;;  %v2713_v49 = vpop.f32.mrf.mxu1 }
 0x35c   : > { %v1560_v5 = vadd.f32 %v1559_v46, %v1260_v31  ;;  %vm14536_vm13 = vcmp.eq.s32.totalorder %v8423_v6, %v7189_v40  ;;  %v1261_v46 = vsel %vm14217_vm5, %v7342_v21, 0.0  ;;  %vm14537_vm7 = vcmp.eq.s32.totalorder %v8423_v6, %v7194_v42 }
 0x35d   : > { %14532 = vst [vmem:[#allocation123_spill] sm:$0xff] %v9203_v53  ;;  %1547 = vadd.xlane.f32.xlu1 %v1546_v1  ;;  %v9228_v1 = vshra.s32 %v9185_v60, 3  ;;  %v1571_v53 = vadd.f32 %v1570_v16, %v1269_v45  ;;  %v9230_v63 = vpop.f32.mrf.mxu0  ;;  %v9253_v16 = vadd.s32 448, %v7160_v24  ;;  %v1290_v18 = vsel %vm1034_vm11, %v7286_v8, 0.0 }
 0x35e   : > { %14535 = vst [vmem:[#allocation125_spill] sm:$0xff] %v9230_v63  ;;  %v1561_v52 = vadd.f32 %v1560_v5, %v1261_v46  ;;  %vm14213_vm11 = vcmp.eq.s32.totalorder %v8804_v23, %v7199_v48  ;;  %v1282_v63 = vsel %vm1026_vm9, %v7286_v8, 0.0  ;;  %v1599_v46 = vadd.f32 %v1291_v62, %v1290_v18 }
 0x35f   : > { %5885 = vmatmul.msk.f32.gmra.mxu1 %vm14533_vm3, %v7286_v8  ;;  %14534 = vst [vmem:[#allocation124_spill] sm:$0xff] %v9228_v1  ;;  %vm14212_vm3 = vcmp.eq.s32.totalorder %v9014_v3, %v7189_v40  ;;  %v9284_v5 = vshra.s32 %v9253_v16, 3  ;;  %vm14541_vm9 = vcmp.eq.s32.totalorder %v8376_v30, %v7187_v38  ;;  %vm14223_vm5 = vcmp.eq.s32.totalorder %v9014_v3, %v7199_v48 }
 0x360   : > { %1572 = vadd.xlane.f32.xlu2 %v1571_v53  ;;  %14539 = vst [vmem:[#allocation127_spill] sm:$0xff] %v9253_v16  ;;  %v1280_v53 = vsel %vm14210_vm12, %v7315_v17, 0.0  ;;  %vm14215_vm12 = vcmp.eq.s32.totalorder %v8804_v23, %v7194_v42 }
 0x361   : > { %5949 = vmatmul.msk.f32.gmra.mxu2 %vm14536_vm13, %v7300_v12  ;;  %v9250_v45 = vpop.f32.mrf.mxu3  ;;  %vm14214_vm13 = vcmp.eq.s32.totalorder %v8944_v7, %v7194_v42  ;;  %v1585_v31 = vadd.f32 %v1584_v27, %v1280_v53  ;;  %14540 = vst [vmem:[#allocation128_spill] sm:$0xff] %v9284_v5  ;;  %v1283_v27 = vsel %vm14212_vm3, %v7300_v12, 0.0  ;;  %vm14542_vm3 = vcmp.eq.s32.totalorder %v8376_v30, %v7189_v40 }
 0x362   : > { %6077 = vmatmul.msk.f32.gmra.mxu0 %vm14537_vm7, %v7342_v21  ;;  %14538 = vst [vmem:[#allocation126_spill] sm:$0xff] %v9250_v45  ;;  %vm1038_vm7 = vcmp.eq.s32.totalorder %v9228_v1, %v7187_v38  ;;  %v2922_v60 = vpop.f32.mrf.mxu2 }
 0x363   : > { %5917 = vmatmul.msk.f32.gmra.mxu3 %vm1038_vm7, %v7286_v8  ;;  %v9277_v45 = vadd.f32 %v2922_v60, %v2713_v49  ;;  %v1281_v60 = vsel %vm14214_vm13, %v7342_v21, 0.0  ;;  %v1272_v49 = vsel %vm14213_vm11, %v7315_v17, 0.0  ;;  %vm1046_vm11 = vcmp.eq.s32.totalorder %v9284_v5, %v7187_v38 }
 0x364   : > { %v1586_v53 = vadd.f32 %v1585_v31, %v1281_v60  ;;  %v1575_v18 = vadd.f32 %v1574_v4, %v1272_v49  ;;  %vm14221_vm13 = vcmp.eq.s32.totalorder %v9284_v5, %v7189_v40  ;;  %v9321_v4 = vadd.s32 472, %v7160_v24 }
 0x365   : > { %1562 = vadd.xlane.f32.xlu1 %v1561_v52  ;;  %v9310_v62 = vpop.f32.mrf.mxu0  ;;  %v1589_v52 = vadd.f32 %v1283_v27, %v1282_v63  ;;  %v1273_v31 = vsel %vm14215_vm12, %v7342_v21, 0.0  ;;  %v1292_v60 = vsel %vm14219_vm6, %v7315_v17, 0.0  ;;  %vm14547_vm12 = vcmp.eq.s32.totalorder %v7986_v55, %v7187_v38 }
 0x366   : > { %14543 = vst [vmem:[#allocation129_spill] sm:$0xff] %v9310_v62  ;;  %v1576_v63 = vadd.f32 %v1575_v18, %v1273_v31  ;;  %v1600_v27 = vadd.f32 %v1599_v46, %v1292_v60  ;;  %v1303_v46 = vsel %vm14221_vm13, %v7300_v12, 0.0  ;;  %v1294_v18 = vsel %vm1038_vm7, %v7286_v8, 0.0 }
 0x367   : > { %5886 = vmatmul.msk.f32.gmra.mxu1 %vm14541_vm9, %v7286_v8  ;;  %vm14544_vm9 = vcmp.eq.s32.totalorder %v8376_v30, %v7194_v42  ;;  %14545 = vst [vmem:[#allocation130_spill] sm:$0xff] %v9321_v4  ;;  %v9358_v31 = vshra.s32 %v9321_v4, 3  ;;  %vm14551_vm7 = vcmp.eq.s32.totalorder %v8463_v47, %v7187_v38  ;;  %vm14227_vm6 = vcmp.eq.s32.totalorder %v9284_v5, %v7199_v48 }
 0x368   : > { %1587 = vadd.xlane.f32.xlu2 %v1586_v53  ;;  %v2716_v53 = vpop.f32.mrf.mxu1  ;;  %vm14552_vm13 = vcmp.eq.s32.totalorder %v8463_v47, %v7189_v40 }
 0x369   : > { %5950 = vmatmul.msk.f32.gmra.mxu2 %vm14542_vm3, %v7300_v12  ;;  %vm14224_vm3 = vcmp.eq.s32.totalorder %v9154_v26, %v7194_v42  ;;  %v9333_v49 = vpop.f32.mrf.mxu3  ;;  %14549 = vst [vmem:[#allocation133_spill] sm:$0xff] %v9358_v31 }
 0x36a   : > { %6078 = vmatmul.msk.f32.gmra.mxu0 %vm14544_vm9, %v7342_v21  ;;  %14546 = vst [vmem:[#allocation131_spill] sm:$0xff] %v9333_v49  ;;  %vm14222_vm9 = vcmp.eq.s32.totalorder %v9228_v1, %v7189_v40  ;;  %v1302_v49 = vsel %vm1046_vm11, %v7286_v8, 0.0 }
 0x36b   : > { %5918 = vmatmul.msk.f32.gmra.mxu3 %vm14547_vm12, %v7286_v8  ;;  %v2925_v16 = vpop.f32.mrf.mxu2  ;;  %v1295_v60 = vsel %vm14222_vm9, %v7300_v12, 0.0  ;;  %vm14232_vm12 = vcmp.eq.s32.totalorder %v9014_v3, %v7194_v42  ;;  %v1614_v30 = vadd.f32 %v1303_v46, %v1302_v49  ;;  %vm14228_vm9 = vcmp.eq.s32.totalorder %v9228_v1, %v7199_v48 }
 0x36c   : > { %v9343_v62 = vadd.f32 %v2925_v16, %v2716_v53  ;;  %v9361_v16 = vadd.s32 456, %v7160_v24  ;;  %v1293_v53 = vsel %vm14224_vm3, %v7342_v21, 0.0  ;;  %vm14229_vm3 = vcmp.eq.s32.totalorder %v9358_v31, %v7189_v40 }
 0x36d   : > { %1577 = vadd.xlane.f32.xlu1 %v1576_v63  ;;  %v1284_v63 = vsel %vm14223_vm5, %v7315_v17, 0.0  ;;  %v1601_v4 = vadd.f32 %v1600_v27, %v1293_v53  ;;  %vm14553_vm5 = vcmp.eq.s32.totalorder %v8463_v47, %v7194_v42  ;;  %v9401_v49 = vadd.s32 496, %v7160_v24 }
 0x36e   : > { %14548 = vst [vmem:[#allocation132_spill] sm:$0xff] %v9343_v62  ;;  %v1590_v62 = vadd.f32 %v1589_v52, %v1284_v63  ;;  %v9398_v52 = vshra.s32 %v9361_v16, 3  ;;  %v1604_v27 = vadd.f32 %v1295_v60, %v1294_v18  ;;  %v1304_v46 = vsel %vm14227_vm6, %v7315_v17, 0.0  ;;  %v9411_v53 = vpop.f32.mrf.mxu0 }
 0x36f   : > { %14550 = vst [vmem:[#allocation134_spill] sm:$0xff] %v9361_v16  ;;  %5887 = vmatmul.msk.f32.gmra.mxu1 %vm14551_vm7, %v7286_v8  ;;  %vm1058_vm7 = vcmp.eq.s32.totalorder %v9358_v31, %v7187_v38  ;;  %v1615_v16 = vadd.f32 %v1614_v30, %v1304_v46  ;;  %v1296_v47 = vsel %vm14228_vm9, %v7315_v17, 0.0  ;;  %v1315_v30 = vsel %vm14229_vm3, %v7300_v12, 0.0 }
 0x370   : > { %1602 = vadd.xlane.f32.xlu2 %v1601_v4  ;;  %14554 = vst [vmem:[#allocation135_spill] sm:$0xff] %v9398_v52  ;;  %v1285_v4 = vsel %vm14232_vm12, %v7342_v21, 0.0  ;;  %v9443_v46 = vadd.s32 480, %v7160_v24  ;;  %vm14237_vm6 = vcmp.eq.s32.totalorder %v9228_v1, %v7194_v42  ;;  %vm14561_vm9 = vcmp.eq.s32.totalorder %v8426_v11, %v7187_v38 }
 0x371   : > { %5951 = vmatmul.msk.f32.gmra.mxu2 %vm14552_vm13, %v7300_v12  ;;  %14555 = vst [vmem:[#allocation136_spill] sm:$0xff] %v9401_v49  ;;  %v1591_v63 = vadd.f32 %v1590_v62, %v1285_v4  ;;  %v1314_v62 = vsel %vm1058_vm7, %v7286_v8, 0.0  ;;  %vm1050_vm13 = vcmp.eq.s32.totalorder %v9398_v52, %v7187_v38  ;;  %v9440_v4 = vshra.s32 %v9401_v49, 3 }
 0x372   : > { %6079 = vmatmul.msk.f32.gmra.mxu0 %vm14553_vm5, %v7342_v21  ;;  %14556 = vst [vmem:[#allocation137_spill] sm:$0xff] %v9411_v53  ;;  %vm14231_vm5 = vcmp.eq.s32.totalorder %v9284_v5, %v7194_v42  ;;  %v9421_v60 = vpop.f32.mrf.mxu3  ;;  %vm14235_vm3 = vcmp.eq.s32.totalorder %v9358_v31, %v7199_v48  ;;  %v1629_v49 = vadd.f32 %v1315_v30, %v1314_v62 }
 0x373   : > { %5919 = vmatmul.msk.f32.gmra.mxu3 %vm1046_vm11, %v7286_v8  ;;  %v9419_v18 = vpop.f32.mrf.mxu2  ;;  %14558 = vst [vmem:[#allocation139_spill] sm:$0xff] %v9421_v60  ;;  %vm14233_vm11 = vcmp.eq.s32.totalorder %v9398_v52, %v7189_v40  ;;  %v1305_v60 = vsel %vm14231_vm5, %v7342_v21, 0.0  ;;  %vm14562_vm5 = vcmp.eq.s32.totalorder %v8426_v11, %v7189_v40  ;;  %vm1070_vm12 = vcmp.eq.s32.totalorder %v9440_v4, %v7187_v38 }
 0x374   : > { %14557 = vst [vmem:[#allocation138_spill] sm:$0xff] %v9419_v18  ;;  %v1616_v53 = vadd.f32 %v1615_v16, %v1305_v60  ;;  %v1306_v18 = vsel %vm1050_vm13, %v7286_v8, 0.0  ;;  %v1297_v16 = vsel %vm14237_vm6, %v7342_v21, 0.0  ;;  %v1316_v60 = vsel %vm14235_vm3, %v7315_v17, 0.0 }
 0x375   : > { %1592 = vadd.xlane.f32.xlu1 %v1591_v63  ;;  %14559 = vst [vmem:[#allocation140_spill] sm:$0xff] %v9440_v4  ;;  %v1605_v63 = vadd.f32 %v1604_v27, %v1296_v47  ;;  %v1307_v47 = vsel %vm14233_vm11, %v7300_v12, 0.0  ;;  %v9482_v27 = vshra.s32 %v9443_v46, 3  ;;  %vm14239_vm11 = vcmp.eq.s32.totalorder %v9358_v31, %v7194_v42 }
 0x376   : > { %14560 = vst [vmem:[#allocation141_spill] sm:$0xff] %v9443_v46  ;;  %v1630_v62 = vadd.f32 %v1629_v49, %v1316_v60  ;;  %v1619_v30 = vadd.f32 %v1307_v47, %v1306_v18  ;;  %v9513_v18 = vadd.s32 504, %v7160_v24  ;;  %v1317_v47 = vsel %vm14239_vm11, %v7342_v21, 0.0 }
 0x377   : > { %5888 = vmatmul.msk.f32.gmra.mxu1 %vm14561_vm9, %v7286_v8  ;;  %vm14563_vm9 = vcmp.eq.s32.totalorder %v8426_v11, %v7194_v42  ;;  %14564 = vst [vmem:[#allocation142_spill] sm:$0xff] %v9482_v27  ;;  %vm14242_vm3 = vcmp.eq.s32.totalorder %v9482_v27, %v7189_v40  ;;  %vm14569_vm6 = vcmp.eq.s32.totalorder %v8593_v36, %v7187_v38 }
 0x378   : > { %1617 = vadd.xlane.f32.xlu2 %v1616_v53  ;;  %v1606_v53 = vadd.f32 %v1605_v63, %v1297_v16  ;;  %v1326_v63 = vsel %vm1070_vm12, %v7286_v8, 0.0  ;;  %v9506_v16 = vpop.f32.mrf.mxu0  ;;  %14567 = vst [vmem:[#allocation145_spill] sm:$0xff] %v9513_v18  ;;  %v1631_v24 = vadd.f32 %v1630_v62, %v1317_v47  ;;  %vm14244_vm11 = vcmp.eq.s32.totalorder %v9440_v4, %v7199_v48 }
 0x379   : > { %5952 = vmatmul.msk.f32.gmra.mxu2 %vm14562_vm5, %v7300_v12  ;;  %vm14236_vm5 = vcmp.eq.s32.totalorder %v9440_v4, %v7189_v40  ;;  %14566 = vst [vmem:[#allocation144_spill] sm:$0xff] %v9506_v16  ;;  %v1319_v62 = vsel %vm14242_vm3, %v7300_v12, 0.0 }
 0x37a   : > { %6080 = vmatmul.msk.f32.gmra.mxu0 %vm14563_vm9, %v7342_v21  ;;  %vm14241_vm9 = vcmp.eq.s32.totalorder %v9398_v52, %v7199_v48  ;;  %v1327_v49 = vsel %vm14236_vm5, %v7300_v12, 0.0  ;;  %vm14243_vm5 = vcmp.eq.s32.totalorder %v9398_v52, %v7194_v42 }
 0x37b   : > { %5920 = vmatmul.msk.f32.gmra.mxu3 %vm1050_vm13, %v7286_v8  ;;  %vm1062_vm13 = vcmp.eq.s32.totalorder %v9482_v27, %v7187_v38 }
 0x37c   : > { %v9496_v46 = vpop.f32.mrf.mxu2 }
 0x37d   : > { %14565 = vst [vmem:[#allocation143_spill] sm:$0xff] %v9496_v46  ;;  %1607 = vadd.xlane.f32.xlu1 %v1606_v53  ;;  %v1308_v53 = vsel %vm14241_vm9, %v7315_v17, 0.0  ;;  %v1644_v46 = vadd.f32 %v1327_v49, %v1326_v63  ;;  %v1309_v63 = vsel %vm14243_vm5, %v7342_v21, 0.0  ;;  %vm14247_vm9 = vcmp.eq.s32.totalorder %v9482_v27, %v7199_v48 }
 0x37e   : > { %v9519_v60 = vpop.f32.mrf.mxu3  ;;  %v1620_v16 = vadd.f32 %v1619_v30, %v1308_v53  ;;  %v9550_v30 = vshra.s32 %v9513_v18, 3 }
 0x37f   : > { %14568 = vst [vmem:[#allocation146_spill] sm:$0xff] %v9519_v60  ;;  %5889 = vmatmul.msk.f32.gmra.mxu1 %vm14569_vm6, %v7286_v8  ;;  %v1318_v60 = vsel %vm1062_vm13, %v7286_v8, 0.0  ;;  %vm14571_vm6 = vcmp.eq.s32.totalorder %v8593_v36, %v7194_v42 }
 0x380   : > { %1632 = vadd.xlane.f32.xlu2 %v1631_v24  ;;  %14572 = vst [vmem:[#allocation147_spill] sm:$0xff] %v9550_v30  ;;  %v1328_v24 = vsel %vm14244_vm11, %v7315_v17, 0.0  ;;  %v1621_v49 = vadd.f32 %v1620_v16, %v1309_v63  ;;  %v1634_v53 = vadd.f32 %v1319_v62, %v1318_v60  ;;  %vm1074_vm3 = vcmp.eq.s32.totalorder %v9550_v30, %v7187_v38  ;;  %v9588_v62 = vpop.f32.mrf.mxu0 }
 0x381   : > { %5953 = vmatmul.msk.f32.gmra.mxu2 %vm14570_vm4, %v7300_v12  ;;  %vm14245_vm4 = vcmp.eq.s32.totalorder %v9440_v4, %v7194_v42  ;;  %v1645_v47 = vadd.f32 %v1644_v46, %v1328_v24  ;;  %vm1075_vm5 = vcmp.eq.s32.totalorder %v9550_v30, %v7189_v40  ;;  %v1320_v60 = vsel %vm14247_vm9, %v7315_v17, 0.0 }
 0x382   : > { %6081 = vmatmul.msk.f32.gmra.mxu0 %vm14571_vm6, %v7342_v21  ;;  %vm14573_vm6 = vcmp.eq.s32.totalorder %v8063_v57, %v7187_v38  ;;  %v1329_v46 = vsel %vm14245_vm4, %v7342_v21, 0.0  ;;  %vm1065_vm11 = vcmp.eq.s32.totalorder %v9482_v27, %v7194_v42  ;;  %vm14576_vm4 = vcmp.eq.s32.totalorder %v8499_v59, %v7189_v40 }
 0x383   : > { %5921 = vmatmul.msk.f32.gmra.mxu3 %vm14573_vm6, %v7286_v8  ;;  %vm14575_vm6 = vcmp.eq.s32.totalorder %v8499_v59, %v7187_v38  ;;  %v1646_v24 = vadd.f32 %v1645_v47, %v1329_v46  ;;  %v1330_v18 = vsel %vm1074_vm3, %v7286_v8, 0.0  ;;  %v1321_v47 = vsel %vm1065_vm11, %v7342_v21, 0.0 }
 0x384   : > { %v9578_v63 = vpop.f32.mrf.mxu2  ;;  %vm14580_vm9 = vcmp.eq.s32.totalorder %v8659_v33, %v7189_v40 }
 0x385   : > { %1622 = vadd.xlane.f32.xlu1 %v1621_v49  ;;  %v1635_v49 = vadd.f32 %v1634_v53, %v1320_v60 }
 0x386   : > { %v9576_v16 = vpop.f32.mrf.mxu3 }
 0x387   : > { %14574 = vst [vmem:[#allocation148_spill] sm:$0xff] %v9576_v16  ;;  %5890 = vmatmul.msk.f32.gmra.mxu1 %vm14575_vm6, %v7286_v8  ;;  %v1331_v16 = vsel %vm1075_vm5, %v7300_v12, 0.0  ;;  %vm14577_vm6 = vcmp.eq.s32.totalorder %v8499_v59, %v7194_v42  ;;  %v1636_v53 = vadd.f32 %v1635_v49, %v1321_v47 }
 0x388   : > { %1647 = vadd.xlane.f32.xlu2 %v1646_v24  ;;  %v1649_v46 = vadd.f32 %v1331_v16, %v1330_v18  ;;  %v9636_v18 = vpop.f32.mrf.mxu0 }
 0x389   : > { %5954 = vmatmul.msk.f32.gmra.mxu2 %vm14576_vm4, %v7300_v12  ;;  %vm1076_vm4 = vcmp.eq.s32.totalorder %v9550_v30, %v7199_v48 }
 0x38a   : > { %6082 = vmatmul.msk.f32.gmra.mxu0 %vm14577_vm6, %v7342_v21  ;;  %v1332_v24 = vsel %vm1076_vm4, %v7315_v17, 0.0  ;;  %vm14579_vm6 = vcmp.eq.s32.totalorder %v8659_v33, %v7187_v38 }
 0x38b   : > { %5922 = vmatmul.msk.f32.gmra.mxu3 %vm1058_vm7, %v7286_v8  ;;  %vm1077_vm7 = vcmp.eq.s32.totalorder %v9550_v30, %v7194_v42  ;;  %v1650_v49 = vadd.f32 %v1649_v46, %v1332_v24 }
 0x38c   : > { %v9630_v47 = vpop.f32.mrf.mxu2  ;;  %v1333_v16 = vsel %vm1077_vm7, %v7342_v21, 0.0 }
 0x38d   : > { %1637 = vadd.xlane.f32.xlu1 %v1636_v53  ;;  %v1651_v53 = vadd.f32 %v1650_v49, %v1333_v16 }
 0x38e   : > { %v9618_v60 = vpop.f32.mrf.mxu3 }
 0x38f   : > { %14578 = vst [vmem:[#allocation149_spill] sm:$0xff] %v9618_v60  ;;  %5891 = vmatmul.msk.f32.gmra.mxu1 %vm14579_vm6, %v7286_v8  ;;  %vm14584_vm6 = vcmp.eq.s32.totalorder %v8596_v19, %v7194_v42 }
 0x390   : > { %v9666_v49 = vpop.f32.mrf.mxu0 }
 0x391   : > { %5955 = vmatmul.msk.f32.gmra.mxu2 %vm14580_vm9, %v7300_v12  ;;  %vm14582_vm9 = vcmp.eq.s32.totalorder %v8596_v19, %v7187_v38 }
 0x392   : > { %6083 = vmatmul.msk.f32.gmra.mxu0 %vm937_vm15, %v7342_v21  ;;  %vm14583_vm15 = vcmp.eq.s32.totalorder %v8596_v19, %v7189_v40 }
 0x393   : > { %5923 = vmatmul.msk.f32.gmra.mxu3 %vm1062_vm13, %v7286_v8  ;;  %vm14585_vm13 = vcmp.eq.s32.totalorder %v8228_v9, %v7187_v38 }
 0x394   : > { %v9664_v24 = vpop.f32.mrf.mxu2 }
 0x395   : > { %1652 = vadd.xlane.f32.xlu1 %v1651_v53 }
 0x396   : > { %v9650_v46 = vpop.f32.mrf.mxu3 }
 0x397   : > { %14581 = vst [vmem:[#allocation150_spill] sm:$0xff] %v9650_v46  ;;  %5892 = vmatmul.msk.f32.gmra.mxu1 %vm14582_vm9, %v7286_v8  ;;  %vm14587_vm9 = vcmp.eq.s32.totalorder %v8702_v34, %v7187_v38 }
 0x399   : > { %5956 = vmatmul.msk.f32.gmra.mxu2 %vm14583_vm15, %v7300_v12  ;;  %vm14588_vm15 = vcmp.eq.s32.totalorder %v8702_v34, %v7189_v40 }
 0x39a   : > { %6084 = vmatmul.msk.f32.gmra.mxu0 %vm14584_vm6, %v7342_v21  ;;  %vm14589_vm6 = vcmp.eq.s32.totalorder %v8702_v34, %v7194_v42 }
 0x39b   : > { %5924 = vmatmul.msk.f32.gmra.mxu3 %vm14585_vm13, %v7286_v8  ;;  %vm14591_vm13 = vcmp.eq.s32.totalorder %v8672_v22, %v7187_v38 }
 0x39c   : > { %v9690_v53 = vpop.f32.mrf.mxu2 }
 0x39e   : > { %v9672_v16 = vpop.f32.mrf.mxu3 }
 0x39f   : > { %14586 = vst [vmem:[#allocation151_spill] sm:$0xff] %v9672_v16  ;;  %5893 = vmatmul.msk.f32.gmra.mxu1 %vm14587_vm9, %v7286_v8  ;;  %v9692_v16 = vpop.f32.mrf.mxu0  ;;  %vm14592_vm9 = vcmp.eq.s32.totalorder %v8672_v22, %v7189_v40 }
 0x3a1   : > { %5957 = vmatmul.msk.f32.gmra.mxu2 %vm14588_vm15, %v7300_v12  ;;  %vm14595_vm15 = vcmp.eq.s32.totalorder %v7192_v41, %v7189_v40 }
 0x3a2   : > { %6085 = vmatmul.msk.f32.gmra.mxu0 %vm14589_vm6, %v7342_v21  ;;  %vm14596_vm6 = vcmp.eq.s32.totalorder %v7192_v41, %v7194_v42 }
 0x3a3   : > { %5925 = vmatmul.msk.f32.gmra.mxu3 %vm1070_vm12, %v7286_v8  ;;  %vm14593_vm12 = vcmp.eq.s32.totalorder %v8672_v22, %v7194_v42 }
 0x3a6   : > { %v9694_v46 = vpop.f32.mrf.mxu3 }
 0x3a7   : > { %14590 = vst [vmem:[#allocation152_spill] sm:$0xff] %v9694_v46  ;;  %5894 = vmatmul.msk.f32.gmra.mxu1 %vm14591_vm13, %v7286_v8  ;;  %v9712_v46 = vpop.f32.mrf.mxu2  ;;  %v9716_v34 = vpop.f32.mrf.mxu0  ;;  %vm14599_vm13 = vcmp.eq.s32.totalorder %v7256_v0, %v7189_v40 }
 0x3a9   : > { %5958 = vmatmul.msk.f32.gmra.mxu2 %vm14592_vm9, %v7300_v12  ;;  %vm14600_vm9 = vcmp.eq.s32.totalorder %v7256_v0, %v7194_v42 }
 0x3aa   : > { %6086 = vmatmul.msk.f32.gmra.mxu0 %vm14593_vm12, %v7342_v21  ;;  %vm14601_vm12 = vcmp.eq.s32.totalorder %v7202_v51, %v7199_v48 }
 0x3ab   : > { %5926 = vmatmul.msk.f32.gmra.mxu3 %vm1074_vm3, %v7286_v8  ;;  %vm14597_vm3 = vcmp.eq.s32.totalorder %v7184_v37, %v7199_v48 }
 0x3ae   : > { %v9714_v60 = vpop.f32.mrf.mxu3 }
 0x3af   : > { %14594 = vst [vmem:[#allocation153_spill] sm:$0xff] %v9714_v60  ;;  %v9732_v8 = vpop.f32.mrf.mxu2  ;;  %v9738_v60 = vpop.f32.mrf.mxu0 }
 0x3b1   : > { %5959 = vmatmul.msk.f32.gmra.mxu2 %vm14595_vm15, %v7300_v12  ;;  %vm14603_vm15 = vcmp.eq.s32.totalorder %v7269_v2, %v7189_v40 }
 0x3b2   : > { %6087 = vmatmul.msk.f32.gmra.mxu0 %vm14596_vm6, %v7342_v21  ;;  %vm14606_vm6 = vcmp.eq.s32.totalorder %v7242_v58, %v7199_v48 }
 0x3b3   : > { %5991 = vmatmul.msk.f32.vlgmr.msrb.gmra.mxu3 %vm14597_vm3, %v7315_v17  ;;  %vm14608_vm3 = vcmp.eq.s32.totalorder %v7338_v20, %v7189_v40 }
 0x3b6   : > { %v9730_v38 = vpop.f32.mrf.mxu3 }
 0x3b7   : > { %14598 = vst [vmem:[#allocation154_spill] sm:$0xff] %v9730_v38  ;;  %v9758_v38 = vpop.f32.mrf.mxu2  ;;  %v9760_v0 = vpop.f32.mrf.mxu0 }
 0x3b8   : > { %14604 = vst [vmem:[#allocation156_spill] sm:$0xff] %v9758_v38  ;;  %v14704_v38 = vld [vmem:[#allocation106_spill] sm:$0xff] }
 0x3b9   : > { %5960 = vmatmul.msk.f32.gmra.mxu2 %vm14599_vm13, %v7300_v12  ;;  %14605 = vst [vmem:[#allocation157_spill] sm:$0xff] %v9760_v0  ;;  %vm14610_vm13 = vcmp.eq.s32.totalorder %v7305_v13, %v7199_v48 }
 0x3ba   : > { %6088 = vmatmul.msk.f32.gmra.mxu0 %vm14600_vm9, %v7342_v21  ;;  %vm14614_vm9 = vcmp.eq.s32.totalorder %v7396_v44, %v7189_v40 }
 0x3bb   : > { %5992 = vmatmul.msk.f32.gmra.mxu3 %vm14601_vm12, %v7315_v17  ;;  %vm14615_vm12 = vcmp.eq.s32.totalorder %v7251_v54, %v7199_v48 }
 0x3be   : > { %v9748_v37 = vpop.f32.mrf.mxu3 }
 0x3bf   : > { %14602 = vst [vmem:[#allocation155_spill] sm:$0xff] %v9748_v37  ;;  %v9776_v37 = vpop.f32.mrf.mxu1  ;;  %v9782_v58 = vpop.f32.mrf.mxu2 }
 0x3c0   : > { %14611 = vst [vmem:[#allocation159_spill] sm:$0xff] %v9782_v58 }
 0x3c1   : > { %5961 = vmatmul.msk.f32.gmra.mxu2 %vm14603_vm15, %v7300_v12  ;;  %vm14619_vm15 = vcmp.eq.s32.totalorder %v7229_v61, %v7189_v40 }
 0x3c2   : > { %6089 = vmatmul.msk.f32.gmra.mxu0 %vm961_vm0, %v7342_v21  ;;  %vm14609_vm0 = vcmp.eq.s32.totalorder %v7338_v20, %v7194_v42 }
 0x3c3   : > { %5993 = vmatmul.msk.f32.gmra.mxu3 %vm14606_vm6, %v7315_v17  ;;  %vm14621_vm6 = vcmp.eq.s32.totalorder %v7370_v32, %v7199_v48 }
 0x3c6   : > { %v9766_v51 = vpop.f32.mrf.mxu3 }
 0x3c7   : > { %14607 = vst [vmem:[#allocation158_spill] sm:$0xff] %v9766_v51  ;;  %v9784_v51 = vpop.f32.mrf.mxu0  ;;  %v9800_v13 = vpop.f32.mrf.mxu1 }
 0x3c8   : > { %14612 = vst [vmem:[#allocation160_spill] sm:$0xff] %v9784_v51  ;;  %v9802_v20 = vpop.f32.mrf.mxu2 }
 0x3c9   : > { %5962 = vmatmul.msk.f32.gmra.mxu2 %vm14608_vm3, %v7300_v12  ;;  %14616 = vst [vmem:[#allocation162_spill] sm:$0xff] %v9802_v20  ;;  %vm14624_vm3 = vcmp.eq.s32.totalorder %v7874_v39, %v7189_v40  ;;  %v14694_v20 = vld [vmem:[#allocation102_spill] sm:$0xff] }
 0x3ca   : > { %6090 = vmatmul.msk.f32.gmra.mxu0 %vm14609_vm0, %v7342_v21  ;;  %vm14626_vm0 = vcmp.eq.s32.totalorder %v7874_v39, %v7194_v42 }
 0x3cb   : > { %5994 = vmatmul.msk.f32.gmra.mxu3 %vm14610_vm13, %v7315_v17  ;;  %vm14627_vm13 = vcmp.eq.s32.totalorder %v7308_v14, %v7199_v48 }
 0x3ce   : > { %v9786_v2 = vpop.f32.mrf.mxu3 }
 0x3cf   : > { %14613 = vst [vmem:[#allocation161_spill] sm:$0xff] %v9786_v2  ;;  %v9806_v51 = vpop.f32.mrf.mxu0  ;;  %v9820_v54 = vpop.f32.mrf.mxu1 }
 0x3d0   : > { %14618 = vst [vmem:[#allocation164_spill] sm:$0xff] %v9806_v51  ;;  %v9824_v44 = vpop.f32.mrf.mxu2 }
 0x3d1   : > { %5963 = vmatmul.msk.f32.gmra.mxu2 %vm14614_vm9, %v7300_v12  ;;  %14623 = vst [vmem:[#allocation166_spill] sm:$0xff] %v9824_v44  ;;  %vm14629_vm9 = vcmp.eq.s32.totalorder %v7983_v28, %v7189_v40  ;;  %v10032_v44 = vpop.xlane.xlu2 %1337 }
 0x3d2   : > { %6091 = vmatmul.msk.f32.gmra.mxu0 %vm969_vm2, %v7342_v21  ;;  %vm14620_vm2 = vcmp.eq.s32.totalorder %v7229_v61, %v7194_v42 }
 0x3d3   : > { %5995 = vmatmul.msk.f32.gmra.mxu3 %vm14615_vm12, %v7315_v17  ;;  %vm14632_vm12 = vcmp.eq.s32.totalorder %v7197_v43, %v7199_v48 }
 0x3d6   : > { %v9804_v2 = vpop.f32.mrf.mxu3 }
 0x3d7   : > { %14617 = vst [vmem:[#allocation163_spill] sm:$0xff] %v9804_v2  ;;  %v9830_v51 = vpop.f32.mrf.mxu0 }
 0x3d8   : > { %14625 = vst [vmem:[#allocation167_spill] sm:$0xff] %v9830_v51  ;;  %v9852_v39 = vpop.f32.mrf.mxu2 }
 0x3d9   : > { %5964 = vmatmul.msk.f32.gmra.mxu2 %vm14619_vm15, %v7300_v12  ;;  %14630 = vst [vmem:[#allocation169_spill] sm:$0xff] %v9852_v39 }
 0x3da   : > { %6092 = vmatmul.msk.f32.gmra.mxu0 %vm14620_vm2, %v7342_v21 }
 0x3db   : > { %5996 = vmatmul.msk.f32.gmra.mxu3 %vm14621_vm6, %v7315_v17  ;;  %vm14642_vm6 = vcmp.eq.s32.totalorder %v8221_v50, %v7189_v40 }
 0x3de   : > { %v9822_v2 = vpop.f32.mrf.mxu3 }
 0x3df   : > { %14622 = vst [vmem:[#allocation165_spill] sm:$0xff] %v9822_v2  ;;  %v9842_v2 = vpop.f32.mrf.mxu1  ;;  %v9854_v61 = vpop.f32.mrf.mxu0 }
 0x3e0   : > { %14631 = vst [vmem:[#allocation170_spill] sm:$0xff] %v9854_v61  ;;  %v14637_v61 = vld [vmem:[#allocation39_spill] sm:$0xff]  ;;  %v9876_v43 = vpop.f32.mrf.mxu2 }
 0x3e1   : > { %5965 = vmatmul.msk.f32.gmra.mxu2 %vm14624_vm3, %v7300_v12  ;;  %vm14638_vm2 = vcmp.eq.s32.totalorder %v14637_v61, %v7199_v48  ;;  %14639 = vst [vmem:[#allocation39_spill] sm:$0xff] %v9876_v43 }
 0x3e2   : > { %6093 = vmatmul.msk.f32.gmra.mxu0 %vm14626_vm0, %v7342_v21 }
 0x3e3   : > { %5997 = vmatmul.msk.f32.gmra.mxu3 %vm14627_vm13, %v7315_v17  ;;  %vm14659_vm13 = vcmp.eq.s32.totalorder %v8437_v10, %v7189_v40 }
 0x3e6   : > { %v9840_v32 = vpop.f32.mrf.mxu3 }
 0x3e7   : > { %14628 = vst [vmem:[#allocation168_spill] sm:$0xff] %v9840_v32  ;;  %v14634_v32 = vld [vmem:[#allocation24_spill] sm:$0xff]  ;;  %v9870_v28 = vpop.f32.mrf.mxu1 }
 0x3e8   : > { %vm14635_vm15 = vcmp.eq.s32.totalorder %v14634_v32, %v7189_v40 }
 0x3e9   : > { %5966 = vmatmul.msk.f32.gmra.mxu2 %vm14629_vm9, %v7300_v12  ;;  %vm14660_vm9 = vcmp.eq.s32.totalorder %v8437_v10, %v7194_v42 }
 0x3ea   : > { %6094 = vmatmul.msk.f32.gmra.mxu0 %vm981_vm14, %v7342_v21  ;;  %vm14636_vm14 = vcmp.eq.s32.totalorder %v14634_v32, %v7194_v42  ;;  %v14643_v32 = vld [vmem:[#allocation32_spill] sm:$0xff] }
 0x3eb   : > { %5998 = vmatmul.msk.f32.gmra.mxu3 %vm14632_vm12, %v7315_v17  ;;  %vm14644_vm3 = vcmp.eq.s32.totalorder %v14643_v32, %v7199_v48  ;;  %v14648_v32 = vld [vmem:[#allocation43_spill] sm:$0xff] }
 0x3ee   : > { %v9860_v14 = vpop.f32.mrf.mxu3 }
 0x3ef   : > { %14633 = vst [vmem:[#allocation171_spill] sm:$0xff] %v9860_v14  ;;  %v9878_v14 = vpop.f32.mrf.mxu0  ;;  %v9894_v61 = vpop.f32.mrf.mxu1 }
 0x3f0   : > { %14640 = vst [vmem:[#allocation172_spill] sm:$0xff] %v9878_v14  ;;  %v9896_v14 = vpop.f32.mrf.mxu2 }
 0x3f1   : > { %5967 = vmatmul.msk.f32.gmra.mxu2 %vm14635_vm15, %v7300_v12  ;;  %14645 = vst [vmem:[#allocation32_spill] sm:$0xff] %v9896_v14  ;;  %v14652_v14 = vld [vmem:[#allocation31_spill] sm:$0xff]  ;;  %vm14666_vm15 = vcmp.eq.s32.totalorder %v8520_v25, %v7189_v40 }
 0x3f2   : > { %6095 = vmatmul.msk.f32.gmra.mxu0 %vm14636_vm14, %v7342_v21  ;;  %vm14667_vm14 = vcmp.eq.s32.totalorder %v8520_v25, %v7194_v42  ;;  %v14676_v25 = vld [vmem:[#allocation62_spill] sm:$0xff] }
 0x3f3   : > { %5999 = vmatmul.msk.f32.gmra.mxu3 %vm14638_vm2, %v7315_v17 }
 0x3f6   : > { %v9880_v39 = vpop.f32.mrf.mxu3 }
 0x3f7   : > { %14641 = vst [vmem:[#allocation173_spill] sm:$0xff] %v9880_v39  ;;  %v9900_v43 = vpop.f32.mrf.mxu0  ;;  %v9914_v50 = vpop.f32.mrf.mxu1 }
 0x3f8   : > { %14647 = vst [vmem:[#allocation175_spill] sm:$0xff] %v9900_v43  ;;  %v9918_v43 = vpop.f32.mrf.mxu2 }
 0x3f9   : > { %5968 = vmatmul.msk.f32.gmra.mxu2 %vm14642_vm6, %v7300_v12  ;;  %14651 = vst [vmem:[#allocation176_spill] sm:$0xff] %v9918_v43  ;;  %v14673_v43 = vld [vmem:[#allocation38_spill] sm:$0xff] }
 0x3fa   : > { %6096 = vmatmul.msk.f32.gmra.mxu0 %vm989_vm10, %v7342_v21  ;;  %vm14649_vm10 = vcmp.eq.s32.totalorder %v14648_v32, %v7199_v48  ;;  %v14656_v32 = vld [vmem:[#allocation40_spill] sm:$0xff]  ;;  %vm14674_vm6 = vcmp.eq.s32.totalorder %v14673_v43, %v7189_v40 }
 0x3fb   : > { %6000 = vmatmul.msk.f32.gmra.mxu3 %vm14644_vm3, %v7315_v17  ;;  %vm14657_vm0 = vcmp.eq.s32.totalorder %v14656_v32, %v7199_v48  ;;  %v14663_v32 = vld [vmem:[#allocation52_spill] sm:$0xff]  ;;  %vm14675_vm3 = vcmp.eq.s32.totalorder %v14673_v43, %v7194_v42  ;;  %v14684_v43 = vld [vmem:[#allocation53_spill] sm:$0xff] }
 0x3fc   : > { %vm14664_vm12 = vcmp.eq.s32.totalorder %v14663_v32, %v7199_v48 }
 0x3fe   : > { %v9898_v39 = vpop.f32.mrf.mxu3 }
 0x3ff   : > { %14646 = vst [vmem:[#allocation174_spill] sm:$0xff] %v9898_v39  ;;  %v9924_v51 = vpop.f32.mrf.mxu0  ;;  %v9936_v29 = vpop.f32.mrf.mxu1 }
 0x400   : > { %14654 = vst [vmem:[#allocation177_spill] sm:$0xff] %v9924_v51 }
 0x401   : > { %5969 = vmatmul.msk.f32.gmra.mxu2 %vm991_vm8, %v7300_v12  ;;  %vm14653_vm8 = vcmp.eq.s32.totalorder %v14652_v14, %v7189_v40 }
 0x402   : > { %6097 = vmatmul.msk.f32.gmra.mxu0 %vm993_vm1, %v7342_v21  ;;  %vm14655_vm1 = vcmp.eq.s32.totalorder %v14652_v14, %v7194_v42  ;;  %v9946_v14 = vpop.f32.mrf.mxu2 }
 0x403   : > { %6001 = vmatmul.msk.f32.gmra.mxu3 %vm14649_vm10, %v7315_v17  ;;  %14661 = vst [vmem:[#allocation178_spill] sm:$0xff] %v9946_v14  ;;  %vm14677_vm10 = vcmp.eq.s32.totalorder %v14676_v25, %v7199_v48  ;;  %v10004_v25 = vpop.xlane.xlu1 %1342 }
 0x406   : > { %v9916_v39 = vpop.f32.mrf.mxu3 }
 0x407   : > { %14650 = vst [vmem:[#allocation43_spill] sm:$0xff] %v9916_v39  ;;  %v9948_v51 = vpop.f32.mrf.mxu0  ;;  %v9964_v10 = vpop.f32.mrf.mxu1 }
 0x408   : > { %14662 = vst [vmem:[#allocation179_spill] sm:$0xff] %v9948_v51  ;;  %v14668_v51 = vld [vmem:[#allocation46_spill] sm:$0xff] }
 0x409   : > { %5970 = vmatmul.msk.f32.gmra.mxu2 %vm14653_vm8, %v7300_v12  ;;  %vm14669_vm2 = vcmp.eq.s32.totalorder %v14668_v51, %v7199_v48  ;;  %vm14682_vm8 = vcmp.eq.s32.totalorder %v8699_v35, %v7189_v40 }
 0x40a   : > { %6098 = vmatmul.msk.f32.gmra.mxu0 %vm14655_vm1, %v7342_v21  ;;  %v9970_v32 = vpop.f32.mrf.mxu2  ;;  %vm14683_vm1 = vcmp.eq.s32.totalorder %v8699_v35, %v7194_v42 }
 0x40b   : > { %6002 = vmatmul.msk.f32.gmra.mxu3 %vm14657_vm0, %v7315_v17  ;;  %14670 = vst [vmem:[#allocation46_spill] sm:$0xff] %v9970_v32  ;;  %vm14685_vm0 = vcmp.eq.s32.totalorder %v14684_v43, %v7199_v48  ;;  %v14692_v43 = vld [vmem:[#allocation65_spill] sm:$0xff] }
 0x40e   : > { %v9934_v39 = vpop.f32.mrf.mxu3 }
 0x40f   : > { %14658 = vst [vmem:[#allocation40_spill] sm:$0xff] %v9934_v39  ;;  %v9988_v51 = vpop.f32.mrf.mxu1 }
 0x410   : > { %14678 = vst [vmem:[#allocation62_spill] sm:$0xff] %v9988_v51 }
 0x411   : > { %5971 = vmatmul.msk.f32.gmra.mxu2 %vm14659_vm13, %v7300_v12  ;;  %vm14689_vm13 = vcmp.eq.s32.totalorder %v8804_v23, %v7189_v40 }
 0x412   : > { %6099 = vmatmul.msk.f32.gmra.mxu0 %vm14660_vm9, %v7342_v21  ;;  %vm14691_vm9 = vcmp.eq.s32.totalorder %v8804_v23, %v7194_v42  ;;  %v14698_v23 = vld [vmem:[#allocation98_spill] sm:$0xff] }
 0x413   : > { %6003 = vmatmul.msk.f32.gmra.mxu3 %vm14664_vm12, %v7315_v17  ;;  %vm14693_vm12 = vcmp.eq.s32.totalorder %v14692_v43, %v7199_v48 }
 0x416   : > { %v9954_v39 = vpop.f32.mrf.mxu3 }
 0x417   : > { %14665 = vst [vmem:[#allocation52_spill] sm:$0xff] %v9954_v39  ;;  %v9972_v39 = vpop.f32.mrf.mxu0 }
 0x418   : > { %14671 = vst [vmem:[#allocation180_spill] sm:$0xff] %v9972_v39  ;;  %v9990_v39 = vpop.f32.mrf.mxu2 }
 0x419   : > { %5972 = vmatmul.msk.f32.gmra.mxu2 %vm14666_vm15, %v7300_v12  ;;  %14679 = vst [vmem:[#allocation182_spill] sm:$0xff] %v9990_v39 }
 0x41a   : > { %6100 = vmatmul.msk.f32.gmra.mxu0 %vm14667_vm14, %v7342_v21 }
 0x41b   : > { %6004 = vmatmul.msk.f32.gmra.mxu3 %vm14669_vm2, %v7315_v17 }
 0x41e   : > { %v9974_v14 = vpop.f32.mrf.mxu3 }
 0x41f   : > { %14672 = vst [vmem:[#allocation181_spill] sm:$0xff] %v9974_v14  ;;  %v9994_v32 = vpop.f32.mrf.mxu0 }
 0x420   : > { %14681 = vst [vmem:[#allocation184_spill] sm:$0xff] %v9994_v32  ;;  %v10014_v39 = vpop.f32.mrf.mxu2 }
 0x421   : > { %5973 = vmatmul.msk.f32.gmra.mxu2 %vm14674_vm6, %v7300_v12  ;;  %14688 = vst [vmem:[#allocation186_spill] sm:$0xff] %v10014_v39  ;;  %vm14705_vm6 = vcmp.eq.s32.totalorder %v8944_v7, %v7189_v40 }
 0x422   : > { %6101 = vmatmul.msk.f32.gmra.mxu0 %vm14675_vm3, %v7342_v21  ;;  %vm14707_vm3 = vcmp.eq.s32.totalorder %v8944_v7, %v7194_v42  ;;  %v14714_v7 = vld [vmem:[#allocation107_spill] sm:$0xff] }
 0x423   : > { %6005 = vmatmul.msk.f32.gmra.mxu3 %vm14677_vm10, %v7315_v17 }
 0x426   : > { %v9992_v14 = vpop.f32.mrf.mxu3 }
 0x427   : > { %14680 = vst [vmem:[#allocation183_spill] sm:$0xff] %v9992_v14  ;;  %v10010_v14 = vpop.f32.mrf.mxu1  ;;  %v10020_v35 = vpop.f32.mrf.mxu0 }
 0x428   : > { %14686 = vst [vmem:[#allocation53_spill] sm:$0xff] %v10010_v14  ;;  %v10046_v43 = vpop.f32.mrf.mxu2 }
 0x429   : > { %5974 = vmatmul.msk.f32.gmra.mxu2 %vm14682_vm8, %v7300_v12  ;;  %14690 = vst [vmem:[#allocation187_spill] sm:$0xff] %v10020_v35  ;;  %v14696_v35 = vld [vmem:[#allocation41_spill] sm:$0xff]  ;;  %vm14713_vm8 = vcmp.eq.s32.totalorder %v9014_v3, %v7189_v40 }
 0x42a   : > { %6102 = vmatmul.msk.f32.gmra.mxu0 %vm14683_vm1, %v7342_v21  ;;  %vm14697_vm15 = vcmp.eq.s32.totalorder %v14696_v35, %v7189_v40  ;;  %vm14699_vm14 = vcmp.eq.s32.totalorder %v14696_v35, %v7194_v42  ;;  %14700 = vst [vmem:[#allocation102_spill] sm:$0xff] %v10046_v43  ;;  %v14706_v35 = vld [vmem:[#allocation103_spill] sm:$0xff]  ;;  %vm14715_vm1 = vcmp.eq.s32.totalorder %v9014_v3, %v7194_v42  ;;  %v14722_v3 = vld [vmem:[#allocation49_spill] sm:$0xff] }
 0x42b   : > { %6006 = vmatmul.msk.f32.gmra.mxu3 %vm14685_vm0, %v7315_v17  ;;  %vm14717_vm0 = vcmp.eq.s32.totalorder %v8146_v56, %v7199_v48 }
 0x42e   : > { %v10012_v32 = vpop.f32.mrf.mxu3 }
 0x42f   : > { %14687 = vst [vmem:[#allocation185_spill] sm:$0xff] %v10012_v32  ;;  %v10030_v32 = vpop.xlane.xlu1 %1347  ;;  %v10035_v58 = vpop.f32.mrf.mxu1 }
 0x430   : > { %14695 = vst [vmem:[#allocation65_spill] sm:$0xff] %v10035_v58  ;;  %v10048_v0 = vpop.f32.mrf.mxu0 }
 0x431   : > { %5975 = vmatmul.msk.f32.gmra.mxu2 %vm14689_vm13, %v7300_v12  ;;  %14701 = vst [vmem:[#allocation98_spill] sm:$0xff] %v10048_v0  ;;  %vm14723_vm13 = vcmp.eq.s32.totalorder %v14722_v3, %v7189_v40 }
 0x432   : > { %6103 = vmatmul.msk.f32.gmra.mxu0 %vm14691_vm9, %v7342_v21  ;;  %vm14725_vm9 = vcmp.eq.s32.totalorder %v14722_v3, %v7194_v42 }
 0x433   : > { %6007 = vmatmul.msk.f32.gmra.mxu3 %vm14693_vm12, %v7315_v17 }
 0x436   : > { %v3113_v39 = vpop.f32.mrf.mxu3 }
 0x437   : > { %v3114_v14 = vadd.f32 %v3113_v39, %v14694_v20  ;;  %v14702_v20 = vld [vmem:[#allocation63_spill] sm:$0xff]  ;;  %v10054_v58 = vpop.xlane.xlu1 %1352 }
 0x438   : > { %vm14703_vm2 = vcmp.eq.s32.totalorder %v14702_v20, %v7199_v48  ;;  %v14709_v20 = vld [vmem:[#allocation74_spill] sm:$0xff] }
 0x439   : > { %5976 = vmatmul.msk.f32.gmra.mxu2 %vm14697_vm15, %v7300_v12  ;;  %v3323_v51 = vadd.f32 %v14698_v23, %v3114_v14  ;;  %v10061_v14 = vpop.xlane.xlu2 %1357  ;;  %vm14710_vm10 = vcmp.eq.s32.totalorder %v14709_v20, %v7199_v48  ;;  %vm14732_vm15 = vcmp.eq.s32.totalorder %v9154_v26, %v7189_v40 }
 0x43a   : > { %6104 = vmatmul.msk.f32.gmra.mxu0 %vm14699_vm14, %v7342_v21  ;;  %vm14735_vm14 = vcmp.eq.s32.totalorder %v9154_v26, %v7194_v42 }
 0x43b   : > { %6008 = vmatmul.msk.f32.gmra.mxu3 %vm14703_vm2, %v7315_v17  ;;  %3530 = vmatmul.f32.vlgmr.msrb.gmra.mxu1 %v3323_v51  ;;  %v10068_v51 = vpop.f32.mrf.mxu1 }
 0x43c   : > { %14708 = vst [vmem:[#allocation63_spill] sm:$0xff] %v10068_v51 }
 0x43e   : > { %v3116_v39 = vpop.f32.mrf.mxu3 }
 0x43f   : > { %v3117_v23 = vadd.f32 %v3116_v39, %v14704_v38  ;;  %v10074_v38 = vpop.f32.mrf.mxu2  ;;  %v10076_v39 = vpop.f32.mrf.mxu0 }
 0x440   : > { %14711 = vst [vmem:[#allocation106_spill] sm:$0xff] %v10074_v38  ;;  %v14724_v38 = vld [vmem:[#allocation111_spill] sm:$0xff] }
 0x441   : > { %5977 = vmatmul.msk.f32.gmra.mxu2 %vm14705_vm6, %v7300_v12  ;;  %v3326_v0 = vadd.f32 %v14706_v35, %v3117_v23  ;;  %14712 = vst [vmem:[#allocation103_spill] sm:$0xff] %v10076_v39  ;;  %v10083_v23 = vpop.xlane.xlu1 %1362  ;;  %vm14739_vm6 = vcmp.eq.s32.totalorder %v9228_v1, %v7189_v40 }
 0x442   : > { %6105 = vmatmul.msk.f32.gmra.mxu0 %vm14707_vm3, %v7342_v21  ;;  %vm14741_vm3 = vcmp.eq.s32.totalorder %v9228_v1, %v7194_v42  ;;  %v14747_v1 = vld [vmem:[#allocation125_spill] sm:$0xff] }
 0x443   : > { %6009 = vmatmul.msk.f32.gmra.mxu3 %vm14710_vm10, %v7315_v17  ;;  %3533 = vmatmul.f32.gmra.mxu1 %v3326_v0  ;;  %v10090_v0 = vpop.xlane.xlu2 %1367  ;;  %vm14744_vm10 = vcmp.eq.s32.totalorder %v8423_v6, %v7199_v48 }
 0x444   : > { %14716 = vst [vmem:[#allocation74_spill] sm:$0xff] %v10090_v0 }
 0x446   : > { %v3119_v43 = vpop.f32.mrf.mxu3 }
 0x447   : > { %v3120_v35 = vadd.f32 %v3119_v43, %v8987_v15  ;;  %v10096_v15 = vpop.f32.mrf.mxu1  ;;  %v10098_v43 = vpop.f32.mrf.mxu2 }
 0x448   : > { %14718 = vst [vmem:[#allocation107_spill] sm:$0xff] %v10096_v15  ;;  %v10100_v39 = vpop.f32.mrf.mxu0  ;;  %v14734_v15 = vld [vmem:[#allocation115_spill] sm:$0xff] }
 0x449   : > { %5978 = vmatmul.msk.f32.gmra.mxu2 %vm14713_vm8, %v7300_v12  ;;  %v3329_v51 = vadd.f32 %v14714_v7, %v3120_v35  ;;  %14719 = vst [vmem:[#allocation188_spill] sm:$0xff] %v10098_v43  ;;  %v14721_v7 = vld [vmem:[#allocation114_spill] sm:$0xff]  ;;  %v10112_v56 = vpop.xlane.xlu1 %1377  ;;  %vm14745_vm8 = vcmp.eq.s32.totalorder %v7986_v55, %v7189_v40 }
 0x44a   : > { %6106 = vmatmul.msk.f32.gmra.mxu0 %vm14715_vm1, %v7342_v21  ;;  %14720 = vst [vmem:[#allocation189_spill] sm:$0xff] %v10100_v39  ;;  %v14730_v43 = vld [vmem:[#allocation118_spill] sm:$0xff]  ;;  %vm14748_vm1 = vcmp.eq.s32.totalorder %v7986_v55, %v7194_v42  ;;  %v14755_v55 = vld [vmem:[#allocation129_spill] sm:$0xff] }
 0x44b   : > { %6010 = vmatmul.msk.f32.gmra.mxu3 %vm14717_vm0, %v7315_v17  ;;  %3536 = vmatmul.f32.gmra.mxu1 %v3329_v51  ;;  %v14726_v51 = vld [vmem:[#allocation78_spill] sm:$0xff] }
 0x44c   : > { %vm14727_vm12 = vcmp.eq.s32.totalorder %v14726_v51, %v7199_v48 }
 0x44e   : > { %v3122_v20 = vpop.f32.mrf.mxu3 }
 0x44f   : > { %v3123_v35 = vadd.f32 %v3122_v20, %v14721_v7  ;;  %v10118_v20 = vpop.xlane.xlu2 %1382  ;;  %v10120_v7 = vpop.f32.mrf.mxu1 }
 0x450   : > { %14728 = vst [vmem:[#allocation114_spill] sm:$0xff] %v10118_v20  ;;  %v10129_v3 = vpop.f32.mrf.mxu0 }
 0x451   : > { %5979 = vmatmul.msk.f32.gmra.mxu2 %vm14723_vm13, %v7300_v12  ;;  %v3332_v0 = vadd.f32 %v14724_v38, %v3123_v35  ;;  %14729 = vst [vmem:[#allocation111_spill] sm:$0xff] %v10120_v7  ;;  %v10123_v35 = vpop.f32.mrf.mxu2  ;;  %v14738_v7 = vld [vmem:[#allocation123_spill] sm:$0xff]  ;;  %vm14754_vm13 = vcmp.eq.s32.totalorder %v9284_v5, %v7189_v40 }
 0x452   : > { %6107 = vmatmul.msk.f32.gmra.mxu0 %vm14725_vm9, %v7342_v21  ;;  %14731 = vst [vmem:[#allocation78_spill] sm:$0xff] %v10123_v35  ;;  %vm14756_vm9 = vcmp.eq.s32.totalorder %v9284_v5, %v7194_v42 }
 0x453   : > { %6011 = vmatmul.msk.f32.gmra.mxu3 %vm14727_vm12, %v7315_v17  ;;  %3539 = vmatmul.f32.gmra.mxu1 %v3332_v0  ;;  %14733 = vst [vmem:[#allocation118_spill] sm:$0xff] %v10129_v3  ;;  %v14736_v0 = vld [vmem:[#allocation76_spill] sm:$0xff] }
 0x454   : > { %vm14737_vm2 = vcmp.eq.s32.totalorder %v14736_v0, %v7199_v48 }
 0x456   : > { %v3125_v39 = vpop.f32.mrf.mxu3 }
 0x457   : > { %v3126_v38 = vadd.f32 %v3125_v39, %v14730_v43  ;;  %v10140_v39 = vpop.xlane.xlu1 %1387  ;;  %v10142_v35 = vpop.xlane.xlu2 %1392 }
 0x458   : > { %v10145_v20 = vpop.f32.mrf.mxu1  ;;  %v10158_v0 = vpop.f32.mrf.mxu0 }
 0x459   : > { %5980 = vmatmul.msk.f32.gmra.mxu2 %vm14732_vm15, %v7300_v12  ;;  %v3335_v51 = vadd.f32 %v14734_v15, %v3126_v38  ;;  %v14740_v15 = vld [vmem:[#allocation119_spill] sm:$0xff]  ;;  %14743 = vst [vmem:[#allocation76_spill] sm:$0xff] %v10158_v0  ;;  %vm14762_vm15 = vcmp.eq.s32.totalorder %v9398_v52, %v7189_v40 }
 0x45a   : > { %6108 = vmatmul.msk.f32.gmra.mxu0 %vm14735_vm14, %v7342_v21  ;;  %vm14764_vm14 = vcmp.eq.s32.totalorder %v9398_v52, %v7194_v42 }
 0x45b   : > { %6012 = vmatmul.msk.f32.gmra.mxu3 %vm14737_vm2, %v7315_v17  ;;  %3542 = vmatmul.f32.gmra.mxu1 %v3335_v51  ;;  %v10156_v51 = vpop.f32.mrf.mxu2  ;;  %vm14765_vm2 = vcmp.eq.s32.totalorder %v8426_v11, %v7199_v48  ;;  %v14768_v11 = vld [vmem:[#allocation144_spill] sm:$0xff] }
 0x45c   : > { %14742 = vst [vmem:[#allocation115_spill] sm:$0xff] %v10156_v51  ;;  %v14753_v51 = vld [vmem:[#allocation132_spill] sm:$0xff] }
 0x45e   : > { %v3128_v43 = vpop.f32.mrf.mxu3 }
 0x45f   : > { %v3129_v3 = vadd.f32 %v3128_v43, %v14738_v7  ;;  %v10164_v43 = vpop.xlane.xlu1 %1397 }
 0x460   : > { %v10178_v6 = vpop.f32.mrf.mxu1 }
 0x461   : > { %5981 = vmatmul.msk.f32.gmra.mxu2 %vm14739_vm6, %v7300_v12  ;;  %v3338_v38 = vadd.f32 %v14740_v15, %v3129_v3  ;;  %v10171_v15 = vpop.xlane.xlu2 %1402  ;;  %vm14767_vm6 = vcmp.eq.s32.totalorder %v8063_v57, %v7189_v40 }
 0x462   : > { %6109 = vmatmul.msk.f32.gmra.mxu0 %vm14741_vm3, %v7342_v21  ;;  %14746 = vst [vmem:[#allocation123_spill] sm:$0xff] %v10171_v15  ;;  %vm14769_vm3 = vcmp.eq.s32.totalorder %v8063_v57, %v7194_v42 }
 0x463   : > { %6013 = vmatmul.msk.f32.gmra.mxu3 %vm14744_vm10, %v7315_v17  ;;  %3545 = vmatmul.f32.gmra.mxu1 %v3338_v38  ;;  %v14749_v38 = vld [vmem:[#allocation80_spill] sm:$0xff]  ;;  %vm14770_vm10 = vcmp.eq.s32.totalorder %v8593_v36, %v7199_v48 }
 0x464   : > { %vm14750_vm0 = vcmp.eq.s32.totalorder %v14749_v38, %v7199_v48  ;;  %v14758_v38 = vld [vmem:[#allocation87_spill] sm:$0xff] }
 0x465   : > { %vm14759_vm12 = vcmp.eq.s32.totalorder %v14758_v38, %v7199_v48 }
 0x466   : > { %v3131_v7 = vpop.f32.mrf.mxu3 }
 0x467   : > { %v3132_v3 = vadd.f32 %v3131_v7, %v9277_v45  ;;  %v10184_v45 = vpop.f32.mrf.mxu2  ;;  %v10186_v7 = vpop.f32.mrf.mxu0 }
 0x468   : > { %14751 = vst [vmem:[#allocation119_spill] sm:$0xff] %v10184_v45 }
 0x469   : > { %5982 = vmatmul.msk.f32.gmra.mxu2 %vm14745_vm8, %v7300_v12  ;;  %v3341_v26 = vadd.f32 %v14747_v1, %v3132_v3  ;;  %14752 = vst [vmem:[#allocation125_spill] sm:$0xff] %v10186_v7  ;;  %v10193_v3 = vpop.xlane.xlu1 %1407  ;;  %vm14771_vm8 = vcmp.eq.s32.totalorder %v9358_v31, %v7189_v40 }
 0x46a   : > { %6110 = vmatmul.msk.f32.gmra.mxu0 %vm14748_vm1, %v7342_v21  ;;  %vm14772_vm1 = vcmp.eq.s32.totalorder %v9358_v31, %v7194_v42 }
 0x46b   : > { %6014 = vmatmul.msk.f32.gmra.mxu3 %vm14750_vm0, %v7315_v17  ;;  %3548 = vmatmul.f32.gmra.mxu1 %v3341_v26  ;;  %v10200_v26 = vpop.xlane.xlu2 %1412  ;;  %vm14773_vm0 = vcmp.eq.s32.totalorder %v8499_v59, %v7199_v48 }
 0x46c   : > { %14757 = vst [vmem:[#allocation80_spill] sm:$0xff] %v10200_v26  ;;  %v14763_v26 = vld [vmem:[#allocation137_spill] sm:$0xff] }
 0x46e   : > { %v3134_v0 = vpop.f32.mrf.mxu3 }
 0x46f   : > { %v3135_v1 = vadd.f32 %v3134_v0, %v14753_v51  ;;  %v10206_v51 = vpop.f32.mrf.mxu1  ;;  %v14760_v0 = vld [vmem:[#allocation138_spill] sm:$0xff]  ;;  %v10210_v45 = vpop.f32.mrf.mxu2 }
 0x470   : > { %v2929_v7 = vadd.f32 %v14760_v0, %v9776_v37 }
 0x471   : > { %5983 = vmatmul.msk.f32.gmra.mxu2 %vm14754_vm13, %v7300_v12  ;;  %v3344_v15 = vadd.f32 %v14755_v55, %v3135_v1  ;;  %v10212_v1 = vpop.f32.mrf.mxu0  ;;  %vm14774_vm13 = vcmp.eq.s32.totalorder %v9482_v27, %v7189_v40 }
 0x472   : > { %6111 = vmatmul.msk.f32.gmra.mxu0 %vm14756_vm9, %v7342_v21  ;;  %14761 = vst [vmem:[#allocation132_spill] sm:$0xff] %v10212_v1  ;;  %vm14775_vm9 = vcmp.eq.s32.totalorder %v8659_v33, %v7199_v48 }
 0x473   : > { %6015 = vmatmul.msk.f32.gmra.mxu3 %vm14759_vm12, %v7315_v17  ;;  %3551 = vmatmul.f32.gmra.mxu1 %v3344_v15  ;;  %v10223_v15 = vpop.xlane.xlu1 %1417  ;;  %v10229_v37 = vpop.xlane.xlu2 %1422  ;;  %vm14778_vm12 = vcmp.eq.s32.totalorder %v8228_v9, %v7194_v42 }
 0x476   : > { %v3137_v55 = vpop.f32.mrf.mxu3 }
 0x477   : > { %v3138_v5 = vadd.f32 %v3137_v55, %v2929_v7  ;;  %v14766_v7 = vld [vmem:[#allocation143_spill] sm:$0xff]  ;;  %v10233_v55 = vpop.f32.mrf.mxu1  ;;  %v10235_v1 = vpop.f32.mrf.mxu2 }
 0x478   : > { %v2932_v0 = vadd.f32 %v14766_v7, %v9800_v13  ;;  %v2935_v7 = vadd.f32 %v9578_v63, %v9820_v54  ;;  %v2938_v54 = vadd.f32 %v9630_v47, %v9842_v2  ;;  %v2941_v47 = vadd.f32 %v9664_v24, %v9870_v28 }
 0x479   : > { %5984 = vmatmul.msk.f32.gmra.mxu2 %vm14762_vm15, %v7300_v12  ;;  %v3347_v38 = vadd.f32 %v14763_v26, %v3138_v5  ;;  %v10241_v52 = vpop.f32.mrf.mxu0  ;;  %vm14779_vm15 = vcmp.eq.s32.totalorder %v8596_v19, %v7199_v48  ;;  %v2944_v24 = vadd.f32 %v9690_v53, %v9894_v61 }
 0x47a   : > { %6112 = vmatmul.msk.f32.gmra.mxu0 %vm14764_vm14, %v7342_v21  ;;  %vm14782_vm14 = vcmp.eq.s32.totalorder %v9440_v4, %v7189_v40 }
 0x47b   : > { %6016 = vmatmul.msk.f32.gmra.mxu3 %vm14765_vm2, %v7315_v17  ;;  %3554 = vmatmul.f32.gmra.mxu1 %v3347_v38  ;;  %v10252_v13 = vpop.xlane.xlu1 %1427  ;;  %vm14783_vm2 = vcmp.eq.s32.totalorder %v9440_v4, %v7194_v42 }
 0x47e   : > { %v3140_v5 = vpop.f32.mrf.mxu3 }
 0x47f   : > { %v3141_v26 = vadd.f32 %v3140_v5, %v2932_v0  ;;  %v10256_v5 = vpop.xlane.xlu2 %1432 }
 0x481   : > { %5985 = vmatmul.msk.f32.gmra.mxu2 %vm14767_vm6, %v7300_v12  ;;  %v3350_v38 = vadd.f32 %v14768_v11, %v3141_v26  ;;  %v10258_v11 = vpop.f32.mrf.mxu1  ;;  %v10271_v63 = vpop.f32.mrf.mxu0 }
 0x482   : > { %6113 = vmatmul.msk.f32.gmra.mxu0 %vm14769_vm3, %v7342_v21  ;;  %vm14788_vm3 = vcmp.eq.s32.totalorder %v8672_v22, %v7199_v48 }
 0x483   : > { %6017 = vmatmul.msk.f32.gmra.mxu3 %vm14770_vm10, %v7315_v17  ;;  %3557 = vmatmul.f32.gmra.mxu1 %v3350_v38  ;;  %v10269_v38 = vpop.f32.mrf.mxu2 }
 0x486   : > { %v3143_v0 = vpop.f32.mrf.mxu3 }
 0x487   : > { %v3144_v26 = vadd.f32 %v3143_v0, %v2935_v7 }
 0x489   : > { %5986 = vmatmul.msk.f32.gmra.mxu2 %vm14771_vm8, %v7300_v12  ;;  %v3353_v36 = vadd.f32 %v9588_v62, %v3144_v26  ;;  %v10279_v62 = vpop.xlane.xlu1 %1437  ;;  %v10285_v26 = vpop.xlane.xlu2 %1442 }
 0x48a   : > { %6114 = vmatmul.msk.f32.gmra.mxu0 %vm14772_vm1, %v7342_v21  ;;  %v10292_v59 = vpop.f32.mrf.mxu1 }
 0x48b   : > { %6018 = vmatmul.msk.f32.gmra.mxu3 %vm14773_vm0, %v7315_v17  ;;  %3560 = vmatmul.f32.gmra.mxu1 %v3353_v36  ;;  %v10298_v2 = vpop.f32.mrf.mxu2  ;;  %v10302_v36 = vpop.f32.mrf.mxu0 }
 0x48c   : > { %14776 = vst [vmem:[#allocation129_spill] sm:$0xff] %v10302_v36 }
 0x48e   : > { %v3146_v7 = vpop.f32.mrf.mxu3 }
 0x48f   : > { %v3147_v0 = vadd.f32 %v3146_v7, %v2938_v54  ;;  %v10305_v7 = vmax.f32 %v10032_v44, 1e-30 }
 0x491   : > { %5987 = vmatmul.msk.f32.gmra.mxu2 %vm14774_vm13, %v7300_v12  ;;  %v3356_v31 = vadd.f32 %v9636_v18, %v3147_v0  ;;  %v10311_v33 = vpop.xlane.xlu1 %1447  ;;  %v10318_v28 = vpop.xlane.xlu2 %1452  ;;  %6213 = vrcp.f32 %v10305_v7  ;;  %vm1723_vm10 = vweird.f32 %v10305_v7  ;;  %vm3855_vm13 = vcmask 64512  }
 0x492   : > { %6115 = vmatmul.msk.f32.gmra.mxu0 %vm1065_vm11, %v7342_v21  ;;  %vm14777_vm11 = vcmp.eq.s32.totalorder %v8228_v9, %v7189_v40  ;;  %v10325_v44 = vpop.f32.mrf.mxu1  ;;  %v10360_v9 = vmax.f32 %v10030_v32, 1e-30 }
 0x493   : > { %6019 = vmatmul.msk.f32.gmra.mxu3 %vm14775_vm9, %v7315_v17  ;;  %3563 = vmatmul.f32.gmra.mxu1 %v3356_v31 }
 0x496   : > { %v3149_v18 = vpop.f32.mrf.mxu3 }
 0x497   : > { %v3150_v54 = vadd.f32 %v3149_v18, %v2941_v47  ;;  %v10331_v47 = vpop.f32.mrf.mxu0  ;;  %v6214_v53 = vpop.eup %6213 }
 0x498   : > { %14781 = vst [vmem:[#allocation138_spill] sm:$0xff] %v10331_v47  ;;  %v14808_v47 = vld [vmem:[#allocation164_spill] sm:$0xff] }
 0x499   : > { %5988 = vmatmul.msk.f32.gmra.mxu2 %vm14777_vm11, %v7300_v12  ;;  %v3359_v31 = vadd.f32 %v9666_v49, %v3150_v54  ;;  %v10329_v49 = vpop.f32.mrf.mxu2  ;;  %v10334_v54 = vmax.f32 %v10004_v25, 1e-30  ;;  %v10345_v61 = vpop.xlane.xlu1 %1457 }
 0x49a   : > { %6116 = vmatmul.msk.f32.gmra.mxu0 %vm14778_vm12, %v7342_v21  ;;  %14780 = vst [vmem:[#allocation87_spill] sm:$0xff] %v10329_v49  ;;  %v10352_v25 = vpop.xlane.xlu2 %1462  ;;  %v14830_v49 = vld [vmem:[#allocation172_spill] sm:$0xff] }
 0x49b   : > { %6020 = vmatmul.msk.f32.gmra.mxu3 %vm14779_vm15, %v7315_v17  ;;  %3566 = vmatmul.f32.gmra.mxu1 %v3359_v31  ;;  %v14784_v31 = vld [vmem:[#allocation97_spill] sm:$0xff]  ;;  %6215 = vrcp.f32 %v10334_v54  ;;  %vm1738_vm11 = vweird.f32 %v10334_v54 }
 0x49c   : > { %vm14785_vm6 = vcmp.eq.s32.totalorder %v14784_v31, %v7199_v48  ;;  %6217 = vrcp.f32 %v10360_v9 }
 0x49e   : > { %v3152_v0 = vpop.f32.mrf.mxu3 }
 0x49f   : > { %v3153_v18 = vadd.f32 %v3152_v0, %v2944_v24  ;;  %v1719_v24 = vmul.f32 %v6214_v53, %v10305_v7  ;;  %v10357_v0 = vpop.f32.mrf.mxu1 }
 0x4a1   : > { %5989 = vmatmul.msk.f32.gmra.mxu2 %vm14782_vm14, %v7300_v12  ;;  %v3362_v19 = vadd.f32 %v9692_v16, %v3153_v18  ;;  %v2947_v16 = vadd.f32 %v9712_v46, %v9914_v50  ;;  %v10362_v27 = vpop.f32.mrf.mxu2  ;;  %v1720_v46 = vsub.f32 1.0, %v1719_v24  ;;  %v10375_v31 = vpop.eup %6215 }
 0x4a2   : > { %6117 = vmatmul.msk.f32.gmra.mxu0 %vm14783_vm2, %v7342_v21  ;;  %14786 = vst [vmem:[#allocation137_spill] sm:$0xff] %v10362_v27  ;;  %v10382_v40 = vpop.xlane.xlu1 %1467  ;;  %v1734_v42 = vmul.f32 %v10375_v31, %v10334_v54  ;;  %v10396_v30 = vpop.eup %6217  ;;  %vm1739_vm0 = vweird.f32 %v10375_v31 }
 0x4a3   : > { %6021 = vmatmul.msk.f32.gmra.mxu3 %vm14785_vm6, %v7315_v17  ;;  %3569 = vmatmul.f32.gmra.mxu1 %v3362_v19  ;;  %v10368_v19 = vpop.f32.mrf.mxu0  ;;  %14789 = vst [vmem:[#allocation144_spill] sm:$0xff] %v10382_v40  ;;  %vm1740_vm12 = vmor %vm1738_vm11, %vm1739_vm0  ;;  %vm1754_vm14 = vweird.f32 %v10396_v30  ;;  %vm1753_vm6 = vweird.f32 %v10360_v9 }
 0x4a4   : > { %14787 = vst [vmem:[#allocation143_spill] sm:$0xff] %v10368_v19 }
 0x4a6   : > { %v3155_v18 = vpop.f32.mrf.mxu3 }
 0x4a7   : > { %v3156_v4 = vadd.f32 %v3155_v18, %v2947_v16  ;;  %v10391_v16 = vmax.f32 %v10054_v58, 1e-30  ;;  %v10393_v22 = vpop.f32.mrf.mxu1 }
 0x4a9   : > { %5990 = vmatmul.msk.f32.gmra.mxu2 %vm1075_vm5, %v7300_v12  ;;  %v3365_v50 = vadd.f32 %v9716_v34, %v3156_v4  ;;  %v2950_v12 = vadd.f32 %v9732_v8, %v9936_v29  ;;  %v1721_v34 = vmul.f32 %v6214_v53, %v1720_v46  ;;  %v10388_v4 = vpop.xlane.xlu2 %1472  ;;  %vm1724_vm5 = vweird.f32 %v6214_v53 }
 0x4aa   : > { %6118 = vmatmul.msk.f32.gmra.mxu0 %vm1077_vm7, %v7342_v21  ;;  %14790 = vst [vmem:[#allocation97_spill] sm:$0xff] %v10388_v4  ;;  %v1729_v29 = vand.u32 2147483648, %v10305_v7  ;;  %vm14791_vm7 = vcmp.eq.s32.totalorder %v7192_v41, %v7199_v48  ;;  %v1727_v8 = vand.u32 2147483647, %v10305_v7  ;;  %6219 = vrcp.f32 %v10391_v16  ;;  %vm1725_vm8 = vmor %vm1723_vm10, %vm1724_vm5 }
 0x4ab   : > { %6022 = vmatmul.msk.f32.gmra.mxu3 %vm14788_vm3, %v7315_v17  ;;  %3572 = vmatmul.f32.gmra.mxu1 %v3365_v50  ;;  %v1722_v18 = vadd.f32 %v6214_v53, %v1721_v34  ;;  %v1735_v50 = vsub.f32 1.0, %v1734_v42  ;;  %v1749_v34 = vmul.f32 %v10396_v30, %v10360_v9  ;;  %vm1755_vm3 = vmor %vm1753_vm6, %vm1754_vm14 }
 0x4ac   : > { %v1730_v41 = vor.u32 1.1754944e-38, %v1729_v29  ;;  %vm1728_vm1 = vcmp.eq.f32.partialorder %v1727_v8, 8.507059e+37  ;;  %v1744_v8 = vand.u32 2147483648, %v10334_v54 }
 0x4ad   : > { %v1726_v46 = vsel %vm1725_vm8, %v6214_v53, %v1722_v18  ;;  %v1750_v57 = vsub.f32 1.0, %v1749_v34  ;;  %v14798_v34 = vld [vmem:[#allocation62_spill] sm:$0xff]  ;;  %vm1768_vm8 = vweird.f32 %v10391_v16 }
 0x4ae   : > { %v3158_v21 = vpop.f32.mrf.mxu3 }
 0x4af   : > { %v3159_v32 = vadd.f32 %v3158_v21, %v2950_v12  ;;  %v1736_v12 = vmul.f32 %v10375_v31, %v1735_v50  ;;  %v10412_v21 = vmax.f32 %v10061_v14, 1e-30  ;;  %v14795_v50 = vld [vmem:[#allocation157_spill] sm:$0xff] }
 0x4b1   : > { %v3368_v24 = vadd.f32 %v9738_v60, %v3159_v32  ;;  %v14792_v60 = vld [vmem:[#allocation156_spill] sm:$0xff]  ;;  %v10414_v32 = vpop.xlane.xlu1 %1477  ;;  %v10422_v18 = vpop.xlane.xlu2 %1482  ;;  %v1737_v14 = vadd.f32 %v10375_v31, %v1736_v12  ;;  %6221 = vrcp.f32 %v10412_v21  ;;  %v1742_v12 = vand.u32 2147483647, %v10334_v54 }
 0x4b2   : > { %v2953_v58 = vadd.f32 %v14792_v60, %v9964_v10  ;;  %14793 = vst [vmem:[#allocation156_spill] sm:$0xff] %v10414_v32  ;;  %v1731_v10 = vsel %vm1728_vm1, %v1730_v41, %v1726_v46  ;;  %v10426_v32 = vpop.eup %6219 }
 0x4b3   : > { %6023 = vmatmul.msk.f32.gmra.mxu3 %vm14791_vm7, %v7315_v17  ;;  %3575 = vmatmul.f32.gmra.mxu1 %v3368_v24  ;;  %v10419_v24 = vld [vmem:[%s13972_s3] ss:$0 sm:$0xff]  ;;  %14794 = vst [vmem:[#allocation190_spill] sm:$0xff] %v10422_v18  ;;  %vm1743_vm15 = vcmp.eq.f32.partialorder %v1742_v12, 8.507059e+37  ;;  %vm1769_vm7 = vweird.f32 %v10426_v32 }
 0x4b4   : > { %vm1770_vm1 = vmor %vm1768_vm8, %vm1769_vm7 }
 0x4b6   : > { %v3161_v42 = vpop.f32.mrf.mxu3 }
 0x4b7   : > { %v3162_v7 = vadd.f32 %v3161_v42, %v2953_v58  ;;  %v14796_v58 = vld [vmem:[#allocation20_spill] sm:$0xff]  ;;  %v14799_v42 = vld [vmem:[#allocation159_spill] sm:$0xff]  ;;  %v10453_v18 = vpop.eup %6221 }
 0x4b8   : > { %v3531_v53 = vpop.f32.mrf.mxu1  ;;  %vm14797_vm9 = vcmp.eq.s32.totalorder %v14796_v58, %v7199_v48  ;;  %v2956_v41 = vadd.f32 %v14799_v42, %v14798_v34  ;;  %v10450_v58 = vmax.f32 %v10083_v23, 1e-30  ;;  %v14803_v23 = vld [vmem:[#allocation23_spill] sm:$0xff] }
 0x4b9   : > { %v3371_v29 = vadd.f32 %v14795_v50, %v3162_v7  ;;  %v3723_v60 = vmul.f32 %v3531_v53, %v1731_v10  ;;  %v1741_v10 = vsel %vm1740_vm12, %v10375_v31, %v1737_v14  ;;  %v1751_v53 = vmul.f32 %v10396_v30, %v1750_v57  ;;  %v10455_v31 = vpop.xlane.xlu1 %1487  ;;  %v14801_v57 = vld [vmem:[#allocation160_spill] sm:$0xff]  ;;  %v10460_v12 = vpop.xlane.xlu2 %1492 }
 0x4ba   : > { %v1764_v50 = vmul.f32 %v10426_v32, %v10391_v16  ;;  %14800 = vst [vmem:[#allocation157_spill] sm:$0xff] %v10455_v31  ;;  %vm14804_vm2 = vcmp.eq.s32.totalorder %v14803_v23, %v7199_v48  ;;  %6223 = vrcp.f32 %v10450_v58  ;;  %vm1783_vm12 = vweird.f32 %v10412_v21 }
 0x4bb   : > { %6024 = vmatmul.msk.f32.gmra.mxu3 %vm14797_vm9, %v7315_v17  ;;  %3578 = vmatmul.f32.gmra.mxu1 %v3371_v29  ;;  %v10435_v46 = vadd.f32 %v10419_v24, %v3723_v60  ;;  %v1745_v60 = vor.u32 1.1754944e-38, %v1744_v8  ;;  %v1752_v4 = vadd.f32 %v10396_v30, %v1751_v53  ;;  %v1759_v8 = vand.u32 2147483648, %v10360_v9  ;;  %14802 = vst [vmem:[#allocation20_spill] sm:$0xff] %v10460_v12 }
 0x4bc   : > { %v1779_v53 = vmul.f32 %v10453_v18, %v10412_v21  ;;  %vm1784_vm9 = vweird.f32 %v10453_v18 }
 0x4bd   : > { %v3856_v7 = vsel %vm3855_vm13, %v10435_v46, -inf  ;;  %v1746_v34 = vsel %vm1743_vm15, %v1745_v60, %v1741_v10  ;;  %v1757_v10 = vand.u32 2147483647, %v10360_v9  ;;  %v1760_v9 = vor.u32 1.1754944e-38, %v1759_v8  ;;  %v14810_v8 = vld [vmem:[#allocation30_spill] sm:$0xff]  ;;  %vm1785_vm15 = vmor %vm1783_vm12, %vm1784_vm9 }
 0x4be   : > { %v3164_v29 = vpop.f32.mrf.mxu3  ;;  %3857 = vmax.xlane.f32.xlu0 %v3856_v7  ;;  %v1765_v7 = vsub.f32 1.0, %v1764_v50  ;;  %v14805_v50 = vld [vmem:[#allocation53_spill] sm:$0xff]  ;;  %v1780_v27 = vsub.f32 1.0, %v1779_v53  ;;  %vm14811_vm10 = vcmp.eq.s32.totalorder %v14810_v8, %v7199_v48  ;;  %v14813_v53 = vld [vmem:[#allocation166_spill] sm:$0xff] }
 0x4bf   : > { %v3165_v54 = vadd.f32 %v3164_v29, %v2956_v41  ;;  %v14806_v29 = vld [vmem:[#allocation162_spill] sm:$0xff]  ;;  %vm1758_vm5 = vcmp.eq.f32.partialorder %v1757_v10, 8.507059e+37  ;;  %v14812_v10 = vld [vmem:[#allocation65_spill] sm:$0xff] }
 0x4c0   : > { %v3534_v42 = vpop.f32.mrf.mxu1  ;;  %v2959_v60 = vadd.f32 %v14806_v29, %v14805_v50 }
 0x4c1   : > { %v3374_v14 = vadd.f32 %v14801_v57, %v3165_v54  ;;  %v3724_v19 = vmul.f32 %v3534_v42, %v1746_v34  ;;  %v1766_v34 = vmul.f32 %v10426_v32, %v1765_v7  ;;  %v14807_v57 = vld [vmem:[#allocation74_spill] sm:$0xff]  ;;  %v10492_v7 = vpop.xlane.xlu1 %1497 }
 0x4c2   : > { %14809 = vst [vmem:[#allocation62_spill] sm:$0xff] %v10492_v7  ;;  %v1789_v7 = vand.u32 2147483648, %v10412_v21 }
 0x4c3   : > { %6025 = vmatmul.msk.f32.gmra.mxu3 %vm14804_vm2, %v7315_v17  ;;  %3581 = vmatmul.f32.gmra.mxu1 %v3374_v14  ;;  %v10467_v41 = vadd.f32 %v10419_v24, %v3724_v19  ;;  %v1756_v19 = vsel %vm1755_vm3, %v10396_v30, %v1752_v4  ;;  %v10483_v14 = vmax.f32 %v14807_v57, 1e-30  ;;  %v1767_v40 = vadd.f32 %v10426_v32, %v1766_v34  ;;  %v10488_v30 = vpop.eup %6223 }
 0x4c4   : > { %v1761_v12 = vsel %vm1758_vm5, %v1760_v9, %v1756_v19  ;;  %v1774_v4 = vand.u32 2147483648, %v10391_v16  ;;  %v1794_v9 = vmul.f32 %v10488_v30, %v10450_v58  ;;  %vm1799_vm2 = vweird.f32 %v10488_v30 }
 0x4c5   : > { %v3859_v54 = vsel %vm3855_vm13, %v10467_v41, -inf  ;;  %6225 = vrcp.f32 %v10483_v14  ;;  %v1771_v34 = vsel %vm1770_vm1, %v10426_v32, %v1767_v40  ;;  %vm1798_vm3 = vweird.f32 %v10450_v58 }
 0x4c6   : > { %v3167_v42 = vpop.f32.mrf.mxu3  ;;  %3860 = vmax.xlane.f32.xlu2 %v3859_v54  ;;  %v10505_v54 = vpop.xlane.xlu2 %1502  ;;  %vm1800_vm5 = vmor %vm1798_vm3, %vm1799_vm2  ;;  %vm1813_vm1 = vweird.f32 %v10483_v14 }
 0x4c7   : > { %v3168_v23 = vadd.f32 %v3167_v42, %v2959_v60  ;;  %v2962_v60 = vadd.f32 %v14813_v53, %v14812_v10  ;;  %14814 = vst [vmem:[#allocation159_spill] sm:$0xff] %v10505_v54  ;;  %v1781_v42 = vmul.f32 %v10453_v18, %v1780_v27  ;;  %v14815_v53 = vld [vmem:[#allocation167_spill] sm:$0xff]  ;;  %v1795_v54 = vsub.f32 1.0, %v1794_v9 }
 0x4c8   : > { %v3537_v31 = vpop.f32.mrf.mxu1 }
 0x4c9   : > { %v3377_v50 = vadd.f32 %v14808_v47, %v3168_v23  ;;  %v3725_v29 = vmul.f32 %v3537_v31, %v1761_v12  ;;  %v1772_v31 = vand.u32 2147483647, %v10391_v16  ;;  %v1373_v12 = vpop.xlane.xlu0 %1372  ;;  %v1775_v16 = vor.u32 1.1754944e-38, %v1774_v4  ;;  %v14816_v4 = vld [vmem:[#allocation33_spill] sm:$0xff] }
 0x4ca   : > { %v10513_v23 = vmax.f32 %v1373_v12, 1e-30  ;;  %v1782_v27 = vadd.f32 %v10453_v18, %v1781_v42  ;;  %vm14817_vm11 = vcmp.eq.s32.totalorder %v14816_v4, %v7199_v48  ;;  %v1787_v12 = vand.u32 2147483647, %v10412_v21  ;;  %v14820_v42 = vld [vmem:[#allocation169_spill] sm:$0xff] }
 0x4cb   : > { %6026 = vmatmul.msk.f32.gmra.mxu3 %vm14811_vm10, %v7315_v17  ;;  %3584 = vmatmul.f32.gmra.mxu1 %v3377_v50  ;;  %v10499_v47 = vadd.f32 %v10419_v24, %v3725_v29  ;;  %vm1773_vm0 = vcmp.eq.f32.partialorder %v1772_v31, 8.507059e+37  ;;  %v10516_v10 = vpop.eup %6225 }
 0x4cc   : > { %v1776_v29 = vsel %vm1773_vm0, %v1775_v16, %v1771_v34  ;;  %6227 = vrcp.f32 %v10513_v23  ;;  %v14819_v34 = vld [vmem:[#allocation63_spill] sm:$0xff]  ;;  %v1786_v16 = vsel %vm1785_vm15, %v10453_v18, %v1782_v27  ;;  %vm1788_vm14 = vcmp.eq.f32.partialorder %v1787_v12, 8.507059e+37  ;;  %v14823_v18 = vld [vmem:[#allocation170_spill] sm:$0xff]  ;;  %v14824_v12 = vld [vmem:[#allocation17_spill] sm:$0xff] }
 0x4cd   : > { %v3862_v19 = vsel %vm3855_vm13, %v10499_v47, -inf  ;;  %v2965_v9 = vadd.f32 %v14820_v42, %v14819_v34  ;;  %vm14825_vm6 = vcmp.eq.s32.totalorder %v14824_v12, %v7199_v48  ;;  %vm1814_vm10 = vweird.f32 %v10516_v10 }
 0x4ce   : > { %v3170_v57 = vpop.f32.mrf.mxu3  ;;  %3863 = vmax.xlane.f32.xlu1 %v3862_v19  ;;  %v10533_v19 = vpop.xlane.xlu1 %1507  ;;  %vm1815_vm0 = vmor %vm1813_vm1, %vm1814_vm10  ;;  %vm1828_vm15 = vweird.f32 %v10513_v23 }
 0x4cf   : > { %v3171_v50 = vadd.f32 %v3170_v57, %v2962_v60  ;;  %v1809_v60 = vmul.f32 %v10516_v10, %v10483_v14  ;;  %14818 = vst [vmem:[#allocation160_spill] sm:$0xff] %v10533_v19  ;;  %v10541_v21 = vpop.xlane.xlu2 %1512 }
 0x4d0   : > { %v3540_v8 = vpop.f32.mrf.mxu1  ;;  %14821 = vst [vmem:[#allocation23_spill] sm:$0xff] %v10541_v21 }
 0x4d1   : > { %v3380_v40 = vadd.f32 %v14815_v53, %v3171_v50  ;;  %v3726_v32 = vmul.f32 %v3540_v8, %v1776_v29  ;;  %v1796_v50 = vmul.f32 %v10488_v30, %v1795_v54  ;;  %v1790_v8 = vor.u32 1.1754944e-38, %v1789_v7  ;;  %v10548_v19 = vpop.xlane.xlu0 %1522 }
 0x4d2   : > { %v1810_v34 = vsub.f32 1.0, %v1809_v60  ;;  %v10546_v42 = vpop.eup %6227  ;;  %14822 = vst [vmem:[#allocation53_spill] sm:$0xff] %v10548_v19  ;;  %v1804_v7 = vand.u32 2147483648, %v10450_v58  ;;  %v1802_v60 = vand.u32 2147483647, %v10450_v58  ;;  %v14828_v58 = vld [vmem:[#allocation114_spill] sm:$0xff] }
 0x4d3   : > { %6027 = vmatmul.msk.f32.gmra.mxu3 %vm14817_vm11, %v7315_v17  ;;  %3587 = vmatmul.f32.gmra.mxu1 %v3380_v40  ;;  %v10527_v31 = vadd.f32 %v10419_v24, %v3726_v32  ;;  %v10544_v40 = vmax.f32 %v10112_v56, 1e-30  ;;  %v1791_v32 = vsel %vm1788_vm14, %v1790_v8, %v1786_v16  ;;  %v14826_v16 = vld [vmem:[#allocation107_spill] sm:$0xff]  ;;  %vm1829_vm11 = vweird.f32 %v10546_v42 }
 0x4d4   : > { %vm1803_vm7 = vcmp.eq.f32.partialorder %v1802_v60, 8.507059e+37  ;;  %v14832_v60 = vld [vmem:[#allocation51_spill] sm:$0xff]  ;;  %vm1830_vm14 = vmor %vm1828_vm15, %vm1829_vm11 }
 0x4d5   : > { %v3865_v57 = vsel %vm3855_vm13, %v10527_v31, -inf  ;;  %6229 = vrcp.f32 %v10544_v40  ;;  %vm14833_vm8 = vcmp.eq.s32.totalorder %v14832_v60, %v7199_v48 }
 0x4d6   : > { %v3173_v29 = vpop.f32.mrf.mxu3  ;;  %3866 = vmax.xlane.f32.xlu0 %v3865_v57  ;;  %v1797_v57 = vadd.f32 %v10488_v30, %v1796_v50  ;;  %v14827_v50 = vld [vmem:[#allocation39_spill] sm:$0xff] }
 0x4d7   : > { %v3174_v53 = vadd.f32 %v3173_v29, %v2965_v9  ;;  %v1824_v9 = vmul.f32 %v10546_v42, %v10513_v23  ;;  %v2968_v29 = vadd.f32 %v14827_v50, %v14826_v16  ;;  %v10577_v50 = vpop.xlane.xlu2 %1527 }
 0x4d8   : > { %v3543_v4 = vpop.f32.mrf.mxu1  ;;  %14829 = vst [vmem:[#allocation162_spill] sm:$0xff] %v10577_v50 }
 0x4d9   : > { %v3383_v27 = vadd.f32 %v14823_v18, %v3174_v53  ;;  %v3727_v54 = vmul.f32 %v3543_v4, %v1791_v32  ;;  %v1801_v53 = vsel %vm1800_vm5, %v10488_v30, %v1797_v57  ;;  %v1811_v32 = vmul.f32 %v10516_v10, %v1810_v34 }
 0x4da   : > { %v1805_v18 = vor.u32 1.1754944e-38, %v1804_v7  ;;  %v1825_v16 = vsub.f32 1.0, %v1824_v9  ;;  %v1819_v7 = vand.u32 2147483648, %v10483_v14  ;;  %v14834_v9 = vld [vmem:[#allocation111_spill] sm:$0xff]  ;;  %vm1843_vm5 = vweird.f32 %v10544_v40 }
 0x4db   : > { %6028 = vmatmul.msk.f32.gmra.mxu3 %vm14825_vm6, %v7315_v17  ;;  %3590 = vmatmul.f32.gmra.mxu1 %v3383_v27  ;;  %v10559_v56 = vadd.f32 %v10419_v24, %v3727_v54  ;;  %v10573_v27 = vmax.f32 %v14828_v58, 1e-30  ;;  %v10575_v54 = vpop.xlane.xlu1 %1517  ;;  %v1812_v34 = vadd.f32 %v10516_v10, %v1811_v32  ;;  %v10582_v57 = vpop.eup %6229 }
 0x4dc   : > { %v1806_v19 = vsel %vm1803_vm7, %v1805_v18, %v1801_v53  ;;  %v1820_v58 = vor.u32 1.1754944e-38, %v1819_v7  ;;  %v1834_v7 = vand.u32 2147483648, %v10513_v23  ;;  %vm1844_vm6 = vweird.f32 %v10582_v57 }
 0x4dd   : > { %v3868_v8 = vsel %vm3855_vm13, %v10559_v56, -inf  ;;  %6231 = vrcp.f32 %v10573_v27  ;;  %vm1845_vm7 = vmor %vm1843_vm5, %vm1844_vm6 }
 0x4de   : > { %v3176_v4 = vpop.f32.mrf.mxu3  ;;  %3869 = vmax.xlane.f32.xlu2 %v3868_v8  ;;  %v10585_v8 = vpop.xlane.xlu0 %1537 }
 0x4df   : > { %v3177_v12 = vadd.f32 %v3176_v4, %v2968_v29  ;;  %14831 = vst [vmem:[#allocation74_spill] sm:$0xff] %v10585_v8  ;;  %v14835_v29 = vld [vmem:[#allocation32_spill] sm:$0xff]  ;;  %v1816_v4 = vsel %vm1815_vm0, %v10516_v10, %v1812_v34  ;;  %v14837_v10 = vld [vmem:[#allocation175_spill] sm:$0xff]  ;;  %vm1858_vm0 = vweird.f32 %v10573_v27 }
 0x4e0   : > { %v3546_v21 = vpop.f32.mrf.mxu1  ;;  %v2971_v53 = vadd.f32 %v14835_v29, %v14834_v9 }
 0x4e1   : > { %v3386_v36 = vadd.f32 %v14830_v49, %v3177_v12  ;;  %v3728_v30 = vmul.f32 %v3546_v21, %v1806_v19  ;;  %v1817_v19 = vand.u32 2147483647, %v10483_v14  ;;  %v1826_v21 = vmul.f32 %v10546_v42, %v1825_v16 }
 0x4e2   : > { %v10606_v14 = vmax.f32 %v10140_v39, 1e-30  ;;  %v14839_v39 = vld [vmem:[#allocation56_spill] sm:$0xff] }
 0x4e3   : > { %6029 = vmatmul.msk.f32.gmra.mxu3 %vm14833_vm8, %v7315_v17  ;;  %3593 = vmatmul.f32.gmra.mxu1 %v3386_v36  ;;  %v10593_v49 = vadd.f32 %v10419_v24, %v3728_v30  ;;  %v1839_v36 = vmul.f32 %v10582_v57, %v10544_v40  ;;  %vm1818_vm9 = vcmp.eq.f32.partialorder %v1817_v19, 8.507059e+37  ;;  %v10609_v60 = vpop.eup %6231  ;;  %v10611_v9 = vpop.xlane.xlu1 %1532  ;;  %v1827_v8 = vadd.f32 %v10546_v42, %v1826_v21 }
 0x4e4   : > { %v1821_v16 = vsel %vm1818_vm9, %v1820_v58, %v1816_v4  ;;  %14836 = vst [vmem:[#allocation164_spill] sm:$0xff] %v10611_v9  ;;  %v10616_v19 = vpop.xlane.xlu2 %1542  ;;  %vm14840_vm12 = vcmp.eq.s32.totalorder %v14839_v39, %v7199_v48  ;;  %v1832_v4 = vand.u32 2147483647, %v10513_v23  ;;  %6233 = vrcp.f32 %v10606_v14  ;;  %v14843_v9 = vld [vmem:[#allocation177_spill] sm:$0xff] }
 0x4e5   : > { %v3871_v32 = vsel %vm3855_vm13, %v10593_v49, -inf  ;;  %14838 = vst [vmem:[#allocation30_spill] sm:$0xff] %v10616_v19  ;;  %v1854_v21 = vmul.f32 %v10609_v60, %v10573_v27  ;;  %vm1859_vm8 = vweird.f32 %v10609_v60 }
 0x4e6   : > { %v3179_v18 = vpop.f32.mrf.mxu3  ;;  %3872 = vmax.xlane.f32.xlu1 %v3871_v32  ;;  %v1840_v32 = vsub.f32 1.0, %v1839_v36  ;;  %v10632_v36 = vpop.xlane.xlu0 %1552  ;;  %vm1833_vm2 = vcmp.eq.f32.partialorder %v1832_v4, 8.507059e+37  ;;  %v14846_v4 = vld [vmem:[#allocation178_spill] sm:$0xff]  ;;  %vm1860_vm9 = vmor %vm1858_vm0, %vm1859_vm8 }
 0x4e7   : > { %v3180_v12 = vadd.f32 %v3179_v18, %v2971_v53  ;;  %14841 = vst [vmem:[#allocation65_spill] sm:$0xff] %v10632_v36  ;;  %v14842_v18 = vld [vmem:[#allocation176_spill] sm:$0xff]  ;;  %v1855_v19 = vsub.f32 1.0, %v1854_v21  ;;  %v2977_v21 = vadd.f32 %v14846_v4, %v10178_v6  ;;  %v10674_v6 = vmax.f32 %v10164_v43, 1e-30 }
 0x4e8   : > { %v3549_v30 = vpop.f32.mrf.mxu1  ;;  %v2974_v58 = vadd.f32 %v14842_v18, %v10145_v20  ;;  %v1841_v23 = vmul.f32 %v10582_v57, %v1840_v32  ;;  %v14844_v32 = vld [vmem:[#allocation24_spill] sm:$0xff] }
 0x4e9   : > { %v3389_v34 = vadd.f32 %v14837_v10, %v3180_v12  ;;  %v3729_v29 = vmul.f32 %v3549_v30, %v1821_v16  ;;  %v1831_v16 = vsel %vm1830_vm14, %v10546_v42, %v1827_v8  ;;  %v1835_v10 = vor.u32 1.1754944e-38, %v1834_v7 }
 0x4ea   : > { %v1842_v50 = vadd.f32 %v10582_v57, %v1841_v23  ;;  %v10646_v42 = vpop.eup %6233  ;;  %v1849_v8 = vand.u32 2147483648, %v10544_v40  ;;  %vm14845_vm3 = vcmp.eq.s32.totalorder %v14844_v32, %v7199_v48  ;;  %v1847_v7 = vand.u32 2147483647, %v10544_v40 }
 0x4eb   : > { %6030 = vmatmul.msk.f32.gmra.mxu3 %vm14840_vm12, %v7315_v17  ;;  %3596 = vmatmul.f32.gmra.mxu1 %v3389_v34  ;;  %v10623_v53 = vadd.f32 %v10419_v24, %v3729_v29  ;;  %v10641_v34 = vmax.f32 %v10142_v35, 1e-30  ;;  %v1836_v39 = vsel %vm1833_vm2, %v1835_v10, %v1831_v16  ;;  %v10650_v35 = vpop.xlane.xlu1 %1547  ;;  %v1856_v16 = vmul.f32 %v10609_v60, %v1855_v19 }
 0x4ec   : > { %v1869_v23 = vmul.f32 %v10646_v42, %v10606_v14  ;;  %v1850_v10 = vor.u32 1.1754944e-38, %v1849_v8  ;;  %vm1848_vm10 = vcmp.eq.f32.partialorder %v1847_v7, 8.507059e+37  ;;  %v1864_v8 = vand.u32 2147483648, %v10573_v27 }
 0x4ed   : > { %v3874_v12 = vsel %vm3855_vm13, %v10623_v53, -inf  ;;  %6235 = vrcp.f32 %v10641_v34  ;;  %v1857_v32 = vadd.f32 %v10609_v60, %v1856_v16  ;;  %v1862_v7 = vand.u32 2147483647, %v10573_v27  ;;  %v14853_v16 = vld [vmem:[#allocation46_spill] sm:$0xff] }
 0x4ee   : > { %v3182_v30 = vpop.f32.mrf.mxu3  ;;  %3875 = vmax.xlane.f32.xlu0 %v3874_v12  ;;  %v1846_v12 = vsel %vm1845_vm7, %v10582_v57, %v1842_v50  ;;  %v10671_v40 = vpop.xlane.xlu0 %1567  ;;  %v14849_v57 = vld [vmem:[#allocation179_spill] sm:$0xff]  ;;  %v1870_v4 = vsub.f32 1.0, %v1869_v23  ;;  %6237 = vrcp.f32 %v10674_v6  ;;  %v2980_v23 = vadd.f32 %v14853_v16, %v10206_v51 }
 0x4ef   : > { %v3183_v29 = vadd.f32 %v3182_v30, %v2974_v58  ;;  %14848 = vst [vmem:[#allocation167_spill] sm:$0xff] %v10671_v40  ;;  %v1865_v27 = vor.u32 1.1754944e-38, %v1864_v8  ;;  %vm1863_vm11 = vcmp.eq.f32.partialorder %v1862_v7, 8.507059e+37  ;;  %vm1874_vm12 = vweird.f32 %v10646_v42  ;;  %v14857_v7 = vld [vmem:[#allocation77_spill] sm:$0xff] }
 0x4f0   : > { %v3552_v36 = vpop.f32.mrf.mxu1  ;;  %v1879_v8 = vand.u32 2147483648, %v10606_v14  ;;  %vm14858_vm15 = vcmp.eq.s32.totalorder %v14857_v7, %v7199_v48  ;;  %vm1873_vm14 = vweird.f32 %v10606_v14  ;;  %vm1888_vm7 = vweird.f32 %v10641_v34 }
 0x4f1   : > { %v3392_v20 = vadd.f32 %v14843_v9, %v3183_v29  ;;  %v3730_v18 = vmul.f32 %v3552_v36, %v1836_v39  ;;  %v10663_v36 = vpop.xlane.xlu2 %1557  ;;  %v1851_v39 = vsel %vm1848_vm10, %v1850_v10, %v1846_v12  ;;  %v1861_v10 = vsel %vm1860_vm9, %v10609_v60, %v1857_v32  ;;  %vm1875_vm2 = vmor %vm1873_vm14, %vm1874_vm12 }
 0x4f2   : > { %14847 = vst [vmem:[#allocation166_spill] sm:$0xff] %v10663_v36  ;;  %vm1903_vm9 = vweird.f32 %v10674_v6 }
 0x4f3   : > { %6031 = vmatmul.msk.f32.gmra.mxu3 %vm14845_vm3, %v7315_v17  ;;  %3599 = vmatmul.f32.gmra.mxu1 %v3392_v20  ;;  %v10657_v9 = vadd.f32 %v10419_v24, %v3730_v18  ;;  %v10677_v50 = vpop.eup %6235  ;;  %v10694_v12 = vpop.xlane.xlu1 %1562 }
 0x4f4   : > { %14852 = vst [vmem:[#allocation33_spill] sm:$0xff] %v10694_v12  ;;  %v14856_v12 = vld [vmem:[#allocation180_spill] sm:$0xff]  ;;  %vm1889_vm3 = vweird.f32 %v10677_v50 }
 0x4f5   : > { %v3877_v58 = vsel %vm3855_vm13, %v10657_v9, -inf  ;;  %vm1890_vm10 = vmor %vm1888_vm7, %vm1889_vm3 }
 0x4f6   : > { %v3185_v30 = vpop.f32.mrf.mxu3  ;;  %3878 = vmax.xlane.f32.xlu2 %v3877_v58  ;;  %v1884_v58 = vmul.f32 %v10677_v50, %v10641_v34  ;;  %v10707_v16 = vpop.xlane.xlu0 %1582 }
 0x4f7   : > { %v3186_v29 = vadd.f32 %v3185_v30, %v2977_v21  ;;  %v14850_v21 = vld [vmem:[#allocation71_spill] sm:$0xff]  ;;  %14855 = vst [vmem:[#allocation63_spill] sm:$0xff] %v10707_v16 }
 0x4f8   : > { %v3555_v20 = vpop.f32.mrf.mxu1  ;;  %vm14851_vm1 = vcmp.eq.s32.totalorder %v14850_v21, %v7199_v48  ;;  %v1866_v21 = vsel %vm1863_vm11, %v1865_v27, %v1861_v10  ;;  %v1885_v51 = vsub.f32 1.0, %v1884_v58  ;;  %v1880_v27 = vor.u32 1.1754944e-38, %v1879_v8 }
 0x4f9   : > { %v3395_v19 = vadd.f32 %v14849_v57, %v3186_v29  ;;  %v3731_v18 = vmul.f32 %v3555_v20, %v1851_v39  ;;  %v1871_v29 = vmul.f32 %v10646_v42, %v1870_v4  ;;  %v14854_v20 = vld [vmem:[#allocation123_spill] sm:$0xff]  ;;  %v10712_v4 = vpop.eup %6237 }
 0x4fa   : > { %v10703_v57 = vmax.f32 %v14854_v20, 1e-30 }
 0x4fb   : > { %6032 = vmatmul.msk.f32.gmra.mxu3 %vm14851_vm1, %v7315_v17  ;;  %3602 = vmatmul.f32.gmra.mxu1 %v3395_v19  ;;  %v10687_v43 = vadd.f32 %v10419_v24, %v3731_v18  ;;  %v10705_v19 = vpop.xlane.xlu2 %1572  ;;  %v1872_v32 = vadd.f32 %v10646_v42, %v1871_v29  ;;  %v10733_v20 = vpop.xlane.xlu1 %1577  ;;  %vm1904_vm1 = vweird.f32 %v10712_v4 }
 0x4fc   : > { %6239 = vrcp.f32 %v10703_v57  ;;  %14860 = vst [vmem:[#allocation169_spill] sm:$0xff] %v10733_v20  ;;  %vm1905_vm11 = vmor %vm1903_vm9, %vm1904_vm1 }
 0x4fd   : > { %v3880_v30 = vsel %vm3855_vm13, %v10687_v43, -inf  ;;  %v1876_v29 = vsel %vm1875_vm2, %v10646_v42, %v1872_v32  ;;  %vm1918_vm2 = vweird.f32 %v10703_v57 }
 0x4fe   : > { %v3188_v39 = vpop.f32.mrf.mxu3  ;;  %3881 = vmax.xlane.f32.xlu1 %v3880_v30 }
 0x4ff   : > { %v3189_v18 = vadd.f32 %v3188_v39, %v2980_v23  ;;  %v14859_v23 = vld [vmem:[#allocation182_spill] sm:$0xff] }
 0x500   : > { %v3558_v40 = vpop.f32.mrf.mxu1  ;;  %v2983_v30 = vadd.f32 %v14859_v23, %v10233_v55 }
 0x501   : > { %v3398_v36 = vadd.f32 %v14856_v12, %v3189_v18  ;;  %v3732_v60 = vmul.f32 %v3558_v40, %v1866_v21  ;;  %v1877_v40 = vand.u32 2147483647, %v10606_v14  ;;  %v1886_v12 = vmul.f32 %v10677_v50, %v1885_v51 }
 0x502   : > { %v10736_v18 = vmax.f32 %v10193_v3, 1e-30  ;;  %v10739_v51 = vpop.eup %6239  ;;  %v14864_v3 = vld [vmem:[#allocation31_spill] sm:$0xff] }
 0x503   : > { %6033 = vmatmul.msk.f32.gmra.mxu3 %vm14858_vm15, %v7315_v17  ;;  %3605 = vmatmul.f32.gmra.mxu1 %v3398_v36  ;;  %v10721_v58 = vadd.f32 %v10419_v24, %v3732_v60  ;;  %v1899_v36 = vmul.f32 %v10712_v4, %v10674_v6  ;;  %vm1878_vm6 = vcmp.eq.f32.partialorder %v1877_v40, 8.507059e+37  ;;  %v10741_v42 = vpop.xlane.xlu2 %1587  ;;  %v14862_v60 = vld [vmem:[#allocation184_spill] sm:$0xff]  ;;  %v1887_v8 = vadd.f32 %v10677_v50, %v1886_v12  ;;  %v10746_v40 = vpop.xlane.xlu0 %1597 }
 0x504   : > { %v1881_v21 = vsel %vm1878_vm6, %v1880_v27, %v1876_v29  ;;  %14861 = vst [vmem:[#allocation170_spill] sm:$0xff] %v10741_v42  ;;  %vm14865_vm5 = vcmp.eq.s32.totalorder %v14864_v3, %v7199_v48  ;;  %v1892_v29 = vand.u32 2147483647, %v10641_v34  ;;  %6241 = vrcp.f32 %v10736_v18  ;;  %v10771_v16 = vpop.xlane.xlu1 %1592 }
 0x505   : > { %v3883_v10 = vsel %vm3855_vm13, %v10721_v58, -inf  ;;  %v1900_v23 = vsub.f32 1.0, %v1899_v36  ;;  %14863 = vst [vmem:[#allocation17_spill] sm:$0xff] %v10746_v40  ;;  %v1914_v12 = vmul.f32 %v10739_v51, %v10703_v57  ;;  %v14866_v36 = vld [vmem:[#allocation186_spill] sm:$0xff]  ;;  %vm1919_vm15 = vweird.f32 %v10739_v51 }
 0x506   : > { %v3191_v39 = vpop.f32.mrf.mxu3  ;;  %3884 = vmax.xlane.f32.xlu0 %v3883_v10  ;;  %vm1893_vm8 = vcmp.eq.f32.partialorder %v1892_v29, 8.507059e+37  ;;  %v14869_v29 = vld [vmem:[#allocation85_spill] sm:$0xff]  ;;  %vm1920_vm6 = vmor %vm1918_vm2, %vm1919_vm15 }
 0x507   : > { %v3192_v14 = vadd.f32 %v3191_v39, %v2983_v30  ;;  %v1894_v30 = vand.u32 2147483648, %v10641_v34  ;;  %v2986_v39 = vadd.f32 %v14866_v36, %v10258_v11  ;;  %v1915_v42 = vsub.f32 1.0, %v1914_v12  ;;  %v14868_v11 = vld [vmem:[#allocation187_spill] sm:$0xff] }
 0x508   : > { %v3561_v55 = vpop.f32.mrf.mxu1  ;;  %vm14870_vm0 = vcmp.eq.s32.totalorder %v14869_v29, %v7199_v48  ;;  %v1907_v12 = vand.u32 2147483647, %v10674_v6 }
 0x509   : > { %v3401_v32 = vadd.f32 %v14862_v60, %v3192_v14  ;;  %v3733_v7 = vmul.f32 %v3561_v55, %v1881_v21  ;;  %v1891_v14 = vsel %vm1890_vm10, %v10677_v50, %v1887_v8  ;;  %v1901_v21 = vmul.f32 %v10712_v4, %v1900_v23  ;;  %v14867_v60 = vld [vmem:[#allocation80_spill] sm:$0xff] }
 0x50a   : > { %v1895_v34 = vor.u32 1.1754944e-38, %v1894_v30  ;;  %v10776_v8 = vpop.eup %6241  ;;  %v1909_v23 = vand.u32 2147483648, %v10674_v6  ;;  %vm1908_vm12 = vcmp.eq.f32.partialorder %v1907_v12, 8.507059e+37  ;;  %v14875_v12 = vld [vmem:[#allocation89_spill] sm:$0xff]  ;;  %vm1933_vm10 = vweird.f32 %v10736_v18 }
 0x50b   : > { %6034 = vmatmul.msk.f32.gmra.mxu3 %vm14865_vm5, %v7315_v17  ;;  %3608 = vmatmul.f32.gmra.mxu1 %v3401_v32  ;;  %v10753_v10 = vadd.f32 %v10419_v24, %v3733_v7  ;;  %v10769_v32 = vmax.f32 %v14867_v60, 1e-30  ;;  %v1902_v50 = vadd.f32 %v10712_v4, %v1901_v21  ;;  %v10780_v30 = vpop.xlane.xlu2 %1602  ;;  %vm14876_vm14 = vcmp.eq.s32.totalorder %v14875_v12, %v7199_v48 }
 0x50c   : > { %v1896_v3 = vsel %vm1893_vm8, %v1895_v34, %v1891_v14  ;;  %v14872_v14 = vld [vmem:[#allocation102_spill] sm:$0xff]  ;;  %vm1934_vm5 = vweird.f32 %v10776_v8 }
 0x50d   : > { %v3886_v27 = vsel %vm3855_vm13, %v10753_v10, -inf  ;;  %6243 = vrcp.f32 %v10769_v32  ;;  %v2989_v21 = vadd.f32 %v14872_v14, %v10292_v59  ;;  %v1906_v34 = vsel %vm1905_vm11, %v10712_v4, %v1902_v50  ;;  %vm10853_vm8 = vmor %vm1933_vm10, %vm1934_vm5 }
 0x50e   : > { %v3194_v55 = vpop.f32.mrf.mxu3  ;;  %3887 = vmax.xlane.f32.xlu2 %v3886_v27  ;;  %v10792_v27 = vpop.xlane.xlu0 %1612  ;;  %vm1948_vm11 = vweird.f32 %v10769_v32 }
 0x50f   : > { %v3195_v7 = vadd.f32 %v3194_v55, %v2986_v39  ;;  %v1916_v39 = vmul.f32 %v10739_v51, %v1915_v42  ;;  %14871 = vst [vmem:[#allocation107_spill] sm:$0xff] %v10792_v27  ;;  %v10802_v42 = vmax.f32 %v10223_v15, 1e-30 }
 0x510   : > { %v3564_v40 = vpop.f32.mrf.mxu1 }
 0x511   : > { %v3404_v36 = vadd.f32 %v14868_v11, %v3195_v7  ;;  %v3734_v20 = vmul.f32 %v3564_v40, %v1896_v3  ;;  %v1910_v7 = vor.u32 1.1754944e-38, %v1909_v23  ;;  %v1917_v50 = vadd.f32 %v10739_v51, %v1916_v39  ;;  %v10810_v23 = vpop.xlane.xlu1 %1607 }
 0x512   : > { %14874 = vst [vmem:[#allocation39_spill] sm:$0xff] %v10810_v23  ;;  %6245 = vrcp.f32 %v10802_v42 }
 0x513   : > { %6035 = vmatmul.msk.f32.gmra.mxu3 %vm14870_vm0, %v7315_v17  ;;  %3611 = vmatmul.f32.gmra.mxu1 %v3404_v36  ;;  %v10787_v40 = vadd.f32 %v10419_v24, %v3734_v20  ;;  %v1929_v20 = vmul.f32 %v10776_v8, %v10736_v18  ;;  %v1911_v3 = vsel %vm1908_vm12, %v1910_v7, %v1906_v34  ;;  %v10805_v59 = vpop.eup %6243  ;;  %v14873_v36 = vld [vmem:[#allocation98_spill] sm:$0xff]  ;;  %v10824_v34 = vpop.xlane.xlu2 %1617 }
 0x514   : > { %v1944_v39 = vmul.f32 %v10805_v59, %v10769_v32  ;;  %14877 = vst [vmem:[#allocation114_spill] sm:$0xff] %v10824_v34  ;;  %vm1949_vm0 = vweird.f32 %v10805_v59 }
 0x515   : > { %v3889_v55 = vsel %vm3855_vm13, %v10787_v40, -inf  ;;  %v1930_v14 = vsub.f32 1.0, %v1929_v20  ;;  %v14878_v20 = vld [vmem:[#allocation106_spill] sm:$0xff]  ;;  %vm1950_vm12 = vmor %vm1948_vm11, %vm1949_vm0 }
 0x516   : > { %v3197_v60 = vpop.f32.mrf.mxu3  ;;  %3890 = vmax.xlane.f32.xlu1 %v3889_v55  ;;  %v1924_v55 = vand.u32 2147483648, %v10703_v57 }
 0x517   : > { %v3198_v6 = vadd.f32 %v3197_v60, %v2989_v21  ;;  %v1922_v21 = vand.u32 2147483647, %v10703_v57  ;;  %v2992_v60 = vadd.f32 %v14878_v20, %v10325_v44  ;;  %v10833_v57 = vmax.f32 %v10229_v37, 1e-30  ;;  %v14879_v20 = vld [vmem:[#allocation103_spill] sm:$0xff] }
 0x518   : > { %v3567_v11 = vpop.f32.mrf.mxu1  ;;  %v1945_v44 = vsub.f32 1.0, %v1944_v39  ;;  %v1939_v37 = vand.u32 2147483648, %v10736_v18 }
 0x519   : > { %v3407_v29 = vadd.f32 %v14873_v36, %v3198_v6  ;;  %v3735_v4 = vmul.f32 %v3567_v11, %v1911_v3  ;;  %v1921_v6 = vsel %vm1920_vm6, %v10739_v51, %v1917_v50  ;;  %v1931_v3 = vmul.f32 %v10776_v8, %v1930_v14  ;;  %v10840_v50 = vpop.eup %6245  ;;  %v14880_v14 = vld [vmem:[#allocation38_spill] sm:$0xff] }
 0x51a   : > { %v1925_v36 = vor.u32 1.1754944e-38, %v1924_v55  ;;  %vm1923_vm3 = vcmp.eq.f32.partialorder %v1922_v21, 8.507059e+37  ;;  %6247 = vrcp.f32 %v10833_v57  ;;  %vm14881_vm7 = vcmp.eq.s32.totalorder %v14880_v14, %v7199_v48 }
 0x51b   : > { %6036 = vmatmul.msk.f32.gmra.mxu3 %vm14876_vm14, %v7315_v17  ;;  %3614 = vmatmul.f32.gmra.mxu1 %v3407_v29  ;;  %v10817_v15 = vadd.f32 %v10419_v24, %v3735_v4  ;;  %v10835_v29 = vpop.xlane.xlu0 %1627  ;;  %v1932_v51 = vadd.f32 %v10776_v8, %v1931_v3  ;;  %v1937_v21 = vand.u32 2147483647, %v10736_v18  ;;  %v1959_v18 = vmul.f32 %v10840_v50, %v10802_v42 }
 0x51c   : > { %v1926_v12 = vsel %vm1923_vm3, %v1925_v36, %v1921_v6  ;;  %v10870_v3 = vmax.f32 %v10252_v13, 1e-30  ;;  %v1940_v36 = vor.u32 1.1754944e-38, %v1939_v37  ;;  %v1954_v37 = vand.u32 2147483648, %v10769_v32 }
 0x51d   : > { %v3892_v7 = vsel %vm3855_vm13, %v10817_v15, -inf  ;;  %vm1938_vm1 = vcmp.eq.f32.partialorder %v1937_v21, 8.507059e+37  ;;  %v14888_v21 = vld [vmem:[#allocation96_spill] sm:$0xff]  ;;  %vm1964_vm14 = vweird.f32 %v10840_v50  ;;  %vm1963_vm6 = vweird.f32 %v10802_v42 }
 0x51e   : > { %v3200_v11 = vpop.f32.mrf.mxu3  ;;  %3893 = vmax.xlane.f32.xlu0 %v3892_v7  ;;  %v14884_v7 = vld [vmem:[#allocation188_spill] sm:$0xff]  ;;  %6249 = vrcp.f32 %v10870_v3  ;;  %vm14889_vm9 = vcmp.eq.s32.totalorder %v14888_v21, %v7199_v48  ;;  %vm10925_vm3 = vmor %vm1963_vm6, %vm1964_vm14  ;;  %vm1978_vm10 = vweird.f32 %v10833_v57  ;;  %vm1993_vm11 = vweird.f32 %v10870_v3 }
 0x51f   : > { %v3201_v4 = vadd.f32 %v3200_v11, %v2992_v60  ;;  %v10858_v60 = vpop.xlane.xlu1 %1622  ;;  %v2995_v6 = vadd.f32 %v14884_v7, %v10357_v0  ;;  %v1960_v7 = vsub.f32 1.0, %v1959_v18 }
 0x520   : > { %v3570_v34 = vpop.f32.mrf.mxu1  ;;  %v10874_v0 = vpop.eup %6247 }
 0x521   : > { %v3410_v27 = vadd.f32 %v14879_v20, %v3201_v4  ;;  %v3736_v23 = vmul.f32 %v3570_v34, %v1926_v12  ;;  %v1946_v34 = vmul.f32 %v10805_v59, %v1945_v44  ;;  %v10872_v4 = vpop.xlane.xlu2 %1632 }
 0x522   : > { %14885 = vst [vmem:[#allocation172_spill] sm:$0xff] %v10872_v4 }
 0x523   : > { %6037 = vmatmul.msk.f32.gmra.mxu3 %vm14881_vm7, %v7315_v17  ;;  %3617 = vmatmul.f32.gmra.mxu1 %v3410_v27  ;;  %v10849_v55 = vadd.f32 %v10419_v24, %v3736_v23  ;;  %v1936_v23 = vsel %vm10853_vm8, %v10776_v8, %v1932_v51  ;;  %v10877_v8 = vpop.xlane.xlu0 %1642  ;;  %v14887_v51 = vld [vmem:[#allocation189_spill] sm:$0xff]  ;;  %v1947_v13 = vadd.f32 %v10805_v59, %v1946_v34  ;;  %vm1979_vm7 = vweird.f32 %v10874_v0 }
 0x524   : > { %v1941_v44 = vsel %vm1938_vm1, %v1940_v36, %v1936_v23  ;;  %14886 = vst [vmem:[#allocation51_spill] sm:$0xff] %v10877_v8  ;;  %v1974_v34 = vmul.f32 %v10874_v0, %v10833_v57  ;;  %v14890_v23 = vld [vmem:[#allocation78_spill] sm:$0xff]  ;;  %v10905_v21 = vpop.eup %6249  ;;  %vm10950_vm8 = vmor %vm1978_vm10, %vm1979_vm7 }
 0x525   : > { %v3895_v27 = vsel %vm3855_vm13, %v10849_v55, -inf  ;;  %v2998_v18 = vadd.f32 %v14890_v23, %v10393_v22  ;;  %v1951_v36 = vsel %vm1950_vm12, %v10805_v59, %v1947_v13  ;;  %v14893_v59 = vld [vmem:[#allocation118_spill] sm:$0xff] }
 0x526   : > { %v3203_v11 = vpop.f32.mrf.mxu3  ;;  %3896 = vmax.xlane.f32.xlu2 %v3895_v27  ;;  %v1952_v27 = vand.u32 2147483647, %v10769_v32  ;;  %v1955_v32 = vor.u32 1.1754944e-38, %v1954_v37  ;;  %v1969_v37 = vand.u32 2147483648, %v10802_v42 }
 0x527   : > { %v3204_v12 = vadd.f32 %v3203_v11, %v2995_v6 }
 0x528   : > { %v3573_v20 = vpop.f32.mrf.mxu1  ;;  %vm1953_vm15 = vcmp.eq.f32.partialorder %v1952_v27, 8.507059e+37  ;;  %v14894_v27 = vld [vmem:[#allocation100_spill] sm:$0xff] }
 0x529   : > { %v3413_v14 = vadd.f32 %v14887_v51, %v3204_v12  ;;  %v3737_v39 = vmul.f32 %v3573_v20, %v1941_v44  ;;  %v1961_v12 = vmul.f32 %v10840_v50, %v1960_v7  ;;  %v10901_v44 = vmax.f32 %v10256_v5, 1e-30  ;;  %v10903_v51 = vpop.xlane.xlu1 %1637  ;;  %v10907_v8 = vpop.xlane.xlu2 %1647 }
 0x52a   : > { %14891 = vst [vmem:[#allocation111_spill] sm:$0xff] %v10903_v51  ;;  %v1956_v22 = vsel %vm1953_vm15, %v1955_v32, %v1951_v36  ;;  %vm14895_vm2 = vcmp.eq.s32.totalorder %v14894_v27, %v7199_v48  ;;  %v14898_v32 = vld [vmem:[#allocation101_spill] sm:$0xff] }
 0x52b   : > { %6038 = vmatmul.msk.f32.gmra.mxu3 %vm14889_vm9, %v7315_v17  ;;  %3620 = vmatmul.f32.gmra.mxu1 %v3413_v14  ;;  %v10888_v6 = vadd.f32 %v10419_v24, %v3737_v39  ;;  %v1975_v39 = vsub.f32 1.0, %v1974_v34  ;;  %14892 = vst [vmem:[#allocation32_spill] sm:$0xff] %v10907_v8  ;;  %v1962_v5 = vadd.f32 %v10840_v50, %v1961_v12  ;;  %6251 = vrcp.f32 %v10901_v44 }
 0x52c   : > { %vm1994_vm9 = vweird.f32 %v10905_v21  ;;  %vm2008_vm6 = vweird.f32 %v10901_v44 }
 0x52d   : > { %v3898_v11 = vsel %vm3855_vm13, %v10888_v6, -inf  ;;  %vm10999_vm15 = vmor %vm1993_vm11, %vm1994_vm9 }
 0x52e   : > { %v3206_v20 = vpop.f32.mrf.mxu3  ;;  %3899 = vmax.xlane.f32.xlu1 %v3898_v11  ;;  %v1976_v11 = vmul.f32 %v10874_v0, %v1975_v39  ;;  %v10939_v39 = vmax.f32 %v10279_v62, 1e-30 }
 0x52f   : > { %v3207_v14 = vadd.f32 %v3206_v20, %v2998_v18  ;;  %v1967_v18 = vand.u32 2147483647, %v10802_v42  ;;  %v1989_v20 = vmul.f32 %v10905_v21, %v10870_v3  ;;  %v1966_v42 = vsel %vm10925_vm3, %v10840_v50, %v1962_v5  ;;  %v14900_v50 = vld [vmem:[#allocation76_spill] sm:$0xff] }
 0x530   : > { %v3576_v23 = vpop.f32.mrf.mxu1  ;;  %6253 = vrcp.f32 %v10939_v39 }
 0x531   : > { %v3416_v13 = vadd.f32 %v14893_v59, %v3207_v14  ;;  %v3738_v7 = vmul.f32 %v3576_v23, %v1956_v22  ;;  %v3858_v4 = vpop.xlane.xlu0 %3857  ;;  %v14899_v14 = vld [vmem:[#allocation115_spill] sm:$0xff]  ;;  %vm1968_vm5 = vcmp.eq.f32.partialorder %v1967_v18, 8.507059e+37  ;;  %v1990_v8 = vsub.f32 1.0, %v1989_v20  ;;  %v10945_v12 = vpop.xlane.xlu1 %1652 }
 0x532   : > { %v4048_v36 = vsub.f32 %v10435_v46, %v3858_v4  ;;  %v3001_v22 = vadd.f32 %v14899_v14, %v14898_v32  ;;  %v1970_v4 = vor.u32 1.1754944e-38, %v1969_v37  ;;  %v1984_v37 = vand.u32 2147483648, %v10833_v57 }
 0x533   : > { %6039 = vmatmul.msk.f32.gmra.mxu3 %vm14895_vm2, %v7315_v17  ;;  %3623 = vmatmul.f32.gmra.mxu1 %v3416_v13  ;;  %v10919_v34 = vadd.f32 %v10419_v24, %v3738_v7  ;;  %v1977_v13 = vadd.f32 %v10874_v0, %v1976_v11  ;;  %v10943_v7 = vpop.eup %6251  ;;  %v1982_v11 = vand.u32 2147483647, %v10833_v57  ;;  %v1991_v57 = vmul.f32 %v10905_v21, %v1990_v8 }
 0x534   : > { %v4112_v27 = vmul.f32 1.442695, %v4048_v36  ;;  %v1971_v32 = vsel %vm1968_vm5, %v1970_v4, %v1966_v42  ;;  %v14903_v36 = vld [vmem:[#allocation41_spill] sm:$0xff]  ;;  %v2004_v42 = vmul.f32 %v10943_v7, %v10901_v44  ;;  %v14906_v4 = vld [vmem:[#allocation119_spill] sm:$0xff]  ;;  %vm2009_vm2 = vweird.f32 %v10943_v7 }
 0x535   : > { %v3901_v23 = vsel %vm3855_vm13, %v10919_v34, -inf  ;;  %vm14904_vm1 = vcmp.eq.s32.totalorder %v14903_v36, %v7199_v48  ;;  %vm1983_vm0 = vcmp.eq.f32.partialorder %v1982_v11, 8.507059e+37  ;;  %v1999_v11 = vand.u32 2147483648, %v10870_v3  ;;  %vm11041_vm5 = vmor %vm2008_vm6, %vm2009_vm2 }
 0x536   : > { %v3209_v46 = vpop.f32.mrf.mxu3  ;;  %3902 = vmax.xlane.f32.xlu0 %v3901_v23  ;;  %6255 = vpow2.f32 %v4112_v27  ;;  %v2005_v27 = vsub.f32 1.0, %v2004_v42 }
 0x537   : > { %v3210_v59 = vadd.f32 %v3209_v46, %v3001_v22  ;;  %v1981_v22 = vsel %vm10950_vm8, %v10874_v0, %v1977_v13  ;;  %v14905_v46 = vld [vmem:[#allocation104_spill] sm:$0xff]  ;;  %v1992_v13 = vadd.f32 %v10905_v21, %v1991_v57 }
 0x538   : > { %v3579_v14 = vpop.f32.mrf.mxu1 }
 0x539   : > { %v3419_v62 = vadd.f32 %v14900_v50, %v3210_v59  ;;  %v3739_v5 = vmul.f32 %v3579_v14, %v1971_v32  ;;  %v3861_v51 = vpop.xlane.xlu2 %3860  ;;  %v3004_v59 = vadd.f32 %v14906_v4, %v14905_v46  ;;  %v10975_v14 = vmax.f32 %v10285_v26, 1e-30  ;;  %v11004_v4 = vpop.f32.mrf.mxu2 }
 0x53a   : > { %v4049_v23 = vsub.f32 %v10467_v41, %v3861_v51  ;;  %v1997_v46 = vand.u32 2147483647, %v10870_v3 }
 0x53b   : > { %6040 = vmatmul.msk.f32.gmra.mxu3 %vm14904_vm1, %v7315_v17  ;;  %3626 = vmatmul.f32.gmra.mxu1 %v3419_v62  ;;  %v10961_v20 = vadd.f32 %v10419_v24, %v3739_v5  ;;  %v1985_v24 = vor.u32 1.1754944e-38, %v1984_v37  ;;  %v10979_v62 = vpop.eup %6253  ;;  %v14907_v5 = vld [vmem:[#allocation125_spill] sm:$0xff]  ;;  %6257 = vrcp.f32 %v10975_v14  ;;  %vm2023_vm1 = vweird.f32 %v10939_v39 }
 0x53c   : > { %v4114_v51 = vmul.f32 1.442695, %v4049_v23  ;;  %v10982_v26 = vpop.eup %6255  ;;  %v10994_v23 = vld [vmem:[%s13972_s3] ss:$0 sm:$0xff]  ;;  %vm1998_vm14 = vcmp.eq.f32.partialorder %v1997_v46, 8.507059e+37  ;;  %v2014_v46 = vand.u32 2147483648, %v10901_v44  ;;  %vm2024_vm10 = vweird.f32 %v10979_v62 }
 0x53d   : > { %v3904_v32 = vsel %vm3855_vm13, %v10961_v20, -inf  ;;  %v1986_v41 = vsel %vm1983_vm0, %v1985_v24, %v1981_v22  ;;  %14908 = vst [vmem:[#allocation175_spill] sm:$0xff] %v10982_v26  ;;  %v14909_v22 = vld [vmem:[#allocation108_spill] sm:$0xff]  ;;  %v2006_v24 = vmul.f32 %v10943_v7, %v2005_v27  ;;  %vm11086_vm0 = vmor %vm2023_vm1, %vm2024_vm10 }
 0x53e   : > { %v3212_v50 = vpop.f32.mrf.mxu3  ;;  %3905 = vmax.xlane.f32.xlu2 %v3904_v32  ;;  %vm14910_vm12 = vcmp.eq.s32.totalorder %v14909_v22, %v7199_v48  ;;  %6259 = vpow2.f32 %v4114_v51  ;;  %v1996_v32 = vsel %vm10999_vm15, %v10905_v21, %v1992_v13  ;;  %v2019_v51 = vmul.f32 %v10979_v62, %v10939_v39 }
 0x53f   : > { %v3213_v0 = vadd.f32 %v3212_v50, %v3004_v59  ;;  %v14913_v50 = vld [vmem:[#allocation109_spill] sm:$0xff]  ;;  %v11020_v21 = vmax.f32 %v10311_v33, 1e-30  ;;  %v11029_v33 = vpop.f32.mrf.mxu0 }
 0x540   : > { %v3582_v8 = vpop.f32.mrf.mxu1 }
 0x541   : > { %v3422_v18 = vadd.f32 %v14907_v5, %v3213_v0  ;;  %v3740_v37 = vmul.f32 %v3582_v8, %v1986_v41  ;;  %v3864_v36 = vpop.xlane.xlu1 %3863  ;;  %v3007_v0 = vadd.f32 %v10210_v45, %v14913_v50  ;;  %v4240_v41 = vsel %vm3855_vm13, %v10982_v26, 0.0  ;;  %v11022_v27 = vpop.eup %6257 }
 0x542   : > { %v4050_v59 = vsub.f32 %v10499_v47, %v3864_v36  ;;  %v2000_v47 = vor.u32 1.1754944e-38, %v1999_v11  ;;  %v14914_v36 = vld [vmem:[#allocation132_spill] sm:$0xff]  ;;  %6261 = vrcp.f32 %v11020_v21  ;;  %vm2039_vm11 = vweird.f32 %v11022_v27 }
 0x543   : > { %6041 = vmatmul.msk.f32.gmra.mxu3 %vm14910_vm12, %v7315_v17  ;;  %3629 = vmatmul.f32.gmra.mxu1 %v3422_v18  ;;  %v10997_v57 = vadd.f32 %v10994_v23, %v3740_v37  ;;  %v2007_v37 = vadd.f32 %v10943_v7, %v2006_v24  ;;  %vm2038_vm12 = vweird.f32 %v10975_v14 }
 0x544   : > { %v4116_v45 = vmul.f32 1.442695, %v4050_v59  ;;  %v2001_v5 = vsel %vm1998_vm14, %v2000_v47, %v1996_v32  ;;  %v11027_v11 = vpop.eup %6259  ;;  %v14916_v59 = vld [vmem:[#allocation112_spill] sm:$0xff]  ;;  %v14920_v47 = vld [vmem:[#allocation113_spill] sm:$0xff]  ;;  %vm11115_vm15 = vmor %vm2038_vm12, %vm2039_vm11 }
 0x545   : > { %v3907_v3 = vsel %vm3855_vm13, %v10997_v57, -inf  ;;  %14915 = vst [vmem:[#allocation56_spill] sm:$0xff] %v11027_v11  ;;  %vm14917_vm3 = vcmp.eq.s32.totalorder %v14916_v59, %v7199_v48 }
 0x546   : > { %v3215_v8 = vpop.f32.mrf.mxu3  ;;  %4241 = vadd.xlane.f32.xlu2 %v4240_v41  ;;  %3908 = vmax.xlane.f32.xlu1 %v3907_v3  ;;  %v2020_v41 = vsub.f32 1.0, %v2019_v51  ;;  %v2034_v3 = vmul.f32 %v11022_v27, %v10975_v14  ;;  %6263 = vpow2.f32 %v4116_v45  ;;  %v11062_v45 = vpop.f32.mrf.mxu2 }
 0x547   : > { %v3216_v13 = vadd.f32 %v3215_v8, %v3007_v0  ;;  %v2012_v0 = vand.u32 2147483647, %v10901_v44  ;;  %v2011_v8 = vsel %vm11041_vm5, %v10943_v7, %v2007_v37  ;;  %v2015_v7 = vor.u32 1.1754944e-38, %v2014_v46 }
 0x548   : > { %v3585_v18 = vpop.f32.mrf.mxu1  ;;  %v2021_v44 = vmul.f32 %v10979_v62, %v2020_v41  ;;  %v11064_v59 = vpop.eup %6261  ;;  %v2029_v46 = vand.u32 2147483648, %v10939_v39 }
 0x549   : > { %v3425_v22 = vadd.f32 %v14914_v36, %v3216_v13  ;;  %v3741_v42 = vmul.f32 %v3585_v18, %v2001_v5  ;;  %v3867_v50 = vpop.xlane.xlu0 %3866  ;;  %v3010_v13 = vadd.f32 %v10235_v1, %v14920_v47  ;;  %v4243_v18 = vsel %vm3855_vm13, %v11027_v11, 0.0 }
 0x54a   : > { %v4051_v51 = vsub.f32 %v10527_v31, %v3867_v50  ;;  %v11060_v36 = vmax.f32 %v10318_v28, 1e-30  ;;  %vm2013_vm7 = vcmp.eq.f32.partialorder %v2012_v0, 8.507059e+37  ;;  %v2035_v1 = vsub.f32 1.0, %v2034_v3  ;;  %v14922_v0 = vld [vmem:[#allocation49_spill] sm:$0xff] }
 0x54b   : > { %6042 = vmatmul.msk.f32.gmra.mxu3 %vm14917_vm3, %v7315_v17  ;;  %3632 = vmatmul.f32.gmra.mxu1 %v3425_v22  ;;  %v11039_v32 = vadd.f32 %v10994_v23, %v3741_v42  ;;  %v2016_v42 = vsel %vm2013_vm7, %v2015_v7, %v2011_v8  ;;  %v2022_v28 = vadd.f32 %v10979_v62, %v2021_v44  ;;  %v2027_v3 = vand.u32 2147483647, %v10939_v39  ;;  %v11083_v8 = vpop.f32.mrf.mxu0  ;;  %v14926_v44 = vld [vmem:[#allocation116_spill] sm:$0xff] }
 0x54c   : > { %v4118_v22 = vmul.f32 1.442695, %v4051_v51  ;;  %v11069_v11 = vpop.eup %6263  ;;  %6265 = vrcp.f32 %v11060_v36  ;;  %vm14923_vm8 = vcmp.eq.s32.totalorder %v14922_v0, %v7199_v48  ;;  %v2036_v51 = vmul.f32 %v11022_v27, %v2035_v1 }
 0x54d   : > { %v3910_v5 = vsel %vm3855_vm13, %v11039_v32, -inf  ;;  %14921 = vst [vmem:[#allocation176_spill] sm:$0xff] %v11069_v11  ;;  %v4246_v39 = vsel %vm3855_vm13, %v11069_v11, 0.0  ;;  %vm2028_vm9 = vcmp.eq.f32.partialorder %v2027_v3, 8.507059e+37  ;;  %vm2054_vm6 = vweird.f32 %v11064_v59 }
 0x54e   : > { %v3218_v31 = vpop.f32.mrf.mxu3  ;;  %3911 = vmax.xlane.f32.xlu0 %v3910_v5  ;;  %4244 = vadd.xlane.f32.xlu1 %v4243_v18  ;;  %6267 = vpow2.f32 %v4118_v22  ;;  %v2049_v18 = vmul.f32 %v11064_v59, %v11020_v21  ;;  %v2030_v22 = vor.u32 1.1754944e-38, %v2029_v46  ;;  %v2044_v46 = vand.u32 2147483648, %v10975_v14 }
 0x54f   : > { %v3219_v37 = vadd.f32 %v3218_v31, %v3010_v13  ;;  %v3013_v31 = vadd.f32 %v10269_v38, %v14926_v44  ;;  %v2037_v38 = vadd.f32 %v11022_v27, %v2036_v51  ;;  %v2042_v44 = vand.u32 2147483647, %v10975_v14 }
 0x550   : > { %v3588_v50 = vpop.f32.mrf.mxu1  ;;  %vm2053_vm3 = vweird.f32 %v11020_v21  ;;  %vm2068_vm1 = vweird.f32 %v11060_v36 }
 0x551   : > { %v3428_v24 = vadd.f32 %v10241_v52, %v3219_v37  ;;  %v3742_v41 = vmul.f32 %v3588_v50, %v2016_v42  ;;  %v3870_v47 = vpop.xlane.xlu2 %3869  ;;  %v11102_v37 = vmax.f32 %v10345_v61, 1e-30  ;;  %vm2043_vm2 = vcmp.eq.f32.partialorder %v2042_v44, 8.507059e+37  ;;  %vm11165_vm7 = vmor %vm2053_vm3, %vm2054_vm6 }
 0x552   : > { %v4052_v13 = vsub.f32 %v10559_v56, %v3870_v47  ;;  %v2026_v56 = vsel %vm11086_vm0, %v10979_v62, %v2022_v28  ;;  %v11106_v50 = vpop.eup %6265  ;;  %v2050_v28 = vsub.f32 1.0, %v2049_v18  ;;  %v2041_v18 = vsel %vm11115_vm15, %v11022_v27, %v2037_v38 }
 0x553   : > { %6043 = vmatmul.msk.f32.gmra.mxu3 %vm14923_vm8, %v7315_v17  ;;  %3635 = vmatmul.f32.gmra.mxu1 %v3428_v24  ;;  %v11078_v52 = vadd.f32 %v10994_v23, %v3742_v41  ;;  %v11108_v24 = vpop.f32.mrf.mxu2  ;;  %v2031_v47 = vsel %vm2028_vm9, %v2030_v22, %v2026_v56  ;;  %6269 = vrcp.f32 %v11102_v37  ;;  %v11142_v27 = vmax.f32 %v10352_v25, 1e-30  ;;  %v11144_v38 = vpop.f32.mrf.mxu0 }
 0x554   : > { %v4120_v41 = vmul.f32 1.442695, %v4052_v13  ;;  %v11113_v3 = vpop.eup %6267  ;;  %v14930_v13 = vld [vmem:[#allocation120_spill] sm:$0xff]  ;;  %v2051_v14 = vmul.f32 %v11064_v59, %v2050_v28  ;;  %vm2069_vm8 = vweird.f32 %v11106_v50 }
 0x555   : > { %v3913_v7 = vsel %vm3855_vm13, %v11078_v52, -inf  ;;  %14927 = vst [vmem:[#allocation177_spill] sm:$0xff] %v11113_v3  ;;  %vm14931_vm14 = vcmp.eq.s32.totalorder %v14930_v13, %v7199_v48  ;;  %vm11205_vm9 = vmor %vm2068_vm1, %vm2069_vm8 }
 0x556   : > { %v3221_v1 = vpop.f32.mrf.mxu3  ;;  %4247 = vadd.xlane.f32.xlu0 %v4246_v39  ;;  %3914 = vmax.xlane.f32.xlu2 %v3913_v7  ;;  %6271 = vpow2.f32 %v4120_v41  ;;  %v2064_v39 = vmul.f32 %v11106_v50, %v11060_v36  ;;  %v14932_v7 = vld [vmem:[#allocation121_spill] sm:$0xff]  ;;  %v2052_v28 = vadd.f32 %v11064_v59, %v2051_v14 }
 0x557   : > { %v3222_v42 = vadd.f32 %v3221_v1, %v3013_v31  ;;  %v3016_v56 = vadd.f32 %v10298_v2, %v14932_v7  ;;  %v4249_v1 = vsel %vm3855_vm13, %v11113_v3, 0.0  ;;  %6273 = vrcp.f32 %v11142_v27  ;;  %v14951_v3 = vld [vmem:[#allocation143_spill] sm:$0xff] }
 0x558   : > { %v3591_v62 = vpop.f32.mrf.mxu1  ;;  %v2057_v7 = vand.u32 2147483647, %v11020_v21 }
 0x559   : > { %v3431_v61 = vadd.f32 %v10271_v63, %v3222_v42  ;;  %v3743_v0 = vmul.f32 %v3591_v62, %v2031_v47  ;;  %v3873_v5 = vpop.xlane.xlu1 %3872  ;;  %v2045_v42 = vor.u32 1.1754944e-38, %v2044_v46 }
 0x55a   : > { %v4053_v31 = vsub.f32 %v10593_v49, %v3873_v5  ;;  %v14933_v5 = vld [vmem:[#allocation129_spill] sm:$0xff]  ;;  %vm2058_vm10 = vcmp.eq.f32.partialorder %v2057_v7, 8.507059e+37  ;;  %v2074_v7 = vand.u32 2147483648, %v11060_v36 }
 0x55b   : > { %6044 = vmatmul.msk.f32.gmra.mxu3 %vm14931_vm14, %v7315_v17  ;;  %3638 = vmatmul.f32.gmra.mxu1 %v3431_v61  ;;  %v11126_v63 = vadd.f32 %v10994_v23, %v3743_v0  ;;  %v2046_v47 = vsel %vm2043_vm2, %v2045_v42, %v2041_v18  ;;  %v2065_v61 = vsub.f32 1.0, %v2064_v39  ;;  %v11148_v0 = vpop.eup %6269  ;;  %v11154_v44 = vpop.f32.mrf.mxu2  ;;  %v2059_v18 = vand.u32 2147483648, %v11020_v21  ;;  %v14939_v42 = vld [vmem:[#allocation126_spill] sm:$0xff] }
 0x55c   : > { %v4122_v62 = vmul.f32 1.442695, %v4053_v31  ;;  %v11151_v13 = vpop.eup %6271  ;;  %v14935_v31 = vld [vmem:[#allocation124_spill] sm:$0xff]  ;;  %v2079_v21 = vmul.f32 %v11148_v0, %v11102_v37  ;;  %vm2084_vm12 = vweird.f32 %v11148_v0  ;;  %vm2083_vm14 = vweird.f32 %v11102_v37 }
 0x55d   : > { %v3916_v22 = vsel %vm3855_vm13, %v11126_v63, -inf  ;;  %14934 = vst [vmem:[#allocation24_spill] sm:$0xff] %v11151_v13  ;;  %vm14936_vm5 = vcmp.eq.s32.totalorder %v14935_v31, %v7199_v48  ;;  %vm11250_vm2 = vmor %vm2083_vm14, %vm2084_vm12 }
 0x55e   : > { %v3224_v49 = vpop.f32.mrf.mxu3  ;;  %4250 = vadd.xlane.f32.xlu2 %v4249_v1  ;;  %3917 = vmax.xlane.f32.xlu1 %v3916_v22  ;;  %6275 = vpow2.f32 %v4122_v62  ;;  %v2056_v1 = vsel %vm11165_vm7, %v11064_v59, %v2052_v28  ;;  %v2066_v22 = vmul.f32 %v11106_v50, %v2065_v61  ;;  %v11186_v61 = vpop.eup %6273 }
 0x55f   : > { %v3225_v41 = vadd.f32 %v3224_v49, %v3016_v56  ;;  %v14940_v49 = vld [vmem:[#allocation87_spill] sm:$0xff]  ;;  %vm2099_vm3 = vweird.f32 %v11186_v61 }
 0x560   : > { %v3594_v2 = vpop.f32.mrf.mxu1  ;;  %v2067_v39 = vadd.f32 %v11106_v50, %v2066_v22 }
 0x561   : > { %v3434_v25 = vadd.f32 %v14933_v5, %v3225_v41  ;;  %v3744_v46 = vmul.f32 %v3594_v2, %v2046_v47  ;;  %v3876_v51 = vpop.xlane.xlu0 %3875  ;;  %v3019_v41 = vadd.f32 %v14940_v49, %v14939_v42  ;;  %v4252_v2 = vsel %vm3855_vm13, %v11151_v13, 0.0  ;;  %v14941_v5 = vld [vmem:[#allocation144_spill] sm:$0xff]  ;;  %v14942_v42 = vld [vmem:[#allocation138_spill] sm:$0xff] }
 0x562   : > { %v4054_v56 = vsub.f32 %v10623_v53, %v3876_v51  ;;  %v2060_v53 = vor.u32 1.1754944e-38, %v2059_v18  ;;  %v11184_v59 = vmax.f32 %v14941_v5, 1e-30 }
 0x563   : > { %6045 = vmatmul.msk.f32.gmra.mxu3 %vm14936_vm5, %v7315_v17  ;;  %3641 = vmatmul.f32.gmra.mxu1 %v3434_v25  ;;  %v11163_v14 = vadd.f32 %v10994_v23, %v3744_v46  ;;  %v11188_v25 = vpop.f32.mrf.mxu0  ;;  %vm2098_vm5 = vweird.f32 %v11142_v27 }
 0x564   : > { %v4124_v46 = vmul.f32 1.442695, %v4054_v56  ;;  %v2061_v51 = vsel %vm2058_vm10, %v2060_v53, %v2056_v1  ;;  %v11193_v5 = vpop.eup %6275  ;;  %6277 = vrcp.f32 %v11184_v59  ;;  %v14944_v56 = vld [vmem:[#allocation57_spill] sm:$0xff]  ;;  %vm11279_vm7 = vmor %vm2098_vm5, %vm2099_vm3 }
 0x565   : > { %v3919_v47 = vsel %vm3855_vm13, %v11163_v14, -inf  ;;  %14943 = vst [vmem:[#allocation178_spill] sm:$0xff] %v11193_v5  ;;  %vm14945_vm0 = vcmp.eq.s32.totalorder %v14944_v56, %v7199_v48  ;;  %v14950_v56 = vld [vmem:[#allocation97_spill] sm:$0xff] }
 0x566   : > { %v3227_v62 = vpop.f32.mrf.mxu3  ;;  %3920 = vmax.xlane.f32.xlu0 %v3919_v47  ;;  %4253 = vadd.xlane.f32.xlu1 %v4252_v2  ;;  %v2080_v2 = vsub.f32 1.0, %v2079_v21  ;;  %v2094_v21 = vmul.f32 %v11186_v61, %v11142_v27  ;;  %6279 = vpow2.f32 %v4124_v46  ;;  %v11226_v13 = vmax.f32 %v14950_v56, 1e-30 }
 0x567   : > { %v3228_v28 = vadd.f32 %v3227_v62, %v3019_v41  ;;  %v2072_v41 = vand.u32 2147483647, %v11060_v36  ;;  %v11212_v62 = vpop.f32.mrf.mxu2  ;;  %v4255_v36 = vsel %vm3855_vm13, %v11193_v5, 0.0 }
 0x568   : > { %v3597_v31 = vpop.f32.mrf.mxu1  ;;  %6281 = vrcp.f32 %v11226_v13  ;;  %vm2128_vm14 = vweird.f32 %v11226_v13 }
 0x569   : > { %v3437_v49 = vadd.f32 %v14942_v42, %v3228_v28  ;;  %v3745_v47 = vmul.f32 %v3597_v31, %v2061_v51  ;;  %v3879_v18 = vpop.xlane.xlu2 %3878  ;;  %v2071_v28 = vsel %vm11205_vm9, %v11106_v50, %v2067_v39  ;;  %v14948_v51 = vld [vmem:[#allocation131_spill] sm:$0xff]  ;;  %v14949_v31 = vld [vmem:[#allocation137_spill] sm:$0xff]  ;;  %vm2073_vm11 = vcmp.eq.f32.partialorder %v2072_v41, 8.507059e+37 }
 0x56a   : > { %v4055_v53 = vsub.f32 %v10657_v9, %v3879_v18  ;;  %v3022_v42 = vadd.f32 %v14949_v31, %v14948_v51  ;;  %v2075_v9 = vor.u32 1.1754944e-38, %v2074_v7  ;;  %v2095_v50 = vsub.f32 1.0, %v2094_v21  ;;  %v11228_v31 = vpop.eup %6277  ;;  %v14953_v21 = vld [vmem:[#allocation128_spill] sm:$0xff] }
 0x56b   : > { %6046 = vmatmul.msk.f32.gmra.mxu3 %vm14945_vm0, %v7315_v17  ;;  %3644 = vmatmul.f32.gmra.mxu1 %v3437_v49  ;;  %v11203_v1 = vadd.f32 %v10994_v23, %v3745_v47  ;;  %v2081_v47 = vmul.f32 %v11148_v0, %v2080_v2  ;;  %v11236_v7 = vpop.f32.mrf.mxu0  ;;  %v2089_v41 = vand.u32 2147483648, %v11102_v37  ;;  %vm14954_vm15 = vcmp.eq.s32.totalorder %v14953_v21, %v7199_v48 }
 0x56c   : > { %v4126_v39 = vmul.f32 1.442695, %v4055_v53  ;;  %v2076_v22 = vsel %vm2073_vm11, %v2075_v9, %v2071_v28  ;;  %v11233_v56 = vpop.eup %6279  ;;  %v2087_v53 = vand.u32 2147483647, %v11102_v37  ;;  %v2096_v28 = vmul.f32 %v11186_v61, %v2095_v50 }
 0x56d   : > { %v3922_v49 = vsel %vm3855_vm13, %v11203_v1, -inf  ;;  %v2082_v2 = vadd.f32 %v11148_v0, %v2081_v47  ;;  %14952 = vst [vmem:[#allocation179_spill] sm:$0xff] %v11233_v56  ;;  %v4258_v47 = vsel %vm3855_vm13, %v11233_v56, 0.0  ;;  %v2090_v50 = vor.u32 1.1754944e-38, %v2089_v41 }
 0x56e   : > { %v3230_v46 = vpop.f32.mrf.mxu3  ;;  %3923 = vmax.xlane.f32.xlu2 %v3922_v49  ;;  %4256 = vadd.xlane.f32.xlu0 %v4255_v36  ;;  %6283 = vpow2.f32 %v4126_v39  ;;  %v2109_v36 = vmul.f32 %v11228_v31, %v11184_v59  ;;  %vm2088_vm6 = vcmp.eq.f32.partialorder %v2087_v53, 8.507059e+37  ;;  %v2097_v39 = vadd.f32 %v11186_v61, %v2096_v28 }
 0x56f   : > { %v3231_v18 = vadd.f32 %v3230_v46, %v3022_v42  ;;  %v11268_v9 = vpop.f32.mrf.mxu2  ;;  %v2104_v41 = vand.u32 2147483648, %v11142_v27  ;;  %v2102_v28 = vand.u32 2147483647, %v11142_v27  ;;  %vm2114_vm1 = vweird.f32 %v11228_v31 }
 0x570   : > { %v3600_v51 = vpop.f32.mrf.mxu1  ;;  %vm2113_vm0 = vweird.f32 %v11184_v59 }
 0x571   : > { %v3440_v11 = vadd.f32 %v14951_v3, %v3231_v18  ;;  %v3746_v5 = vmul.f32 %v3600_v51, %v2076_v22  ;;  %v3882_v26 = vpop.xlane.xlu1 %3881  ;;  %v11272_v22 = vpop.eup %6281  ;;  %vm2103_vm8 = vcmp.eq.f32.partialorder %v2102_v28, 8.507059e+37  ;;  %v2119_v28 = vand.u32 2147483648, %v11184_v59  ;;  %vm11329_vm11 = vmor %vm2113_vm0, %vm2114_vm1 }
 0x572   : > { %v4056_v42 = vsub.f32 %v10687_v43, %v3882_v26  ;;  %v2086_v43 = vsel %vm11250_vm2, %v11148_v0, %v2082_v2  ;;  %v14958_v26 = vld [vmem:[#allocation156_spill] sm:$0xff]  ;;  %v2110_v2 = vsub.f32 1.0, %v2109_v36  ;;  %v2101_v36 = vsel %vm11279_vm7, %v11186_v61, %v2097_v39  ;;  %v14965_v39 = vld [vmem:[#allocation190_spill] sm:$0xff] }
 0x573   : > { %6047 = vmatmul.msk.f32.gmra.mxu3 %vm14954_vm15, %v7315_v17  ;;  %3647 = vmatmul.f32.gmra.mxu1 %v3440_v11  ;;  %v11244_v3 = vadd.f32 %v10994_v23, %v3746_v5  ;;  %v14957_v11 = vld [vmem:[#allocation139_spill] sm:$0xff]  ;;  %v11266_v46 = vmax.f32 %v14958_v26, 1e-30  ;;  %v2091_v21 = vsel %vm2088_vm6, %v2090_v50, %v2086_v43  ;;  %v2124_v43 = vmul.f32 %v11272_v22, %v11226_v13 }
 0x574   : > { %v3025_v5 = vadd.f32 %v11004_v4, %v14957_v11  ;;  %v4128_v51 = vmul.f32 1.442695, %v4056_v42  ;;  %v14962_v42 = vld [vmem:[#allocation135_spill] sm:$0xff]  ;;  %v2105_v61 = vor.u32 1.1754944e-38, %v2104_v41  ;;  %vm2129_vm15 = vweird.f32 %v11272_v22 }
 0x575   : > { %v3925_v37 = vsel %vm3855_vm13, %v11244_v3, -inf  ;;  %6285 = vrcp.f32 %v11266_v46  ;;  %vm14963_vm10 = vcmp.eq.s32.totalorder %v14962_v42, %v7199_v48  ;;  %v2125_v53 = vsub.f32 1.0, %v2124_v43  ;;  %vm11371_vm6 = vmor %vm2128_vm14, %vm2129_vm15 }
 0x576   : > { %v3233_v18 = vpop.f32.mrf.mxu3  ;;  %4259 = vadd.xlane.f32.xlu2 %v4258_v47  ;;  %3926 = vmax.xlane.f32.xlu1 %v3925_v37  ;;  %v11295_v47 = vpop.f32.mrf.mxu0  ;;  %6287 = vpow2.f32 %v4128_v51  ;;  %v2111_v37 = vmul.f32 %v11228_v31, %v2110_v2  ;;  %v2106_v2 = vsel %vm2103_vm8, %v2105_v61, %v2101_v36  ;;  %v14967_v36 = vld [vmem:[#allocation64_spill] sm:$0xff] }
 0x577   : > { %v3234_v4 = vadd.f32 %v3233_v18, %v3025_v5  ;;  %v11277_v5 = vpop.eup %6283  ;;  %v14964_v18 = vld [vmem:[#allocation146_spill] sm:$0xff]  ;;  %vm14968_vm9 = vcmp.eq.s32.totalorder %v14967_v36, %v7199_v48  ;;  %v14971_v61 = vld [vmem:[#allocation148_spill] sm:$0xff] }
 0x578   : > { %v3603_v0 = vpop.f32.mrf.mxu1  ;;  %14959 = vst [vmem:[#allocation71_spill] sm:$0xff] %v11277_v5  ;;  %v3028_v50 = vadd.f32 %v11062_v45, %v14964_v18 }
 0x579   : > { %v3443_v49 = vadd.f32 %v11029_v33, %v3234_v4  ;;  %v3747_v11 = vmul.f32 %v3603_v0, %v2091_v21  ;;  %v3885_v26 = vpop.xlane.xlu0 %3884  ;;  %v4261_v21 = vsel %vm3855_vm13, %v11277_v5, 0.0  ;;  %v11308_v0 = vmax.f32 %v14965_v39, 1e-30 }
 0x57a   : > { %v4057_v27 = vsub.f32 %v10721_v58, %v3885_v26  ;;  %v2112_v26 = vadd.f32 %v11228_v31, %v2111_v37  ;;  %v2117_v37 = vand.u32 2147483647, %v11184_v59 }
 0x57b   : > { %6048 = vmatmul.msk.f32.gmra.mxu3 %vm14963_vm10, %v7315_v17  ;;  %3650 = vmatmul.f32.gmra.mxu1 %v3443_v49  ;;  %v11290_v33 = vadd.f32 %v10994_v23, %v3747_v11  ;;  %v11310_v49 = vpop.f32.mrf.mxu2  ;;  %v11314_v42 = vpop.eup %6285  ;;  %6289 = vrcp.f32 %v11308_v0  ;;  %vm2143_vm10 = vweird.f32 %v11266_v46 }
 0x57c   : > { %v4130_v11 = vmul.f32 1.442695, %v4057_v27  ;;  %v2139_v59 = vmul.f32 %v11314_v42, %v11266_v46  ;;  %vm2118_vm12 = vcmp.eq.f32.partialorder %v2117_v37, 8.507059e+37  ;;  %v2134_v37 = vand.u32 2147483648, %v11226_v13 }
 0x57d   : > { %v3928_v4 = vsel %vm3855_vm13, %v11290_v33, -inf  ;;  %vm2144_vm5 = vweird.f32 %v11314_v42 }
 0x57e   : > { %v3236_v51 = vpop.f32.mrf.mxu3  ;;  %3929 = vmax.xlane.f32.xlu0 %v3928_v4  ;;  %4262 = vadd.xlane.f32.xlu1 %v4261_v21  ;;  %v11317_v4 = vpop.eup %6287  ;;  %6291 = vpow2.f32 %v4130_v11  ;;  %v2126_v21 = vmul.f32 %v11272_v22, %v2125_v53  ;;  %vm11416_vm8 = vmor %vm2143_vm10, %vm2144_vm5 }
 0x57f   : > { %v3237_v58 = vadd.f32 %v3236_v51, %v3028_v50  ;;  %14966 = vst [vmem:[#allocation46_spill] sm:$0xff] %v11317_v4  ;;  %v2116_v50 = vsel %vm11329_vm11, %v11228_v31, %v2112_v26  ;;  %v3031_v51 = vadd.f32 %v11108_v24, %v14971_v61  ;;  %v11347_v11 = vpop.f32.mrf.mxu0  ;;  %v2120_v31 = vor.u32 1.1754944e-38, %v2119_v28 }
 0x580   : > { %v3606_v45 = vpop.f32.mrf.mxu1  ;;  %v2127_v36 = vadd.f32 %v11272_v22, %v2126_v21  ;;  %v2132_v21 = vand.u32 2147483647, %v11226_v13 }
 0x581   : > { %v3446_v41 = vadd.f32 %v11083_v8, %v3237_v58  ;;  %v3748_v18 = vmul.f32 %v3606_v45, %v2106_v2  ;;  %v3888_v39 = vpop.xlane.xlu2 %3887  ;;  %v4264_v58 = vsel %vm3855_vm13, %v11317_v4, 0.0  ;;  %v14972_v45 = vld [vmem:[#allocation157_spill] sm:$0xff]  ;;  %v11352_v24 = vpop.eup %6289 }
 0x582   : > { %v4058_v43 = vsub.f32 %v10753_v10, %v3888_v39  ;;  %v11350_v26 = vmax.f32 %v14972_v45, 1e-30  ;;  %vm2133_vm3 = vcmp.eq.f32.partialorder %v2132_v21, 8.507059e+37  ;;  %v14981_v21 = vld [vmem:[#allocation142_spill] sm:$0xff]  ;;  %vm2159_vm0 = vweird.f32 %v11352_v24 }
 0x583   : > { %6049 = vmatmul.msk.f32.gmra.mxu3 %vm14968_vm9, %v7315_v17  ;;  %3653 = vmatmul.f32.gmra.mxu1 %v3446_v41  ;;  %v11327_v27 = vadd.f32 %v10994_v23, %v3748_v18  ;;  %v2121_v18 = vsel %vm2118_vm12, %v2120_v31, %v2116_v50  ;;  %v11359_v45 = vpop.f32.mrf.mxu2  ;;  %v14978_v31 = vld [vmem:[#allocation149_spill] sm:$0xff]  ;;  %vm14982_vm7 = vcmp.eq.s32.totalorder %v14981_v21, %v7199_v48  ;;  %vm2158_vm9 = vweird.f32 %v11308_v0 }
 0x584   : > { %v4132_v41 = vmul.f32 1.442695, %v4058_v43  ;;  %v11357_v28 = vpop.eup %6291  ;;  %6293 = vrcp.f32 %v11350_v26  ;;  %v14974_v43 = vld [vmem:[#allocation133_spill] sm:$0xff]  ;;  %vm11445_vm11 = vmor %vm2158_vm9, %vm2159_vm0 }
 0x585   : > { %v3931_v2 = vsel %vm3855_vm13, %v11327_v27, -inf  ;;  %14973 = vst [vmem:[#allocation123_spill] sm:$0xff] %v11357_v28  ;;  %vm14975_vm2 = vcmp.eq.s32.totalorder %v14974_v43, %v7199_v48 }
 0x586   : > { %v3239_v10 = vpop.f32.mrf.mxu3  ;;  %4265 = vadd.xlane.f32.xlu0 %v4264_v58  ;;  %3932 = vmax.xlane.f32.xlu2 %v3931_v2  ;;  %v2140_v2 = vsub.f32 1.0, %v2139_v59  ;;  %6295 = vpow2.f32 %v4132_v41 }
 0x587   : > { %v3240_v53 = vadd.f32 %v3239_v10, %v3031_v51  ;;  %v2154_v51 = vmul.f32 %v11352_v24, %v11308_v0  ;;  %v2131_v10 = vsel %vm11371_vm6, %v11272_v22, %v2127_v36  ;;  %v11392_v36 = vpop.f32.mrf.mxu0 }
 0x588   : > { %v3609_v39 = vpop.f32.mrf.mxu1  ;;  %v2141_v13 = vmul.f32 %v11314_v42, %v2140_v2 }
 0x589   : > { %v3449_v8 = vadd.f32 %v11144_v38, %v3240_v53  ;;  %v3749_v61 = vmul.f32 %v3609_v39, %v2121_v18  ;;  %v3891_v58 = vpop.xlane.xlu1 %3890  ;;  %v3034_v53 = vadd.f32 %v11154_v44, %v14978_v31  ;;  %v4267_v18 = vsel %vm3855_vm13, %v11357_v28, 0.0 }
 0x58a   : > { %v4059_v59 = vsub.f32 %v10787_v40, %v3891_v58  ;;  %v2135_v40 = vor.u32 1.1754944e-38, %v2134_v37  ;;  %v2155_v22 = vsub.f32 1.0, %v2154_v51  ;;  %v11394_v31 = vpop.eup %6293  ;;  %v2149_v37 = vand.u32 2147483648, %v11266_v46 }
 0x58b   : > { %6050 = vmatmul.msk.f32.gmra.mxu3 %vm14975_vm2, %v7315_v17  ;;  %3656 = vmatmul.f32.gmra.mxu1 %v3449_v8  ;;  %v11369_v38 = vadd.f32 %v10994_v23, %v3749_v61  ;;  %v14979_v8 = vld [vmem:[#allocation20_spill] sm:$0xff]  ;;  %v2147_v51 = vand.u32 2147483647, %v11266_v46  ;;  %vm2174_vm14 = vweird.f32 %v11394_v31  ;;  %vm2173_vm2 = vweird.f32 %v11350_v26 }
 0x58c   : > { %v11390_v61 = vmax.f32 %v14979_v8, 1e-30  ;;  %v4134_v44 = vmul.f32 1.442695, %v4059_v59  ;;  %v2136_v43 = vsel %vm2133_vm3, %v2135_v40, %v2131_v10  ;;  %v2142_v8 = vadd.f32 %v11314_v42, %v2141_v13  ;;  %v11413_v10 = vpop.f32.mrf.mxu2  ;;  %v14985_v13 = vld [vmem:[#allocation150_spill] sm:$0xff]  ;;  %vm11493_vm3 = vmor %vm2173_vm2, %vm2174_vm14 }
 0x58d   : > { %v3934_v39 = vsel %vm3855_vm13, %v11369_v38, -inf  ;;  %v2156_v59 = vmul.f32 %v11352_v24, %v2155_v22  ;;  %vm2148_vm1 = vcmp.eq.f32.partialorder %v2147_v51, 8.507059e+37 }
 0x58e   : > { %v3242_v41 = vpop.f32.mrf.mxu3  ;;  %4268 = vadd.xlane.f32.xlu2 %v4267_v18  ;;  %3935 = vmax.xlane.f32.xlu1 %v3934_v39  ;;  %v11399_v18 = vpop.eup %6295  ;;  %6297 = vrcp.f32 %v11390_v61  ;;  %vm2188_vm10 = vweird.f32 %v11390_v61 }
 0x58f   : > { %v3243_v58 = vadd.f32 %v3242_v41, %v3034_v53  ;;  %14980 = vst [vmem:[#allocation180_spill] sm:$0xff] %v11399_v18  ;;  %6299 = vpow2.f32 %v4134_v44  ;;  %v3037_v41 = vadd.f32 %v11212_v62, %v14985_v13  ;;  %v4270_v40 = vsel %vm3855_vm13, %v11399_v18, 0.0  ;;  %v11443_v51 = vpop.f32.mrf.mxu0 }
 0x590   : > { %v3612_v50 = vpop.f32.mrf.mxu1  ;;  %v2150_v44 = vor.u32 1.1754944e-38, %v2149_v37  ;;  %v2157_v62 = vadd.f32 %v11352_v24, %v2156_v59  ;;  %v2164_v37 = vand.u32 2147483648, %v11308_v0 }
 0x591   : > { %v3452_v28 = vadd.f32 %v11188_v25, %v3243_v58  ;;  %v3750_v2 = vmul.f32 %v3612_v50, %v2136_v43  ;;  %v3894_v4 = vpop.xlane.xlu0 %3893 }
 0x592   : > { %v4060_v53 = vsub.f32 %v10817_v15, %v3894_v4  ;;  %v2146_v15 = vsel %vm11416_vm8, %v11314_v42, %v2142_v8  ;;  %v14986_v4 = vld [vmem:[#allocation62_spill] sm:$0xff] }
 0x593   : > { %6051 = vmatmul.msk.f32.gmra.mxu3 %vm14982_vm7, %v7315_v17  ;;  %3659 = vmatmul.f32.gmra.mxu1 %v3452_v28  ;;  %v11408_v25 = vadd.f32 %v10994_v23, %v3750_v2  ;;  %v2169_v28 = vmul.f32 %v11394_v31, %v11350_v26  ;;  %v11432_v58 = vmax.f32 %v14986_v4, 1e-30  ;;  %v2151_v21 = vsel %vm2148_vm1, %v2150_v44, %v2146_v15 }
 0x594   : > { %v11436_v50 = vpop.eup %6297  ;;  %v4136_v2 = vmul.f32 1.442695, %v4060_v53  ;;  %v2162_v53 = vand.u32 2147483647, %v11308_v0 }
 0x595   : > { %v3937_v46 = vsel %vm3855_vm13, %v11408_v25, -inf  ;;  %v2170_v39 = vsub.f32 1.0, %v2169_v28  ;;  %6301 = vrcp.f32 %v11432_v58  ;;  %v2184_v15 = vmul.f32 %v11436_v50, %v11390_v61 }
 0x596   : > { %v3245_v22 = vpop.f32.mrf.mxu3  ;;  %3938 = vmax.xlane.f32.xlu0 %v3937_v46  ;;  %4271 = vadd.xlane.f32.xlu1 %v4270_v40  ;;  %v2161_v46 = vsel %vm11445_vm11, %v11352_v24, %v2157_v62  ;;  %6303 = vpow2.f32 %v4136_v2  ;;  %v11474_v62 = vpop.f32.mrf.mxu2  ;;  %vm2163_vm15 = vcmp.eq.f32.partialorder %v2162_v53, 8.507059e+37  ;;  %v2179_v53 = vand.u32 2147483648, %v11350_v26 }
 0x597   : > { %v3246_v43 = vadd.f32 %v3245_v22, %v3037_v41  ;;  %v11441_v41 = vpop.eup %6299  ;;  %v2171_v0 = vmul.f32 %v11394_v31, %v2170_v39  ;;  %v14992_v22 = vld [vmem:[#allocation151_spill] sm:$0xff]  ;;  %v2185_v59 = vsub.f32 1.0, %v2184_v15  ;;  %v11498_v15 = vpop.f32.mrf.mxu0  ;;  %vm2189_vm7 = vweird.f32 %v11436_v50 }
 0x598   : > { %v3615_v13 = vpop.f32.mrf.mxu1  ;;  %14987 = vst [vmem:[#allocation77_spill] sm:$0xff] %v11441_v41  ;;  %v3040_v44 = vadd.f32 %v11268_v9, %v14992_v22  ;;  %vm11535_vm8 = vmor %vm2188_vm10, %vm2189_vm7  ;;  %vm2203_vm0 = vweird.f32 %v11432_v58 }
 0x599   : > { %v3455_v42 = vadd.f32 %v11236_v7, %v3246_v43  ;;  %v3751_v8 = vmul.f32 %v3615_v13, %v2151_v21  ;;  %v3897_v4 = vpop.xlane.xlu2 %3896  ;;  %v14990_v7 = vld [vmem:[#allocation72_spill] sm:$0xff]  ;;  %v4273_v21 = vsel %vm3855_vm13, %v11441_v41, 0.0  ;;  %v2165_v13 = vor.u32 1.1754944e-38, %v2164_v37 }
 0x59a   : > { %vm14991_vm12 = vcmp.eq.s32.totalorder %v14990_v7, %v7199_v48  ;;  %v4061_v40 = vsub.f32 %v10849_v55, %v3897_v4  ;;  %v2172_v4 = vadd.f32 %v11394_v31, %v2171_v0  ;;  %v2177_v0 = vand.u32 2147483647, %v11350_v26 }
 0x59b   : > { %6052 = vmatmul.msk.f32.gmra.mxu3 %vm14991_vm12, %v7315_v17  ;;  %3662 = vmatmul.f32.gmra.mxu1 %v3455_v42  ;;  %v11456_v28 = vadd.f32 %v10994_v23, %v3751_v8  ;;  %v14993_v42 = vld [vmem:[#allocation159_spill] sm:$0xff]  ;;  %v2166_v39 = vsel %vm2163_vm15, %v2165_v13, %v2161_v46  ;;  %v11478_v7 = vpop.eup %6301  ;;  %v14995_v46 = vld [vmem:[#allocation140_spill] sm:$0xff] }
 0x59c   : > { %v11472_v24 = vmax.f32 %v14993_v42, 1e-30  ;;  %v4138_v8 = vmul.f32 1.442695, %v4061_v40  ;;  %v11481_v41 = vpop.eup %6303  ;;  %vm14996_vm6 = vcmp.eq.s32.totalorder %v14995_v46, %v7199_v48  ;;  %v14999_v13 = vld [vmem:[#allocation152_spill] sm:$0xff]  ;;  %vm2178_vm5 = vcmp.eq.f32.partialorder %v2177_v0, 8.507059e+37 }
 0x59d   : > { %v3940_v43 = vsel %vm3855_vm13, %v11456_v28, -inf  ;;  %14994 = vst [vmem:[#allocation182_spill] sm:$0xff] %v11481_v41  ;;  %v2194_v0 = vand.u32 2147483648, %v11390_v61  ;;  %vm2204_vm1 = vweird.f32 %v11478_v7 }
 0x59e   : > { %v3248_v55 = vpop.f32.mrf.mxu3  ;;  %3941 = vmax.xlane.f32.xlu2 %v3940_v43  ;;  %4274 = vadd.xlane.f32.xlu0 %v4273_v21  ;;  %6305 = vrcp.f32 %v11472_v24  ;;  %v2176_v43 = vsel %vm11493_vm3, %v11394_v31, %v2172_v4  ;;  %v2186_v21 = vmul.f32 %v11436_v50, %v2185_v59  ;;  %vm11576_vm9 = vmor %vm2203_vm0, %vm2204_vm1  ;;  %vm2218_vm15 = vweird.f32 %v11472_v24 }
 0x59f   : > { %v3249_v2 = vadd.f32 %v3248_v55, %v3040_v44  ;;  %6307 = vpow2.f32 %v4138_v8  ;;  %v3043_v55 = vadd.f32 %v11310_v49, %v14999_v13  ;;  %v11518_v49 = vpop.f32.mrf.mxu2 }
 0x5a0   : > { %v3618_v9 = vpop.f32.mrf.mxu1  ;;  %v2187_v46 = vadd.f32 %v11436_v50, %v2186_v21  ;;  %v2192_v21 = vand.u32 2147483647, %v11390_v61 }
 0x5a1   : > { %v3458_v37 = vadd.f32 %v11295_v47, %v3249_v2  ;;  %v3752_v22 = vmul.f32 %v3618_v9, %v2166_v39  ;;  %v3900_v42 = vpop.xlane.xlu1 %3899  ;;  %v4276_v2 = vsel %vm3855_vm13, %v11481_v41, 0.0  ;;  %v2199_v39 = vmul.f32 %v11478_v7, %v11432_v58  ;;  %v15000_v9 = vld [vmem:[#allocation160_spill] sm:$0xff] }
 0x5a2   : > { %v4062_v44 = vsub.f32 %v10888_v6, %v3900_v42  ;;  %v2180_v6 = vor.u32 1.1754944e-38, %v2179_v53  ;;  %v11514_v31 = vmax.f32 %v15000_v9, 1e-30  ;;  %v2191_v48 = vsel %vm11535_vm8, %v11436_v50, %v2187_v46 }
 0x5a3   : > { %6053 = vmatmul.msk.f32.gmra.mxu3 %vm14996_vm6, %v7315_v17  ;;  %3665 = vmatmul.f32.gmra.mxu1 %v3458_v37  ;;  %v11491_v40 = vadd.f32 %v10994_v23, %v3752_v22  ;;  %v2195_v50 = vor.u32 1.1754944e-38, %v2194_v0 }
 0x5a4   : > { %v11516_v59 = vpop.eup %6305  ;;  %v4140_v37 = vmul.f32 1.442695, %v4062_v44  ;;  %v2181_v22 = vsel %vm2178_vm5, %v2180_v6, %v2176_v43  ;;  %6309 = vrcp.f32 %v11514_v31  ;;  %vm2233_vm3 = vweird.f32 %v11514_v31 }
 0x5a5   : > { %v3943_v26 = vsel %vm3855_vm13, %v11491_v40, -inf  ;;  %vm2219_vm12 = vweird.f32 %v11516_v59 }
 0x5a6   : > { %v3251_v8 = vpop.f32.mrf.mxu3  ;;  %4277 = vadd.xlane.f32.xlu2 %v4276_v2  ;;  %3944 = vmax.xlane.f32.xlu1 %v3943_v26  ;;  %v2200_v2 = vsub.f32 1.0, %v2199_v39  ;;  %v11523_v26 = vpop.eup %6307  ;;  %6311 = vpow2.f32 %v4140_v37  ;;  %vm11605_vm14 = vmor %vm2218_vm15, %vm2219_vm12 }
 0x5a7   : > { %v3252_v4 = vadd.f32 %v3251_v8, %v3043_v55  ;;  %15001 = vst [vmem:[#allocation184_spill] sm:$0xff] %v11523_v26  ;;  %v2214_v55 = vmul.f32 %v11516_v59, %v11472_v24  ;;  %v4279_v9 = vsel %vm3855_vm13, %v11523_v26, 0.0  ;;  %v11556_v37 = vpop.f32.mrf.mxu0  ;;  %v11566_v0 = vpop.f32.mrf.mxu2 }
 0x5a8   : > { %v3621_v42 = vpop.f32.mrf.mxu1  ;;  %v2201_v61 = vmul.f32 %v11478_v7, %v2200_v2 }
 0x5a9   : > { %v3461_v47 = vadd.f32 %v11347_v11, %v3252_v4  ;;  %v3753_v13 = vmul.f32 %v3621_v42, %v2181_v22  ;;  %v3903_v53 = vpop.xlane.xlu0 %3902  ;;  %v15006_v4 = vld [vmem:[#allocation23_spill] sm:$0xff] }
 0x5aa   : > { %v4063_v39 = vsub.f32 %v10919_v34, %v3903_v53  ;;  %v11554_v22 = vmax.f32 %v15006_v4, 1e-30  ;;  %v11558_v53 = vpop.eup %6309 }
 0x5ab   : > { %6054 = vmatmul.msk.f32.gmra.mxu3 %vm1076_vm4, %v7315_v17  ;;  %3668 = vmatmul.f32.gmra.mxu1 %v3461_v47  ;;  %v11533_v43 = vadd.f32 %v10994_v23, %v3753_v13  ;;  %v15005_v17 = vld [vmem:[#allocation153_spill] sm:$0xff]  ;;  %vm2193_vm4 = vcmp.eq.f32.partialorder %v2192_v21, 8.507059e+37  ;;  %v2209_v21 = vand.u32 2147483648, %v11432_v58  ;;  %vm2234_vm6 = vweird.f32 %v11558_v53 }
 0x5ac   : > { %v3046_v8 = vadd.f32 %v11359_v45, %v15005_v17  ;;  %v2215_v45 = vsub.f32 1.0, %v2214_v55  ;;  %v4142_v46 = vmul.f32 1.442695, %v4063_v39  ;;  %v2196_v47 = vsel %vm2193_vm4, %v2195_v50, %v2191_v48  ;;  %v11563_v4 = vpop.eup %6311  ;;  %vm11654_vm5 = vmor %vm2233_vm3, %vm2234_vm6 }
 0x5ad   : > { %v3946_v6 = vsel %vm3855_vm13, %v11533_v43, -inf  ;;  %v2202_v17 = vadd.f32 %v11478_v7, %v2201_v61  ;;  %15007 = vst [vmem:[#allocation31_spill] sm:$0xff] %v11563_v4  ;;  %6313 = vrcp.f32 %v11554_v22  ;;  %v4282_v61 = vsel %vm3855_vm13, %v11563_v4, 0.0 }
 0x5ae   : > { %v3254_v34 = vpop.f32.mrf.mxu3  ;;  %3947 = vmax.xlane.f32.xlu0 %v3946_v6  ;;  %4280 = vadd.xlane.f32.xlu1 %v4279_v9  ;;  %v2216_v39 = vmul.f32 %v11516_v59, %v2215_v45  ;;  %6315 = vpow2.f32 %v4142_v46  ;;  %v2229_v6 = vmul.f32 %v11558_v53, %v11514_v31  ;;  %v15010_v9 = vld [vmem:[#allocation154_spill] sm:$0xff]  ;;  %vm2248_vm8 = vweird.f32 %v11554_v22 }
 0x5af   : > { %v3255_v42 = vadd.f32 %v3254_v34, %v3046_v8  ;;  %v11592_v34 = vmax.f32 %v10575_v54, 1e-30  ;;  %v2222_v8 = vand.u32 2147483647, %v11472_v24 }
 0x5b0   : > { %v3624_v13 = vpop.f32.mrf.mxu1 }
 0x5b1   : > { %v3464_v44 = vadd.f32 %v11392_v36, %v3255_v42  ;;  %v3754_v2 = vmul.f32 %v3624_v13, %v2196_v47  ;;  %v3906_v11 = vpop.xlane.xlu2 %3905  ;;  %v2207_v36 = vand.u32 2147483647, %v11432_v58  ;;  %v2210_v42 = vor.u32 1.1754944e-38, %v2209_v21  ;;  %v11598_v47 = vpop.f32.mrf.mxu0 }
 0x5b2   : > { %v4064_v48 = vsub.f32 %v10961_v20, %v3906_v11  ;;  %v2206_v20 = vsel %vm11576_vm9, %v11478_v7, %v2202_v17  ;;  %v2224_v21 = vand.u32 2147483648, %v11472_v24  ;;  %6317 = vrcp.f32 %v11592_v34 }
 0x5b3   : > { %3671 = vmatmul.f32.gmra.mxu1 %v3464_v44  ;;  %v11570_v55 = vadd.f32 %v10994_v23, %v3754_v2  ;;  %v3049_v23 = vadd.f32 %v11413_v10, %v15010_v9  ;;  %vm2208_vm11 = vcmp.eq.f32.partialorder %v2207_v36, 8.507059e+37  ;;  %v2217_v10 = vadd.f32 %v11516_v59, %v2216_v39  ;;  %v11596_v46 = vpop.eup %6313  ;;  %v11622_v9 = vpop.f32.mrf.mxu2 }
 0x5b4   : > { %v4144_v13 = vmul.f32 1.442695, %v4064_v48  ;;  %v2211_v44 = vsel %vm2208_vm11, %v2210_v42, %v2206_v20  ;;  %v2230_v2 = vsub.f32 1.0, %v2229_v6  ;;  %v11603_v36 = vpop.eup %6315  ;;  %vm2223_vm2 = vcmp.eq.f32.partialorder %v2222_v8, 8.507059e+37 }
 0x5b5   : > { %v3949_v58 = vsel %vm3855_vm13, %v11570_v55, -inf  ;;  %15011 = vst [vmem:[#allocation186_spill] sm:$0xff] %v11603_v36  ;;  %v2221_v6 = vsel %vm11605_vm14, %v11516_v59, %v2217_v10  ;;  %v2225_v59 = vor.u32 1.1754944e-38, %v2224_v21  ;;  %vm2249_vm10 = vweird.f32 %v11596_v46 }
 0x5b6   : > { %v3257_v50 = vpop.f32.mrf.mxu3  ;;  %4283 = vadd.xlane.f32.xlu0 %v4282_v61  ;;  %3950 = vmax.xlane.f32.xlu2 %v3949_v58  ;;  %6319 = vpow2.f32 %v4144_v13  ;;  %v2244_v61 = vmul.f32 %v11596_v46, %v11554_v22  ;;  %v15015_v58 = vld [vmem:[#allocation155_spill] sm:$0xff]  ;;  %vm11692_vm4 = vmor %vm2248_vm8, %vm2249_vm10  ;;  %vm2263_vm9 = vweird.f32 %v11592_v34 }
 0x5b7   : > { %v3258_v45 = vadd.f32 %v3257_v50, %v3049_v23  ;;  %v2231_v23 = vmul.f32 %v11558_v53, %v2230_v2  ;;  %v3052_v20 = vadd.f32 %v11474_v62, %v15015_v58  ;;  %v4285_v50 = vsel %vm3855_vm13, %v11603_v36, 0.0 }
 0x5b8   : > { %v3627_v7 = vpop.f32.mrf.mxu1 }
 0x5b9   : > { %v3467_v54 = vadd.f32 %v11443_v51, %v3258_v45  ;;  %v3755_v11 = vmul.f32 %v3627_v7, %v2211_v44  ;;  %v3909_v17 = vpop.xlane.xlu1 %3908  ;;  %v11614_v51 = vld [vmem:[%s13972_s3] ss:$0 sm:$0xff]  ;;  %v2226_v44 = vsel %vm2223_vm2, %v2225_v59, %v2221_v6  ;;  %v2232_v62 = vadd.f32 %v11558_v53, %v2231_v23  ;;  %v15019_v59 = vld [vmem:[#allocation158_spill] sm:$0xff] }
 0x5ba   : > { %v4065_v24 = vsub.f32 %v10997_v57, %v3909_v17  ;;  %v15016_v57 = vld [vmem:[#allocation53_spill] sm:$0xff]  ;;  %v11641_v17 = vpop.xlane.xlu2 %4241  ;;  %v2239_v6 = vand.u32 2147483648, %v11514_v31 }
 0x5bb   : > { %3674 = vmatmul.f32.gmra.mxu1 %v3467_v54  ;;  %v11617_v48 = vadd.f32 %v11614_v51, %v3755_v11  ;;  %v11635_v10 = vmax.f32 %v15016_v57, 1e-30  ;;  %v2245_v54 = vsub.f32 1.0, %v2244_v61  ;;  %v11639_v11 = vpop.eup %6317 }
 0x5bc   : > { %v4146_v7 = vmul.f32 1.442695, %v4065_v24  ;;  %v11644_v58 = vpop.eup %6319  ;;  %vm2264_vm0 = vweird.f32 %v11639_v11 }
 0x5bd   : > { %15014 = vst [vmem:[#allocation80_spill] sm:$0xff] %v11617_v48  ;;  %v3952_v42 = vsel %vm3855_vm13, %v11617_v48, -inf  ;;  %6321 = vrcp.f32 %v11635_v10  ;;  %vm11734_vm11 = vmor %vm2263_vm9, %vm2264_vm0  ;;  %vm2278_vm14 = vweird.f32 %v11635_v10 }
 0x5be   : > { %v3260_v45 = vpop.f32.mrf.mxu3  ;;  %4286 = vadd.xlane.f32.xlu2 %v4285_v50  ;;  %3953 = vmax.xlane.f32.xlu1 %v3952_v42  ;;  %v11646_v50 = vpop.f32.mrf.mxu0  ;;  %6323 = vpow2.f32 %v4146_v7  ;;  %v2246_v42 = vmul.f32 %v11596_v46, %v2245_v54  ;;  %v15020_v7 = vld [vmem:[#allocation162_spill] sm:$0xff] }
 0x5bf   : > { %v3261_v13 = vadd.f32 %v3260_v45, %v3052_v20  ;;  %v2236_v20 = vsel %vm11654_vm5, %v11558_v53, %v2232_v62  ;;  %v3055_v45 = vadd.f32 %v11518_v49, %v15019_v59  ;;  %v2240_v53 = vor.u32 1.1754944e-38, %v2239_v6 }
 0x5c0   : > { %v3630_v2 = vpop.f32.mrf.mxu1 }
 0x5c1   : > { %v3470_v21 = vadd.f32 %v11498_v15, %v3261_v13  ;;  %v3756_v39 = vmul.f32 %v3630_v2, %v2226_v44  ;;  %v3912_v8 = vpop.xlane.xlu0 %3911  ;;  %v2237_v15 = vand.u32 2147483647, %v11514_v31  ;;  %v4288_v13 = vsel %vm3855_vm13, %v11644_v58, 0.0  ;;  %v11672_v44 = vpop.f32.mrf.mxu2 }
 0x5c2   : > { %v4066_v61 = vsub.f32 %v11039_v32, %v3912_v8  ;;  %v2259_v31 = vmul.f32 %v11639_v11, %v11592_v34  ;;  %v11675_v2 = vmax.f32 %v15020_v7, 1e-30  ;;  %v11681_v23 = vpop.xlane.xlu1 %4244 }
 0x5c3   : > { %3677 = vmatmul.f32.gmra.mxu1 %v3470_v21  ;;  %v11652_v24 = vadd.f32 %v11614_v51, %v3756_v39  ;;  %vm2238_vm7 = vcmp.eq.f32.partialorder %v2237_v15, 8.507059e+37  ;;  %v2247_v39 = vadd.f32 %v11596_v46, %v2246_v42  ;;  %v11679_v8 = vpop.eup %6321  ;;  %v2254_v15 = vand.u32 2147483648, %v11554_v22 }
 0x5c4   : > { %v4148_v49 = vmul.f32 1.442695, %v4066_v61  ;;  %v2241_v54 = vsel %vm2238_vm7, %v2240_v53, %v2236_v20  ;;  %v11684_v7 = vpop.eup %6323  ;;  %6325 = vrcp.f32 %v11675_v2  ;;  %v15023_v53 = vld [vmem:[#allocation161_spill] sm:$0xff]  ;;  %vm2279_vm15 = vweird.f32 %v11679_v8 }
 0x5c5   : > { %v3955_v57 = vsel %vm3855_vm13, %v11652_v24, -inf  ;;  %vm11774_vm2 = vmor %vm2278_vm14, %vm2279_vm15  ;;  %vm2293_vm5 = vweird.f32 %v11675_v2 }
 0x5c6   : > { %v3263_v32 = vpop.f32.mrf.mxu3  ;;  %3956 = vmax.xlane.f32.xlu0 %v3955_v57  ;;  %4289 = vadd.xlane.f32.xlu1 %v4288_v13  ;;  %v2260_v13 = vsub.f32 1.0, %v2259_v31  ;;  %v11697_v42 = vpop.f32.mrf.mxu0  ;;  %6327 = vpow2.f32 %v4148_v49  ;;  %v2251_v31 = vsel %vm11692_vm4, %v11596_v46, %v2247_v39 }
 0x5c7   : > { %v3264_v62 = vadd.f32 %v3263_v32, %v3055_v45  ;;  %v2274_v32 = vmul.f32 %v11679_v8, %v11635_v10 }
 0x5c8   : > { %v3633_v21 = vpop.f32.mrf.mxu1  ;;  %v2261_v49 = vmul.f32 %v11639_v11, %v2260_v13 }
 0x5c9   : > { %v3473_v59 = vadd.f32 %v11556_v37, %v3264_v62  ;;  %v3757_v57 = vmul.f32 %v3633_v21, %v2241_v54  ;;  %v3915_v6 = vpop.xlane.xlu2 %3914  ;;  %v2252_v37 = vand.u32 2147483647, %v11554_v22  ;;  %v3058_v62 = vadd.f32 %v11566_v0, %v15023_v53  ;;  %v11719_v4 = vpop.xlane.xlu0 %4247 }
 0x5ca   : > { %v4067_v45 = vsub.f32 %v11078_v52, %v3915_v6  ;;  %v4291_v22 = vsel %vm3855_vm13, %v11684_v7, 0.0  ;;  %v2255_v52 = vor.u32 1.1754944e-38, %v2254_v15  ;;  %v2275_v53 = vsub.f32 1.0, %v2274_v32  ;;  %v11717_v36 = vpop.eup %6325 }
 0x5cb   : > { %3680 = vmatmul.f32.gmra.mxu1 %v3473_v59  ;;  %v11690_v61 = vadd.f32 %v11614_v51, %v3757_v57  ;;  %v15024_v59 = vld [vmem:[#allocation164_spill] sm:$0xff]  ;;  %vm2253_vm1 = vcmp.eq.f32.partialorder %v2252_v37, 8.507059e+37  ;;  %v11715_v57 = vpop.f32.mrf.mxu2  ;;  %v2262_v15 = vadd.f32 %v11639_v11, %v2261_v49  ;;  %v2269_v37 = vand.u32 2147483648, %v11592_v34 }
 0x5cc   : > { %v11713_v46 = vmax.f32 %v15024_v59, 1e-30  ;;  %v4150_v0 = vmul.f32 1.442695, %v4067_v45  ;;  %v2256_v6 = vsel %vm2253_vm1, %v2255_v52, %v2251_v31  ;;  %v2276_v49 = vmul.f32 %v11679_v8, %v2275_v53  ;;  %v15028_v52 = vld [vmem:[#allocation163_spill] sm:$0xff]  ;;  %v15029_v53 = vld [vmem:[#allocation74_spill] sm:$0xff] }
 0x5cd   : > { %v3958_v54 = vsel %vm3855_vm13, %v11690_v61, -inf  ;;  %v3061_v59 = vadd.f32 %v11622_v9, %v15028_v52  ;;  %vm2294_vm3 = vweird.f32 %v11717_v36 }
 0x5ce   : > { %v3266_v21 = vpop.f32.mrf.mxu3  ;;  %3959 = vmax.xlane.f32.xlu2 %v3958_v54  ;;  %4292 = vadd.xlane.f32.xlu0 %v4291_v22  ;;  %6329 = vrcp.f32 %v11713_v46  ;;  %v2277_v26 = vadd.f32 %v11679_v8, %v2276_v49  ;;  %v2282_v49 = vand.u32 2147483647, %v11635_v10  ;;  %vm11812_vm7 = vmor %vm2293_vm5, %vm2294_vm3  ;;  %vm2308_vm4 = vweird.f32 %v11713_v46 }
 0x5cf   : > { %v3267_v39 = vadd.f32 %v3266_v21, %v3058_v62  ;;  %v11724_v62 = vpop.eup %6327  ;;  %6331 = vpow2.f32 %v4150_v0  ;;  %v2289_v21 = vmul.f32 %v11717_v36, %v11675_v2  ;;  %v11750_v0 = vpop.f32.mrf.mxu0 }
 0x5d0   : > { %v3636_v20 = vpop.f32.mrf.mxu1  ;;  %vm2283_vm6 = vcmp.eq.f32.partialorder %v2282_v49, 8.507059e+37  ;;  %v2299_v49 = vand.u32 2147483648, %v11675_v2 }
 0x5d1   : > { %v3476_v13 = vadd.f32 %v11598_v47, %v3267_v39  ;;  %v3758_v54 = vmul.f32 %v3636_v20, %v2256_v6  ;;  %v3918_v22 = vpop.xlane.xlu1 %3917  ;;  %v2267_v47 = vand.u32 2147483647, %v11592_v34  ;;  %v4294_v39 = vsel %vm3855_vm13, %v11724_v62, 0.0 }
 0x5d2   : > { %v4068_v31 = vsub.f32 %v11126_v63, %v3918_v22  ;;  %v2266_v63 = vsel %vm11734_vm11, %v11639_v11, %v2262_v15  ;;  %v2270_v20 = vor.u32 1.1754944e-38, %v2269_v37  ;;  %v2290_v32 = vsub.f32 1.0, %v2289_v21  ;;  %v11759_v15 = vpop.xlane.xlu2 %4250 }
 0x5d3   : > { %3683 = vmatmul.f32.gmra.mxu1 %v3476_v13  ;;  %v11729_v45 = vadd.f32 %v11614_v51, %v3758_v54  ;;  %v11753_v13 = vmax.f32 %v15029_v53, 1e-30  ;;  %vm2268_vm12 = vcmp.eq.f32.partialorder %v2267_v47, 8.507059e+37  ;;  %v2284_v47 = vand.u32 2147483648, %v11635_v10 }
 0x5d4   : > { %v4152_v54 = vmul.f32 1.442695, %v4068_v31  ;;  %v2271_v22 = vsel %vm2268_vm12, %v2270_v20, %v2266_v63  ;;  %v11757_v11 = vpop.eup %6329  ;;  %v2281_v63 = vsel %vm11774_vm2, %v11679_v8, %v2277_v26  ;;  %v15032_v20 = vld [vmem:[#allocation165_spill] sm:$0xff] }
 0x5d5   : > { %15025 = vst [vmem:[#allocation187_spill] sm:$0xff] %v11729_v45  ;;  %v3961_v34 = vsel %vm3855_vm13, %v11729_v45, -inf  ;;  %v11762_v53 = vpop.eup %6331  ;;  %6333 = vrcp.f32 %v11753_v13  ;;  %v2304_v10 = vmul.f32 %v11757_v11, %v11713_v46  ;;  %vm2309_vm8 = vweird.f32 %v11757_v11 }
 0x5d6   : > { %v3269_v6 = vpop.f32.mrf.mxu3  ;;  %4295 = vadd.xlane.f32.xlu2 %v4294_v39  ;;  %3962 = vmax.xlane.f32.xlu1 %v3961_v34  ;;  %6335 = vpow2.f32 %v4152_v54  ;;  %vm11854_vm1 = vmor %vm2308_vm4, %vm2309_vm8  ;;  %vm2323_vm11 = vweird.f32 %v11753_v13 }
 0x5d7   : > { %v3270_v9 = vadd.f32 %v3269_v6, %v3061_v59  ;;  %v11764_v59 = vpop.f32.mrf.mxu2  ;;  %v2291_v6 = vmul.f32 %v11717_v36, %v2290_v32  ;;  %v11795_v32 = vpop.f32.mrf.mxu0 }
 0x5d8   : > { %v3639_v52 = vpop.f32.mrf.mxu1 }
 0x5d9   : > { %v3479_v39 = vadd.f32 %v11646_v50, %v3270_v9  ;;  %v3759_v37 = vmul.f32 %v3639_v52, %v2271_v22  ;;  %v3921_v34 = vpop.xlane.xlu0 %3920  ;;  %v3064_v9 = vadd.f32 %v11672_v44, %v15032_v20  ;;  %v4297_v52 = vsel %vm3855_vm13, %v11762_v53, 0.0  ;;  %v11801_v45 = vpop.xlane.xlu1 %4253 }
 0x5da   : > { %v4069_v21 = vsub.f32 %v11163_v14, %v3921_v34  ;;  %v2285_v14 = vor.u32 1.1754944e-38, %v2284_v47  ;;  %v2292_v50 = vadd.f32 %v11717_v36, %v2291_v6 }
 0x5db   : > { %3686 = vmatmul.f32.gmra.mxu1 %v3479_v39  ;;  %v11770_v31 = vadd.f32 %v11614_v51, %v3759_v37  ;;  %v15033_v39 = vld [vmem:[#allocation30_spill] sm:$0xff]  ;;  %v11799_v20 = vpop.eup %6333 }
 0x5dc   : > { %v11793_v26 = vmax.f32 %v15033_v39, 1e-30  ;;  %v4154_v44 = vmul.f32 1.442695, %v4069_v21  ;;  %v2286_v37 = vsel %vm2283_vm6, %v2285_v14, %v2281_v63  ;;  %v2305_v39 = vsub.f32 1.0, %v2304_v10 }
 0x5dd   : > { %v3964_v22 = vsel %vm3855_vm13, %v11770_v31, -inf  ;;  %v2319_v14 = vmul.f32 %v11799_v20, %v11753_v13  ;;  %vm2324_vm9 = vweird.f32 %v11799_v20 }
 0x5de   : > { %v3272_v54 = vpop.f32.mrf.mxu3  ;;  %3965 = vmax.xlane.f32.xlu0 %v3964_v22  ;;  %4298 = vadd.xlane.f32.xlu1 %v4297_v52  ;;  %6337 = vrcp.f32 %v11793_v26  ;;  %vm11892_vm12 = vmor %vm2323_vm11, %vm2324_vm9  ;;  %vm2338_vm2 = vweird.f32 %v11793_v26 }
 0x5df   : > { %v3273_v8 = vadd.f32 %v3272_v54, %v3064_v9  ;;  %v11804_v9 = vpop.eup %6335  ;;  %v11817_v6 = vpop.f32.mrf.mxu2  ;;  %6339 = vpow2.f32 %v4154_v44  ;;  %v2296_v54 = vsel %vm11812_vm7, %v11717_v36, %v2292_v50  ;;  %v2306_v44 = vmul.f32 %v11757_v11, %v2305_v39 }
 0x5e0   : > { %v3642_v34 = vpop.f32.mrf.mxu1  ;;  %v11833_v36 = vmax.f32 %v10650_v35, 1e-30  ;;  %v2320_v63 = vsub.f32 1.0, %v2319_v14 }
 0x5e1   : > { %v3482_v47 = vadd.f32 %v11697_v42, %v3273_v8  ;;  %v3760_v22 = vmul.f32 %v3642_v34, %v2286_v37  ;;  %v3924_v52 = vpop.xlane.xlu2 %3923  ;;  %v2297_v42 = vand.u32 2147483647, %v11675_v2  ;;  %v15036_v8 = vld [vmem:[#allocation168_spill] sm:$0xff]  ;;  %v4300_v2 = vsel %vm3855_vm13, %v11804_v9, 0.0  ;;  %v11837_v41 = vpop.xlane.xlu0 %4256 }
 0x5e2   : > { %v4070_v10 = vsub.f32 %v11203_v1, %v3924_v52  ;;  %v3067_v37 = vadd.f32 %v11715_v57, %v15036_v8  ;;  %v2300_v1 = vor.u32 1.1754944e-38, %v2299_v49  ;;  %15037 = vst [vmem:[#allocation85_spill] sm:$0xff] %v11837_v41  ;;  %v11844_v49 = vpop.f32.mrf.mxu0  ;;  %6341 = vrcp.f32 %v11833_v36 }
 0x5e3   : > { %3689 = vmatmul.f32.gmra.mxu1 %v3482_v47  ;;  %v11810_v21 = vadd.f32 %v11614_v51, %v3760_v22  ;;  %vm2298_vm10 = vcmp.eq.f32.partialorder %v2297_v42, 8.507059e+37  ;;  %v2314_v42 = vand.u32 2147483648, %v11713_v46  ;;  %vm2353_vm7 = vweird.f32 %v11833_v36 }
 0x5e4   : > { %v4156_v22 = vmul.f32 1.442695, %v4070_v10  ;;  %v2301_v52 = vsel %vm2298_vm10, %v2300_v1, %v2296_v54  ;;  %v11835_v8 = vpop.eup %6337 }
 0x5e5   : > { %v3967_v34 = vsel %vm3855_vm13, %v11810_v21, -inf  ;;  %v11842_v35 = vpop.eup %6339  ;;  %vm2339_vm14 = vweird.f32 %v11835_v8 }
 0x5e6   : > { %v3275_v47 = vpop.f32.mrf.mxu3  ;;  %3968 = vmax.xlane.f32.xlu2 %v3967_v34  ;;  %4301 = vadd.xlane.f32.xlu0 %v4300_v2  ;;  %v2307_v34 = vadd.f32 %v11757_v11, %v2306_v44  ;;  %6343 = vpow2.f32 %v4156_v22  ;;  %v2334_v2 = vmul.f32 %v11835_v8, %v11793_v26  ;;  %v15042_v22 = vld [vmem:[#allocation65_spill] sm:$0xff]  ;;  %vm11928_vm6 = vmor %vm2338_vm2, %vm2339_vm14 }
 0x5e7   : > { %v3276_v50 = vadd.f32 %v3275_v47, %v3067_v37  ;;  %v2321_v37 = vmul.f32 %v11799_v20, %v2320_v63  ;;  %v4303_v47 = vsel %vm3855_vm13, %v11842_v35, 0.0 }
 0x5e8   : > { %v3645_v57 = vpop.f32.mrf.mxu1  ;;  %v2335_v14 = vsub.f32 1.0, %v2334_v2 }
 0x5e9   : > { %v3485_v48 = vadd.f32 %v11750_v0, %v3276_v50  ;;  %v3761_v39 = vmul.f32 %v3645_v57, %v2301_v52  ;;  %v3927_v18 = vpop.xlane.xlu1 %3926  ;;  %v2312_v0 = vand.u32 2147483647, %v11713_v46  ;;  %v2315_v50 = vor.u32 1.1754944e-38, %v2314_v42 }
 0x5ea   : > { %v4071_v54 = vsub.f32 %v11244_v3, %v3927_v18  ;;  %v2311_v3 = vsel %vm11854_vm1, %v11757_v11, %v2307_v34  ;;  %v11870_v18 = vpop.f32.mrf.mxu2  ;;  %v11873_v52 = vmax.f32 %v15042_v22, 1e-30  ;;  %v11877_v11 = vpop.eup %6341 }
 0x5eb   : > { %3692 = vmatmul.f32.gmra.mxu1 %v3485_v48  ;;  %v11849_v10 = vadd.f32 %v11614_v51, %v3761_v39  ;;  %v15041_v48 = vld [vmem:[#allocation171_spill] sm:$0xff]  ;;  %vm2313_vm0 = vcmp.eq.f32.partialorder %v2312_v0, 8.507059e+37  ;;  %v11879_v34 = vpop.xlane.xlu2 %4259  ;;  %v2329_v0 = vand.u32 2147483648, %v11753_v13  ;;  %v3493_v2 = vpop.f32.mrf.mxu0  ;;  %vm2354_vm5 = vweird.f32 %v11877_v11 }
 0x5ec   : > { %v3070_v44 = vadd.f32 %v11764_v59, %v15041_v48  ;;  %v4158_v57 = vmul.f32 1.442695, %v4071_v54  ;;  %v2316_v63 = vsel %vm2313_vm0, %v2315_v50, %v2311_v3  ;;  %v2322_v48 = vadd.f32 %v11799_v20, %v2321_v37  ;;  %15043 = vst [vmem:[#allocation98_spill] sm:$0xff] %v11879_v34  ;;  %v11882_v22 = vpop.eup %6343  ;;  %v15046_v50 = vld [vmem:[#allocation173_spill] sm:$0xff]  ;;  %vm11965_vm10 = vmor %vm2353_vm7, %vm2354_vm5 }
 0x5ed   : > { %15038 = vst [vmem:[#allocation102_spill] sm:$0xff] %v11849_v10  ;;  %v3970_v46 = vsel %vm3855_vm13, %v11849_v10, -inf  ;;  %6345 = vrcp.f32 %v11873_v52  ;;  %vm2368_vm1 = vweird.f32 %v11873_v52 }
 0x5ee   : > { %v3278_v1 = vpop.f32.mrf.mxu3  ;;  %4304 = vadd.xlane.f32.xlu2 %v4303_v47  ;;  %3971 = vmax.xlane.f32.xlu1 %v3970_v46  ;;  %6347 = vpow2.f32 %v4158_v57  ;;  %v2326_v3 = vsel %vm11892_vm12, %v11799_v20, %v2322_v48 }
 0x5ef   : > { %v3279_v59 = vadd.f32 %v3278_v1, %v3070_v44  ;;  %v2336_v1 = vmul.f32 %v11835_v8, %v2335_v14 }
 0x5f0   : > { %v3648_v39 = vpop.f32.mrf.mxu1 }
 0x5f1   : > { %v3488_v47 = vadd.f32 %v11795_v32, %v3279_v59  ;;  %v3762_v42 = vmul.f32 %v3648_v39, %v2316_v63  ;;  %v3930_v46 = vpop.xlane.xlu0 %3929  ;;  %v2327_v32 = vand.u32 2147483647, %v11753_v13  ;;  %v3073_v59 = vadd.f32 %v11817_v6, %v15046_v50  ;;  %v11917_v10 = vpop.xlane.xlu1 %4262 }
 0x5f2   : > { %v4072_v44 = vsub.f32 %v11290_v33, %v3930_v46  ;;  %v4306_v39 = vsel %vm3855_vm13, %v11882_v22, 0.0  ;;  %v2349_v13 = vmul.f32 %v11877_v11, %v11833_v36  ;;  %v2330_v33 = vor.u32 1.1754944e-38, %v2329_v0  ;;  %v3078_v14 = vpop.f32.mrf.mxu2  ;;  %15048 = vst [vmem:[#allocation89_spill] sm:$0xff] %v11917_v10 }
 0x5f3   : > { %3695 = vmatmul.f32.gmra.mxu1 %v3488_v47  ;;  %v11888_v54 = vadd.f32 %v11614_v51, %v3762_v42  ;;  %v15047_v47 = vld [vmem:[#allocation166_spill] sm:$0xff]  ;;  %vm2328_vm15 = vcmp.eq.f32.partialorder %v2327_v32, 8.507059e+37  ;;  %v2337_v37 = vadd.f32 %v11835_v8, %v2336_v1  ;;  %v11915_v50 = vpop.eup %6345  ;;  %v2344_v32 = vand.u32 2147483648, %v11793_v26 }
 0x5f4   : > { %v11911_v20 = vmax.f32 %v15047_v47, 1e-30  ;;  %v4160_v6 = vmul.f32 1.442695, %v4072_v44  ;;  %v2331_v42 = vsel %vm2328_vm15, %v2330_v33, %v2326_v3  ;;  %v2350_v47 = vsub.f32 1.0, %v2349_v13  ;;  %v11920_v5 = vpop.eup %6347 }
 0x5f5   : > { %v3973_v63 = vsel %vm3855_vm13, %v11888_v54, -inf  ;;  %v2364_v13 = vmul.f32 %v11915_v50, %v11873_v52  ;;  %vm2369_vm4 = vweird.f32 %v11915_v50 }
 0x5f6   : > { %v3281_v57 = vpop.f32.mrf.mxu3  ;;  %3974 = vmax.xlane.f32.xlu0 %v3973_v63  ;;  %4307 = vadd.xlane.f32.xlu1 %v4306_v39  ;;  %6349 = vrcp.f32 %v11911_v20  ;;  %vm11999_vm0 = vmor %vm2368_vm1, %vm2369_vm4  ;;  %vm2383_vm12 = vweird.f32 %v11911_v20 }
 0x5f7   : > { %v3282_v48 = vadd.f32 %v3281_v57, %v3073_v59  ;;  %6351 = vpow2.f32 %v4160_v6  ;;  %v2341_v59 = vsel %vm11928_vm6, %v11835_v8, %v2337_v37  ;;  %v15051_v57 = vld [vmem:[#allocation174_spill] sm:$0xff]  ;;  %v3496_v6 = vpop.f32.mrf.mxu0  ;;  %v15052_v8 = vld [vmem:[#allocation33_spill] sm:$0xff]  ;;  %v2365_v3 = vsub.f32 1.0, %v2364_v13 }
 0x5f8   : > { %v3651_v46 = vpop.f32.mrf.mxu1  ;;  %v3076_v33 = vadd.f32 %v11870_v18, %v15051_v57  ;;  %v11947_v37 = vmax.f32 %v15052_v8, 1e-30 }
 0x5f9   : > { %v3491_v63 = vadd.f32 %v11844_v49, %v3282_v48  ;;  %v3763_v0 = vmul.f32 %v3651_v46, %v2331_v42  ;;  %v3933_v39 = vpop.xlane.xlu2 %3932  ;;  %v2342_v49 = vand.u32 2147483647, %v11793_v26  ;;  %v4309_v42 = vsel %vm3855_vm13, %v11920_v5, 0.0  ;;  %v11951_v56 = vpop.xlane.xlu0 %4265 }
 0x5fa   : > { %v4073_v1 = vsub.f32 %v11327_v27, %v3933_v39  ;;  %v2351_v26 = vmul.f32 %v11877_v11, %v2350_v47  ;;  %v2345_v46 = vor.u32 1.1754944e-38, %v2344_v32  ;;  %15053 = vst [vmem:[#allocation106_spill] sm:$0xff] %v11951_v56  ;;  %6353 = vrcp.f32 %v11947_v37 }
 0x5fb   : > { %3698 = vmatmul.f32.gmra.mxu1 %v3491_v63  ;;  %v11926_v44 = vadd.f32 %v11614_v51, %v3763_v0  ;;  %vm2343_vm3 = vcmp.eq.f32.partialorder %v2342_v49, 8.507059e+37  ;;  %v2359_v49 = vand.u32 2147483648, %v11833_v36  ;;  %vm2398_vm6 = vweird.f32 %v11947_v37 }
 0x5fc   : > { %v4162_v0 = vmul.f32 1.442695, %v4073_v1  ;;  %v2346_v18 = vsel %vm2343_vm3, %v2345_v46, %v2341_v59  ;;  %v11949_v57 = vpop.eup %6349 }
 0x5fd   : > { %v3976_v48 = vsel %vm3855_vm13, %v11926_v44, -inf  ;;  %v11955_v32 = vpop.eup %6351  ;;  %v2360_v8 = vor.u32 1.1754944e-38, %v2359_v49  ;;  %vm2384_vm11 = vweird.f32 %v11949_v57 }
 0x5fe   : > { %v3284_v27 = vpop.f32.mrf.mxu3  ;;  %3977 = vmax.xlane.f32.xlu2 %v3976_v48  ;;  %4310 = vadd.xlane.f32.xlu0 %v4309_v42  ;;  %v2352_v48 = vadd.f32 %v11877_v11, %v2351_v26  ;;  %v3081_v42 = vpop.f32.mrf.mxu2  ;;  %6355 = vpow2.f32 %v4162_v0  ;;  %v2379_v26 = vmul.f32 %v11949_v57, %v11911_v20  ;;  %vm12033_vm15 = vmor %vm2383_vm12, %vm2384_vm11 }
 0x5ff   : > { %v3285_v63 = vadd.f32 %v3284_v27, %v3076_v33  ;;  %v2366_v33 = vmul.f32 %v11915_v50, %v2365_v3  ;;  %v15057_v27 = vld [vmem:[#allocation43_spill] sm:$0xff] }
 0x600   : > { %v3654_v39 = vpop.f32.mrf.mxu1  ;;  %v3079_v46 = vadd.f32 %v3078_v14, %v15057_v27  ;;  %v3499_v14 = vpop.f32.mrf.mxu0 }
 0x601   : > { %v3494_v10 = vadd.f32 %v3493_v2, %v3285_v63  ;;  %v3764_v47 = vmul.f32 %v3654_v39, %v2346_v18  ;;  %v3936_v34 = vpop.xlane.xlu1 %3935  ;;  %v2357_v2 = vand.u32 2147483647, %v11833_v36  ;;  %v15058_v63 = vld [vmem:[#allocation167_spill] sm:$0xff]  ;;  %v2367_v27 = vadd.f32 %v11915_v50, %v2366_v33  ;;  %v11985_v13 = vpop.eup %6353 }
 0x602   : > { %v4074_v59 = vsub.f32 %v11369_v38, %v3936_v34  ;;  %v2356_v38 = vsel %vm11965_vm10, %v11877_v11, %v2352_v48  ;;  %v11981_v0 = vmax.f32 %v15058_v63, 1e-30  ;;  %v11987_v11 = vpop.xlane.xlu2 %4268  ;;  %vm2399_vm2 = vweird.f32 %v11985_v13 }
 0x603   : > { %v11960_v1 = vadd.f32 %v11614_v51, %v3764_v47  ;;  %3701 = vmatmul.f32.gmra.mxu1 %v3494_v10  ;;  %v4312_v10 = vsel %vm3855_vm13, %v11955_v32, 0.0  ;;  %vm2358_vm8 = vcmp.eq.f32.partialorder %v2357_v2, 8.507059e+37  ;;  %15059 = vst [vmem:[#allocation38_spill] sm:$0xff] %v11987_v11  ;;  %v2374_v2 = vand.u32 2147483648, %v11873_v52  ;;  %vm12069_vm3 = vmor %vm2398_vm6, %vm2399_vm2 }
 0x604   : > { %v4164_v39 = vmul.f32 1.442695, %v4074_v59  ;;  %v2361_v3 = vsel %vm2358_vm8, %v2360_v8, %v2356_v38  ;;  %6357 = vrcp.f32 %v11981_v0  ;;  %v2371_v38 = vsel %vm11999_vm0, %v11915_v50, %v2367_v27  ;;  %v15062_v8 = vld [vmem:[#allocation40_spill] sm:$0xff] }
 0x605   : > { %15054 = vst [vmem:[#allocation103_spill] sm:$0xff] %v11960_v1  ;;  %v3979_v36 = vsel %vm3855_vm13, %v11960_v1, -inf  ;;  %v2380_v1 = vsub.f32 1.0, %v2379_v26  ;;  %v3082_v63 = vadd.f32 %v3081_v42, %v15062_v8  ;;  %vm2413_vm10 = vweird.f32 %v11981_v0 }
 0x606   : > { %v3287_v34 = vpop.f32.mrf.mxu3  ;;  %4313 = vadd.xlane.f32.xlu2 %v4312_v10  ;;  %3980 = vmax.xlane.f32.xlu1 %v3979_v36  ;;  %v11989_v36 = vpop.eup %6355  ;;  %6359 = vpow2.f32 %v4164_v39 }
 0x607   : > { %v3288_v18 = vadd.f32 %v3287_v34, %v3079_v46  ;;  %v3084_v26 = vpop.f32.mrf.mxu2  ;;  %v2381_v34 = vmul.f32 %v11949_v57, %v2380_v1 }
 0x608   : > { %v3657_v47 = vpop.f32.mrf.mxu1 }
 0x609   : > { %v3497_v48 = vadd.f32 %v3496_v6, %v3288_v18  ;;  %v3765_v49 = vmul.f32 %v3657_v47, %v2361_v3  ;;  %v3939_v10 = vpop.xlane.xlu0 %3938  ;;  %v2372_v6 = vand.u32 2147483647, %v11873_v52  ;;  %v4315_v3 = vsel %vm3855_vm13, %v11989_v36, 0.0 }
 0x60a   : > { %v4075_v46 = vsub.f32 %v11408_v25, %v3939_v10  ;;  %v2394_v52 = vmul.f32 %v11985_v13, %v11947_v37  ;;  %v2375_v25 = vor.u32 1.1754944e-38, %v2374_v2  ;;  %v12017_v47 = vmax.f32 %v10705_v19, 1e-30  ;;  %v12023_v10 = vpop.xlane.xlu1 %4271  ;;  %v3502_v19 = vpop.f32.mrf.mxu0 }
 0x60b   : > { %3704 = vmatmul.f32.gmra.mxu1 %v3497_v48  ;;  %v11995_v59 = vadd.f32 %v11614_v51, %v3765_v49  ;;  %vm2373_vm9 = vcmp.eq.f32.partialorder %v2372_v6, 8.507059e+37  ;;  %v2382_v48 = vadd.f32 %v11949_v57, %v2381_v34  ;;  %v12021_v49 = vpop.eup %6357  ;;  %15063 = vst [vmem:[#allocation188_spill] sm:$0xff] %v12023_v10  ;;  %v2389_v6 = vand.u32 2147483648, %v11911_v20 }
 0x60c   : > { %v4166_v1 = vmul.f32 1.442695, %v4075_v46  ;;  %v2376_v42 = vsel %vm2373_vm9, %v2375_v25, %v2371_v38  ;;  %v2395_v2 = vsub.f32 1.0, %v2394_v52  ;;  %6361 = vrcp.f32 %v12017_v47 }
 0x60d   : > { %v3982_v18 = vsel %vm3855_vm13, %v11995_v59, -inf  ;;  %v2409_v52 = vmul.f32 %v12021_v49, %v11981_v0  ;;  %vm2414_vm7 = vweird.f32 %v12021_v49  ;;  %vm2428_vm0 = vweird.f32 %v12017_v47 }
 0x60e   : > { %v3290_v39 = vpop.f32.mrf.mxu3  ;;  %3983 = vmax.xlane.f32.xlu0 %v3982_v18  ;;  %4316 = vadd.xlane.f32.xlu1 %v4315_v3  ;;  %v12025_v3 = vpop.eup %6359  ;;  %6363 = vpow2.f32 %v4166_v1  ;;  %vm12103_vm8 = vmor %vm2413_vm10, %vm2414_vm7 }
 0x60f   : > { %v3291_v50 = vadd.f32 %v3290_v39, %v3082_v63  ;;  %v2386_v63 = vsel %vm12033_vm15, %v11949_v57, %v2382_v48  ;;  %v15066_v39 = vld [vmem:[#allocation52_spill] sm:$0xff]  ;;  %v3087_v1 = vpop.f32.mrf.mxu2  ;;  %v2410_v38 = vsub.f32 1.0, %v2409_v52 }
 0x610   : > { %v3660_v27 = vpop.f32.mrf.mxu1  ;;  %v3085_v25 = vadd.f32 %v3084_v26, %v15066_v39 }
 0x611   : > { %v3500_v33 = vadd.f32 %v3499_v14, %v3291_v50  ;;  %v3766_v8 = vmul.f32 %v3660_v27, %v2376_v42  ;;  %v3942_v18 = vpop.xlane.xlu2 %3941  ;;  %v2387_v14 = vand.u32 2147483647, %v11911_v20  ;;  %v4318_v42 = vsel %vm3855_vm13, %v12025_v3, 0.0  ;;  %v12055_v10 = vpop.xlane.xlu0 %4274 }
 0x612   : > { %v4076_v34 = vsub.f32 %v11456_v28, %v3942_v18  ;;  %v2396_v20 = vmul.f32 %v11985_v13, %v2395_v2  ;;  %v2390_v28 = vor.u32 1.1754944e-38, %v2389_v6  ;;  %v12053_v39 = vpop.eup %6361  ;;  %15068 = vst [vmem:[#allocation189_spill] sm:$0xff] %v12055_v10 }
 0x613   : > { %v12031_v46 = vadd.f32 %v11614_v51, %v3766_v8  ;;  %3707 = vmatmul.f32.gmra.mxu1 %v3500_v33  ;;  %v15067_v33 = vld [vmem:[#allocation169_spill] sm:$0xff]  ;;  %vm2388_vm14 = vcmp.eq.f32.partialorder %v2387_v14, 8.507059e+37  ;;  %vm2429_vm1 = vweird.f32 %v12053_v39 }
 0x614   : > { %v12051_v57 = vmax.f32 %v15067_v33, 1e-30  ;;  %v4168_v8 = vmul.f32 1.442695, %v4076_v34  ;;  %v2391_v26 = vsel %vm2388_vm14, %v2390_v28, %v2386_v63  ;;  %v12059_v6 = vpop.eup %6363  ;;  %v3505_v34 = vpop.f32.mrf.mxu0  ;;  %vm12135_vm9 = vmor %vm2428_vm0, %vm2429_vm1 }
 0x615   : > { %v3985_v50 = vsel %vm3855_vm13, %v12031_v46, -inf }
 0x616   : > { %v3293_v27 = vpop.f32.mrf.mxu3  ;;  %3986 = vmax.xlane.f32.xlu2 %v3985_v50  ;;  %4319 = vadd.xlane.f32.xlu0 %v4318_v42  ;;  %v2397_v50 = vadd.f32 %v11985_v13, %v2396_v20  ;;  %6365 = vrcp.f32 %v12051_v57  ;;  %v2411_v42 = vmul.f32 %v12021_v49, %v2410_v38  ;;  %v2424_v20 = vmul.f32 %v12053_v39, %v12017_v47 }
 0x617   : > { %v3294_v48 = vadd.f32 %v3293_v27, %v3085_v25  ;;  %v2404_v25 = vand.u32 2147483648, %v11947_v37  ;;  %6367 = vpow2.f32 %v4168_v8  ;;  %v15072_v27 = vld [vmem:[#allocation181_spill] sm:$0xff]  ;;  %vm2443_vm15 = vweird.f32 %v12051_v57 }
 0x618   : > { %v3663_v18 = vpop.f32.mrf.mxu1  ;;  %v3088_v28 = vadd.f32 %v3087_v1, %v15072_v27  ;;  %v3090_v1 = vpop.f32.mrf.mxu2  ;;  %v2412_v27 = vadd.f32 %v12021_v49, %v2411_v42 }
 0x619   : > { %v3503_v11 = vadd.f32 %v3502_v19, %v3294_v48  ;;  %v3767_v2 = vmul.f32 %v3663_v18, %v2391_v26  ;;  %v3945_v56 = vpop.xlane.xlu1 %3944  ;;  %v2402_v19 = vand.u32 2147483647, %v11947_v37  ;;  %v2405_v33 = vor.u32 1.1754944e-38, %v2404_v25  ;;  %v15073_v48 = vld [vmem:[#allocation63_spill] sm:$0xff] }
 0x61a   : > { %v4077_v63 = vsub.f32 %v11491_v40, %v3945_v56  ;;  %v2401_v56 = vsel %vm12069_vm3, %v11985_v13, %v2397_v50  ;;  %v12085_v8 = vmax.f32 %v15073_v48, 1e-30  ;;  %v12091_v13 = vpop.xlane.xlu2 %4277 }
 0x61b   : > { %v12064_v14 = vadd.f32 %v11614_v51, %v3767_v2  ;;  %3710 = vmatmul.f32.gmra.mxu1 %v3503_v11  ;;  %v4321_v11 = vsel %vm3855_vm13, %v12059_v6, 0.0  ;;  %vm2403_vm5 = vcmp.eq.f32.partialorder %v2402_v19, 8.507059e+37  ;;  %15074 = vst [vmem:[#allocation78_spill] sm:$0xff] %v12091_v13  ;;  %v2419_v19 = vand.u32 2147483648, %v11981_v0 }
 0x61c   : > { %v4170_v18 = vmul.f32 1.442695, %v4077_v63  ;;  %v2406_v38 = vsel %vm2403_vm5, %v2405_v33, %v2401_v56  ;;  %v12089_v52 = vpop.eup %6365  ;;  %6369 = vrcp.f32 %v12085_v8  ;;  %vm2458_vm3 = vweird.f32 %v12085_v8 }
 0x61d   : > { %15069 = vst [vmem:[#allocation96_spill] sm:$0xff] %v12064_v14  ;;  %v3988_v37 = vsel %vm3855_vm13, %v12064_v14, -inf  ;;  %v2425_v14 = vsub.f32 1.0, %v2424_v20  ;;  %vm2444_vm12 = vweird.f32 %v12089_v52 }
 0x61e   : > { %v3296_v40 = vpop.f32.mrf.mxu3  ;;  %4322 = vadd.xlane.f32.xlu2 %v4321_v11  ;;  %3989 = vmax.xlane.f32.xlu1 %v3988_v37  ;;  %v12093_v37 = vpop.eup %6367  ;;  %6371 = vpow2.f32 %v4170_v18  ;;  %vm2445_vm14 = vmor %vm2443_vm15, %vm2444_vm12 }
 0x61f   : > { %v3297_v26 = vadd.f32 %v3296_v40, %v3088_v28  ;;  %v2416_v28 = vsel %vm12103_vm8, %v12021_v49, %v2412_v27  ;;  %v2426_v56 = vmul.f32 %v12053_v39, %v2425_v14  ;;  %v15077_v40 = vld [vmem:[#allocation183_spill] sm:$0xff]  ;;  %v3508_v18 = vpop.f32.mrf.mxu0 }
 0x620   : > { %v3666_v2 = vpop.f32.mrf.mxu1  ;;  %v3091_v33 = vadd.f32 %v3090_v1, %v15077_v40 }
 0x621   : > { %v3506_v50 = vadd.f32 %v3505_v34, %v3297_v26  ;;  %v3768_v25 = vmul.f32 %v3666_v2, %v2406_v38  ;;  %v3948_v11 = vpop.xlane.xlu0 %3947  ;;  %v2417_v34 = vand.u32 2147483647, %v11981_v0  ;;  %v4324_v26 = vsel %vm3855_vm13, %v12093_v37, 0.0  ;;  %v15078_v2 = vld [vmem:[#allocation170_spill] sm:$0xff] }
 0x622   : > { %v4078_v20 = vsub.f32 %v11533_v43, %v3948_v11  ;;  %v2439_v0 = vmul.f32 %v12089_v52, %v12051_v57  ;;  %v2420_v43 = vor.u32 1.1754944e-38, %v2419_v19  ;;  %v12121_v49 = vmax.f32 %v15078_v2, 1e-30  ;;  %v12125_v11 = vpop.eup %6369  ;;  %v3093_v19 = vpop.f32.mrf.mxu2 }
 0x623   : > { %3713 = vmatmul.f32.gmra.mxu1 %v3506_v50  ;;  %v12099_v63 = vadd.f32 %v11614_v51, %v3768_v25  ;;  %vm2418_vm4 = vcmp.eq.f32.partialorder %v2417_v34, 8.507059e+37  ;;  %v2427_v25 = vadd.f32 %v12053_v39, %v2426_v56  ;;  %v2434_v34 = vand.u32 2147483648, %v12017_v47 }
 0x624   : > { %v4172_v1 = vmul.f32 1.442695, %v4078_v20  ;;  %v2421_v27 = vsel %vm2418_vm4, %v2420_v43, %v2416_v28  ;;  %6373 = vrcp.f32 %v12121_v49  ;;  %v2432_v56 = vand.u32 2147483647, %v12017_v47 }
 0x625   : > { %v3991_v48 = vsel %vm3855_vm13, %v12099_v63, -inf  ;;  %vm2459_vm6 = vweird.f32 %v12125_v11  ;;  %vm2473_vm8 = vweird.f32 %v12121_v49 }
 0x626   : > { %v3299_v38 = vpop.f32.mrf.mxu3  ;;  %3992 = vmax.xlane.f32.xlu0 %v3991_v48  ;;  %4325 = vadd.xlane.f32.xlu1 %v4324_v26  ;;  %v2440_v48 = vsub.f32 1.0, %v2439_v0  ;;  %v12127_v26 = vpop.eup %6371  ;;  %6375 = vpow2.f32 %v4172_v1  ;;  %v2431_v0 = vsel %vm12135_vm9, %v12053_v39, %v2427_v25  ;;  %vm2433_vm11 = vcmp.eq.f32.partialorder %v2432_v56, 8.507059e+37  ;;  %v12168_v56 = vld [vmem:[%s13972_s3] ss:$0 sm:$0xff]  ;;  %vm2460_vm5 = vmor %vm2458_vm3, %vm2459_vm6 }
 0x627   : > { %v3300_v14 = vadd.f32 %v3299_v38, %v3091_v33  ;;  %v15081_v38 = vld [vmem:[#allocation185_spill] sm:$0xff]  ;;  %v4327_v2 = vsel %vm3855_vm13, %v12127_v26, 0.0  ;;  %v3511_v1 = vpop.f32.mrf.mxu0 }
 0x628   : > { %v3669_v50 = vpop.f32.mrf.mxu1  ;;  %v2441_v47 = vmul.f32 %v12089_v52, %v2440_v48 }
 0x629   : > { %v3509_v42 = vadd.f32 %v3508_v18, %v3300_v14  ;;  %v3769_v40 = vmul.f32 %v3669_v50, %v2421_v27  ;;  %v3951_v13 = vpop.xlane.xlu2 %3950  ;;  %v2454_v18 = vmul.f32 %v12125_v11, %v12085_v8 }
 0x62a   : > { %v4079_v33 = vsub.f32 %v11570_v55, %v3951_v13  ;;  %v2435_v55 = vor.u32 1.1754944e-38, %v2434_v34  ;;  %v12153_v13 = vmax.f32 %v10771_v16, 1e-30  ;;  %v2449_v16 = vand.u32 2147483648, %v12051_v57 }
 0x62b   : > { %v12133_v20 = vadd.f32 %v11614_v51, %v3769_v40  ;;  %3716 = vmatmul.f32.gmra.mxu1 %v3509_v42  ;;  %v3094_v51 = vadd.f32 %v3093_v19, %v15081_v38  ;;  %v2455_v42 = vsub.f32 1.0, %v2454_v18  ;;  %v12155_v40 = vpop.eup %6373  ;;  %v12157_v19 = vpop.xlane.xlu0 %4283  ;;  %v2442_v38 = vadd.f32 %v12089_v52, %v2441_v47 }
 0x62c   : > { %v4174_v27 = vmul.f32 1.442695, %v4079_v33  ;;  %v2436_v50 = vsel %vm2433_vm11, %v2435_v55, %v2431_v0  ;;  %15082 = vst [vmem:[#allocation118_spill] sm:$0xff] %v12157_v19  ;;  %v12161_v34 = vpop.eup %6375  ;;  %6377 = vrcp.f32 %v12153_v13  ;;  %v2447_v0 = vand.u32 2147483647, %v12051_v57  ;;  %v15084_v55 = vld [vmem:[#allocation17_spill] sm:$0xff] }
 0x62d   : > { %v3994_v43 = vsel %vm3855_vm13, %v12133_v20, -inf  ;;  %v2456_v18 = vmul.f32 %v12125_v11, %v2455_v42  ;;  %v2469_v47 = vmul.f32 %v12155_v40, %v12121_v49  ;;  %v12184_v57 = vmax.f32 %v15084_v55, 1e-30 }
 0x62e   : > { %v3302_v14 = vpop.f32.mrf.mxu3  ;;  %3995 = vmax.xlane.f32.xlu2 %v3994_v43  ;;  %4328 = vadd.xlane.f32.xlu0 %v4327_v2  ;;  %6379 = vpow2.f32 %v4174_v27  ;;  %v2446_v2 = vsel %vm2445_vm14, %v12089_v52, %v2442_v38  ;;  %vm2448_vm2 = vcmp.eq.f32.partialorder %v2447_v0, 8.507059e+37  ;;  %v2464_v38 = vand.u32 2147483648, %v12085_v8 }
 0x62f   : > { %v3303_v39 = vadd.f32 %v3302_v14, %v3094_v51  ;;  %v4330_v51 = vsel %vm3855_vm13, %v12161_v34, 0.0  ;;  %v2450_v14 = vor.u32 1.1754944e-38, %v2449_v16  ;;  %v2457_v27 = vadd.f32 %v12125_v11, %v2456_v18 }
 0x630   : > { %v3672_v25 = vpop.f32.mrf.mxu1  ;;  %6381 = vrcp.f32 %v12184_v57  ;;  %v2462_v0 = vand.u32 2147483647, %v12085_v8  ;;  %v2465_v55 = vor.u32 1.1754944e-38, %v2464_v38  ;;  %v12211_v8 = vmax.f32 %v10780_v30, 1e-30 }
 0x631   : > { %v3512_v28 = vadd.f32 %v3511_v1, %v3303_v39  ;;  %v3770_v48 = vmul.f32 %v3672_v25, %v2436_v50  ;;  %v2451_v39 = vsel %vm2448_vm2, %v2450_v14, %v2446_v2  ;;  %v12190_v25 = vpop.xlane.xlu2 %4286  ;;  %vm2474_vm10 = vweird.f32 %v12155_v40 }
 0x632   : > { %v12188_v50 = vpop.eup %6377  ;;  %15085 = vst [vmem:[#allocation101_spill] sm:$0xff] %v12190_v25  ;;  %vm2463_vm7 = vcmp.eq.f32.partialorder %v2462_v0, 8.507059e+37  ;;  %6383 = vrcp.f32 %v12211_v8  ;;  %v2477_v38 = vand.u32 2147483647, %v12121_v49  ;;  %vm2475_vm4 = vmor %vm2473_vm8, %vm2474_vm10  ;;  %vm2488_vm9 = vweird.f32 %v12153_v13 }
 0x633   : > { %v12171_v33 = vadd.f32 %v12168_v56, %v3770_v48  ;;  %3719 = vmatmul.f32.gmra.mxu1 %v3512_v28  ;;  %v2470_v28 = vsub.f32 1.0, %v2469_v47  ;;  %v2484_v14 = vmul.f32 %v12188_v50, %v12153_v13  ;;  %vm2489_vm0 = vweird.f32 %v12188_v50 }
 0x634   : > { %v12192_v48 = vpop.eup %6379  ;;  %vm2478_vm1 = vcmp.eq.f32.partialorder %v2477_v38, 8.507059e+37  ;;  %vm2490_vm11 = vmor %vm2488_vm9, %vm2489_vm0  ;;  %vm2503_vm14 = vweird.f32 %v12184_v57 }
 0x635   : > { %15083 = vst [vmem:[#allocation100_spill] sm:$0xff] %v12171_v33  ;;  %v3997_v43 = vsel %vm3855_vm13, %v12171_v33, -inf  ;;  %v4333_v2 = vsel %vm3855_vm13, %v12192_v48, 0.0  ;;  %v2471_v47 = vmul.f32 %v12155_v40, %v2470_v28  ;;  %v2485_v28 = vsub.f32 1.0, %v2484_v14 }
 0x636   : > { %4331 = vadd.xlane.f32.xlu2 %v4330_v51  ;;  %3998 = vmax.xlane.f32.xlu1 %v3997_v43  ;;  %v2461_v51 = vsel %vm2460_vm5, %v12125_v11, %v2457_v27  ;;  %vm2518_vm5 = vweird.f32 %v12211_v8 }
 0x637   : > { %v2466_v11 = vsel %vm2463_vm7, %v2465_v55, %v2461_v51  ;;  %v15086_v55 = vld [vmem:[#allocation39_spill] sm:$0xff] }
 0x638   : > { %v3675_v1 = vpop.f32.mrf.mxu1 }
 0x639   : > { %v3771_v52 = vmul.f32 %v3675_v1, %v2451_v39  ;;  %v3957_v42 = vpop.xlane.xlu0 %3956  ;;  %v12213_v1 = vpop.eup %6381 }
 0x63a   : > { %v4081_v18 = vsub.f32 %v11652_v24, %v3957_v42  ;;  %v2472_v42 = vadd.f32 %v12155_v40, %v2471_v47  ;;  %v2486_v47 = vmul.f32 %v12188_v50, %v2485_v28  ;;  %vm2504_vm15 = vweird.f32 %v12213_v1 }
 0x63b   : > { %v12198_v16 = vadd.f32 %v12168_v56, %v3771_v52  ;;  %vm2505_vm2 = vmor %vm2503_vm14, %vm2504_vm15 }
 0x63c   : > { %v4178_v24 = vmul.f32 1.442695, %v4081_v18  ;;  %v2499_v18 = vmul.f32 %v12213_v1, %v12184_v57  ;;  %v2487_v25 = vadd.f32 %v12188_v50, %v2486_v47  ;;  %v15089_v47 = vld [vmem:[#allocation107_spill] sm:$0xff] }
 0x63d   : > { %v4000_v43 = vsel %vm3855_vm13, %v12198_v16, -inf }
 0x63e   : > { %4001 = vmax.xlane.f32.xlu0 %v4000_v43  ;;  %4334 = vadd.xlane.f32.xlu1 %v4333_v2  ;;  %v2479_v43 = vand.u32 2147483648, %v12121_v49  ;;  %6385 = vpow2.f32 %v4178_v24  ;;  %v2476_v2 = vsel %vm2475_vm4, %v12155_v40, %v2472_v42  ;;  %v2494_v42 = vand.u32 2147483648, %v12153_v13 }
 0x640   : > { %v3678_v39 = vpop.f32.mrf.mxu1  ;;  %v2480_v14 = vor.u32 1.1754944e-38, %v2479_v43  ;;  %v2492_v43 = vand.u32 2147483647, %v12153_v13  ;;  %v12258_v13 = vmax.f32 %v15089_v47, 1e-30 }
 0x641   : > { %v3772_v27 = vmul.f32 %v3678_v39, %v2466_v11  ;;  %v3960_v52 = vpop.xlane.xlu2 %3959  ;;  %v12232_v11 = vmax.f32 %v15086_v55, 1e-30  ;;  %v2500_v39 = vsub.f32 1.0, %v2499_v18 }
 0x642   : > { %v4082_v0 = vsub.f32 %v11690_v61, %v3960_v52  ;;  %v2481_v24 = vsel %vm2478_vm1, %v2480_v14, %v2476_v2  ;;  %v12236_v52 = vpop.xlane.xlu0 %4292  ;;  %v2495_v2 = vor.u32 1.1754944e-38, %v2494_v42  ;;  %vm2493_vm12 = vcmp.eq.f32.partialorder %v2492_v43, 8.507059e+37 }
 0x643   : > { %v12220_v30 = vadd.f32 %v12168_v56, %v3772_v27  ;;  %v12234_v27 = vpop.eup %6383  ;;  %6387 = vrcp.f32 %v12232_v11  ;;  %v2501_v38 = vmul.f32 %v12213_v1, %v2500_v39  ;;  %v2509_v42 = vand.u32 2147483648, %v12184_v57 }
 0x644   : > { %v4180_v49 = vmul.f32 1.442695, %v4082_v0  ;;  %v12240_v40 = vpop.eup %6385  ;;  %vm2519_vm3 = vweird.f32 %v12234_v27  ;;  %vm2533_vm4 = vweird.f32 %v12232_v11 }
 0x645   : > { %v4003_v51 = vsel %vm3855_vm13, %v12220_v30, -inf  ;;  %15087 = vst [vmem:[#allocation115_spill] sm:$0xff] %v12240_v40  ;;  %v4339_v0 = vsel %vm3855_vm13, %v12240_v40, 0.0  ;;  %vm2520_vm7 = vmor %vm2518_vm5, %vm2519_vm3 }
 0x646   : > { %4004 = vmax.xlane.f32.xlu2 %v4003_v51  ;;  %6389 = vpow2.f32 %v4180_v49  ;;  %v2491_v51 = vsel %vm2490_vm11, %v12188_v50, %v2487_v25  ;;  %v2502_v49 = vadd.f32 %v12213_v1, %v2501_v38  ;;  %v2507_v38 = vand.u32 2147483647, %v12184_v57 }
 0x647   : > { %v2496_v14 = vsel %vm2493_vm12, %v2495_v2, %v2491_v51  ;;  %6391 = vrcp.f32 %v12258_v13  ;;  %vm2548_vm11 = vweird.f32 %v12258_v13 }
 0x648   : > { %v3681_v61 = vpop.f32.mrf.mxu1  ;;  %v2506_v51 = vsel %vm2505_vm2, %v12213_v1, %v2502_v49  ;;  %vm2508_vm6 = vcmp.eq.f32.partialorder %v2507_v38, 8.507059e+37  ;;  %v2522_v38 = vand.u32 2147483647, %v12211_v8 }
 0x649   : > { %v3773_v33 = vmul.f32 %v3681_v61, %v2481_v24  ;;  %v12262_v24 = vpop.eup %6387  ;;  %v12264_v61 = vpop.xlane.xlu2 %4295 }
 0x64a   : > { %vm2523_vm10 = vcmp.eq.f32.partialorder %v2522_v38, 8.507059e+37  ;;  %vm2534_vm8 = vweird.f32 %v12262_v24 }
 0x64b   : > { %v12245_v28 = vadd.f32 %v12168_v56, %v3773_v33  ;;  %v2514_v33 = vmul.f32 %v12234_v27, %v12211_v8  ;;  %vm2535_vm1 = vmor %vm2533_vm4, %vm2534_vm8 }
 0x64d   : > { %15088 = vst [vmem:[#allocation76_spill] sm:$0xff] %v12245_v28  ;;  %v4006_v18 = vsel %vm3855_vm13, %v12245_v28, -inf  ;;  %v2515_v39 = vsub.f32 1.0, %v2514_v33 }
 0x64e   : > { %4340 = vadd.xlane.f32.xlu2 %v4339_v0  ;;  %4007 = vmax.xlane.f32.xlu1 %v4006_v18  ;;  %v12266_v0 = vpop.eup %6389 }
 0x64f   : > { %15090 = vst [vmem:[#allocation41_spill] sm:$0xff] %v12266_v0  ;;  %v4342_v2 = vsel %vm3855_vm13, %v12266_v0, 0.0  ;;  %v2516_v47 = vmul.f32 %v12234_v27, %v2515_v39 }
 0x650   : > { %v3684_v55 = vpop.f32.mrf.mxu1 }
 0x651   : > { %v3774_v50 = vmul.f32 %v3684_v55, %v2496_v14  ;;  %v3966_v25 = vpop.xlane.xlu0 %3965  ;;  %v2529_v14 = vmul.f32 %v12262_v24, %v12232_v11  ;;  %v2510_v55 = vor.u32 1.1754944e-38, %v2509_v42  ;;  %v2517_v0 = vadd.f32 %v12234_v27, %v2516_v47 }
 0x652   : > { %v4084_v18 = vsub.f32 %v11770_v31, %v3966_v25  ;;  %v12287_v25 = vpop.eup %6391 }
 0x653   : > { %v12272_v43 = vadd.f32 %v12168_v56, %v3774_v50  ;;  %v15091_v50 = vld [vmem:[#allocation114_spill] sm:$0xff]  ;;  %v2511_v1 = vsel %vm2508_vm6, %v2510_v55, %v2506_v51  ;;  %v2530_v39 = vsub.f32 1.0, %v2529_v14  ;;  %v2544_v51 = vmul.f32 %v12287_v25, %v12258_v13 }
 0x654   : > { %v12285_v57 = vmax.f32 %v15091_v50, 1e-30  ;;  %v4184_v31 = vmul.f32 1.442695, %v4084_v18  ;;  %v2521_v47 = vsel %vm2520_vm7, %v12234_v27, %v2517_v0  ;;  %v12306_v55 = vmax.f32 %v10858_v60, 1e-30 }
 0x655   : > { %v4009_v33 = vsel %vm3855_vm13, %v12272_v43, -inf  ;;  %v2531_v14 = vmul.f32 %v12262_v24, %v2530_v39  ;;  %v2539_v0 = vand.u32 2147483648, %v12232_v11  ;;  %v2537_v39 = vand.u32 2147483647, %v12232_v11 }
 0x656   : > { %4010 = vmax.xlane.f32.xlu0 %v4009_v33  ;;  %4343 = vadd.xlane.f32.xlu1 %v4342_v2  ;;  %v2524_v33 = vand.u32 2147483648, %v12211_v8  ;;  %6393 = vrcp.f32 %v12285_v57  ;;  %v12332_v11 = vmax.f32 %v10835_v29, 1e-30  ;;  %vm2549_vm9 = vweird.f32 %v12287_v25 }
 0x657   : > { %6395 = vpow2.f32 %v4184_v31  ;;  %v2532_v19 = vadd.f32 %v12262_v24, %v2531_v14  ;;  %vm2538_vm0 = vcmp.eq.f32.partialorder %v2537_v39, 8.507059e+37  ;;  %v2554_v29 = vand.u32 2147483648, %v12258_v13  ;;  %vm2550_vm12 = vmor %vm2548_vm11, %vm2549_vm9 }
 0x658   : > { %v3687_v49 = vpop.f32.mrf.mxu1  ;;  %6397 = vrcp.f32 %v12306_v55  ;;  %v2552_v39 = vand.u32 2147483647, %v12258_v13  ;;  %vm2563_vm2 = vweird.f32 %v12285_v57  ;;  %vm2578_vm7 = vweird.f32 %v12306_v55 }
 0x659   : > { %v3775_v40 = vmul.f32 %v3687_v49, %v2511_v1  ;;  %v3969_v28 = vpop.xlane.xlu2 %3968  ;;  %v12310_v1 = vpop.xlane.xlu0 %4301 }
 0x65a   : > { %v4085_v18 = vsub.f32 %v11810_v21, %v3969_v28  ;;  %v2545_v28 = vsub.f32 1.0, %v2544_v51  ;;  %v2536_v51 = vsel %vm2535_vm1, %v12262_v24, %v2532_v19  ;;  %vm2553_vm15 = vcmp.eq.f32.partialorder %v2552_v39, 8.507059e+37 }
 0x65b   : > { %v12294_v42 = vadd.f32 %v12168_v56, %v3775_v40  ;;  %v2525_v40 = vor.u32 1.1754944e-38, %v2524_v33  ;;  %v2567_v39 = vand.u32 2147483647, %v12285_v57  ;;  %vm2593_vm1 = vweird.f32 %v12332_v11 }
 0x65c   : > { %v4186_v8 = vmul.f32 1.442695, %v4085_v18  ;;  %v12308_v31 = vpop.eup %6393  ;;  %v2546_v33 = vmul.f32 %v12287_v25, %v2545_v28 }
 0x65d   : > { %v4012_v2 = vsel %vm3855_vm13, %v12294_v42, -inf  ;;  %v2526_v50 = vsel %vm2523_vm10, %v2525_v40, %v2521_v47  ;;  %v12314_v27 = vpop.eup %6395  ;;  %v2540_v47 = vor.u32 1.1754944e-38, %v2539_v0  ;;  %vm2564_vm14 = vweird.f32 %v12308_v31 }
 0x65e   : > { %4013 = vmax.xlane.f32.xlu2 %v4012_v2  ;;  %15092 = vst [vmem:[#allocation104_spill] sm:$0xff] %v12314_v27  ;;  %6399 = vpow2.f32 %v4186_v8  ;;  %v4348_v38 = vsel %vm3855_vm13, %v12314_v27, 0.0  ;;  %v2559_v2 = vmul.f32 %v12308_v31, %v12285_v57  ;;  %v2547_v8 = vadd.f32 %v12287_v25, %v2546_v33  ;;  %vm2565_vm6 = vmor %vm2563_vm2, %vm2564_vm14 }
 0x65f   : > { %v2541_v14 = vsel %vm2538_vm0, %v2540_v47, %v2536_v51  ;;  %6401 = vrcp.f32 %v12332_v11  ;;  %vm2568_vm3 = vcmp.eq.f32.partialorder %v2567_v39, 8.507059e+37 }
 0x660   : > { %v3690_v21 = vpop.f32.mrf.mxu1  ;;  %v2560_v28 = vsub.f32 1.0, %v2559_v2 }
 0x661   : > { %v3776_v49 = vmul.f32 %v3690_v21, %v2526_v50  ;;  %v12336_v50 = vpop.eup %6397  ;;  %v12338_v21 = vpop.xlane.xlu2 %4304 }
 0x662   : > { %v2561_v2 = vmul.f32 %v12308_v31, %v2560_v28  ;;  %v2574_v47 = vmul.f32 %v12336_v50, %v12306_v55  ;;  %vm2579_vm5 = vweird.f32 %v12336_v50 }
 0x663   : > { %v12319_v60 = vadd.f32 %v12168_v56, %v3776_v49  ;;  %vm2580_vm10 = vmor %vm2578_vm7, %vm2579_vm5 }
 0x664   : > { %v12340_v49 = vpop.eup %6399  ;;  %v2575_v28 = vsub.f32 1.0, %v2574_v47 }
 0x665   : > { %15093 = vst [vmem:[#allocation119_spill] sm:$0xff] %v12319_v60  ;;  %v4015_v18 = vsel %vm3855_vm13, %v12319_v60, -inf  ;;  %v4351_v51 = vsel %vm3855_vm13, %v12340_v49, 0.0 }
 0x666   : > { %4349 = vadd.xlane.f32.xlu2 %v4348_v38  ;;  %4016 = vmax.xlane.f32.xlu1 %v4015_v18  ;;  %15094 = vst [vmem:[#allocation125_spill] sm:$0xff] %v12340_v49  ;;  %v2551_v38 = vsel %vm2550_vm12, %v12287_v25, %v2547_v8  ;;  %v2562_v49 = vadd.f32 %v12308_v31, %v2561_v2 }
 0x667   : > { %v2576_v47 = vmul.f32 %v12336_v50, %v2575_v28 }
 0x668   : > { %v3693_v40 = vpop.f32.mrf.mxu1  ;;  %v2566_v2 = vsel %vm2565_vm6, %v12308_v31, %v2562_v49  ;;  %v2584_v49 = vand.u32 2147483648, %v12306_v55 }
 0x669   : > { %v3777_v19 = vmul.f32 %v3693_v40, %v2541_v14  ;;  %v3975_v24 = vpop.xlane.xlu0 %3974  ;;  %v2555_v14 = vor.u32 1.1754944e-38, %v2554_v29  ;;  %v15095_v40 = vld [vmem:[#allocation172_spill] sm:$0xff]  ;;  %v2577_v10 = vadd.f32 %v12336_v50, %v2576_v47  ;;  %v15099_v47 = vld [vmem:[#allocation51_spill] sm:$0xff] }
 0x66a   : > { %v4087_v33 = vsub.f32 %v11888_v54, %v3975_v24  ;;  %v12359_v13 = vmax.f32 %v15095_v40, 1e-30  ;;  %v15096_v40 = vld [vmem:[#allocation111_spill] sm:$0xff] }
 0x66b   : > { %v12346_v0 = vadd.f32 %v12168_v56, %v3777_v19  ;;  %v2556_v25 = vsel %vm2553_vm15, %v2555_v14, %v2551_v38  ;;  %v12361_v19 = vpop.eup %6401 }
 0x66c   : > { %v4190_v54 = vmul.f32 1.442695, %v4087_v33  ;;  %6403 = vrcp.f32 %v12359_v13  ;;  %v2589_v38 = vmul.f32 %v12361_v19, %v12332_v11  ;;  %vm2594_vm4 = vweird.f32 %v12361_v19 }
 0x66d   : > { %v4018_v18 = vsel %vm3855_vm13, %v12346_v0, -inf  ;;  %vm2595_vm0 = vmor %vm2593_vm1, %vm2594_vm4  ;;  %vm2608_vm12 = vweird.f32 %v12359_v13 }
 0x66e   : > { %4019 = vmax.xlane.f32.xlu0 %v4018_v18  ;;  %4352 = vadd.xlane.f32.xlu1 %v4351_v51  ;;  %v2569_v18 = vand.u32 2147483648, %v12285_v57  ;;  %6405 = vpow2.f32 %v4190_v54 }
 0x670   : > { %v3696_v8 = vpop.f32.mrf.mxu1  ;;  %v2570_v14 = vor.u32 1.1754944e-38, %v2569_v18  ;;  %v2582_v18 = vand.u32 2147483647, %v12306_v55  ;;  %v12406_v55 = vmax.f32 %v15099_v47, 1e-30 }
 0x671   : > { %v3778_v24 = vmul.f32 %v3696_v8, %v2556_v25  ;;  %v3978_v27 = vpop.xlane.xlu2 %3977  ;;  %v12380_v25 = vmax.f32 %v15096_v40, 1e-30 }
 0x672   : > { %v4088_v33 = vsub.f32 %v11926_v44, %v3978_v27  ;;  %v2571_v54 = vsel %vm2568_vm3, %v2570_v14, %v2566_v2  ;;  %v2590_v27 = vsub.f32 1.0, %v2589_v38  ;;  %v12382_v8 = vpop.eup %6403  ;;  %v2585_v2 = vor.u32 1.1754944e-38, %v2584_v49 }
 0x673   : > { %v12368_v29 = vadd.f32 %v12168_v56, %v3778_v24  ;;  %v12384_v24 = vpop.xlane.xlu0 %4310  ;;  %6407 = vrcp.f32 %v12380_v25  ;;  %vm2583_vm8 = vcmp.eq.f32.partialorder %v2582_v18, 8.507059e+37  ;;  %v2599_v49 = vand.u32 2147483648, %v12332_v11 }
 0x674   : > { %v4192_v57 = vmul.f32 1.442695, %v4088_v33  ;;  %v12388_v31 = vpop.eup %6405  ;;  %v2591_v39 = vmul.f32 %v12361_v19, %v2590_v27  ;;  %vm2609_vm11 = vweird.f32 %v12382_v8  ;;  %vm2623_vm6 = vweird.f32 %v12380_v25 }
 0x675   : > { %v4021_v51 = vsel %vm3855_vm13, %v12368_v29, -inf  ;;  %15097 = vst [vmem:[#allocation108_spill] sm:$0xff] %v12388_v31  ;;  %v4357_v33 = vsel %vm3855_vm13, %v12388_v31, 0.0  ;;  %vm2610_vm15 = vmor %vm2608_vm12, %vm2609_vm11 }
 0x676   : > { %4022 = vmax.xlane.f32.xlu2 %v4021_v51  ;;  %6409 = vpow2.f32 %v4192_v57  ;;  %v2581_v51 = vsel %vm2580_vm10, %v12336_v50, %v2577_v10  ;;  %v2592_v57 = vadd.f32 %v12361_v19, %v2591_v39  ;;  %v2597_v39 = vand.u32 2147483647, %v12332_v11 }
 0x677   : > { %v2586_v14 = vsel %vm2583_vm8, %v2585_v2, %v2581_v51  ;;  %6411 = vrcp.f32 %v12406_v55  ;;  %vm2638_vm10 = vweird.f32 %v12406_v55 }
 0x678   : > { %v3699_v44 = vpop.f32.mrf.mxu1  ;;  %v2596_v51 = vsel %vm2595_vm0, %v12361_v19, %v2592_v57  ;;  %vm2598_vm9 = vcmp.eq.f32.partialorder %v2597_v39, 8.507059e+37  ;;  %v2612_v39 = vand.u32 2147483647, %v12359_v13 }
 0x679   : > { %v3779_v60 = vmul.f32 %v3699_v44, %v2571_v54  ;;  %v12410_v54 = vpop.eup %6407  ;;  %v12412_v44 = vpop.xlane.xlu2 %4313 }
 0x67a   : > { %vm2613_vm14 = vcmp.eq.f32.partialorder %v2612_v39, 8.507059e+37  ;;  %vm2624_vm2 = vweird.f32 %v12410_v54 }
 0x67b   : > { %v12393_v28 = vadd.f32 %v12168_v56, %v3779_v60  ;;  %v2604_v60 = vmul.f32 %v12382_v8, %v12359_v13  ;;  %vm2625_vm3 = vmor %vm2623_vm6, %vm2624_vm2 }
 0x67d   : > { %15098 = vst [vmem:[#allocation109_spill] sm:$0xff] %v12393_v28  ;;  %v4024_v38 = vsel %vm3855_vm13, %v12393_v28, -inf  ;;  %v2605_v27 = vsub.f32 1.0, %v2604_v60 }
 0x67e   : > { %4358 = vadd.xlane.f32.xlu2 %v4357_v33  ;;  %4025 = vmax.xlane.f32.xlu1 %v4024_v38  ;;  %v12414_v33 = vpop.eup %6409 }
 0x67f   : > { %15100 = vst [vmem:[#allocation132_spill] sm:$0xff] %v12414_v33  ;;  %v4360_v2 = vsel %vm3855_vm13, %v12414_v33, 0.0  ;;  %v2606_v47 = vmul.f32 %v12382_v8, %v2605_v27 }
 0x680   : > { %v3702_v40 = vpop.f32.mrf.mxu1 }
 0x681   : > { %v3780_v10 = vmul.f32 %v3702_v40, %v2586_v14  ;;  %v3984_v50 = vpop.xlane.xlu0 %3983  ;;  %v2619_v14 = vmul.f32 %v12410_v54, %v12380_v25  ;;  %v2600_v40 = vor.u32 1.1754944e-38, %v2599_v49  ;;  %v2607_v33 = vadd.f32 %v12382_v8, %v2606_v47 }
 0x682   : > { %v4090_v38 = vsub.f32 %v11995_v59, %v3984_v50  ;;  %v12435_v50 = vpop.eup %6411 }
 0x683   : > { %v12420_v18 = vadd.f32 %v12168_v56, %v3780_v10  ;;  %v15101_v10 = vld [vmem:[#allocation32_spill] sm:$0xff]  ;;  %v2601_v19 = vsel %vm2598_vm9, %v2600_v40, %v2596_v51  ;;  %v2620_v27 = vsub.f32 1.0, %v2619_v14  ;;  %v2634_v51 = vmul.f32 %v12435_v50, %v12406_v55 }
 0x684   : > { %v12433_v11 = vmax.f32 %v15101_v10, 1e-30  ;;  %v4196_v59 = vmul.f32 1.442695, %v4090_v38  ;;  %v2611_v47 = vsel %vm2610_vm15, %v12382_v8, %v2607_v33  ;;  %v12454_v40 = vmax.f32 %v10945_v12, 1e-30 }
 0x685   : > { %v4027_v60 = vsel %vm3855_vm13, %v12420_v18, -inf  ;;  %v2621_v14 = vmul.f32 %v12410_v54, %v2620_v27  ;;  %v2629_v33 = vand.u32 2147483648, %v12380_v25  ;;  %v2627_v27 = vand.u32 2147483647, %v12380_v25 }
 0x686   : > { %4028 = vmax.xlane.f32.xlu0 %v4027_v60  ;;  %4361 = vadd.xlane.f32.xlu1 %v4360_v2  ;;  %v2614_v60 = vand.u32 2147483648, %v12359_v13  ;;  %6413 = vrcp.f32 %v12433_v11  ;;  %vm2639_vm7 = vweird.f32 %v12435_v50  ;;  %vm2653_vm0 = vweird.f32 %v12433_v11 }
 0x687   : > { %6415 = vpow2.f32 %v4196_v59  ;;  %v2622_v41 = vadd.f32 %v12410_v54, %v2621_v14  ;;  %vm2628_vm5 = vcmp.eq.f32.partialorder %v2627_v27, 8.507059e+37  ;;  %vm2640_vm8 = vmor %vm2638_vm10, %vm2639_vm7  ;;  %v2642_v27 = vand.u32 2147483647, %v12406_v55 }
 0x688   : > { %v3705_v57 = vpop.f32.mrf.mxu1  ;;  %6417 = vrcp.f32 %v12454_v40  ;;  %vm2668_vm15 = vweird.f32 %v12454_v40 }
 0x689   : > { %v3781_v31 = vmul.f32 %v3705_v57, %v2601_v19  ;;  %v3987_v28 = vpop.xlane.xlu2 %3986  ;;  %v12458_v19 = vpop.xlane.xlu0 %4319  ;;  %vm2643_vm4 = vcmp.eq.f32.partialorder %v2642_v27, 8.507059e+37 }
 0x68a   : > { %v4091_v38 = vsub.f32 %v12031_v46, %v3987_v28  ;;  %v2635_v28 = vsub.f32 1.0, %v2634_v51  ;;  %v2626_v51 = vsel %vm2625_vm3, %v12410_v54, %v2622_v41 }
 0x68b   : > { %v12442_v49 = vadd.f32 %v12168_v56, %v3781_v31  ;;  %v2615_v31 = vor.u32 1.1754944e-38, %v2614_v60 }
 0x68c   : > { %v4198_v13 = vmul.f32 1.442695, %v4091_v38  ;;  %v12456_v59 = vpop.eup %6413  ;;  %v2636_v60 = vmul.f32 %v12435_v50, %v2635_v28 }
 0x68d   : > { %v4030_v2 = vsel %vm3855_vm13, %v12442_v49, -inf  ;;  %v2616_v10 = vsel %vm2613_vm14, %v2615_v31, %v2611_v47  ;;  %v12462_v8 = vpop.eup %6415  ;;  %v2630_v47 = vor.u32 1.1754944e-38, %v2629_v33  ;;  %vm2654_vm1 = vweird.f32 %v12456_v59 }
 0x68e   : > { %4031 = vmax.xlane.f32.xlu2 %v4030_v2  ;;  %15102 = vst [vmem:[#allocation112_spill] sm:$0xff] %v12462_v8  ;;  %6419 = vpow2.f32 %v4198_v13  ;;  %v4366_v39 = vsel %vm3855_vm13, %v12462_v8, 0.0  ;;  %v2649_v2 = vmul.f32 %v12456_v59, %v12433_v11  ;;  %v2637_v31 = vadd.f32 %v12435_v50, %v2636_v60  ;;  %v12481_v13 = vpop.eup %6417  ;;  %vm2655_vm9 = vmor %vm2653_vm0, %vm2654_vm1 }
 0x68f   : > { %v2631_v25 = vsel %vm2628_vm5, %v2630_v47, %v2626_v51  ;;  %v2664_v47 = vmul.f32 %v12481_v13, %v12454_v40  ;;  %vm2669_vm12 = vweird.f32 %v12481_v13 }
 0x690   : > { %v3708_v46 = vpop.f32.mrf.mxu1  ;;  %v2650_v41 = vsub.f32 1.0, %v2649_v2  ;;  %vm2670_vm14 = vmor %vm2668_vm15, %vm2669_vm12  ;;  %vm4899_vm12 = vweird.f32 %v12264_v61 }
 0x691   : > { %v3782_v57 = vmul.f32 %v3708_v46, %v2616_v10  ;;  %v12483_v10 = vpop.xlane.xlu2 %4322 }
 0x692   : > { %v2651_v2 = vmul.f32 %v12456_v59, %v2650_v41 }
 0x693   : > { %v12467_v12 = vadd.f32 %v12168_v56, %v3782_v57  ;;  %v2644_v57 = vand.u32 2147483648, %v12406_v55 }
 0x694   : > { %v12485_v54 = vpop.eup %6419 }
 0x695   : > { %v4033_v38 = vsel %vm3855_vm13, %v12467_v12, -inf  ;;  %15103 = vst [vmem:[#allocation113_spill] sm:$0xff] %v12485_v54  ;;  %v4369_v51 = vsel %vm3855_vm13, %v12485_v54, 0.0  ;;  %v2659_v54 = vand.u32 2147483648, %v12433_v11 }
 0x696   : > { %4367 = vadd.xlane.f32.xlu2 %v4366_v39  ;;  %4034 = vmax.xlane.f32.xlu1 %v4033_v38  ;;  %v2641_v39 = vsel %vm2640_vm8, %v12435_v50, %v2637_v31  ;;  %v2652_v31 = vadd.f32 %v12456_v59, %v2651_v2  ;;  %v12515_v2 = vpop.xlane.xlu1 %4280 }
 0x698   : > { %v3711_v14 = vpop.f32.mrf.mxu1 }
 0x699   : > { %v3783_v46 = vmul.f32 %v3711_v14, %v2631_v25  ;;  %v3993_v28 = vpop.xlane.xlu0 %3992  ;;  %v2645_v25 = vor.u32 1.1754944e-38, %v2644_v57  ;;  %v2657_v57 = vand.u32 2147483647, %v12433_v11 }
 0x69a   : > { %v4093_v60 = vsub.f32 %v12099_v63, %v3993_v28  ;;  %v2665_v28 = vsub.f32 1.0, %v2664_v47 }
 0x69b   : > { %v12490_v33 = vadd.f32 %v12168_v56, %v3783_v46  ;;  %v2646_v14 = vsel %vm2643_vm4, %v2645_v25, %v2641_v39  ;;  %v2656_v39 = vsel %vm2655_vm9, %v12456_v59, %v2652_v31  ;;  %vm2658_vm11 = vcmp.eq.f32.partialorder %v2657_v57, 8.507059e+37 }
 0x69c   : > { %v4202_v55 = vmul.f32 1.442695, %v4093_v60  ;;  %v2674_v59 = vand.u32 2147483648, %v12454_v40  ;;  %vm4884_vm4 = vweird.f32 %v12236_v52 }
 0x69d   : > { %v4036_v38 = vsel %vm3855_vm13, %v12490_v33, -inf }
 0x69e   : > { %4037 = vmax.xlane.f32.xlu0 %v4036_v38  ;;  %4370 = vadd.xlane.f32.xlu1 %v4369_v51  ;;  %6421 = vpow2.f32 %v4202_v55  ;;  %v2666_v38 = vmul.f32 %v12481_v13, %v2665_v28  ;;  %v2660_v51 = vor.u32 1.1754944e-38, %v2659_v54  ;;  %v2672_v54 = vand.u32 2147483647, %v12454_v40 }
 0x69f   : > { %v2675_v57 = vor.u32 1.1754944e-38, %v2674_v59 }
 0x6a0   : > { %v3714_v63 = vpop.f32.mrf.mxu1  ;;  %v2661_v25 = vsel %vm2658_vm11, %v2660_v51, %v2656_v39  ;;  %vm2673_vm2 = vcmp.eq.f32.partialorder %v2672_v54, 8.507059e+37 }
 0x6a1   : > { %v3784_v46 = vmul.f32 %v3714_v63, %v2646_v14  ;;  %v3996_v50 = vpop.xlane.xlu2 %3995  ;;  %v12517_v11 = vpop.xlane.xlu0 %4328 }
 0x6a2   : > { %v4094_v27 = vsub.f32 %v12133_v20, %v3996_v50  ;;  %v2667_v20 = vadd.f32 %v12481_v13, %v2666_v38 }
 0x6a3   : > { %v12506_v41 = vadd.f32 %v12168_v56, %v3784_v46 }
 0x6a4   : > { %v4204_v47 = vmul.f32 1.442695, %v4094_v27  ;;  %v12521_v63 = vpop.eup %6421  ;;  %v2671_v28 = vsel %vm2670_vm14, %v12481_v13, %v2667_v20  ;;  %v12534_v27 = vpop.xlane.xlu1 %3953 }
 0x6a5   : > { %v4039_v60 = vsel %vm3855_vm13, %v12506_v41, -inf  ;;  %15104 = vst [vmem:[#allocation49_spill] sm:$0xff] %v12521_v63  ;;  %v4375_v50 = vsel %vm3855_vm13, %v12521_v63, 0.0 }
 0x6a6   : > { %4040 = vmax.xlane.f32.xlu2 %v4039_v60  ;;  %6423 = vpow2.f32 %v4204_v47  ;;  %v2676_v60 = vsel %vm2673_vm2, %v2675_v57, %v2671_v28 }
 0x6a8   : > { %v3717_v14 = vpop.f32.mrf.mxu1 }
 0x6a9   : > { %v3785_v55 = vmul.f32 %v3717_v14, %v2661_v25  ;;  %v12536_v38 = vpop.xlane.xlu2 %4331 }
 0x6ab   : > { %v12525_v46 = vadd.f32 %v12168_v56, %v3785_v55 }
 0x6ac   : > { %v12538_v47 = vpop.eup %6423  ;;  %v4290_v54 = vpop.xlane.xlu1 %4289 }
 0x6ad   : > { %15105 = vst [vmem:[#allocation116_spill] sm:$0xff] %v12525_v46  ;;  %v4042_v31 = vsel %vm3855_vm13, %v12525_v46, -inf  ;;  %v4378_v20 = vsel %vm3855_vm13, %v12538_v47, 0.0  ;;  %vm4869_vm3 = vweird.f32 %v4290_v54 }
 0x6ae   : > { %4376 = vadd.xlane.f32.xlu2 %v4375_v50  ;;  %4043 = vmax.xlane.f32.xlu1 %v4042_v31  ;;  %15106 = vst [vmem:[#allocation120_spill] sm:$0xff] %v12538_v47 }
 0x6b0   : > { %v3720_v39 = vpop.f32.mrf.mxu1 }
 0x6b1   : > { %v3786_v40 = vmul.f32 %v3720_v39, %v2676_v60  ;;  %v4002_v51 = vpop.xlane.xlu0 %4001 }
 0x6b2   : > { %v4096_v25 = vsub.f32 %v12198_v16, %v4002_v51 }
 0x6b3   : > { %v12542_v14 = vadd.f32 %v12168_v56, %v3786_v40 }
 0x6b4   : > { %v4208_v13 = vmul.f32 1.442695, %v4096_v25 }
 0x6b5   : > { %v4045_v55 = vsel %vm3855_vm13, %v12542_v14, -inf }
 0x6b6   : > { %6425 = vpow2.f32 %v4208_v13  ;;  %4046 = vmax.xlane.f32.xlu0 %v4045_v55  ;;  %4379 = vadd.xlane.f32.xlu1 %v4378_v20 }
 0x6b7   : > { %6427 = vrcp.f32 %v4290_v54 }
 0x6b9   : > { %v4005_v59 = vpop.xlane.xlu2 %4004 }
 0x6ba   : > { %v4097_v50 = vsub.f32 %v12220_v30, %v4005_v59  ;;  %v12558_v30 = vpop.xlane.xlu1 %3962 }
 0x6bc   : > { %v12549_v31 = vpop.eup %6425  ;;  %v4210_v16 = vmul.f32 1.442695, %v4097_v50 }
 0x6bd   : > { %15107 = vst [vmem:[#allocation121_spill] sm:$0xff] %v12549_v31  ;;  %v4384_v56 = vsel %vm3855_vm13, %v12549_v31, 0.0  ;;  %v6428_v28 = vpop.eup %6427  ;;  %v15112_v31 = vld [vmem:[#allocation9_spill] sm:$0xff] }
 0x6be   : > { %6429 = vpow2.f32 %v4210_v16  ;;  %4385 = vadd.xlane.f32.xlu2 %v4384_v56  ;;  %v4865_v39 = vmul.f32 %v6428_v28, %v4290_v54  ;;  %vm4870_vm6 = vweird.f32 %v6428_v28 }
 0x6bf   : > { %6431 = vrcp.f32 %v12236_v52  ;;  %vm4871_vm5 = vmor %vm4869_vm3, %vm4870_vm6 }
 0x6c0   : > { %v4866_v13 = vsub.f32 1.0, %v4865_v39  ;;  %6433 = vrcp.f32 %v12264_v61  ;;  %v4875_v39 = vand.u32 2147483648, %v4290_v54 }
 0x6c1   : > { %v12560_v40 = vpop.xlane.xlu2 %4340 }
 0x6c2   : > { %15109 = vst [vmem:[#allocation124_spill] sm:$0xff] %v12560_v40  ;;  %v4867_v59 = vmul.f32 %v6428_v28, %v4866_v13  ;;  %v12565_v56 = vpop.xlane.xlu1 %4298  ;;  %v15111_v13 = vld [vmem:[#allocation61_spill] sm:$0xff] }
 0x6c3   : > { %vm4914_vm6 = vweird.f32 %v12565_v56 }
 0x6c4   : > { %v12553_v57 = vpop.eup %6429  ;;  %v4868_v8 = vadd.f32 %v6428_v28, %v4867_v59 }
 0x6c5   : > { %15108 = vst [vmem:[#allocation129_spill] sm:$0xff] %v12553_v57  ;;  %v4387_v60 = vsel %vm3855_vm13, %v12553_v57, 0.0  ;;  %v6432_v55 = vpop.eup %6431  ;;  %v4873_v57 = vand.u32 2147483647, %v4290_v54 }
 0x6c6   : > { %4388 = vadd.xlane.f32.xlu1 %v4387_v60  ;;  %v4880_v50 = vmul.f32 %v6432_v55, %v12236_v52  ;;  %v12568_v47 = vpop.eup %6433  ;;  %vm4885_vm8 = vweird.f32 %v6432_v55 }
 0x6c7   : > { %v4895_v59 = vmul.f32 %v12568_v47, %v12264_v61  ;;  %vm4874_vm10 = vcmp.eq.f32.partialorder %v4873_v57, 8.507059e+37  ;;  %vm4886_vm1 = vmor %vm4884_vm4, %vm4885_vm8  ;;  %vm4900_vm11 = vweird.f32 %v12568_v47  ;;  %vm4929_vm4 = vweird.f32 %v12310_v1 }
 0x6c8   : > { %v4881_v63 = vsub.f32 1.0, %v4880_v50  ;;  %v4872_v50 = vsel %vm4871_vm5, %v6428_v28, %v4868_v8  ;;  %v4888_v8 = vand.u32 2147483647, %v12236_v52  ;;  %vm4901_vm15 = vmor %vm4899_vm12, %vm4900_vm11  ;;  %vm4944_vm12 = vweird.f32 %v12338_v21 }
 0x6c9   : > { %v4011_v51 = vpop.xlane.xlu0 %4010 }
 0x6ca   : > { %v4099_v25 = vsub.f32 %v12272_v43, %v4011_v51  ;;  %vm4889_vm0 = vcmp.eq.f32.partialorder %v4888_v8, 8.507059e+37  ;;  %v4903_v8 = vand.u32 2147483647, %v12264_v61 }
 0x6cc   : > { %v4214_v20 = vmul.f32 1.442695, %v4099_v25  ;;  %vm4904_vm14 = vcmp.eq.f32.partialorder %v4903_v8, 8.507059e+37 }
 0x6ce   : > { %6435 = vpow2.f32 %v4214_v20  ;;  %v4448_v20 = vand.u32 7, %v15111_v13 }
 0x6cf   : > { %6437 = vrcp.f32 %v12565_v56 }
 0x6d0   : > { %vm4512_vm7 = vcmp.eq.s32.totalorder %v15112_v31, %v4448_v20 }
 0x6d1   : > { %v4014_v16 = vpop.xlane.xlu2 %4013  ;;  %v4576_v54 = vsel %vm4512_vm7, %v11644_v58, 0.0 }
 0x6d2   : > { %v4100_v60 = vsub.f32 %v12294_v42, %v4014_v16  ;;  %v4882_v42 = vmul.f32 %v6432_v55, %v4881_v63  ;;  %v4876_v16 = vor.u32 1.1754944e-38, %v4875_v39  ;;  %v4890_v63 = vand.u32 2147483648, %v12236_v52  ;;  %v15113_v39 = vld [vmem:[#allocation59_spill] sm:$0xff] }
 0x6d4   : > { %v12570_v43 = vpop.eup %6435  ;;  %v4216_v51 = vmul.f32 1.442695, %v4100_v60  ;;  %v4877_v60 = vsel %vm4874_vm10, %v4876_v16, %v4872_v50  ;;  %v4883_v46 = vadd.f32 %v6432_v55, %v4882_v42  ;;  %v4891_v58 = vor.u32 1.1754944e-38, %v4890_v63 }
 0x6d5   : > { %15110 = vst [vmem:[#allocation126_spill] sm:$0xff] %v12570_v43  ;;  %v4393_v25 = vsel %vm3855_vm13, %v12570_v43, 0.0  ;;  %v12579_v40 = vpop.eup %6437  ;;  %v4896_v43 = vsub.f32 1.0, %v4895_v59  ;;  %v4878_v57 = vmul.f32 %v4877_v60, %v4576_v54  ;;  %v12594_v59 = vpop.xlane.xlu1 %3971 }
 0x6d6   : > { %6439 = vpow2.f32 %v4216_v51  ;;  %4394 = vadd.xlane.f32.xlu2 %v4393_v25  ;;  %v4449_v51 = vand.u32 7, %v15113_v39  ;;  %v4910_v20 = vmul.f32 %v12579_v40, %v12565_v56  ;;  %v4887_v42 = vsel %vm4886_vm1, %v6432_v55, %v4883_v46 }
 0x6d7   : > { %6441 = vrcp.f32 %v12310_v1  ;;  %v4897_v25 = vmul.f32 %v12568_v47, %v4896_v43  ;;  %v4892_v60 = vsel %vm4889_vm0, %v4891_v58, %v4887_v42  ;;  %v4905_v46 = vand.u32 2147483648, %v12264_v61 }
 0x6d8   : > { %vm4513_vm9 = vcmp.eq.s32.totalorder %v15112_v31, %v4449_v51  ;;  %v4911_v43 = vsub.f32 1.0, %v4910_v20  ;;  %6443 = vrcp.f32 %v12338_v21  ;;  %vm4915_vm3 = vweird.f32 %v12579_v40 }
 0x6d9   : > { %v12596_v52 = vpop.xlane.xlu2 %4349  ;;  %v4898_v54 = vadd.f32 %v12568_v47, %v4897_v25  ;;  %v4577_v63 = vsel %vm4513_vm9, %v11684_v7, 0.0  ;;  %v4906_v42 = vor.u32 1.1754944e-38, %v4905_v46  ;;  %v4918_v46 = vand.u32 2147483647, %v12565_v56  ;;  %vm4916_vm5 = vmor %vm4914_vm6, %vm4915_vm3 }
 0x6da   : > { %v4912_v51 = vmul.f32 %v12579_v40, %v4911_v43 }
 0x6db   : > { %v4902_v20 = vsel %vm4901_vm15, %v12568_v47, %v4898_v54  ;;  %vm4919_vm7 = vcmp.eq.f32.partialorder %v4918_v46, 8.507059e+37 }
 0x6dc   : > { %v12581_v13 = vpop.eup %6439  ;;  %v4913_v43 = vadd.f32 %v12579_v40, %v4912_v51 }
 0x6dd   : > { %v4396_v28 = vsel %vm3855_vm13, %v12581_v13, 0.0  ;;  %v12619_v58 = vpop.xlane.xlu1 %4307 }
 0x6de   : > { %4397 = vadd.xlane.f32.xlu1 %v4396_v28  ;;  %v12602_v28 = vpop.eup %6441  ;;  %vm4959_vm6 = vweird.f32 %v12619_v58 }
 0x6df   : > { %5616 = vxpose.xlu0.b32.start [1/16] (narrow) %v4878_v57, 8  ;;  %v15114_v57 = vld [vmem:[#allocation69_spill] sm:$0xff]  ;;  %v4925_v25 = vmul.f32 %v12602_v28, %v12310_v1  ;;  %vm4930_vm8 = vweird.f32 %v12602_v28 }
 0x6e0   : > { %v4450_v39 = vand.u32 7, %v15114_v57  ;;  %v15117_v57 = vld [vmem:[#allocation66_spill] sm:$0xff]  ;;  %vm4931_vm1 = vmor %vm4929_vm4, %vm4930_vm8  ;;  %vm4974_vm4 = vweird.f32 %v12384_v24 }
 0x6e1   : > { %v4020_v50 = vpop.xlane.xlu0 %4019  ;;  %v4926_v47 = vsub.f32 1.0, %v4925_v25  ;;  %v4917_v25 = vsel %vm4916_vm5, %v12579_v40, %v4913_v43  ;;  %v4933_v43 = vand.u32 2147483647, %v12310_v1 }
 0x6e2   : > { %v4102_v16 = vsub.f32 %v12346_v0, %v4020_v50  ;;  %v4893_v0 = vmul.f32 %v4892_v60, %v4577_v63  ;;  %vm12615_vm2 = vcmp.eq.s32.totalorder %v15112_v31, %v4450_v39  ;;  %v12622_v60 = vpop.eup %6443  ;;  %v4451_v39 = vand.u32 7, %v15117_v57 }
 0x6e3   : > { %v4927_v51 = vmul.f32 %v12602_v28, %v4926_v47  ;;  %vm4934_vm0 = vcmp.eq.f32.partialorder %v4933_v43, 8.507059e+37  ;;  %vm4945_vm11 = vweird.f32 %v12622_v60 }
 0x6e4   : > { %v4220_v55 = vmul.f32 1.442695, %v4102_v16  ;;  %v4907_v16 = vsel %vm4904_vm14, %v4906_v42, %v4902_v20  ;;  %vm4515_vm10 = vcmp.eq.s32.totalorder %v15112_v31, %v4451_v39  ;;  %vm4946_vm15 = vmor %vm4944_vm12, %vm4945_vm11  ;;  %vm4989_vm12 = vweird.f32 %v12412_v44 }
 0x6e5   : > { %v4579_v40 = vsel %vm4515_vm10, %v11762_v53, 0.0 }
 0x6e6   : > { %6445 = vpow2.f32 %v4220_v55  ;;  %v4920_v55 = vand.u32 2147483648, %v12565_v56  ;;  %v4940_v56 = vmul.f32 %v12622_v60, %v12338_v21 }
 0x6e7   : > { %5617 = vxpose.xlu0.b32.cont [2/16] (narrow) %v4893_v0, 8  ;;  %6447 = vrcp.f32 %v12619_v58 }
 0x6e8   : > { %v4941_v61 = vsub.f32 1.0, %v4940_v56 }
 0x6e9   : > { %v4023_v7 = vpop.xlane.xlu2 %4022 }
 0x6ea   : > { %v4103_v50 = vsub.f32 %v12368_v29, %v4023_v7  ;;  %v4578_v29 = vsel %vm12615_vm2, %v11724_v62, 0.0  ;;  %v4921_v62 = vor.u32 1.1754944e-38, %v4920_v55  ;;  %v4928_v7 = vadd.f32 %v12602_v28, %v4927_v51  ;;  %v15118_v55 = vld [vmem:[#allocation75_spill] sm:$0xff] }
 0x6eb   : > { %v4908_v0 = vmul.f32 %v4907_v16, %v4578_v29  ;;  %v4935_v16 = vand.u32 2147483648, %v12310_v1  ;;  %v4942_v29 = vmul.f32 %v12622_v60, %v4941_v61  ;;  %v12661_v1 = vpop.xlane.xlu1 %3980 }
 0x6ec   : > { %v12627_v54 = vpop.eup %6445  ;;  %v4222_v63 = vmul.f32 1.442695, %v4103_v50  ;;  %v4922_v20 = vsel %vm4919_vm7, %v4921_v62, %v4917_v25  ;;  %v4932_v53 = vsel %vm4931_vm1, %v12602_v28, %v4928_v7  ;;  %v4950_v28 = vand.u32 2147483648, %v12338_v21 }
 0x6ed   : > { %v4402_v8 = vsel %vm3855_vm13, %v12627_v54, 0.0  ;;  %v12643_v42 = vpop.eup %6447  ;;  %v4923_v46 = vmul.f32 %v4922_v20, %v4579_v40  ;;  %v4943_v25 = vadd.f32 %v12622_v60, %v4942_v29  ;;  %v15119_v40 = vld [vmem:[#allocation70_spill] sm:$0xff] }
 0x6ee   : > { %6449 = vpow2.f32 %v4222_v63  ;;  %4403 = vadd.xlane.f32.xlu2 %v4402_v8  ;;  %v4452_v63 = vand.u32 7, %v15118_v55  ;;  %v4955_v8 = vmul.f32 %v12643_v42, %v12619_v58  ;;  %v4453_v43 = vand.u32 7, %v15119_v40 }
 0x6ef   : > { %5618 = vxpose.xlu0.b32.cont [3/16] (narrow) %v4908_v0, 8  ;;  %6451 = vrcp.f32 %v12384_v24  ;;  %v4936_v0 = vor.u32 1.1754944e-38, %v4935_v16  ;;  %v4948_v16 = vand.u32 2147483647, %v12338_v21  ;;  %v4947_v55 = vsel %vm4946_vm15, %v12622_v60, %v4943_v25 }
 0x6f0   : > { %vm4516_vm9 = vcmp.eq.s32.totalorder %v15112_v31, %v4452_v63  ;;  %v4956_v62 = vsub.f32 1.0, %v4955_v8  ;;  %6453 = vrcp.f32 %v12412_v44  ;;  %v4951_v63 = vor.u32 1.1754944e-38, %v4950_v28 }
 0x6f1   : > { %v12663_v57 = vpop.xlane.xlu2 %4358  ;;  %v4937_v56 = vsel %vm4934_vm0, %v4936_v0, %v4932_v53  ;;  %v4580_v61 = vsel %vm4516_vm9, %v11804_v9, 0.0  ;;  %vm4949_vm14 = vcmp.eq.f32.partialorder %v4948_v16, 8.507059e+37  ;;  %vm12682_vm2 = vcmp.eq.s32.totalorder %v15112_v31, %v4453_v43 }
 0x6f2   : > { %v4952_v53 = vsel %vm4949_vm14, %v4951_v63, %v4947_v55  ;;  %vm4960_vm3 = vweird.f32 %v12643_v42  ;;  %v4965_v25 = vand.u32 2147483648, %v12619_v58  ;;  %v4978_v21 = vand.u32 2147483647, %v12384_v24 }
 0x6f3   : > { %v12686_v29 = vpop.xlane.xlu1 %4316  ;;  %vm4961_vm5 = vmor %vm4959_vm6, %vm4960_vm3 }
 0x6f4   : > { %v12647_v50 = vpop.eup %6449  ;;  %vm4979_vm0 = vcmp.eq.f32.partialorder %v4978_v21, 8.507059e+37  ;;  %vm5004_vm6 = vweird.f32 %v12686_v29 }
 0x6f5   : > { %v4405_v47 = vsel %vm3855_vm13, %v12647_v50, 0.0  ;;  %v12669_v20 = vpop.eup %6451 }
 0x6f6   : > { %4406 = vadd.xlane.f32.xlu1 %v4405_v47  ;;  %v4957_v47 = vmul.f32 %v12643_v42, %v4956_v62  ;;  %v12689_v0 = vpop.eup %6453  ;;  %vm4975_vm8 = vweird.f32 %v12669_v20 }
 0x6f7   : > { %5619 = vxpose.xlu0.b32.cont [4/16] (narrow) %v4923_v46, 8  ;;  %v4970_v46 = vmul.f32 %v12669_v20, %v12384_v24  ;;  %vm4976_vm1 = vmor %vm4974_vm4, %vm4975_vm8  ;;  %vm4990_vm11 = vweird.f32 %v12689_v0  ;;  %vm5019_vm4 = vweird.f32 %v12458_v19 }
 0x6f8   : > { %vm4991_vm15 = vmor %vm4989_vm12, %vm4990_vm11  ;;  %vm5034_vm12 = vweird.f32 %v12483_v10 }
 0x6f9   : > { %v4029_v39 = vpop.xlane.xlu0 %4028  ;;  %v4971_v60 = vsub.f32 1.0, %v4970_v46 }
 0x6fa   : > { %v4105_v51 = vsub.f32 %v12420_v18, %v4029_v39  ;;  %v4938_v18 = vmul.f32 %v4937_v56, %v4580_v61  ;;  %v4958_v39 = vadd.f32 %v12643_v42, %v4957_v47  ;;  %v4963_v56 = vand.u32 2147483647, %v12619_v58  ;;  %v15122_v61 = vld [vmem:[#allocation81_spill] sm:$0xff] }
 0x6fb   : > { %v4454_v16 = vand.u32 7, %v15122_v61  ;;  %v4985_v58 = vmul.f32 %v12689_v0, %v12412_v44 }
 0x6fc   : > { %v4226_v7 = vmul.f32 1.442695, %v4105_v51  ;;  %v4962_v40 = vsel %vm4961_vm5, %v12643_v42, %v4958_v39  ;;  %vm4964_vm7 = vcmp.eq.f32.partialorder %v4963_v56, 8.507059e+37  ;;  %v15123_v39 = vld [vmem:[#allocation79_spill] sm:$0xff] }
 0x6fd   : > { %vm4518_vm10 = vcmp.eq.s32.totalorder %v15112_v31, %v4454_v16  ;;  %v4986_v55 = vsub.f32 1.0, %v4985_v58 }
 0x6fe   : > { %6455 = vpow2.f32 %v4226_v7  ;;  %v4582_v42 = vsel %vm4518_vm10, %v11882_v22, 0.0 }
 0x6ff   : > { %5620 = vxpose.xlu0.b32.cont [5/16] (narrow) %v4938_v18, 8  ;;  %6457 = vrcp.f32 %v12686_v29  ;;  %v4972_v18 = vmul.f32 %v12669_v20, %v4971_v60  ;;  %v4455_v60 = vand.u32 7, %v15123_v39  ;;  %v4987_v56 = vmul.f32 %v12689_v0, %v4986_v55 }
 0x701   : > { %v4032_v9 = vpop.xlane.xlu2 %4031  ;;  %v4973_v46 = vadd.f32 %v12669_v20, %v4972_v18  ;;  %vm4519_vm9 = vcmp.eq.s32.totalorder %v15112_v31, %v4455_v60  ;;  %v4988_v16 = vadd.f32 %v12689_v0, %v4987_v56 }
 0x702   : > { %v4106_v8 = vsub.f32 %v12442_v49, %v4032_v9  ;;  %v4581_v49 = vsel %vm12682_vm2, %v11842_v35, 0.0  ;;  %v4966_v35 = vor.u32 1.1754944e-38, %v4965_v25  ;;  %v4980_v9 = vand.u32 2147483648, %v12384_v24  ;;  %v12728_v24 = vpop.xlane.xlu1 %3989 }
 0x703   : > { %v4953_v7 = vmul.f32 %v4952_v53, %v4581_v49  ;;  %v4977_v22 = vsel %vm4976_vm1, %v12669_v20, %v4973_v46  ;;  %v4995_v20 = vand.u32 2147483648, %v12412_v44  ;;  %v15124_v46 = vld [vmem:[#allocation84_spill] sm:$0xff]  ;;  %v4992_v21 = vsel %vm4991_vm15, %v12689_v0, %v4988_v16 }
 0x704   : > { %v12694_v51 = vpop.eup %6455  ;;  %v4228_v62 = vmul.f32 1.442695, %v4106_v8  ;;  %v4967_v43 = vsel %vm4964_vm7, %v4966_v35, %v4962_v40  ;;  %v4583_v35 = vsel %vm4519_vm9, %v11920_v5, 0.0  ;;  %v4456_v55 = vand.u32 7, %v15124_v46 }
 0x705   : > { %v4411_v28 = vsel %vm3855_vm13, %v12694_v51, 0.0  ;;  %v12710_v47 = vpop.eup %6457  ;;  %v4968_v53 = vmul.f32 %v4967_v43, %v4582_v42  ;;  %v4993_v43 = vand.u32 2147483647, %v12412_v44  ;;  %v15130_v44 = vld [vmem:[#allocation90_spill] sm:$0xff] }
 0x706   : > { %6459 = vpow2.f32 %v4228_v62  ;;  %4412 = vadd.xlane.f32.xlu2 %v4411_v28  ;;  %v5000_v25 = vmul.f32 %v12710_v47, %v12686_v29  ;;  %v4981_v62 = vor.u32 1.1754944e-38, %v4980_v9  ;;  %vm12749_vm2 = vcmp.eq.s32.totalorder %v15112_v31, %v4456_v55 }
 0x707   : > { %5621 = vxpose.xlu0.b32.cont [6/16] (narrow) %v4953_v7, 8  ;;  %6461 = vrcp.f32 %v12458_v19  ;;  %vm4994_vm14 = vcmp.eq.f32.partialorder %v4993_v43, 8.507059e+37  ;;  %vm5005_vm3 = vweird.f32 %v12710_v47 }
 0x708   : > { %v4982_v61 = vsel %vm4979_vm0, %v4981_v62, %v4977_v22  ;;  %v5001_v18 = vsub.f32 1.0, %v5000_v25  ;;  %6463 = vrcp.f32 %v12483_v10  ;;  %v5008_v62 = vand.u32 2147483647, %v12686_v29  ;;  %vm5006_vm5 = vmor %vm5004_vm6, %vm5005_vm3 }
 0x709   : > { %v12730_v49 = vpop.xlane.xlu2 %4367 }
 0x70a   : > { %v5002_v9 = vmul.f32 %v12710_v47, %v5001_v18  ;;  %v15128_v18 = vld [vmem:[#allocation82_spill] sm:$0xff]  ;;  %vm5009_vm7 = vcmp.eq.f32.partialorder %v5008_v62, 8.507059e+37 }
 0x70c   : > { %v12714_v63 = vpop.eup %6459  ;;  %v5003_v25 = vadd.f32 %v12710_v47, %v5002_v9 }
 0x70d   : > { %v4414_v8 = vsel %vm3855_vm13, %v12714_v63, 0.0  ;;  %v12736_v58 = vpop.eup %6461 }
 0x70e   : > { %4415 = vadd.xlane.f32.xlu1 %v4414_v8  ;;  %v5015_v42 = vmul.f32 %v12736_v58, %v12458_v19  ;;  %v4996_v8 = vor.u32 1.1754944e-38, %v4995_v20  ;;  %v12756_v56 = vpop.eup %6463  ;;  %v4457_v20 = vand.u32 7, %v15128_v18  ;;  %vm5020_vm8 = vweird.f32 %v12736_v58 }
 0x70f   : > { %5622 = vxpose.xlu0.b32.cont [7/16] (narrow) %v4968_v53, 8  ;;  %v12753_v53 = vpop.xlane.xlu1 %4325  ;;  %vm5021_vm1 = vmor %vm5019_vm4, %vm5020_vm8  ;;  %vm5035_vm11 = vweird.f32 %v12756_v56  ;;  %vm5064_vm4 = vweird.f32 %v12517_v11 }
 0x710   : > { %v4997_v60 = vsel %vm4994_vm14, %v4996_v8, %v4992_v21  ;;  %v5016_v0 = vsub.f32 1.0, %v5015_v42  ;;  %vm4521_vm10 = vcmp.eq.s32.totalorder %v15112_v31, %v4457_v20  ;;  %v5025_v42 = vand.u32 2147483648, %v12458_v19  ;;  %vm5036_vm15 = vmor %vm5034_vm12, %vm5035_vm11 }
 0x711   : > { %v4038_v28 = vpop.xlane.xlu0 %4037  ;;  %v5023_v21 = vand.u32 2147483647, %v12458_v19  ;;  %vm5049_vm3 = vweird.f32 %v12753_v53  ;;  %vm5079_vm12 = vweird.f32 %v12536_v38 }
 0x712   : > { %v4108_v7 = vsub.f32 %v12490_v33, %v4038_v28  ;;  %v4983_v33 = vmul.f32 %v4982_v61, %v4583_v35  ;;  %v5010_v28 = vand.u32 2147483648, %v12686_v29  ;;  %v5030_v29 = vmul.f32 %v12756_v56, %v12483_v10 }
 0x713   : > { %v5007_v35 = vsel %vm5006_vm5, %v12710_v47, %v5003_v25  ;;  %v4585_v47 = vsel %vm4521_vm10, %v11989_v36, 0.0  ;;  %vm5024_vm0 = vcmp.eq.f32.partialorder %v5023_v21, 8.507059e+37 }
 0x714   : > { %v4232_v40 = vmul.f32 1.442695, %v4108_v7  ;;  %v5031_v55 = vsub.f32 1.0, %v5030_v29  ;;  %v15131_v29 = vld [vmem:[#allocation86_spill] sm:$0xff] }
 0x716   : > { %6465 = vpow2.f32 %v4232_v40  ;;  %v5017_v40 = vmul.f32 %v12736_v58, %v5016_v0  ;;  %v5026_v0 = vor.u32 1.1754944e-38, %v5025_v42 }
 0x717   : > { %5623 = vxpose.xlu0.b32.cont [8/16] (narrow) %v4983_v33, 8  ;;  %6467 = vrcp.f32 %v12753_v53  ;;  %v12795_v19 = vpop.xlane.xlu1 %3998 }
 0x718   : > { %v5018_v46 = vadd.f32 %v12736_v58, %v5017_v40  ;;  %v5038_v40 = vand.u32 2147483647, %v12483_v10 }
 0x719   : > { %v4041_v5 = vpop.xlane.xlu2 %4040 }
 0x71a   : > { %v4109_v39 = vsub.f32 %v12506_v41, %v4041_v5  ;;  %v4584_v41 = vsel %vm12749_vm2, %v11955_v32, 0.0  ;;  %v5011_v32 = vor.u32 1.1754944e-38, %v5010_v28  ;;  %v5022_v36 = vsel %vm5021_vm1, %v12736_v58, %v5018_v46 }
 0x71b   : > { %v4998_v16 = vmul.f32 %v4997_v60, %v4584_v41  ;;  %v5032_v60 = vmul.f32 %v12756_v56, %v5031_v55  ;;  %v5040_v58 = vand.u32 2147483648, %v12483_v10  ;;  %vm5039_vm14 = vcmp.eq.f32.partialorder %v5038_v40, 8.507059e+37  ;;  %v15134_v40 = vld [vmem:[#allocation91_spill] sm:$0xff] }
 0x71c   : > { %v12761_v22 = vpop.eup %6465  ;;  %v4234_v7 = vmul.f32 1.442695, %v4109_v39  ;;  %v5012_v43 = vsel %vm5009_vm7, %v5011_v32, %v5007_v35  ;;  %v4458_v39 = vand.u32 7, %v15130_v44  ;;  %v4459_v35 = vand.u32 7, %v15131_v29 }
 0x71d   : > { %15127 = vst [vmem:[#allocation87_spill] sm:$0xff] %v12761_v22  ;;  %v4420_v61 = vsel %vm3855_vm13, %v12761_v22, 0.0  ;;  %v12777_v33 = vpop.eup %6467  ;;  %v5013_v5 = vmul.f32 %v5012_v43, %v4585_v47  ;;  %v5033_v41 = vadd.f32 %v12756_v56, %v5032_v60  ;;  %v5041_v55 = vor.u32 1.1754944e-38, %v5040_v58 }
 0x71e   : > { %6469 = vpow2.f32 %v4234_v7  ;;  %4421 = vadd.xlane.f32.xlu2 %v4420_v61  ;;  %v5045_v25 = vmul.f32 %v12777_v33, %v12753_v53  ;;  %vm4522_vm9 = vcmp.eq.s32.totalorder %v15112_v31, %v4458_v39  ;;  %v5027_v7 = vsel %vm5024_vm0, %v5026_v0, %v5022_v36 }
 0x71f   : > { %5624 = vxpose.xlu0.b32.cont [9/16] (narrow) %v4998_v16, 8  ;;  %6471 = vrcp.f32 %v12517_v11  ;;  %v4586_v20 = vsel %vm4522_vm9, %v12025_v3, 0.0  ;;  %v5037_v46 = vsel %vm5036_vm15, %v12756_v56, %v5033_v41  ;;  %vm4523_vm2 = vcmp.eq.s32.totalorder %v15112_v31, %v4459_v35  ;;  %v12818_v21 = vpop.xlane.xlu1 %4334 }
 0x720   : > { %v5046_v61 = vsub.f32 1.0, %v5045_v25  ;;  %6473 = vrcp.f32 %v12536_v38  ;;  %v5042_v3 = vsel %vm5039_vm14, %v5041_v55, %v5037_v46  ;;  %vm5050_vm6 = vweird.f32 %v12777_v33  ;;  %v15133_v25 = vld [vmem:[#allocation92_spill] sm:$0xff] }
 0x721   : > { %v5055_v56 = vand.u32 2147483648, %v12753_v53  ;;  %v5053_v44 = vand.u32 2147483647, %v12753_v53  ;;  %v4460_v36 = vand.u32 7, %v15133_v25  ;;  %vm5051_vm5 = vmor %vm5049_vm3, %vm5050_vm6  ;;  %v5070_v58 = vand.u32 2147483648, %v12517_v11 }
 0x722   : > { %v5047_v32 = vmul.f32 %v12777_v33, %v5046_v61  ;;  %v5085_v55 = vand.u32 2147483648, %v12536_v38  ;;  %vm5094_vm3 = vweird.f32 %v12818_v21  ;;  %v15230_v22 = vand.u32 2147483647, %v12663_v57 }
 0x723   : > { %vm5054_vm7 = vcmp.eq.f32.partialorder %v5053_v44, 8.507059e+37  ;;  %vm4524_vm10 = vcmp.eq.s32.totalorder %v15112_v31, %v4460_v36 }
 0x724   : > { %v12781_v9 = vpop.eup %6469  ;;  %v5048_v42 = vadd.f32 %v12777_v33, %v5047_v32  ;;  %v5086_v25 = vor.u32 1.1754944e-38, %v5085_v55 }
 0x725   : > { %15129 = vst [vmem:[#allocation144_spill] sm:$0xff] %v12781_v9  ;;  %v4423_v8 = vsel %vm3855_vm13, %v12781_v9, 0.0  ;;  %v12801_v16 = vpop.eup %6471 }
 0x726   : > { %4424 = vadd.xlane.f32.xlu1 %v4423_v8  ;;  %v5060_v43 = vmul.f32 %v12801_v16, %v12517_v11  ;;  %v12814_v10 = vpop.eup %6473  ;;  %vm5065_vm8 = vweird.f32 %v12801_v16 }
 0x727   : > { %5625 = vxpose.xlu0.b32.cont [10/16] (narrow) %v5013_v5, 8  ;;  %v4587_v5 = vsel %vm4523_vm2, %v12059_v6, 0.0  ;;  %v5052_v6 = vsel %vm5051_vm5, %v12777_v33, %v5048_v42  ;;  %vm5066_vm1 = vmor %vm5064_vm4, %vm5065_vm8  ;;  %vm5080_vm11 = vweird.f32 %v12814_v10  ;;  %vm4629_vm4 = vweird.f32 %v11641_v17 }
 0x728   : > { %v5061_v47 = vsub.f32 1.0, %v5060_v43  ;;  %v5043_v60 = vmul.f32 %v5042_v3, %v4587_v5  ;;  %v5071_v43 = vor.u32 1.1754944e-38, %v5070_v58  ;;  %vm5081_vm15 = vmor %vm5079_vm12, %vm5080_vm11  ;;  %vm4644_vm12 = vweird.f32 %v11681_v23 }
 0x729   : > { %v4047_v62 = vpop.xlane.xlu0 %4046 }
 0x72a   : > { %v4111_v28 = vsub.f32 %v12542_v14, %v4047_v62  ;;  %v5028_v14 = vmul.f32 %v5027_v7, %v4586_v20  ;;  %v5062_v0 = vmul.f32 %v12801_v16, %v5061_v47  ;;  %v5075_v62 = vmul.f32 %v12814_v10, %v12536_v38 }
 0x72b   : > { %v5068_v20 = vand.u32 2147483647, %v12517_v11  ;;  %v5083_v47 = vand.u32 2147483647, %v12536_v38 }
 0x72c   : > { %v4238_v18 = vmul.f32 1.442695, %v4111_v28  ;;  %v5056_v28 = vor.u32 1.1754944e-38, %v5055_v56  ;;  %v5063_v7 = vadd.f32 %v12801_v16, %v5062_v0  ;;  %v5076_v41 = vsub.f32 1.0, %v5075_v62  ;;  %v15135_v56 = vld [vmem:[#allocation95_spill] sm:$0xff] }
 0x72d   : > { %vm5069_vm0 = vcmp.eq.f32.partialorder %v5068_v20, 8.507059e+37  ;;  %v4462_v5 = vand.u32 7, %v15135_v56  ;;  %vm5084_vm14 = vcmp.eq.f32.partialorder %v5083_v47, 8.507059e+37  ;;  %v5100_v0 = vand.u32 2147483648, %v12818_v21  ;;  %v15138_v56 = vld [vmem:[#allocation175_spill] sm:$0xff] }
 0x72e   : > { %6475 = vpow2.f32 %v4238_v18  ;;  %v5057_v53 = vsel %vm5054_vm7, %v5056_v28, %v5052_v6  ;;  %v4588_v18 = vsel %vm4524_vm10, %v12093_v37, 0.0  ;;  %v5077_v29 = vmul.f32 %v12814_v10, %v5076_v41 }
 0x72f   : > { %5626 = vxpose.xlu0.b32.cont [11/16] (narrow) %v5028_v14, 8  ;;  %6477 = vrcp.f32 %v12818_v21  ;;  %v5058_v33 = vmul.f32 %v5057_v53, %v4588_v18  ;;  %v4461_v14 = vand.u32 7, %v15134_v40  ;;  %v5067_v32 = vsel %vm5066_vm1, %v12801_v16, %v5063_v7  ;;  %v15136_v53 = vld [vmem:[#allocation93_spill] sm:$0xff] }
 0x730   : > { %6479 = vrcp.f32 %v11641_v17  ;;  %v5072_v37 = vsel %vm5069_vm0, %v5071_v43, %v5067_v32  ;;  %v5078_v11 = vadd.f32 %v12814_v10, %v5077_v29  ;;  %vm4526_vm2 = vcmp.eq.s32.totalorder %v15112_v31, %v4462_v5  ;;  %v15137_v32 = vld [vmem:[#allocation8_spill] sm:$0xff] }
 0x731   : > { %vm4525_vm9 = vcmp.eq.s32.totalorder %v15112_v31, %v4461_v14  ;;  %6481 = vrcp.f32 %v11681_v23  ;;  %v4590_v62 = vsel %vm4526_vm2, %v12161_v34, 0.0  ;;  %v5098_v28 = vand.u32 2147483647, %v12818_v21 }
 0x732   : > { %v4589_v3 = vsel %vm4525_vm9, %v12127_v26, 0.0  ;;  %v4463_v7 = vand.u32 7, %v15136_v53  ;;  %6483 = vrcp.f32 %v11719_v4  ;;  %v5101_v20 = vor.u32 1.1754944e-38, %v5100_v0  ;;  %v15140_v53 = vld [vmem:[#allocation56_spill] sm:$0xff] }
 0x733   : > { %v5073_v16 = vmul.f32 %v5072_v37, %v4589_v3  ;;  %vm5099_vm7 = vcmp.eq.f32.partialorder %v5098_v28, 8.507059e+37  ;;  %v4635_v29 = vand.u32 2147483648, %v11641_v17  ;;  %v4432_v43 = vand.u32 7, %v15137_v32 }
 0x734   : > { %v12820_v8 = vpop.eup %6475  ;;  %vm4527_vm10 = vcmp.eq.s32.totalorder %v15112_v31, %v4463_v7  ;;  %6485 = vrcp.f32 %v11759_v15  ;;  %v4680_v32 = vand.u32 2147483648, %v11759_v15 }
 0x735   : > { %15132 = vst [vmem:[#allocation138_spill] sm:$0xff] %v12820_v8  ;;  %v4429_v39 = vsel %vm3855_vm13, %v12820_v8, 0.0  ;;  %v6478_v61 = vpop.eup %6477  ;;  %v4636_v55 = vor.u32 1.1754944e-38, %v4635_v29  ;;  %vm4496_vm9 = vcmp.eq.s32.totalorder %v15112_v31, %v4432_v43  ;;  %6487 = vrcp.f32 %v11801_v45  ;;  %v15143_v43 = vld [vmem:[#allocation176_spill] sm:$0xff] }
 0x736   : > { %4430 = vadd.xlane.f32.xlu2 %v4429_v39  ;;  %v5090_v35 = vmul.f32 %v6478_v61, %v12818_v21  ;;  %v6480_v42 = vpop.eup %6479  ;;  %v5082_v39 = vsel %vm5081_vm15, %v12814_v10, %v5078_v11  ;;  %vm5095_vm6 = vweird.f32 %v6478_v61  ;;  %v4591_v21 = vsel %vm4527_vm10, %v12192_v48, 0.0 }
 0x737   : > { %5627 = vxpose.xlu0.b32.cont [12/16] (narrow) %v5043_v60, 8  ;;  %v4625_v60 = vmul.f32 %v6480_v42, %v11641_v17  ;;  %v5087_v26 = vsel %vm5084_vm14, %v5086_v25, %v5082_v39  ;;  %v6482_v6 = vpop.eup %6481  ;;  %vm5096_vm5 = vmor %vm5094_vm3, %vm5095_vm6  ;;  %vm4630_vm8 = vweird.f32 %v6480_v42  ;;  %v4560_v5 = vsel %vm4496_vm9, %v15138_v56, 0.0 }
 0x738   : > { %v5091_v46 = vsub.f32 1.0, %v5090_v35  ;;  %v5088_v10 = vmul.f32 %v5087_v26, %v4590_v62  ;;  %v4640_v18 = vmul.f32 %v6482_v6, %v11681_v23  ;;  %v6484_v14 = vpop.eup %6483  ;;  %vm4631_vm1 = vmor %vm4629_vm4, %vm4630_vm8  ;;  %vm4645_vm11 = vweird.f32 %v6482_v6 }
 0x739   : > { %v4626_v38 = vsub.f32 1.0, %v4625_v60  ;;  %v4655_v11 = vmul.f32 %v6484_v14, %v11719_v4  ;;  %v15139_v60 = vld [vmem:[#allocation12_spill] sm:$0xff]  ;;  %vm4646_vm15 = vmor %vm4644_vm12, %vm4645_vm11  ;;  %vm4660_vm6 = vweird.f32 %v6484_v14  ;;  %vm4659_vm3 = vweird.f32 %v11719_v4 }
 0x73a   : > { %v5092_v44 = vmul.f32 %v6478_v61, %v5091_v46  ;;  %v4641_v40 = vsub.f32 1.0, %v4640_v18  ;;  %v15141_v18 = vld [vmem:[#allocation14_spill] sm:$0xff]  ;;  %vm4674_vm4 = vweird.f32 %v11759_v15  ;;  %v4681_v56 = vor.u32 1.1754944e-38, %v4680_v32 }
 0x73b   : > { %v4627_v58 = vmul.f32 %v6480_v42, %v4626_v38  ;;  %v4656_v47 = vsub.f32 1.0, %v4655_v11  ;;  %v4678_v11 = vand.u32 2147483647, %v11759_v15  ;;  %vm4689_vm12 = vweird.f32 %v11801_v45 }
 0x73c   : > { %v5093_v36 = vadd.f32 %v6478_v61, %v5092_v44  ;;  %v4642_v37 = vmul.f32 %v6482_v6, %v4641_v40  ;;  %v4648_v44 = vand.u32 2147483647, %v11681_v23 }
 0x73d   : > { %v4657_v25 = vmul.f32 %v6484_v14, %v4656_v47 }
 0x73e   : > { %v5097_v41 = vsel %vm5096_vm5, %v6478_v61, %v5093_v36  ;;  %v4633_v61 = vand.u32 2147483647, %v11641_v17  ;;  %v4643_v3 = vadd.f32 %v6482_v6, %v4642_v37  ;;  %v4650_v17 = vand.u32 2147483648, %v11681_v23  ;;  %vm4661_vm5 = vmor %vm4659_vm3, %vm4660_vm6 }
 0x73f   : > { %5628 = vxpose.xlu0.b32.cont [13/16] (narrow) %v5058_v33, 8  ;;  %v5102_v34 = vsel %vm5099_vm7, %v5101_v20, %v5097_v41  ;;  %v4628_v33 = vadd.f32 %v6480_v42, %v4627_v58  ;;  %vm4649_vm14 = vcmp.eq.f32.partialorder %v4648_v44, 8.507059e+37  ;;  %v4658_v62 = vadd.f32 %v6484_v14, %v4657_v25  ;;  %v15142_v20 = vld [vmem:[#allocation85_spill] sm:$0xff] }
 0x740   : > { %v5103_v35 = vmul.f32 %v5102_v34, %v4591_v21  ;;  %vm4634_vm0 = vcmp.eq.f32.partialorder %v4633_v61, 8.507059e+37  ;;  %v4647_v36 = vsel %vm4646_vm15, %v6482_v6, %v4643_v3  ;;  %v4651_v38 = vor.u32 1.1754944e-38, %v4650_v17 }
 0x741   : > { %v4632_v46 = vsel %vm4631_vm1, %v6480_v42, %v4628_v33  ;;  %v4433_v42 = vand.u32 7, %v15139_v60  ;;  %v4663_v41 = vand.u32 2147483647, %v11719_v4  ;;  %v4434_v6 = vand.u32 7, %v15141_v18 }
 0x742   : > { %v4637_v48 = vsel %vm4634_vm0, %v4636_v55, %v4632_v46  ;;  %v4652_v0 = vsel %vm4649_vm14, %v4651_v38, %v4647_v36  ;;  %6489 = vrcp.f32 %v15142_v20  ;;  %v4662_v40 = vsel %vm4661_vm5, %v6484_v14, %v4658_v62  ;;  %v15144_v55 = vld [vmem:[#allocation21_spill] sm:$0xff]  ;;  %v15147_v38 = vld [vmem:[#allocation15_spill] sm:$0xff] }
 0x743   : > { %v4638_v39 = vmul.f32 %v4637_v48, %v4560_v5  ;;  %vm4497_vm2 = vcmp.eq.s32.totalorder %v15112_v31, %v4433_v42  ;;  %vm4664_vm7 = vcmp.eq.f32.partialorder %v4663_v41, 8.507059e+37  ;;  %vm4498_vm10 = vcmp.eq.s32.totalorder %v15112_v31, %v4434_v6  ;;  %v15145_v48 = vld [vmem:[#allocation98_spill] sm:$0xff]  ;;  %v15146_v42 = vld [vmem:[#allocation177_spill] sm:$0xff]  ;;  %v15149_v6 = vld [vmem:[#allocation24_spill] sm:$0xff] }
 0x744   : > { %v4561_v7 = vsel %vm4497_vm2, %v15140_v53, 0.0  ;;  %v4562_v37 = vsel %vm4498_vm10, %v15143_v43, 0.0  ;;  %v4435_v14 = vand.u32 7, %v15144_v55  ;;  %6491 = vrcp.f32 %v15145_v48 }
 0x745   : > { %v4653_v58 = vmul.f32 %v4652_v0, %v4561_v7  ;;  %vm4679_vm0 = vcmp.eq.f32.partialorder %v4678_v11, 8.507059e+37  ;;  %v4695_v60 = vand.u32 2147483648, %v11801_v45  ;;  %v15148_v0 = vld [vmem:[#allocation89_spill] sm:$0xff]  ;;  %v4710_v18 = vand.u32 2147483648, %v15142_v20 }
 0x746   : > { %vm4499_vm9 = vcmp.eq.s32.totalorder %v15112_v31, %v4435_v14  ;;  %6493 = vrcp.f32 %v15148_v0  ;;  %vm4704_vm3 = vweird.f32 %v15142_v20  ;;  %v4725_v55 = vand.u32 2147483648, %v15145_v48  ;;  %v15152_v14 = vld [vmem:[#allocation178_spill] sm:$0xff] }
 0x747   : > { %5629 = vxpose.xlu0.b32.cont [14/16] (narrow) %v5073_v16, 8  ;;  %v6486_v16 = vpop.eup %6485  ;;  %v4563_v25 = vsel %vm4499_vm9, %v15146_v42, 0.0  ;;  %v4696_v53 = vor.u32 1.1754944e-38, %v4695_v60  ;;  %v4711_v43 = vor.u32 1.1754944e-38, %v4710_v18 }
 0x748   : > { %v4670_v26 = vmul.f32 %v6486_v16, %v11759_v15  ;;  %v6488_v23 = vpop.eup %6487  ;;  %vm4675_vm8 = vweird.f32 %v6486_v16  ;;  %v4726_v42 = vor.u32 1.1754944e-38, %v4725_v55 }
 0x749   : > { %v4685_v33 = vmul.f32 %v6488_v23, %v11801_v45  ;;  %vm4676_vm1 = vmor %vm4674_vm4, %vm4675_vm8  ;;  %vm4690_vm11 = vweird.f32 %v6488_v23  ;;  %vm4719_vm4 = vweird.f32 %v15145_v48 }
 0x74a   : > { %v4671_v28 = vsub.f32 1.0, %v4670_v26  ;;  %v4693_v26 = vand.u32 2147483647, %v11801_v45  ;;  %vm4691_vm15 = vmor %vm4689_vm12, %vm4690_vm11  ;;  %vm4734_vm12 = vweird.f32 %v15148_v0 }
 0x74b   : > { %v4686_v61 = vsub.f32 1.0, %v4685_v33  ;;  %v4708_v33 = vand.u32 2147483647, %v15142_v20 }
 0x74c   : > { %v4672_v34 = vmul.f32 %v6486_v16, %v4671_v28  ;;  %vm4694_vm14 = vcmp.eq.f32.partialorder %v4693_v26, 8.507059e+37 }
 0x74d   : > { %v4687_v3 = vmul.f32 %v6488_v23, %v4686_v61 }
 0x74f   : > { %5630 = vxpose.xlu0.b32.cont [15/16] (narrow) %v5088_v10, 8  ;;  %v4665_v10 = vand.u32 2147483648, %v11719_v4  ;;  %v6490_v4 = vpop.eup %6489  ;;  %v4688_v44 = vadd.f32 %v6488_v23, %v4687_v3 }
 0x750   : > { %v4700_v47 = vmul.f32 %v6490_v4, %v15142_v20  ;;  %v6492_v15 = vpop.eup %6491  ;;  %vm4705_vm6 = vweird.f32 %v6490_v4 }
 0x751   : > { %v4666_v21 = vor.u32 1.1754944e-38, %v4665_v10  ;;  %v4715_v28 = vmul.f32 %v6492_v15, %v15145_v48  ;;  %v4692_v10 = vsel %vm4691_vm15, %v6488_v23, %v4688_v44  ;;  %v6494_v45 = vpop.eup %6493  ;;  %vm4706_vm5 = vmor %vm4704_vm3, %vm4705_vm6  ;;  %vm4720_vm8 = vweird.f32 %v6492_v15 }
 0x752   : > { %v4697_v7 = vsel %vm4694_vm14, %v4696_v53, %v4692_v10  ;;  %v4730_v61 = vmul.f32 %v6494_v45, %v15148_v0  ;;  %vm4735_vm11 = vweird.f32 %v6494_v45  ;;  %v15156_v53 = vld [vmem:[#allocation11_spill] sm:$0xff] }
 0x753   : > { %v4667_v29 = vsel %vm4664_vm7, %v4666_v21, %v4662_v40  ;;  %v15150_v21 = vld [vmem:[#allocation27_spill] sm:$0xff]  ;;  %vm4709_vm7 = vcmp.eq.f32.partialorder %v4708_v33, 8.507059e+37  ;;  %vm4736_vm15 = vmor %vm4734_vm12, %vm4735_vm11 }
 0x754   : > { %v4668_v46 = vmul.f32 %v4667_v29, %v4562_v37  ;;  %v4437_v23 = vand.u32 7, %v15150_v21  ;;  %v15151_v29 = vld [vmem:[#allocation106_spill] sm:$0xff] }
 0x755   : > { %6495 = vrcp.f32 %v15151_v29  ;;  %v4755_v21 = vand.u32 2147483648, %v15151_v29  ;;  %vm4749_vm3 = vweird.f32 %v15151_v29 }
 0x756   : > { %vm4501_vm10 = vcmp.eq.s32.totalorder %v15112_v31, %v4437_v23  ;;  %v15158_v23 = vld [vmem:[#allocation71_spill] sm:$0xff] }
 0x757   : > { %5631 = vxpose.xlu0.b32.end [16/16] (narrow) %v5103_v35, 8  ;;  %v4673_v35 = vadd.f32 %v6486_v16, %v4672_v34  ;;  %v4565_v3 = vsel %vm4501_vm10, %v15152_v14, 0.0  ;;  %v4756_v14 = vor.u32 1.1754944e-38, %v4755_v21 }
 0x759   : > { %v4677_v17 = vsel %vm4676_vm1, %v6486_v16, %v4673_v35  ;;  %v4436_v16 = vand.u32 7, %v15147_v38  ;;  %vm4721_vm1 = vmor %vm4719_vm4, %vm4720_vm8  ;;  %v4740_v38 = vand.u32 2147483648, %v15148_v0 }
 0x75a   : > { %v4682_v5 = vsel %vm4679_vm0, %v4681_v56, %v4677_v17  ;;  %v15153_v56 = vld [vmem:[#allocation22_spill] sm:$0xff] }
 0x75b   : > { %v4683_v36 = vmul.f32 %v4682_v5, %v4563_v25  ;;  %vm4500_vm2 = vcmp.eq.s32.totalorder %v15112_v31, %v4436_v16  ;;  %v6496_v20 = vpop.eup %6495  ;;  %v15154_v5 = vld [vmem:[#allocation38_spill] sm:$0xff]  ;;  %v15155_v16 = vld [vmem:[#allocation179_spill] sm:$0xff] }
 0x75c   : > { %v4564_v34 = vsel %vm4500_vm2, %v15149_v6, 0.0  ;;  %6497 = vrcp.f32 %v15154_v5  ;;  %v4741_v6 = vor.u32 1.1754944e-38, %v4740_v38  ;;  %vm4750_vm6 = vweird.f32 %v6496_v20 }
 0x75d   : > { %v4698_v40 = vmul.f32 %v4697_v7, %v4564_v34  ;;  %v15157_v7 = vld [vmem:[#allocation188_spill] sm:$0xff]  ;;  %vm4764_vm4 = vweird.f32 %v15154_v5 }
 0x75e   : > { %6499 = vrcp.f32 %v15157_v7  ;;  %vm4779_vm12 = vweird.f32 %v15157_v7 }
 0x760   : > { %5584 = vxpose.xlu1.b32.start [1/16] (narrow) %v4638_v39, 8  ;;  %v4701_v39 = vsub.f32 1.0, %v4700_v47  ;;  %v4723_v47 = vand.u32 2147483647, %v15145_v48 }
 0x762   : > { %v4702_v62 = vmul.f32 %v6490_v4, %v4701_v39  ;;  %v4745_v39 = vmul.f32 %v6496_v20, %v15151_v29  ;;  %vm4724_vm0 = vcmp.eq.f32.partialorder %v4723_v47, 8.507059e+37  ;;  %v6498_v48 = vpop.eup %6497 }
 0x763   : > { %vm4765_vm8 = vweird.f32 %v6498_v48 }
 0x764   : > { %v4703_v41 = vadd.f32 %v6490_v4, %v4702_v62 }
 0x766   : > { %v4707_v32 = vsel %vm4706_vm5, %v6490_v4, %v4703_v41  ;;  %v4438_v4 = vand.u32 7, %v15153_v56  ;;  %vm4751_vm5 = vmor %vm4749_vm3, %vm4750_vm6  ;;  %v4770_v56 = vand.u32 2147483648, %v15154_v5 }
 0x767   : > { %v4712_v37 = vsel %vm4709_vm7, %v4711_v43, %v4707_v32  ;;  %v15159_v43 = vld [vmem:[#allocation35_spill] sm:$0xff] }
 0x768   : > { %5585 = vxpose.xlu1.b32.cont [2/16] (narrow) %v4653_v58, 8  ;;  %v4716_v58 = vsub.f32 1.0, %v4715_v28  ;;  %v4713_v17 = vmul.f32 %v4712_v37, %v4565_v3  ;;  %vm4502_vm9 = vcmp.eq.s32.totalorder %v15112_v31, %v4438_v4  ;;  %v4738_v28 = vand.u32 2147483647, %v15148_v0  ;;  %v6500_v0 = vpop.eup %6499  ;;  %v15160_v37 = vld [vmem:[#allocation189_spill] sm:$0xff]  ;;  %v15161_v4 = vld [vmem:[#allocation46_spill] sm:$0xff] }
 0x769   : > { %v4566_v62 = vsel %vm4502_vm9, %v15155_v16, 0.0  ;;  %6501 = vrcp.f32 %v15160_v37  ;;  %v4771_v16 = vor.u32 1.1754944e-38, %v4770_v56  ;;  %vm4780_vm11 = vweird.f32 %v6500_v0 }
 0x76a   : > { %v4717_v35 = vmul.f32 %v6492_v15, %v4716_v58  ;;  %v4760_v58 = vmul.f32 %v6498_v48, %v15154_v5  ;;  %vm4739_vm14 = vcmp.eq.f32.partialorder %v4738_v28, 8.507059e+37  ;;  %vm4794_vm3 = vweird.f32 %v15160_v37 }
 0x76c   : > { %v4718_v11 = vadd.f32 %v6492_v15, %v4717_v35 }
 0x76e   : > { %v4722_v60 = vsel %vm4721_vm1, %v6492_v15, %v4718_v11  ;;  %v4439_v15 = vand.u32 7, %v15156_v53  ;;  %vm4766_vm1 = vmor %vm4764_vm4, %vm4765_vm8  ;;  %v4785_v53 = vand.u32 2147483648, %v15157_v7 }
 0x76f   : > { %v4727_v25 = vsel %vm4724_vm0, %v4726_v42, %v4722_v60  ;;  %v15162_v42 = vld [vmem:[#allocation28_spill] sm:$0xff] }
 0x770   : > { %5586 = vxpose.xlu1.b32.cont [3/16] (narrow) %v4668_v46, 8  ;;  %v4731_v46 = vsub.f32 1.0, %v4730_v61  ;;  %v4728_v10 = vmul.f32 %v4727_v25, %v4566_v62  ;;  %vm4503_vm2 = vcmp.eq.s32.totalorder %v15112_v31, %v4439_v15  ;;  %v4753_v61 = vand.u32 2147483647, %v15151_v29  ;;  %v6502_v29 = vpop.eup %6501  ;;  %v15163_v25 = vld [vmem:[#allocation78_spill] sm:$0xff]  ;;  %v15164_v15 = vld [vmem:[#allocation123_spill] sm:$0xff] }
 0x771   : > { %v4567_v35 = vsel %vm4503_vm2, %v15158_v23, 0.0  ;;  %6503 = vrcp.f32 %v15163_v25  ;;  %v4786_v21 = vor.u32 1.1754944e-38, %v4785_v53  ;;  %vm4795_vm6 = vweird.f32 %v6502_v29 }
 0x772   : > { %v4732_v44 = vmul.f32 %v6494_v45, %v4731_v46  ;;  %v4775_v46 = vmul.f32 %v6500_v0, %v15157_v7  ;;  %vm4754_vm7 = vcmp.eq.f32.partialorder %v4753_v61, 8.507059e+37  ;;  %6505 = vrcp.f32 %v12515_v2 }
 0x773   : > { %vm4809_vm4 = vweird.f32 %v15163_v25 }
 0x774   : > { %v4733_v26 = vadd.f32 %v6494_v45, %v4732_v44 }
 0x776   : > { %v4737_v18 = vsel %vm4736_vm15, %v6494_v45, %v4733_v26  ;;  %v4440_v45 = vand.u32 7, %v15159_v43  ;;  %vm4781_vm15 = vmor %vm4779_vm12, %vm4780_vm11  ;;  %v15166_v43 = vld [vmem:[#allocation180_spill] sm:$0xff]  ;;  %vm4824_vm12 = vweird.f32 %v12515_v2 }
 0x777   : > { %v4742_v34 = vsel %vm4739_vm14, %v4741_v6, %v4737_v18  ;;  %v15165_v6 = vld [vmem:[#allocation42_spill] sm:$0xff] }
 0x778   : > { %5587 = vxpose.xlu1.b32.cont [4/16] (narrow) %v4683_v36, 8  ;;  %v4746_v36 = vsub.f32 1.0, %v4745_v39  ;;  %v4743_v32 = vmul.f32 %v4742_v34, %v4567_v35  ;;  %vm4504_vm10 = vcmp.eq.s32.totalorder %v15112_v31, %v4440_v45  ;;  %v4768_v39 = vand.u32 2147483647, %v15154_v5  ;;  %v6504_v5 = vpop.eup %6503 }
 0x779   : > { %v4568_v44 = vsel %vm4504_vm10, %v15161_v4, 0.0  ;;  %vm4810_vm8 = vweird.f32 %v6504_v5 }
 0x77a   : > { %v4747_v41 = vmul.f32 %v6496_v20, %v4746_v36  ;;  %v4790_v36 = vmul.f32 %v6502_v29, %v15160_v37  ;;  %vm4769_vm0 = vcmp.eq.f32.partialorder %v4768_v39, 8.507059e+37 }
 0x77c   : > { %v4748_v33 = vadd.f32 %v6496_v20, %v4747_v41 }
 0x77e   : > { %v4752_v55 = vsel %vm4751_vm5, %v6496_v20, %v4748_v33  ;;  %v4441_v20 = vand.u32 7, %v15162_v42  ;;  %v4805_v33 = vmul.f32 %v6504_v5, %v15163_v25  ;;  %vm4796_vm5 = vmor %vm4794_vm3, %vm4795_vm6  ;;  %v15169_v42 = vld [vmem:[#allocation77_spill] sm:$0xff] }
 0x77f   : > { %v4757_v3 = vsel %vm4754_vm7, %v4756_v14, %v4752_v55  ;;  %v15168_v14 = vld [vmem:[#allocation118_spill] sm:$0xff] }
 0x780   : > { %5588 = vxpose.xlu1.b32.cont [5/16] (narrow) %v4698_v40, 8  ;;  %v4761_v40 = vsub.f32 1.0, %v4760_v58  ;;  %v4758_v60 = vmul.f32 %v4757_v3, %v4568_v44  ;;  %vm4505_vm9 = vcmp.eq.s32.totalorder %v15112_v31, %v4441_v20  ;;  %v4783_v58 = vand.u32 2147483647, %v15157_v7  ;;  %v12954_v7 = vpop.eup %6505 }
 0x781   : > { %v4569_v41 = vsel %vm4505_vm9, %v15164_v15, 0.0  ;;  %v4806_v61 = vsub.f32 1.0, %v4805_v33  ;;  %6507 = vrcp.f32 %v15168_v14  ;;  %vm4825_vm11 = vweird.f32 %v12954_v7  ;;  %v15173_v33 = vld [vmem:[#allocation182_spill] sm:$0xff] }
 0x782   : > { %v4762_v11 = vmul.f32 %v6498_v48, %v4761_v40  ;;  %vm4784_vm14 = vcmp.eq.f32.partialorder %v4783_v58, 8.507059e+37  ;;  %vm4839_vm3 = vweird.f32 %v15168_v14 }
 0x783   : > { %v4807_v3 = vmul.f32 %v6504_v5, %v4806_v61  ;;  %v15175_v61 = vld [vmem:[#allocation44_spill] sm:$0xff] }
 0x784   : > { %v4763_v47 = vadd.f32 %v6498_v48, %v4762_v11  ;;  %v4798_v11 = vand.u32 2147483647, %v15160_v37 }
 0x785   : > { %v4808_v44 = vadd.f32 %v6504_v5, %v4807_v3 }
 0x786   : > { %v4767_v38 = vsel %vm4766_vm1, %v6498_v48, %v4763_v47  ;;  %v4442_v48 = vand.u32 7, %v15165_v6  ;;  %v4820_v47 = vmul.f32 %v12954_v7, %v12515_v2  ;;  %vm4799_vm7 = vcmp.eq.f32.partialorder %v4798_v11, 8.507059e+37  ;;  %vm4811_vm1 = vmor %vm4809_vm4, %vm4810_vm8 }
 0x787   : > { %v4772_v62 = vsel %vm4769_vm0, %v4771_v16, %v4767_v38  ;;  %v12965_v39 = vpop.eup %6507  ;;  %v15171_v16 = vld [vmem:[#allocation48_spill] sm:$0xff]  ;;  %v4812_v15 = vsel %vm4811_vm1, %v6504_v5, %v4808_v44  ;;  %v4830_v5 = vand.u32 2147483648, %v12515_v2  ;;  %v15177_v44 = vld [vmem:[#allocation102_spill] sm:$0xff] }
 0x788   : > { %5589 = vxpose.xlu1.b32.cont [6/16] (narrow) %v4713_v17, 8  ;;  %v4776_v17 = vsub.f32 1.0, %v4775_v46  ;;  %v4773_v18 = vmul.f32 %v4772_v62, %v4569_v41  ;;  %vm4506_vm2 = vcmp.eq.s32.totalorder %v15112_v31, %v4442_v48  ;;  %v4444_v62 = vand.u32 7, %v15171_v16 }
 0x789   : > { %v4570_v45 = vsel %vm4506_vm2, %v15166_v43, 0.0  ;;  %v4835_v53 = vmul.f32 %v12965_v39, %v15168_v14  ;;  %vm4840_vm6 = vweird.f32 %v12965_v39 }
 0x78a   : > { %v4777_v26 = vmul.f32 %v6500_v0, %v4776_v17  ;;  %vm4508_vm9 = vcmp.eq.s32.totalorder %v15112_v31, %v4444_v62 }
 0x78b   : > { %v4836_v6 = vsub.f32 1.0, %v4835_v53 }
 0x78c   : > { %v4778_v28 = vadd.f32 %v6500_v0, %v4777_v26  ;;  %v4813_v26 = vand.u32 2147483647, %v15163_v25 }
 0x78d   : > { %v4837_v43 = vmul.f32 %v12965_v39, %v4836_v6  ;;  %v15181_v6 = vld [vmem:[#allocation50_spill] sm:$0xff] }
 0x78e   : > { %v4782_v40 = vsel %vm4781_vm15, %v6500_v0, %v4778_v28  ;;  %v15167_v0 = vld [vmem:[#allocation36_spill] sm:$0xff]  ;;  %v15172_v28 = vld [vmem:[#allocation101_spill] sm:$0xff]  ;;  %vm4814_vm0 = vcmp.eq.f32.partialorder %v4813_v26, 8.507059e+37  ;;  %vm4826_vm15 = vmor %vm4824_vm12, %vm4825_vm11 }
 0x78f   : > { %v4787_v23 = vsel %vm4784_vm14, %v4786_v21, %v4782_v40  ;;  %v4443_v55 = vand.u32 7, %v15167_v0  ;;  %6509 = vrcp.f32 %v15172_v28  ;;  %v4572_v40 = vsel %vm4508_vm9, %v15173_v33, 0.0  ;;  %v15174_v21 = vld [vmem:[#allocation187_spill] sm:$0xff] }
 0x790   : > { %5590 = vxpose.xlu1.b32.cont [7/16] (narrow) %v4728_v10, 8  ;;  %v4791_v10 = vsub.f32 1.0, %v4790_v36  ;;  %v4788_v46 = vmul.f32 %v4787_v23, %v4570_v45  ;;  %v4083_v23 = vsub.f32 %v15174_v21, %v12558_v30  ;;  %v4838_v30 = vadd.f32 %v12965_v39, %v4837_v43 }
 0x791   : > { %vm4507_vm10 = vcmp.eq.s32.totalorder %v15112_v31, %v4443_v55  ;;  %vm4854_vm4 = vweird.f32 %v15172_v28  ;;  %v4860_v53 = vand.u32 2147483648, %v15172_v28 }
 0x792   : > { %v4792_v34 = vmul.f32 %v6502_v29, %v4791_v10  ;;  %v4571_v20 = vsel %vm4507_vm10, %v15169_v42, 0.0  ;;  %v15178_v42 = vld [vmem:[#allocation58_spill] sm:$0xff] }
 0x794   : > { %v4793_v35 = vadd.f32 %v6502_v29, %v4792_v34  ;;  %v4828_v34 = vand.u32 2147483647, %v12515_v2  ;;  %v4182_v2 = vmul.f32 1.442695, %v4083_v23 }
 0x795   : > { %v12983_v48 = vpop.eup %6509 }
 0x796   : > { %v4797_v17 = vsel %vm4796_vm5, %v6502_v29, %v4793_v35  ;;  %v15170_v29 = vld [vmem:[#allocation80_spill] sm:$0xff]  ;;  %v4850_v45 = vmul.f32 %v12983_v48, %v15172_v28  ;;  %vm4829_vm14 = vcmp.eq.f32.partialorder %v4828_v34, 8.507059e+37  ;;  %vm4841_vm5 = vmor %vm4839_vm3, %vm4840_vm6  ;;  %vm4855_vm8 = vweird.f32 %v12983_v48 }
 0x797   : > { %v4080_v36 = vsub.f32 %v15170_v29, %v12534_v27  ;;  %v4447_v34 = vand.u32 7, %v15181_v6  ;;  %vm4856_vm1 = vmor %vm4854_vm4, %vm4855_vm8 }
 0x798   : > { %5591 = vxpose.xlu1.b32.cont [8/16] (narrow) %v4743_v32, 8  ;;  %v4800_v32 = vand.u32 2147483648, %v15160_v37  ;;  %v4821_v37 = vsub.f32 1.0, %v4820_v47  ;;  %v4851_v3 = vsub.f32 1.0, %v4850_v45  ;;  %v4843_v47 = vand.u32 2147483647, %v15168_v14 }
 0x799   : > { %v4176_v58 = vmul.f32 1.442695, %v4080_v36  ;;  %vm4511_vm9 = vcmp.eq.s32.totalorder %v15112_v31, %v4447_v34 }
 0x79a   : > { %v4801_v56 = vor.u32 1.1754944e-38, %v4800_v32  ;;  %v4822_v10 = vmul.f32 %v12954_v7, %v4821_v37  ;;  %v4445_v32 = vand.u32 7, %v15175_v61  ;;  %v4086_v37 = vsub.f32 %v15177_v44, %v12594_v59  ;;  %v15183_v61 = vld [vmem:[#allocation96_spill] sm:$0xff] }
 0x79b   : > { %6511 = vpow2.f32 %v4176_v58  ;;  %v4852_v29 = vmul.f32 %v12983_v48, %v4851_v3  ;;  %v15180_v58 = vld [vmem:[#allocation103_spill] sm:$0xff] }
 0x79c   : > { %v4802_v4 = vsel %vm4799_vm7, %v4801_v56, %v4797_v17  ;;  %vm4509_vm2 = vcmp.eq.s32.totalorder %v15112_v31, %v4445_v32  ;;  %v4845_v17 = vand.u32 2147483648, %v15168_v14  ;;  %v15176_v56 = vld [vmem:[#allocation184_spill] sm:$0xff]  ;;  %6513 = vpow2.f32 %v4182_v2 }
 0x79d   : > { %v4803_v38 = vmul.f32 %v4802_v4, %v4571_v20  ;;  %v4573_v4 = vsel %vm4509_vm2, %v15176_v56, 0.0  ;;  %v4446_v20 = vand.u32 7, %v15178_v42  ;;  %v4842_v14 = vsel %vm4841_vm5, %v12965_v39, %v4838_v30  ;;  %v15179_v39 = vld [vmem:[#allocation31_spill] sm:$0xff]  ;;  %v15184_v2 = vld [vmem:[#allocation100_spill] sm:$0xff] }
 0x79e   : > { %v4846_v36 = vor.u32 1.1754944e-38, %v4845_v17  ;;  %vm4844_vm7 = vcmp.eq.f32.partialorder %v4843_v47, 8.507059e+37  ;;  %v4853_v62 = vadd.f32 %v12983_v48, %v4852_v29  ;;  %v4092_v32 = vsub.f32 %v15183_v61, %v12728_v24  ;;  %v15185_v17 = vld [vmem:[#allocation76_spill] sm:$0xff] }
 0x79f   : > { %vm4510_vm10 = vcmp.eq.s32.totalorder %v15112_v31, %v4446_v20 }
 0x7a0   : > { %5592 = vxpose.xlu1.b32.cont [9/16] (narrow) %v4758_v60, 8  ;;  %v4815_v60 = vand.u32 2147483648, %v15163_v25  ;;  %v12979_v25 = vpop.xlane.xlu1 %4007  ;;  %v4847_v16 = vsel %vm4844_vm7, %v4846_v36, %v4842_v14  ;;  %v4857_v33 = vsel %vm4856_vm1, %v12983_v48, %v4853_v62 }
 0x7a1   : > { %v12997_v55 = vpop.eup %6511  ;;  %v4098_v56 = vsub.f32 %v15185_v17, %v12979_v25  ;;  %v15187_v25 = vld [vmem:[#allocation109_spill] sm:$0xff]  ;;  %v15192_v17 = vld [vmem:[#allocation124_spill] sm:$0xff] }
 0x7a2   : > { %v4816_v41 = vor.u32 1.1754944e-38, %v4815_v60  ;;  %v4336_v26 = vsel %vm3855_vm13, %v12997_v55, 0.0  ;;  %v13015_v59 = vpop.eup %6513 }
 0x7a4   : > { %v4817_v27 = vsel %vm4814_vm0, %v4816_v41, %v4812_v15  ;;  %v4574_v41 = vsel %vm4510_vm10, %v15179_v39, 0.0 }
 0x7a5   : > { %v4818_v35 = vmul.f32 %v4817_v27, %v4572_v40  ;;  %v4089_v27 = vsub.f32 %v15180_v58, %v12661_v1  ;;  %v4861_v40 = vor.u32 1.1754944e-38, %v4860_v53  ;;  %v15182_v1 = vld [vmem:[#allocation186_spill] sm:$0xff] }
 0x7a8   : > { %5593 = vxpose.xlu1.b32.cont [10/16] (narrow) %v4773_v18, 8  ;;  %v4823_v18 = vadd.f32 %v12954_v7, %v4822_v10  ;;  %v4858_v10 = vand.u32 2147483647, %v15172_v28  ;;  %v4194_v28 = vmul.f32 1.442695, %v4089_v27  ;;  %v15188_v27 = vld [vmem:[#allocation116_spill] sm:$0xff] }
 0x7aa   : > { %v4827_v11 = vsel %vm4826_vm15, %v12954_v7, %v4823_v18  ;;  %v13004_v7 = vpop.xlane.xlu1 %4343  ;;  %v4848_v18 = vmul.f32 %v4847_v16, %v4574_v41  ;;  %vm4859_vm0 = vcmp.eq.f32.partialorder %v4858_v10, 8.507059e+37 }
 0x7ab   : > { %v4862_v21 = vsel %vm4859_vm0, %v4861_v40, %v4857_v33  ;;  %v13081_v40 = vpop.xlane.xlu2 %4376 }
 0x7b0   : > { %5594 = vxpose.xlu1.b32.cont [11/16] (narrow) %v4788_v46, 8  ;;  %v4831_v46 = vor.u32 1.1754944e-38, %v4830_v5  ;;  %v4345_v5 = vsel %vm3855_vm13, %v13015_v59, 0.0 }
 0x7b2   : > { %v4832_v0 = vsel %vm4829_vm14, %v4831_v46, %v4827_v11  ;;  %v4017_v15 = vpop.xlane.xlu1 %4016  ;;  %v4200_v11 = vmul.f32 1.442695, %v4092_v32 }
 0x7b3   : > { %v4833_v60 = vmul.f32 %v4832_v0, %v4573_v4  ;;  %v4095_v0 = vsub.f32 %v15184_v2, %v12795_v19 }
 0x7b5   : > { %v4206_v24 = vmul.f32 1.442695, %v4095_v0  ;;  %v13087_v0 = vpop.trf.xlu0 }
 0x7b6   : > { %15191 = vst [vmem:[#allocation137_spill] sm:$0xff] %v13087_v0 }
 0x7b8   : > { %5595 = vxpose.xlu1.b32.cont [12/16] (narrow) %v4803_v38, 8  ;;  %v4188_v38 = vmul.f32 1.442695, %v4086_v37  ;;  %v4212_v37 = vmul.f32 1.442695, %v4098_v56 }
 0x7ba   : > { %6515 = vpow2.f32 %v4188_v38  ;;  %v13035_v45 = vpop.xlane.xlu1 %4352 }
 0x7bb   : > { %6517 = vpow2.f32 %v4194_v28 }
 0x7bc   : > { %6519 = vpow2.f32 %v4200_v11 }
 0x7bd   : > { %6521 = vpow2.f32 %v4206_v24 }
 0x7be   : > { %6523 = vpow2.f32 %v4212_v37 }
 0x7c0   : > { %5596 = vxpose.xlu1.b32.cont [13/16] (narrow) %v4818_v35, 8  ;;  %v13030_v23 = vpop.eup %6515  ;;  %v4575_v35 = vsel %vm4511_vm9, %v15182_v1, 0.0  ;;  %v4386_v1 = vpop.xlane.xlu2 %4385 }
 0x7c1   : > { %v4863_v43 = vmul.f32 %v4862_v21, %v4575_v35  ;;  %v4354_v48 = vsel %vm3855_vm13, %v13030_v23, 0.0  ;;  %v13039_v46 = vpop.eup %6517  ;;  %v5355_v24 = vand.u32 2147483648, %v4386_v1  ;;  %v5353_v56 = vand.u32 2147483647, %v4386_v1 }
 0x7c2   : > { %v4026_v30 = vpop.xlane.xlu1 %4025  ;;  %v4363_v3 = vsel %vm3855_vm13, %v13039_v46, 0.0  ;;  %v13045_v47 = vpop.eup %6519 }
 0x7c3   : > { %v4372_v4 = vsel %vm3855_vm13, %v13045_v47, 0.0  ;;  %v13053_v19 = vpop.eup %6521  ;;  %v4104_v36 = vsub.f32 %v15187_v25, %v4026_v30  ;;  %vm5354_vm15 = vcmp.eq.f32.partialorder %v5353_v56, 8.507059e+37 }
 0x7c4   : > { %v4381_v20 = vsel %vm3855_vm13, %v13053_v19, 0.0  ;;  %v13058_v14 = vpop.eup %6523 }
 0x7c5   : > { %v4390_v38 = vsel %vm3855_vm13, %v13058_v14, 0.0  ;;  %v4224_v16 = vmul.f32 1.442695, %v4104_v36 }
 0x7c8   : > { %4337 = vadd.xlane.f32.xlu0 %v4336_v26  ;;  %5597 = vxpose.xlu1.b32.cont [14/16] (narrow) %v4833_v60, 8  ;;  %v15186_v60 = vld [vmem:[#allocation119_spill] sm:$0xff] }
 0x7c9   : > { %v4101_v42 = vsub.f32 %v15186_v60, %v4017_v15 }
 0x7ca   : > { %v13051_v44 = vpop.xlane.xlu1 %4361 }
 0x7cb   : > { %v4218_v29 = vmul.f32 1.442695, %v4101_v42 }
 0x7cd   : > { %6525 = vpow2.f32 %v4218_v29 }
 0x7ce   : > { %6527 = vpow2.f32 %v4224_v16 }
 0x7d0   : > { %4346 = vadd.xlane.f32.xlu0 %v4345_v5  ;;  %5598 = vxpose.xlu1.b32.cont [15/16] (narrow) %v4848_v18, 8 }
 0x7d2   : > { %v4035_v26 = vpop.xlane.xlu1 %4034 }
 0x7d3   : > { %v13065_v10 = vpop.eup %6525  ;;  %v4107_v53 = vsub.f32 %v12467_v12, %v4035_v26 }
 0x7d4   : > { %v4399_v15 = vsel %vm3855_vm13, %v13065_v10, 0.0  ;;  %v13070_v58 = vpop.eup %6527 }
 0x7d5   : > { %v4230_v39 = vmul.f32 1.442695, %v4107_v53  ;;  %v4408_v6 = vsel %vm3855_vm13, %v13070_v58, 0.0  ;;  %v15194_v53 = vld [vmem:[#allocation121_spill] sm:$0xff] }
 0x7d7   : > { %6529 = vpow2.f32 %v4230_v39  ;;  %v15195_v39 = vld [vmem:[#allocation37_spill] sm:$0xff] }
 0x7d8   : > { %4355 = vadd.xlane.f32.xlu0 %v4354_v48  ;;  %5599 = vxpose.xlu1.b32.end [16/16] (narrow) %v4863_v43, 8 }
 0x7da   : > { %v13063_v62 = vpop.xlane.xlu1 %4370 }
 0x7dd   : > { %v13075_v5 = vpop.eup %6529 }
 0x7de   : > { %15189 = vst [vmem:[#allocation57_spill] sm:$0xff] %v13075_v5  ;;  %v4417_v12 = vsel %vm3855_vm13, %v13075_v5, 0.0 }
 0x7e0   : > { %4364 = vadd.xlane.f32.xlu0 %v4363_v3 }
 0x7e2   : > { %v4044_v41 = vpop.xlane.xlu1 %4043 }
 0x7e3   : > { %v4110_v18 = vsub.f32 %v15188_v27, %v4044_v41  ;;  %v4481_v41 = vand.u32 7, %v15195_v39 }
 0x7e5   : > { %v4236_v34 = vmul.f32 1.442695, %v4110_v18  ;;  %vm4545_vm7 = vcmp.eq.s32.totalorder %v15112_v31, %v4481_v41  ;;  %v5128_v41 = vand.u32 2147483647, %v15192_v17 }
 0x7e7   : > { %6531 = vpow2.f32 %v4236_v34 }
 0x7e8   : > { %4373 = vadd.xlane.f32.xlu0 %v4372_v4  ;;  %6533 = vrcp.f32 %v4386_v1  ;;  %v15193_v4 = vld [vmem:[#allocation99_spill] sm:$0xff] }
 0x7e9   : > { %v4480_v37 = vand.u32 7, %v15193_v4 }
 0x7ea   : > { %v13085_v21 = vpop.xlane.xlu1 %4379 }
 0x7eb   : > { %vm4544_vm14 = vcmp.eq.s32.totalorder %v15112_v31, %v4480_v37 }
 0x7ed   : > { %v13079_v33 = vpop.eup %6531 }
 0x7ee   : > { %15190 = vst [vmem:[#allocation131_spill] sm:$0xff] %v13079_v33  ;;  %v4426_v28 = vsel %vm3855_vm13, %v13079_v33, 0.0  ;;  %v6534_v61 = vpop.eup %6533  ;;  %vm5349_vm13 = vweird.f32 %v4386_v1 }
 0x7ef   : > { %v5345_v32 = vmul.f32 %v6534_v61, %v4386_v1  ;;  %vm5350_vm11 = vweird.f32 %v6534_v61 }
 0x7f0   : > { %4382 = vadd.xlane.f32.xlu0 %v4381_v20  ;;  %vm5351_vm12 = vmor %vm5349_vm13, %vm5350_vm11  ;;  %v5356_v20 = vor.u32 1.1754944e-38, %v5355_v24  ;;  %vm5124_vm11 = vweird.f32 %v15192_v17 }
 0x7f1   : > { %v5346_v48 = vsub.f32 1.0, %v5345_v32 }
 0x7f2   : > { %v4389_v35 = vpop.xlane.xlu1 %4388 }
 0x7f3   : > { %6535 = vrcp.f32 %v4389_v35  ;;  %v5347_v2 = vmul.f32 %v6534_v61, %v5346_v48  ;;  %vm5364_vm6 = vweird.f32 %v4389_v35  ;;  %v5368_v16 = vand.u32 2147483647, %v4389_v35 }
 0x7f4   : > { %6537 = vrcp.f32 %v15192_v17 }
 0x7f5   : > { %v5348_v3 = vadd.f32 %v6534_v61, %v5347_v2  ;;  %vm5369_vm5 = vcmp.eq.f32.partialorder %v5368_v16, 8.507059e+37 }
 0x7f7   : > { %v5352_v42 = vsel %vm5351_vm12, %v6534_v61, %v5348_v3  ;;  %v15197_v3 = vld [vmem:[#allocation10_spill] sm:$0xff]  ;;  %vm5129_vm12 = vcmp.eq.f32.partialorder %v5128_v41, 8.507059e+37 }
 0x7f8   : > { %4391 = vadd.xlane.f32.xlu0 %v4390_v38  ;;  %v5357_v25 = vsel %vm5354_vm15, %v5356_v20, %v5352_v42  ;;  %v5370_v38 = vand.u32 2147483648, %v4389_v35  ;;  %v4464_v24 = vand.u32 7, %v15197_v3  ;;  %v5143_v3 = vand.u32 2147483647, %v13004_v7 }
 0x7f9   : > { %v6536_v43 = vpop.eup %6535 }
 0x7fa   : > { %v5360_v11 = vmul.f32 %v6536_v43, %v4389_v35  ;;  %vm5365_vm2 = vweird.f32 %v6536_v43  ;;  %v13092_v36 = vpop.eup %6537  ;;  %v5371_v34 = vor.u32 1.1754944e-38, %v5370_v38  ;;  %vm4528_vm1 = vcmp.eq.s32.totalorder %v15112_v31, %v4464_v24 }
 0x7fb   : > { %vm5366_vm3 = vmor %vm5364_vm6, %vm5365_vm2  ;;  %v5120_v18 = vmul.f32 %v13092_v36, %v15192_v17  ;;  %vm5125_vm0 = vweird.f32 %v13092_v36  ;;  %vm5139_vm2 = vweird.f32 %v13004_v7 }
 0x7fc   : > { %v5361_v30 = vsub.f32 1.0, %v5360_v11  ;;  %v15196_v11 = vld [vmem:[#allocation129_spill] sm:$0xff]  ;;  %vm5126_vm13 = vmor %vm5124_vm11, %vm5125_vm0 }
 0x7fd   : > { %v5121_v61 = vsub.f32 1.0, %v5120_v18  ;;  %v4609_v2 = vsel %vm4545_vm7, %v15196_v11, 0.0  ;;  %v15198_v18 = vld [vmem:[#allocation16_spill] sm:$0xff] }
 0x7fe   : > { %v5362_v60 = vmul.f32 %v6536_v43, %v5361_v30 }
 0x7ff   : > { %v5122_v4 = vmul.f32 %v13092_v36, %v5121_v61 }
 0x800   : > { %4400 = vadd.xlane.f32.xlu0 %v4399_v15  ;;  %v5363_v29 = vadd.f32 %v6536_v43, %v5362_v60  ;;  %v4608_v15 = vsel %vm4544_vm14, %v15194_v53, 0.0 }
 0x801   : > { %v5358_v27 = vmul.f32 %v5357_v25, %v4608_v15  ;;  %v5123_v38 = vadd.f32 %v13092_v36, %v5122_v4  ;;  %v5130_v15 = vand.u32 2147483648, %v15192_v17 }
 0x808   : > { %4409 = vadd.xlane.f32.xlu0 %v4408_v6  ;;  %v5367_v6 = vsel %vm5366_vm3, %v6536_v43, %v5363_v29  ;;  %vm5144_vm3 = vcmp.eq.f32.partialorder %v5143_v3, 8.507059e+37 }
 0x809   : > { %v5372_v35 = vsel %vm5369_vm5, %v5371_v34, %v5367_v6  ;;  %v4465_v6 = vand.u32 7, %v15198_v18  ;;  %v15202_v18 = vld [vmem:[#allocation25_spill] sm:$0xff] }
 0x80a   : > { %v5373_v30 = vmul.f32 %v5372_v35, %v4609_v2  ;;  %v5145_v2 = vand.u32 2147483648, %v13004_v7 }
 0x80b   : > { %vm4529_vm15 = vcmp.eq.s32.totalorder %v15112_v31, %v4465_v6  ;;  %v4467_v6 = vand.u32 7, %v15202_v18 }
 0x80d   : > { %vm13178_vm0 = vcmp.eq.s32.totalorder %v15112_v31, %v4467_v6 }
 0x810   : > { %4418 = vadd.xlane.f32.xlu0 %v4417_v12 }
 0x818   : > { %4427 = vadd.xlane.f32.xlu0 %v4426_v28 }
 0x83b   : > { %v4338_v26 = vpop.xlane.xlu0 %4337 }
 0x83c   : > { %6539 = vrcp.f32 %v4338_v26  ;;  %v5115_v56 = vand.u32 2147483648, %v4338_v26  ;;  %v5113_v60 = vand.u32 2147483647, %v4338_v26  ;;  %vm5109_vm8 = vweird.f32 %v4338_v26 }
 0x83d   : > { %6541 = vrcp.f32 %v13004_v7 }
 0x83e   : > { %v5116_v20 = vor.u32 1.1754944e-38, %v5115_v56  ;;  %vm5114_vm9 = vcmp.eq.f32.partialorder %v5113_v60, 8.507059e+37 }
 0x841   : > { %5680 = vxpose.xlu0.b32.start [1/16] (narrow) %v5358_v27, 8 }
 0x842   : > { %v6540_v12 = vpop.eup %6539 }
 0x843   : > { %v5105_v28 = vmul.f32 %v6540_v12, %v4338_v26  ;;  %v13100_v1 = vpop.xlane.xlu0 %4346  ;;  %v13102_v32 = vpop.eup %6541  ;;  %vm5110_vm10 = vweird.f32 %v6540_v12  ;;  %v4592_v26 = vsel %vm4528_vm1, %v12997_v55, 0.0  ;;  %v5131_v55 = vor.u32 1.1754944e-38, %v5130_v15 }
 0x844   : > { %6543 = vrcp.f32 %v13100_v1  ;;  %v5135_v37 = vmul.f32 %v13102_v32, %v13004_v7  ;;  %vm5111_vm4 = vmor %vm5109_vm8, %vm5110_vm10  ;;  %vm5140_vm14 = vweird.f32 %v13102_v32  ;;  %v5160_v15 = vand.u32 2147483648, %v13100_v1 }
 0x845   : > { %v5106_v48 = vsub.f32 1.0, %v5105_v28  ;;  %6545 = vrcp.f32 %v12596_v52  ;;  %v5127_v28 = vsel %vm5126_vm13, %v13092_v36, %v5123_v38  ;;  %vm5141_vm6 = vmor %vm5139_vm2, %vm5140_vm14  ;;  %vm5154_vm10 = vweird.f32 %v13100_v1 }
 0x846   : > { %v5136_v16 = vsub.f32 1.0, %v5135_v37  ;;  %v5132_v17 = vsel %vm5129_vm12, %v5131_v55, %v5127_v28  ;;  %6547 = vrcp.f32 %v13035_v45  ;;  %v5158_v41 = vand.u32 2147483647, %v13100_v1  ;;  %v13167_v28 = vpop.xlane.xlu2 %4394 }
 0x847   : > { %v5107_v43 = vmul.f32 %v6540_v12, %v5106_v48  ;;  %6549 = vrcp.f32 %v12663_v57  ;;  %vm5184_vm12 = vweird.f32 %v13035_v45 }
 0x848   : > { %v5137_v34 = vmul.f32 %v13102_v32, %v5136_v16  ;;  %6551 = vrcp.f32 %v13051_v44  ;;  %vm5159_vm1 = vcmp.eq.f32.partialorder %v5158_v41, 8.507059e+37 }
 0x849   : > { %v5108_v42 = vadd.f32 %v6540_v12, %v5107_v43  ;;  %5681 = vxpose.xlu0.b32.cont [2/16] (narrow) %v5373_v30, 8  ;;  %v15199_v30 = vld [vmem:[#allocation115_spill] sm:$0xff]  ;;  %v15200_v43 = vld [vmem:[#allocation18_spill] sm:$0xff]  ;;  %6553 = vrcp.f32 %v12730_v49 }
 0x84a   : > { %v13115_v53 = vpop.eup %6543  ;;  %v5138_v61 = vadd.f32 %v13102_v32, %v5137_v34  ;;  %v4593_v36 = vsel %vm4529_vm15, %v15199_v30, 0.0  ;;  %v4466_v56 = vand.u32 7, %v15200_v43 }
 0x84b   : > { %v13111_v29 = vpop.xlane.xlu0 %4355  ;;  %v5112_v25 = vsel %vm5111_vm4, %v6540_v12, %v5108_v42  ;;  %v5150_v12 = vmul.f32 %v13115_v53, %v13100_v1  ;;  %v13133_v11 = vpop.eup %6545  ;;  %v5133_v24 = vmul.f32 %v5132_v17, %v4593_v36  ;;  %v5146_v42 = vor.u32 1.1754944e-38, %v5145_v2 }
 0x84c   : > { %v5117_v39 = vsel %vm5114_vm9, %v5116_v20, %v5112_v25  ;;  %v5165_v4 = vmul.f32 %v13133_v11, %v12596_v52  ;;  %v5142_v60 = vsel %vm5141_vm6, %v13102_v32, %v5138_v61  ;;  %v13144_v20 = vpop.eup %6547  ;;  %vm4530_vm5 = vcmp.eq.s32.totalorder %v15112_v31, %v4466_v56 }
 0x84d   : > { %v5118_v27 = vmul.f32 %v5117_v39, %v4592_v26  ;;  %v5151_v48 = vsub.f32 1.0, %v5150_v12  ;;  %v5147_v25 = vsel %vm5144_vm3, %v5146_v42, %v5142_v60  ;;  %vm5155_vm7 = vweird.f32 %v13115_v53  ;;  %v15201_v26 = vld [vmem:[#allocation41_spill] sm:$0xff]  ;;  %v13172_v17 = vpop.eup %6549 }
 0x84e   : > { %v5166_v38 = vsub.f32 1.0, %v5165_v4  ;;  %v5180_v32 = vmul.f32 %v13144_v20, %v13035_v45  ;;  %v4594_v39 = vsel %vm4530_vm5, %v15201_v26, 0.0  ;;  %vm13161_vm8 = vmor %vm5154_vm10, %vm5155_vm7  ;;  %6555 = vrcp.f32 %v13111_v29  ;;  %v13174_v61 = vpop.eup %6551  ;;  %v13354_v8 = vpop.xlane.xlu2 %4403 }
 0x84f   : > { %5648 = vxpose.xlu2.b32.start [1/16] (narrow) %v5118_v27, 8  ;;  %v5152_v37 = vmul.f32 %v13115_v53, %v5151_v48  ;;  %v5148_v27 = vmul.f32 %v5147_v25, %v4594_v39  ;;  %v5161_v1 = vor.u32 1.1754944e-38, %v5160_v15  ;;  %vm5169_vm4 = vweird.f32 %v12596_v52  ;;  %v13182_v30 = vpop.eup %6553  ;;  %v15207_v15 = vld [vmem:[#allocation29_spill] sm:$0xff]  ;;  %v15218_v39 = vld [vmem:[#allocation104_spill] sm:$0xff] }
 0x850   : > { %v5167_v12 = vmul.f32 %v13133_v11, %v5166_v38  ;;  %v5181_v48 = vsub.f32 1.0, %v5180_v32  ;;  %v5173_v36 = vand.u32 2147483647, %v12596_v52  ;;  %6557 = vrcp.f32 %v13167_v28 }
 0x851   : > { %v5153_v16 = vadd.f32 %v13115_v53, %v5152_v37  ;;  %vm5170_vm9 = vweird.f32 %v13133_v11  ;;  %v5188_v56 = vand.u32 2147483647, %v13035_v45  ;;  %v5190_v4 = vand.u32 2147483648, %v13035_v45 }
 0x852   : > { %v5168_v43 = vadd.f32 %v13133_v11, %v5167_v12  ;;  %v5210_v60 = vmul.f32 %v13172_v17, %v12663_v57  ;;  %v5225_v42 = vmul.f32 %v13174_v61, %v13051_v44  ;;  %6559 = vrcp.f32 %v13063_v62  ;;  %vm13209_vm11 = vmor %vm5169_vm4, %vm5170_vm9 }
 0x853   : > { %v13128_v35 = vpop.xlane.xlu0 %4364  ;;  %v5157_v55 = vsel %vm13161_vm8, %v13115_v53, %v5153_v16  ;;  %v5175_v53 = vand.u32 2147483648, %v12596_v52  ;;  %v4595_v25 = vsel %vm13178_vm0, %v13015_v59, 0.0  ;;  %v5182_v38 = vmul.f32 %v13144_v20, %v5181_v48  ;;  %v13218_v59 = vpop.xlane.xlu1 %4397 }
 0x854   : > { %v13193_v37 = vpop.eup %6555  ;;  %v5255_v16 = vmul.f32 %v13182_v30, %v12730_v49  ;;  %v4468_v26 = vand.u32 7, %v15207_v15  ;;  %vm13213_vm13 = vcmp.eq.f32.partialorder %v5173_v36, 8.507059e+37  ;;  %v5172_v52 = vsel %vm13209_vm11, %v13133_v11, %v5168_v43 }
 0x855   : > { %v5195_v18 = vmul.f32 %v13193_v37, %v13111_v29  ;;  %vm5185_vm15 = vweird.f32 %v13144_v20  ;;  %v5191_v34 = vor.u32 1.1754944e-38, %v5190_v4  ;;  %v5211_v12 = vsub.f32 1.0, %v5210_v60  ;;  %v15216_v4 = vld [vmem:[#allocation13_spill] sm:$0xff] }
 0x856   : > { %v13225_v6 = vpop.eup %6557  ;;  %vm13229_vm14 = vcmp.eq.f32.partialorder %v5188_v56, 8.507059e+37  ;;  %v5256_v36 = vsub.f32 1.0, %v5255_v16  ;;  %vm13235_vm2 = vcmp.eq.s32.totalorder %v15112_v31, %v4468_v26  ;;  %6561 = vrcp.f32 %v13218_v59  ;;  %vm13268_vm6 = vmor %vm5184_vm12, %vm5185_vm15 }
 0x857   : > { %5649 = vxpose.xlu2.b32.cont [2/16] (narrow) %v5133_v24, 8  ;;  %v5162_v24 = vsel %vm5159_vm1, %v5161_v1, %v5157_v55  ;;  %v5226_v55 = vsub.f32 1.0, %v5225_v42  ;;  %v5183_v1 = vadd.f32 %v13144_v20, %v5182_v38  ;;  %v4469_v60 = vand.u32 7, %v15216_v4  ;;  %v15217_v38 = vld [vmem:[#allocation47_spill] sm:$0xff] }
 0x858   : > { %v5163_v32 = vmul.f32 %v5162_v24, %v4595_v25  ;;  %v13239_v11 = vpop.eup %6559  ;;  %v5220_v24 = vand.u32 2147483648, %v12663_v57  ;;  %v5390_v42 = vmul.f32 %v13225_v6, %v13167_v28  ;;  %v5196_v25 = vsub.f32 1.0, %v5195_v18 }
 0x859   : > { %v4470_v16 = vand.u32 7, %v15217_v38  ;;  %v5227_v15 = vmul.f32 %v13174_v61, %v5226_v55  ;;  %v5235_v26 = vand.u32 2147483648, %v13051_v44  ;;  %v4596_v41 = vsel %vm13235_vm2, %v15218_v39, 0.0 }
 0x85a   : > { %v13262_v18 = vmul.f32 %v13239_v11, %v13063_v62  ;;  %v13272_v55 = vor.u32 1.1754944e-38, %v5220_v24  ;;  %vm13277_vm3 = vcmp.eq.s32.totalorder %v15112_v31, %v4469_v60  ;;  %v5197_v38 = vmul.f32 %v13193_v37, %v5196_v25 }
 0x85b   : > { %v13148_v7 = vpop.xlane.xlu0 %4373  ;;  %v5187_v45 = vsel %vm13268_vm6, %v13144_v20, %v5183_v1  ;;  %vm13286_vm5 = vcmp.eq.s32.totalorder %v15112_v31, %v4470_v16  ;;  %vm5215_vm7 = vweird.f32 %v13172_v17  ;;  %vm5214_vm10 = vweird.f32 %v12663_v57 }
 0x85c   : > { %v13290_v39 = vpop.eup %6561  ;;  %v5192_v25 = vsel %vm13229_vm14, %v5191_v34, %v5187_v45  ;;  %v5198_v16 = vadd.f32 %v13193_v37, %v5197_v38  ;;  %vm5200_vm8 = vweird.f32 %v13193_v37  ;;  %vm5394_vm4 = vweird.f32 %v13167_v28  ;;  %v15226_v45 = vld [vmem:[#allocation105_spill] sm:$0xff] }
 0x85d   : > { %v5405_v34 = vmul.f32 %v13290_v39, %v13218_v59  ;;  %vm5199_vm1 = vweird.f32 %v13111_v29  ;;  %v5203_v38 = vand.u32 2147483647, %v13111_v29  ;;  %vm5230_vm12 = vweird.f32 %v13174_v61 }
 0x85e   : > { %vm13338_vm0 = vmor %vm5199_vm1, %vm5200_vm8  ;;  %vm5395_vm15 = vweird.f32 %v13225_v6  ;;  %v5293_v57 = vand.u32 2147483647, %v13148_v7 }
 0x85f   : > { %5650 = vxpose.xlu2.b32.cont [3/16] (narrow) %v5148_v27, 8  ;;  %v5176_v27 = vor.u32 1.1754944e-38, %v5175_v53  ;;  %vm5204_vm14 = vcmp.eq.f32.partialorder %v5203_v38, 8.507059e+37  ;;  %vm13396_vm1 = vmor %vm5214_vm10, %vm5215_vm7  ;;  %vm5409_vm7 = vweird.f32 %v13218_v59 }
 0x861   : > { %v5177_v56 = vsel %vm13213_vm13, %v5176_v27, %v5172_v52  ;;  %v5257_v27 = vmul.f32 %v13182_v30, %v5256_v36  ;;  %v5265_v52 = vand.u32 2147483648, %v12730_v49  ;;  %vm13360_vm13 = vcmp.eq.f32.partialorder %v15230_v22, 8.507059e+37 }
 0x862   : > { %v5178_v4 = vmul.f32 %v5177_v56, %v4596_v41  ;;  %v5391_v56 = vsub.f32 1.0, %v5390_v42  ;;  %v13296_v41 = vadd.f32 %v13174_v61, %v5227_v15  ;;  %v13298_v42 = vor.u32 1.1754944e-38, %v5235_v26  ;;  %v15225_v26 = vld [vmem:[#allocation125_spill] sm:$0xff] }
 0x863   : > { %v13187_v3 = vpop.xlane.xlu0 %4382  ;;  %v13305_v20 = vadd.f32 %v13182_v30, %v5257_v27  ;;  %v13307_v1 = vor.u32 1.1754944e-38, %v5265_v52  ;;  %v4598_v27 = vsel %vm13286_vm5, %v13030_v23, 0.0  ;;  %v5205_v23 = vand.u32 2147483648, %v13111_v29 }
 0x864   : > { %v5392_v52 = vmul.f32 %v13225_v6, %v5391_v56  ;;  %v4482_v56 = vand.u32 7, %v15226_v45 }
 0x865   : > { %v5206_v33 = vor.u32 1.1754944e-38, %v5205_v23 }
 0x866   : > { %vm13373_vm6 = vcmp.eq.s32.totalorder %v15112_v31, %v4482_v56  ;;  %v5393_v22 = vadd.f32 %v13225_v6, %v5392_v52 }
 0x867   : > { %5651 = vxpose.xlu2.b32.cont [4/16] (narrow) %v5163_v32, 8  ;;  %v5212_v32 = vmul.f32 %v13172_v17, %v5211_v12  ;;  %v4597_v12 = vsel %vm13277_vm3, %v15225_v26, 0.0  ;;  %vm5229_vm3 = vweird.f32 %v13051_v44  ;;  %v15243_v26 = vld [vmem:[#allocation19_spill] sm:$0xff] }
 0x868   : > { %v5193_v24 = vmul.f32 %v5192_v25, %v4597_v12  ;;  %v5202_v25 = vsel %vm13338_vm0, %v13193_v37, %v5198_v16  ;;  %v15229_v12 = vld [vmem:[#allocation54_spill] sm:$0xff]  ;;  %v5406_v37 = vsub.f32 1.0, %v5405_v34 }
 0x869   : > { %v13293_v60 = vadd.f32 %v13172_v17, %v5212_v32  ;;  %v5398_v32 = vand.u32 2147483647, %v13167_v28  ;;  %v4471_v45 = vand.u32 7, %v15229_v12  ;;  %v5207_v23 = vsel %vm5204_vm14, %v5206_v33, %v5202_v25  ;;  %v15246_v12 = vld [vmem:[#allocation110_spill] sm:$0xff] }
 0x86b   : > { %v13243_v43 = vpop.xlane.xlu0 %4391  ;;  %vm13386_vm8 = vcmp.eq.s32.totalorder %v15112_v31, %v4471_v45  ;;  %vm13400_vm0 = vcmp.eq.f32.partialorder %v5398_v32, 8.507059e+37  ;;  %v5407_v32 = vmul.f32 %v13290_v39, %v5406_v37  ;;  %v4483_v45 = vand.u32 7, %v15246_v12 }
 0x86c   : > { %6563 = vrcp.f32 %v13243_v43  ;;  %v5385_v0 = vand.u32 2147483648, %v13243_v43  ;;  %v5383_v29 = vand.u32 2147483647, %v13243_v43  ;;  %vm5379_vm11 = vweird.f32 %v13243_v43 }
 0x86d   : > { %6565 = vrcp.f32 %v13148_v7 }
 0x86e   : > { %6567 = vrcp.f32 %v13128_v35  ;;  %vm5384_vm5 = vcmp.eq.f32.partialorder %v5383_v29, 8.507059e+37  ;;  %v5208_v29 = vmul.f32 %v5207_v23, %v4598_v27  ;;  %v15248_v23 = vand.u32 2147483647, %v13051_v44 }
 0x86f   : > { %5652 = vxpose.xlu2.b32.cont [5/16] (narrow) %v5178_v4, 8 }
 0x870   : > { %vm13436_vm10 = vcmp.eq.f32.partialorder %v15248_v23, 8.507059e+37  ;;  %v5248_v23 = vand.u32 2147483647, %v13128_v35 }
 0x872   : > { %v13301_v4 = vpop.eup %6563 }
 0x873   : > { %v5375_v15 = vmul.f32 %v13301_v4, %v13243_v43  ;;  %v13326_v53 = vpop.xlane.xlu0 %4400  ;;  %v13328_v36 = vpop.eup %6565  ;;  %vm5380_vm9 = vweird.f32 %v13301_v4  ;;  %v5386_v43 = vor.u32 1.1754944e-38, %v5385_v0  ;;  %v4610_v0 = vsel %vm13373_vm6, %v13058_v14, 0.0 }
 0x874   : > { %6569 = vrcp.f32 %v13326_v53  ;;  %vm13368_vm2 = vmor %vm5379_vm11, %vm5380_vm9  ;;  %v13381_v38 = vpop.eup %6567  ;;  %vm5410_vm11 = vweird.f32 %v13290_v39  ;;  %vm5290_vm14 = vweird.f32 %v13328_v36  ;;  %vm5289_vm6 = vweird.f32 %v13148_v7 }
 0x875   : > { %v5376_v48 = vsub.f32 1.0, %v5375_v15  ;;  %v5285_v15 = vmul.f32 %v13328_v36, %v13148_v7  ;;  %6571 = vrcp.f32 %v13354_v8  ;;  %vm13412_vm9 = vmor %vm5394_vm4, %vm5395_vm15  ;;  %v5240_v27 = vmul.f32 %v13381_v38, %v13128_v35 }
 0x876   : > { %vm13455_vm15 = vcmp.eq.s32.totalorder %v15112_v31, %v4483_v45 }
 0x877   : > { %v5377_v2 = vmul.f32 %v13301_v4, %v5376_v48  ;;  %5653 = vxpose.xlu2.b32.cont [6/16] (narrow) %v5193_v24, 8  ;;  %v5400_v48 = vand.u32 2147483648, %v13167_v28  ;;  %v5286_v24 = vsub.f32 1.0, %v5285_v15  ;;  %v4472_v15 = vand.u32 7, %v15243_v26  ;;  %v15256_v26 = vld [vmem:[#allocation45_spill] sm:$0xff] }
 0x878   : > { %v5217_v28 = vsel %vm13396_vm1, %v13172_v17, %v13293_v60  ;;  %v5415_v60 = vand.u32 2147483648, %v13218_v59  ;;  %v5241_v12 = vsub.f32 1.0, %v5240_v27 }
 0x879   : > { %v5378_v9 = vadd.f32 %v13301_v4, %v5377_v2  ;;  %v5401_v16 = vor.u32 1.1754944e-38, %v5400_v48  ;;  %v15247_v2 = vld [vmem:[#allocation108_spill] sm:$0xff]  ;;  %v5287_v48 = vmul.f32 %v13328_v36, %v5286_v24  ;;  %vm13443_vm4 = vcmp.eq.s32.totalorder %v15112_v31, %v4472_v15 }
 0x87a   : > { %v13390_v52 = vpop.eup %6569  ;;  %v4599_v14 = vsel %vm13386_vm8, %v15247_v2, 0.0  ;;  %v4484_v15 = vand.u32 7, %v15256_v26  ;;  %vm5294_vm8 = vcmp.eq.f32.partialorder %v5293_v57, 8.507059e+37  ;;  %v15267_v26 = vld [vmem:[#allocation67_spill] sm:$0xff] }
 0x87b   : > { %v5382_v34 = vsel %vm13368_vm2, %v13301_v4, %v5378_v9  ;;  %v5420_v37 = vmul.f32 %v13390_v52, %v13326_v53  ;;  %v13448_v56 = vpop.eup %6571  ;;  %v5408_v9 = vadd.f32 %v13290_v39, %v5407_v32  ;;  %v5288_v2 = vadd.f32 %v13328_v36, %v5287_v48  ;;  %vm13473_vm2 = vmor %vm5229_vm3, %vm5230_vm12  ;;  %v13535_v17 = vpop.xlane.xlu0 %4409 }
 0x87c   : > { %v5387_v4 = vsel %vm5384_vm5, %v5386_v43, %v5382_v34  ;;  %v5397_v43 = vsel %vm13412_vm9, %v13225_v6, %v5393_v22  ;;  %v5413_v6 = vand.u32 2147483647, %v13218_v59  ;;  %v15253_v34 = vld [vmem:[#allocation83_spill] sm:$0xff]  ;;  %v5435_v5 = vmul.f32 %v13448_v56, %v13354_v8  ;;  %vm13492_vm12 = vmor %vm5409_vm7, %vm5410_vm11 }
 0x87d   : > { %v5388_v25 = vmul.f32 %v5387_v4, %v4610_v0  ;;  %v4476_v24 = vand.u32 7, %v15253_v34  ;;  %v13452_v0 = vpop.xlane.xlu1 %4406  ;;  %v5402_v32 = vsel %vm13400_vm0, %v5401_v16, %v5397_v43  ;;  %v5421_v45 = vsub.f32 1.0, %v5420_v37  ;;  %vm5291_vm5 = vmor %vm5289_vm6, %vm5290_vm14 }
 0x87e   : > { %6573 = vrcp.f32 %v13452_v0  ;;  %vm13498_vm3 = vcmp.eq.s32.totalorder %v15112_v31, %v4484_v15  ;;  %v5232_v59 = vsel %vm13473_vm2, %v13174_v61, %v13296_v41  ;;  %v5292_v34 = vsel %vm5291_vm5, %v13328_v36, %v5288_v2  ;;  %v15266_v41 = vld [vmem:[#allocation132_spill] sm:$0xff] }
 0x87f   : > { %5654 = vxpose.xlu2.b32.cont [7/16] (narrow) %v5208_v29, 8  ;;  %5682 = vxpose.xlu0.b32.cont [3/16] (narrow) %v5388_v25, 8  ;;  %v5295_v29 = vand.u32 2147483648, %v13148_v7  ;;  %v5222_v25 = vsel %vm13360_vm13, %v13272_v55, %v5217_v28  ;;  %v15259_v55 = vld [vmem:[#allocation126_spill] sm:$0xff]  ;;  %vm13484_vm13 = vcmp.eq.s32.totalorder %v15112_v31, %v4476_v24  ;;  %6575 = vrcp.f32 %v13187_v3 }
 0x880   : > { %v4611_v33 = vsel %vm13455_vm15, %v15259_v55, 0.0  ;;  %v5223_v28 = vmul.f32 %v5222_v25, %v4599_v14  ;;  %v5412_v7 = vsel %vm13492_vm12, %v13290_v39, %v5408_v9  ;;  %v5242_v14 = vmul.f32 %v13381_v38, %v5241_v12 }
 0x881   : > { %v5403_v43 = vmul.f32 %v5402_v32, %v4611_v33  ;;  %v5296_v48 = vor.u32 1.1754944e-38, %v5295_v29  ;;  %v5422_v37 = vmul.f32 %v13390_v52, %v5421_v45  ;;  %vm5414_vm1 = vcmp.eq.f32.partialorder %v5413_v6, 8.507059e+37  ;;  %v15268_v29 = vld [vmem:[#allocation117_spill] sm:$0xff] }
 0x882   : > { %v5416_v24 = vor.u32 1.1754944e-38, %v5415_v60  ;;  %v4604_v4 = vsel %vm13484_vm13, %v13045_v47, 0.0  ;;  %v4600_v39 = vsel %vm13443_vm4, %v15266_v41, 0.0  ;;  %v5237_v9 = vsel %vm13436_vm10, %v13298_v42, %v5232_v59 }
 0x883   : > { %v5297_v61 = vsel %vm5294_vm8, %v5296_v48, %v5292_v34  ;;  %v4473_v15 = vand.u32 7, %v15267_v26  ;;  %vm5260_vm0 = vweird.f32 %v13182_v30  ;;  %v5436_v6 = vsub.f32 1.0, %v5435_v5 }
 0x884   : > { %v13523_v57 = vmul.f32 %v5297_v61, %v4604_v4  ;;  %v13525_v36 = vpop.eup %6573  ;;  %vm5245_vm9 = vweird.f32 %v13381_v38  ;;  %v4612_v47 = vsel %vm13498_vm3, %v12581_v13, 0.0  ;;  %v5417_v60 = vsel %vm5414_vm1, %v5416_v24, %v5412_v7 }
 0x885   : > { %v5243_v22 = vadd.f32 %v13381_v38, %v5242_v14  ;;  %v5423_v42 = vadd.f32 %v13390_v52, %v5422_v37  ;;  %vm5425_vm7 = vweird.f32 %v13390_v52  ;;  %v4485_v25 = vand.u32 7, %v15268_v29  ;;  %v13538_v32 = vpop.eup %6575  ;;  %v15276_v37 = vld [vmem:[#allocation73_spill] sm:$0xff]  ;;  %v15286_v29 = vld [vmem:[#allocation122_spill] sm:$0xff] }
 0x886   : > { %vm5259_vm10 = vweird.f32 %v12730_v49  ;;  %vm5244_vm4 = vweird.f32 %v13128_v35  ;;  %v5250_v12 = vand.u32 2147483648, %v13128_v35  ;;  %v5430_v13 = vand.u32 2147483648, %v13326_v53 }
 0x887   : > { %5655 = vxpose.xlu2.b32.cont [8/16] (narrow) %v5223_v28, 8  ;;  %5683 = vxpose.xlu0.b32.cont [4/16] (narrow) %v5403_v43, 8  ;;  %v5238_v2 = vmul.f32 %v5237_v9, %v4600_v39  ;;  %vm13544_vm11 = vmor %vm5244_vm4, %vm5245_vm9  ;;  %vm5424_vm15 = vweird.f32 %v13326_v53  ;;  %v5428_v5 = vand.u32 2147483647, %v13326_v53  ;;  %v5418_v55 = vmul.f32 %v5417_v60, %v4612_v47 }
 0x888   : > { %v5437_v33 = vmul.f32 %v13448_v56, %v5436_v6  ;;  %v5450_v16 = vmul.f32 %v13525_v36, %v13452_v0  ;;  %vm13556_vm14 = vmor %vm5424_vm15, %vm5425_vm7  ;;  %6577 = vrcp.f32 %v13535_v17  ;;  %vm13562_vm2 = vcmp.eq.s32.totalorder %v15112_v31, %v4473_v15 }
 0x889   : > { %v5280_v53 = vand.u32 2147483648, %v13063_v62  ;;  %v5330_v28 = vmul.f32 %v13538_v32, %v13187_v3  ;;  %v5247_v43 = vsel %vm13544_vm11, %v13381_v38, %v5243_v22  ;;  %v5427_v27 = vsel %vm13556_vm14, %v13390_v52, %v5423_v42  ;;  %v13592_v52 = vpop.xlane.xlu2 %4412  ;;  %vm13617_vm4 = vmor %vm5259_vm10, %vm5260_vm0 }
 0x88a   : > { %v15275_v48 = vsub.f32 1.0, %v13262_v18  ;;  %v5251_v7 = vor.u32 1.1754944e-38, %v5250_v12  ;;  %v5431_v14 = vor.u32 1.1754944e-38, %v5430_v13  ;;  %v4474_v34 = vand.u32 7, %v15276_v37 }
 0x88b   : > { %v15277_v24 = vand.u32 2147483647, %v12730_v49  ;;  %vm5275_vm12 = vweird.f32 %v13239_v11  ;;  %6579 = vrcp.f32 %v13081_v40  ;;  %vm5249_vm6 = vcmp.eq.f32.partialorder %v5248_v23, 8.507059e+37 }
 0x88c   : > { %v5272_v59 = vmul.f32 %v13239_v11, %v15275_v48  ;;  %vm5429_vm3 = vcmp.eq.f32.partialorder %v5428_v5, 8.507059e+37  ;;  %vm13588_vm5 = vcmp.eq.s32.totalorder %v15112_v31, %v4485_v25  ;;  %v5451_v38 = vsub.f32 1.0, %v5450_v16  ;;  %v15292_v16 = vld [vmem:[#allocation94_spill] sm:$0xff] }
 0x88d   : > { %vm13581_vm13 = vcmp.eq.f32.partialorder %v15277_v24, 8.507059e+37  ;;  %v4601_v61 = vsel %vm13562_vm2, %v13039_v46, 0.0  ;;  %v5252_v41 = vsel %vm5249_vm6, %v5251_v7, %v5247_v43  ;;  %v5432_v39 = vsel %vm5429_vm3, %v5431_v14, %v5427_v27  ;;  %v13664_v27 = vpop.xlane.xlu1 %4415 }
 0x88e   : > { %vm5274_vm8 = vweird.f32 %v13063_v62  ;;  %v5438_v9 = vadd.f32 %v13448_v56, %v5437_v33  ;;  %vm5440_vm1 = vweird.f32 %v13448_v56  ;;  %v5443_v26 = vand.u32 2147483647, %v13354_v8  ;;  %v13601_v6 = vpop.eup %6577 }
 0x88f   : > { %5656 = vxpose.xlu2.b32.cont [9/16] (narrow) %v5238_v2, 8  ;;  %5684 = vxpose.xlu0.b32.cont [5/16] (narrow) %v5418_v55, 8  ;;  %v5331_v15 = vsub.f32 1.0, %v5330_v28  ;;  %vm5439_vm9 = vweird.f32 %v13354_v8  ;;  %v5445_v47 = vand.u32 2147483648, %v13354_v8  ;;  %v4613_v46 = vsel %vm13588_vm5, %v13065_v10, 0.0  ;;  %vm13689_vm3 = vmor %vm5274_vm8, %vm5275_vm12 }
 0x890   : > { %vm13609_vm7 = vcmp.eq.s32.totalorder %v15112_v31, %v4474_v34  ;;  %6581 = vrcp.f32 %v13592_v52  ;;  %v5253_v8 = vmul.f32 %v5252_v41, %v4601_v61  ;;  %v5433_v42 = vmul.f32 %v5432_v39, %v4613_v46  ;;  %vm13629_vm11 = vmor %vm5439_vm9, %vm5440_vm1  ;;  %v15300_v41 = vld [vmem:[#allocation26_spill] sm:$0xff] }
 0x891   : > { %v4486_v25 = vand.u32 7, %v15286_v29  ;;  %v13624_v10 = vadd.f32 %v13239_v11, %v5272_v59  ;;  %6583 = vrcp.f32 %v13085_v21  ;;  %v5452_v49 = vmul.f32 %v13525_v36, %v5451_v38  ;;  %v13638_v2 = vpop.eup %6579 }
 0x892   : > { %v5262_v13 = vsel %vm13617_vm4, %v13182_v30, %v13305_v20  ;;  %vm13640_vm0 = vcmp.eq.f32.partialorder %v5443_v26, 8.507059e+37  ;;  %v5332_v23 = vmul.f32 %v13538_v32, %v5331_v15  ;;  %v5465_v5 = vmul.f32 %v13601_v6, %v13535_v17  ;;  %v15291_v30 = vld [vmem:[#allocation112_spill] sm:$0xff] }
 0x893   : > { %v5442_v55 = vsel %vm13629_vm11, %v13448_v56, %v5438_v9  ;;  %v5446_v33 = vor.u32 1.1754944e-38, %v5445_v47  ;;  %vm5454_vm10 = vweird.f32 %v13452_v0  ;;  %v4602_v20 = vsel %vm13609_vm7, %v15291_v30, 0.0 }
 0x894   : > { %v4479_v44 = vand.u32 7, %v15292_v16  ;;  %v15293_v35 = vand.u32 2147483647, %v13063_v62  ;;  %vm5455_vm14 = vweird.f32 %v13525_v36  ;;  %v5458_v43 = vand.u32 2147483647, %v13452_v0  ;;  %v15311_v16 = vld [vmem:[#allocation127_spill] sm:$0xff] }
 0x895   : > { %v5460_v56 = vand.u32 2147483648, %v13452_v0  ;;  %vm13667_vm2 = vcmp.eq.s32.totalorder %v15112_v31, %v4486_v25  ;;  %v5453_v59 = vadd.f32 %v13525_v36, %v5452_v49  ;;  %v5340_v7 = vand.u32 2147483648, %v13187_v3  ;;  %vm13707_vm12 = vmor %vm5454_vm10, %vm5455_vm14 }
 0x896   : > { %vm13657_vm15 = vcmp.eq.f32.partialorder %v15293_v35, 8.507059e+37  ;;  %v5267_v14 = vsel %vm13581_vm13, %v13307_v1, %v5262_v13  ;;  %v5447_v37 = vsel %vm13640_vm0, %v5446_v33, %v5442_v55  ;;  %v13678_v34 = vpop.eup %6581  ;;  %v5333_v24 = vadd.f32 %v13538_v32, %v5332_v23  ;;  %v15310_v33 = vld [vmem:[#allocation113_spill] sm:$0xff]  ;;  %v13785_v1 = vpop.xlane.xlu2 %4421 }
 0x897   : > { %5657 = vxpose.xlu2.b32.cont [10/16] (narrow) %v5253_v8, 8  ;;  %5685 = vxpose.xlu0.b32.cont [6/16] (narrow) %v5433_v42, 8  ;;  %vm5335_vm6 = vweird.f32 %v13538_v32  ;;  %v5338_v18 = vand.u32 2147483647, %v13187_v3  ;;  %v5466_v38 = vsub.f32 1.0, %v5465_v5  ;;  %v13683_v61 = vpop.eup %6583  ;;  %6585 = vrcp.f32 %v13664_v27  ;;  %v13751_v5 = vpop.xlane.xlu0 %4418 }
 0x898   : > { %v4614_v4 = vsel %vm13667_vm2, %v12627_v54, 0.0  ;;  %v4475_v39 = vand.u32 7, %v15300_v41  ;;  %vm13699_vm13 = vcmp.eq.s32.totalorder %v15112_v31, %v4479_v44  ;;  %vm5334_vm5 = vweird.f32 %v13187_v3  ;;  %v15305_v54 = vld [vmem:[#allocation55_spill] sm:$0xff] }
 0x899   : > { %v5268_v15 = vmul.f32 %v5267_v14, %v4602_v20  ;;  %v5448_v47 = vmul.f32 %v5447_v37, %v4614_v4  ;;  %v4487_v46 = vand.u32 7, %v15305_v54  ;;  %v5300_v60 = vmul.f32 %v13638_v2, %v13081_v40  ;;  %vm5336_vm8 = vmor %vm5334_vm5, %vm5335_vm6 }
 0x89a   : > { %v5480_v22 = vmul.f32 %v13678_v34, %v13592_v52  ;;  %v5341_v0 = vor.u32 1.1754944e-38, %v5340_v7  ;;  %v5277_v8 = vsel %vm13689_vm3, %v13239_v11, %v13624_v10  ;;  %vm5339_vm1 = vcmp.eq.f32.partialorder %v5338_v18, 8.507059e+37 }
 0x89b   : > { %v5467_v3 = vmul.f32 %v13601_v6, %v5466_v38  ;;  %v5457_v42 = vsel %vm13707_vm12, %v13525_v36, %v5453_v59  ;;  %v5337_v29 = vsel %vm5336_vm8, %v13538_v32, %v5333_v24  ;;  %v5281_v25 = vor.u32 1.1754944e-38, %v5280_v53 }
 0x89c   : > { %v5461_v12 = vor.u32 1.1754944e-38, %v5460_v56  ;;  %v4607_v49 = vsel %vm13699_vm13, %v13053_v19, 0.0  ;;  %v5342_v11 = vsel %vm5339_vm1, %v5341_v0, %v5337_v29  ;;  %vm5459_vm9 = vcmp.eq.f32.partialorder %v5458_v43, 8.507059e+37  ;;  %v15319_v0 = vld [vmem:[#allocation134_spill] sm:$0xff] }
 0x89d   : > { %vm13734_vm7 = vcmp.eq.s32.totalorder %v15112_v31, %v4475_v39  ;;  %vm13739_vm4 = vcmp.eq.s32.totalorder %v15112_v31, %v4487_v46  ;;  %v13743_v32 = vmul.f32 %v5342_v11, %v4607_v49  ;;  %v13745_v62 = vpop.eup %6585  ;;  %v5282_v53 = vsel %vm13657_vm15, %v5281_v25, %v5277_v8 }
 0x89e   : > { %v5462_v19 = vsel %vm5459_vm9, %v5461_v12, %v5457_v42  ;;  %v5301_v13 = vsub.f32 1.0, %v5300_v60  ;;  %v5481_v45 = vsub.f32 1.0, %v5480_v22  ;;  %v5468_v23 = vadd.f32 %v13601_v6, %v5467_v3  ;;  %v13900_v42 = vpop.xlane.xlu2 %4430 }
 0x89f   : > { %5658 = vxpose.xlu2.b32.cont [11/16] (narrow) %v5268_v15, 8  ;;  %5686 = vxpose.xlu0.b32.cont [7/16] (narrow) %v5448_v47, 8  ;;  %vm5470_vm11 = vweird.f32 %v13601_v6  ;;  %v5475_v55 = vand.u32 2147483648, %v13535_v17  ;;  %v4603_v30 = vsel %vm13734_vm7, %v15310_v33, 0.0  ;;  %v4615_v20 = vsel %vm13739_vm4, %v12647_v50, 0.0  ;;  %v15316_v47 = vld [vmem:[#allocation88_spill] sm:$0xff] }
 0x8a0   : > { %v4488_v44 = vand.u32 7, %v15311_v16  ;;  %vm5469_vm0 = vweird.f32 %v13535_v17  ;;  %v5473_v35 = vand.u32 2147483647, %v13535_v17  ;;  %v5283_v28 = vmul.f32 %v5282_v53, %v4603_v30 }
 0x8a1   : > { %v5463_v43 = vmul.f32 %v5462_v19, %v4615_v20  ;;  %v5315_v56 = vmul.f32 %v13683_v61, %v13085_v21  ;;  %v5495_v48 = vmul.f32 %v13745_v62, %v13664_v27  ;;  %vm13767_vm10 = vmor %vm5469_vm0, %vm5470_vm11  ;;  %6587 = vrcp.f32 %v13751_v5 }
 0x8a2   : > { %v5302_v50 = vmul.f32 %v13638_v2, %v5301_v13  ;;  %v5482_v7 = vmul.f32 %v13678_v34, %v5481_v45  ;;  %v5472_v17 = vsel %vm13767_vm10, %v13601_v6, %v5468_v23  ;;  %v5476_v14 = vor.u32 1.1754944e-38, %v5475_v55  ;;  %v13848_v45 = vpop.xlane.xlu1 %4424  ;;  %v15328_v55 = vld [vmem:[#allocation49_spill] sm:$0xff] }
 0x8a3   : > { %vm5304_vm15 = vweird.f32 %v13081_v40  ;;  %v5308_v37 = vand.u32 2147483647, %v13081_v40  ;;  %vm5474_vm14 = vcmp.eq.f32.partialorder %v5473_v35, 8.507059e+37  ;;  %vm13780_vm2 = vcmp.eq.s32.totalorder %v15112_v31, %v4488_v44 }
 0x8a4   : > { %vm5305_vm6 = vweird.f32 %v13638_v2  ;;  %v5316_v18 = vsub.f32 1.0, %v5315_v56  ;;  %v5496_v38 = vsub.f32 1.0, %v5495_v48  ;;  %v5477_v4 = vsel %vm5474_vm14, %v5476_v14, %v5472_v17  ;;  %v15332_v48 = vld [vmem:[#allocation60_spill] sm:$0xff] }
 0x8a5   : > { %v5303_v6 = vadd.f32 %v13638_v2, %v5302_v50  ;;  %v5310_v41 = vand.u32 2147483648, %v13081_v40  ;;  %v5483_v39 = vadd.f32 %v13678_v34, %v5482_v7  ;;  %vm5485_vm3 = vweird.f32 %v13678_v34  ;;  %vm13801_vm12 = vmor %vm5304_vm15, %vm5305_vm6 }
 0x8a6   : > { %vm5484_vm13 = vweird.f32 %v13592_v52  ;;  %v5490_v26 = vand.u32 2147483648, %v13592_v52  ;;  %v4616_v15 = vsel %vm13780_vm2, %v13070_v58, 0.0  ;;  %v4477_v54 = vand.u32 7, %v15316_v47 }
 0x8a7   : > { %5659 = vxpose.xlu2.b32.cont [12/16] (narrow) %v5283_v28, 8  ;;  %5687 = vxpose.xlu0.b32.cont [8/16] (narrow) %v5463_v43, 8  ;;  %v13791_v9 = vpop.eup %6587  ;;  %v5488_v60 = vand.u32 2147483647, %v13592_v52  ;;  %6589 = vrcp.f32 %v13785_v1  ;;  %v5478_v22 = vmul.f32 %v5477_v4, %v4616_v15  ;;  %v4489_v8 = vand.u32 7, %v15319_v0  ;;  %vm13809_vm5 = vmor %vm5484_vm13, %vm5485_vm3  ;;  %v15331_v43 = vld [vmem:[#allocation34_spill] sm:$0xff] }
 0x8a8   : > { %v5317_v3 = vmul.f32 %v13683_v61, %v5316_v18  ;;  %v5497_v58 = vmul.f32 %v13745_v62, %v5496_v38  ;;  %vm13814_vm8 = vcmp.eq.f32.partialorder %v5308_v37, 8.507059e+37  ;;  %v5510_v52 = vmul.f32 %v13791_v9, %v13751_v5 }
 0x8a9   : > { %v5307_v29 = vsel %vm13801_vm12, %v13638_v2, %v5303_v6  ;;  %v5487_v25 = vsel %vm13809_vm5, %v13678_v34, %v5483_v39  ;;  %v5311_v12 = vor.u32 1.1754944e-38, %v5310_v41  ;;  %vm5319_vm1 = vweird.f32 %v13085_v21  ;;  %v15335_v6 = vld [vmem:[#allocation120_spill] sm:$0xff] }
 0x8aa   : > { %v5491_v49 = vor.u32 1.1754944e-38, %v5490_v26  ;;  %vm13829_vm9 = vcmp.eq.s32.totalorder %v15112_v31, %v4477_v54  ;;  %v5325_v10 = vand.u32 2147483648, %v13085_v21  ;;  %vm5489_vm7 = vcmp.eq.f32.partialorder %v5488_v60, 8.507059e+37  ;;  %v15336_v26 = vld [vmem:[#allocation130_spill] sm:$0xff] }
 0x8ab   : > { %vm13836_vm4 = vcmp.eq.s32.totalorder %v15112_v31, %v4489_v8  ;;  %v5318_v34 = vadd.f32 %v13683_v61, %v5317_v3  ;;  %vm5320_vm11 = vweird.f32 %v13683_v61  ;;  %v5312_v36 = vsel %vm13814_vm8, %v5311_v12, %v5307_v29  ;;  %v15338_v12 = vld [vmem:[#allocation141_spill] sm:$0xff] }
 0x8ac   : > { %v5492_v53 = vsel %vm5489_vm7, %v5491_v49, %v5487_v25  ;;  %v5498_v13 = vadd.f32 %v13745_v62, %v5497_v58  ;;  %vm5500_vm0 = vweird.f32 %v13745_v62  ;;  %v5511_v23 = vsub.f32 1.0, %v5510_v52  ;;  %vm13861_vm15 = vmor %vm5319_vm1, %vm5320_vm11  ;;  %v15337_v52 = vld [vmem:[#allocation57_spill] sm:$0xff] }
 0x8ad   : > { %v13844_v19 = vpop.eup %6589  ;;  %v4605_v33 = vsel %vm13829_vm9, %v15328_v55, 0.0  ;;  %vm5499_vm10 = vweird.f32 %v13664_v27  ;;  %v5503_v30 = vand.u32 2147483647, %v13664_v27  ;;  %v5505_v20 = vand.u32 2147483648, %v13664_v27 }
 0x8ae   : > { %v4617_v16 = vsel %vm13836_vm4, %v12694_v51, 0.0  ;;  %v5313_v35 = vmul.f32 %v5312_v36, %v4605_v33  ;;  %v4478_v56 = vand.u32 7, %v15331_v43  ;;  %v4490_v59 = vand.u32 7, %v15332_v48  ;;  %vm13867_vm14 = vmor %vm5499_vm10, %vm5500_vm0 }
 0x8af   : > { %5660 = vxpose.xlu2.b32.cont [13/16] (narrow) %v13523_v57, 8  ;;  %5688 = vxpose.xlu0.b32.cont [9/16] (narrow) %v5478_v22, 8  ;;  %v5323_v57 = vand.u32 2147483647, %v13085_v21  ;;  %v5493_v28 = vmul.f32 %v5492_v53, %v4617_v16  ;;  %v5525_v27 = vmul.f32 %v13844_v19, %v13785_v1  ;;  %6591 = vrcp.f32 %v13848_v45 }
 0x8b0   : > { %v5512_v51 = vmul.f32 %v13791_v9, %v5511_v23  ;;  %v5322_v21 = vsel %vm13861_vm15, %v13683_v61, %v5318_v34  ;;  %v5502_v7 = vsel %vm13867_vm14, %v13745_v62, %v5498_v13  ;;  %v5326_v17 = vor.u32 1.1754944e-38, %v5325_v10  ;;  %v13885_v61 = vpop.xlane.xlu0 %4427  ;;  %v15339_v23 = vld [vmem:[#allocation87_spill] sm:$0xff] }
 0x8b1   : > { %v5506_v14 = vor.u32 1.1754944e-38, %v5505_v20  ;;  %vm5324_vm2 = vcmp.eq.f32.partialorder %v5323_v57, 8.507059e+37  ;;  %vm5504_vm6 = vcmp.eq.f32.partialorder %v5503_v30, 8.507059e+37  ;;  %vm4542_vm3 = vcmp.eq.s32.totalorder %v15112_v31, %v4478_v56  ;;  %v15340_v30 = vld [vmem:[#allocation68_spill] sm:$0xff] }
 0x8b2   : > { %vm4554_vm13 = vcmp.eq.s32.totalorder %v15112_v31, %v4490_v59  ;;  %v5327_v37 = vsel %vm5324_vm2, %v5326_v17, %v5322_v21  ;;  %v5526_v18 = vsub.f32 1.0, %v5525_v27  ;;  %v5513_v38 = vadd.f32 %v13791_v9, %v5512_v51  ;;  %v15342_v51 = vld [vmem:[#allocation136_spill] sm:$0xff] }
 0x8b3   : > { %v5507_v24 = vsel %vm5504_vm6, %v5506_v14, %v5502_v7  ;;  %vm5515_vm12 = vweird.f32 %v13791_v9  ;;  %v5520_v62 = vand.u32 2147483648, %v13751_v5  ;;  %v4606_v41 = vsel %vm4542_vm3, %v15335_v6, 0.0  ;;  %v15344_v6 = vld [vmem:[#allocation145_spill] sm:$0xff] }
 0x8b4   : > { %v4618_v39 = vsel %vm4554_vm13, %v12714_v63, 0.0  ;;  %v4491_v15 = vand.u32 7, %v15336_v26  ;;  %vm5514_vm5 = vweird.f32 %v13751_v5  ;;  %v5518_v47 = vand.u32 2147483647, %v13751_v5 }
 0x8b5   : > { %v6592_v4 = vpop.eup %6591  ;;  %v5328_v54 = vmul.f32 %v5327_v37, %v4606_v41  ;;  %v5508_v46 = vmul.f32 %v5507_v24, %v4618_v39  ;;  %vm5516_vm8 = vmor %vm5514_vm5, %vm5515_vm12  ;;  %6593 = vrcp.f32 %v13885_v61  ;;  %v5527_v60 = vmul.f32 %v13844_v19, %v5526_v18 }
 0x8b6   : > { %v5540_v22 = vmul.f32 %v6592_v4, %v13848_v45  ;;  %v5517_v0 = vsel %vm5516_vm8, %v13791_v9, %v5513_v38  ;;  %v5521_v63 = vor.u32 1.1754944e-38, %v5520_v62  ;;  %vm5519_vm1 = vcmp.eq.f32.partialorder %v5518_v47, 8.507059e+37  ;;  %v15343_v38 = vld [vmem:[#allocation131_spill] sm:$0xff]  ;;  %v15345_v47 = vld [vmem:[#allocation138_spill] sm:$0xff] }
 0x8b7   : > { %5661 = vxpose.xlu2.b32.cont [14/16] (narrow) %v5313_v35, 8  ;;  %5689 = vxpose.xlu0.b32.cont [10/16] (narrow) %v5493_v28, 8  ;;  %vm4555_vm9 = vcmp.eq.s32.totalorder %v15112_v31, %v4491_v15  ;;  %v5528_v5 = vadd.f32 %v13844_v19, %v5527_v60  ;;  %vm5530_vm7 = vweird.f32 %v13844_v19  ;;  %v5535_v40 = vand.u32 2147483648, %v13785_v1 }
 0x8b8   : > { %v5522_v8 = vsel %vm5519_vm1, %v5521_v63, %v5517_v0  ;;  %v5541_v3 = vsub.f32 1.0, %v5540_v22  ;;  %v4619_v29 = vsel %vm4555_vm9, %v15337_v52, 0.0  ;;  %vm5529_vm4 = vweird.f32 %v13785_v1  ;;  %v15346_v22 = vld [vmem:[#allocation137_spill] sm:$0xff]  ;;  %v5600_v63 = vpop.trf.xlu1 }
 0x8b9   : > { %v5533_v9 = vand.u32 2147483647, %v13785_v1  ;;  %v5523_v25 = vmul.f32 %v5522_v8, %v4619_v29  ;;  %v4492_v49 = vand.u32 7, %v15338_v12  ;;  %vm5531_vm11 = vmor %vm5529_vm4, %vm5530_vm7  ;;  %6595 = vrcp.f32 %v13900_v42 }
 0x8ba   : > { %v5542_v11 = vmul.f32 %v6592_v4, %v5541_v3  ;;  %v5532_v10 = vsel %vm5531_vm11, %v13844_v19, %v5528_v5  ;;  %v5536_v2 = vor.u32 1.1754944e-38, %v5535_v40  ;;  %vm5545_vm15 = vweird.f32 %v6592_v4 }
 0x8bb   : > { %v6594_v58 = vpop.eup %6593  ;;  %vm5534_vm0 = vcmp.eq.f32.partialorder %v5533_v9, 8.507059e+37  ;;  %vm4556_vm10 = vcmp.eq.s32.totalorder %v15112_v31, %v4492_v49  ;;  %v5550_v13 = vand.u32 2147483648, %v13848_v45  ;;  %vm5544_vm14 = vweird.f32 %v13848_v45 }
 0x8bc   : > { %v5555_v57 = vmul.f32 %v6594_v58, %v13885_v61  ;;  %v5537_v34 = vsel %vm5534_vm0, %v5536_v2, %v5532_v10  ;;  %v5543_v1 = vadd.f32 %v6592_v4, %v5542_v11  ;;  %v4620_v55 = vsel %vm4556_vm10, %v15339_v23, 0.0  ;;  %vm5546_vm2 = vmor %vm5544_vm14, %vm5545_vm15 }
 0x8bd   : > { %v5538_v33 = vmul.f32 %v5537_v34, %v4620_v55  ;;  %v4493_v19 = vand.u32 7, %v15340_v30  ;;  %v5551_v35 = vor.u32 1.1754944e-38, %v5550_v13  ;;  %vm5560_vm13 = vweird.f32 %v6594_v58 }
 0x8be   : > { %v5556_v36 = vsub.f32 1.0, %v5555_v57  ;;  %v5547_v44 = vsel %vm5546_vm2, %v6592_v4, %v5543_v1  ;;  %v5565_v48 = vand.u32 2147483648, %v13885_v61  ;;  %vm5559_vm12 = vweird.f32 %v13885_v61 }
 0x8bf   : > { %5662 = vxpose.xlu2.b32.cont [15/16] (narrow) %v5328_v54, 8  ;;  %5690 = vxpose.xlu0.b32.cont [11/16] (narrow) %v5508_v46, 8  ;;  %v6596_v53 = vpop.eup %6595  ;;  %vm4557_vm3 = vcmp.eq.s32.totalorder %v15112_v31, %v4493_v19  ;;  %v5563_v50 = vand.u32 2147483647, %v13885_v61  ;;  %v4494_v21 = vand.u32 7, %v15342_v51  ;;  %vm5561_vm5 = vmor %vm5559_vm12, %vm5560_vm13  ;;  %v5580_v18 = vand.u32 2147483648, %v13900_v42 }
 0x8c0   : > { %v5570_v20 = vmul.f32 %v6596_v53, %v13900_v42  ;;  %v5557_v16 = vmul.f32 %v6594_v58, %v5556_v36  ;;  %v5566_v14 = vor.u32 1.1754944e-38, %v5565_v48  ;;  %vm5575_vm9 = vweird.f32 %v6596_v53 }
 0x8c1   : > { %vm5564_vm8 = vcmp.eq.f32.partialorder %v5563_v50, 8.507059e+37  ;;  %vm4558_vm1 = vcmp.eq.s32.totalorder %v15112_v31, %v4494_v21  ;;  %vm5574_vm7 = vweird.f32 %v13900_v42  ;;  %v5578_v61 = vand.u32 2147483647, %v13900_v42 }
 0x8c2   : > { %v5571_v43 = vsub.f32 1.0, %v5570_v20  ;;  %v5558_v56 = vadd.f32 %v6594_v58, %v5557_v16  ;;  %v4622_v4 = vsel %vm4558_vm1, %v15343_v38, 0.0  ;;  %v4495_v41 = vand.u32 7, %v15344_v6  ;;  %vm5576_vm4 = vmor %vm5574_vm7, %vm5575_vm9 }
 0x8c3   : > { %v5581_v26 = vor.u32 1.1754944e-38, %v5580_v18  ;;  %vm5579_vm11 = vcmp.eq.f32.partialorder %v5578_v61, 8.507059e+37  ;;  %v5718_v0 = vrot.slane %v15346_v22, 4  ;;  %v5712_v3 = vrot.slane %v5600_v63, 4 }
 0x8c4   : > { %v5572_v7 = vmul.f32 %v6596_v53, %v5571_v43  ;;  %v5562_v17 = vsel %vm5561_vm5, %v6594_v58, %v5558_v56  ;;  %vm4559_vm0 = vcmp.eq.s32.totalorder %v15112_v31, %v4495_v41  ;;  %vm5743_vm10 = vcmask 1040384  }
 0x8c5   : > { %v5567_v37 = vsel %vm5564_vm8, %v5566_v14, %v5562_v17  ;;  %v4623_v54 = vsel %vm4559_vm0, %v15345_v47, 0.0  ;;  %v5719_v5 = vadd.f32 %v5718_v0, %v15346_v22  ;;  %v5713_v40 = vadd.f32 %v5712_v3, %v5600_v63 }
 0x8c6   : > { %v5573_v24 = vadd.f32 %v6596_v53, %v5572_v7  ;;  %v5568_v62 = vmul.f32 %v5567_v37, %v4622_v4  ;;  %vm5745_vm15 = vcmask 1042434   ;;  %vm5747_vm14 = vcmask 1041408  }
 0x8c7   : > { %5663 = vxpose.xlu2.b32.end [16/16] (narrow) %v13743_v32, 8  ;;  %5691 = vxpose.xlu0.b32.cont [12/16] (narrow) %v5523_v25, 8  ;;  %v5548_v32 = vand.u32 2147483647, %v13848_v45  ;;  %v15341_v45 = vld [vmem:[#allocation144_spill] sm:$0xff]  ;;  %v5720_v58 = vrot.slane %v5719_v5, 2  ;;  %v15347_v19 = vlaneseq }
 0x8c8   : > { %v4621_v59 = vsel %vm4557_vm3, %v15341_v45, 0.0  ;;  %v5577_v39 = vsel %vm5576_vm4, %v6596_v53, %v5573_v24  ;;  %v5714_v29 = vrot.slane %v5713_v40, 2 }
 0x8c9   : > { %vm5549_vm6 = vcmp.eq.f32.partialorder %v5548_v32, 8.507059e+37  ;;  %v5582_v15 = vsel %vm5579_vm11, %v5581_v26, %v5577_v39  ;;  %v5721_v31 = vadd.f32 %v5720_v58, %v5719_v5  ;;  %vm5752_vm2 = vcmp.lt.s32.totalorder %v15347_v19, 512 }
 0x8ca   : > { %v5552_v28 = vsel %vm5549_vm6, %v5551_v35, %v5547_v44  ;;  %v5583_v46 = vmul.f32 %v5582_v15, %v4623_v54  ;;  %v5715_v11 = vadd.f32 %v5714_v29, %v5713_v40 }
 0x8cb   : > { %v5553_v27 = vmul.f32 %v5552_v28, %v4621_v59  ;;  %v5722_v49 = vrot.slane %v5721_v31, 1 }
 0x8cc   : > { %v5716_v1 = vrot.slane %v5715_v11, 1 }
 0x8cd   : > { %v5723_v34 = vadd.f32 %v5722_v49, %v5721_v31 }
 0x8ce   : > { %v5717_v55 = vadd.f32 %v5716_v1, %v5715_v11 }
 0x8cf   : > { %5692 = vxpose.xlu0.b32.cont [13/16] (narrow) %v5538_v33, 8  ;;  %v5740_v23 = vrot.slane %v5723_v34, 7 }
 0x8d1   : > { %v5744_v20 = vsel %vm5743_vm10, %v5717_v55, %v5740_v23 }
 0x8d7   : > { %5693 = vxpose.xlu0.b32.cont [14/16] (narrow) %v5553_v27, 8 }
 0x8df   : > { %5694 = vxpose.xlu0.b32.cont [15/16] (narrow) %v5568_v62, 8 }
 0x8e7   : > { %5695 = vxpose.xlu0.b32.end [16/16] (narrow) %v5583_v46, 8 }
 0x8e8   : > { %v5664_v60 = vpop.trf.xlu2 }
 0x8e9   : > { %v5724_v8 = vrot.slane %v5664_v60, 4 }
 0x8eb   : > { %v5725_v42 = vadd.f32 %v5724_v8, %v5664_v60 }
 0x8ed   : > { %v5726_v52 = vrot.slane %v5725_v42, 2 }
 0x8ef   : > { %v5727_v25 = vadd.f32 %v5726_v52, %v5725_v42 }
 0x8f1   : > { %v5728_v10 = vrot.slane %v5727_v25, 1 }
 0x8f3   : > { %v5729_v53 = vadd.f32 %v5728_v10, %v5727_v25 }
 0x8f5   : > { %v5741_v33 = vrot.slane %v5729_v53, 6 }
 0x913   : > { %v5696_v9 = vpop.trf.xlu0 }
 0x914   : > { %v5730_v12 = vrot.slane %v5696_v9, 4 }
 0x916   : > { %v5731_v57 = vadd.f32 %v5730_v12, %v5696_v9 }
 0x918   : > { %v5732_v2 = vrot.slane %v5731_v57, 2 }
 0x91a   : > { %v5733_v36 = vadd.f32 %v5732_v2, %v5731_v57 }
 0x91c   : > { %v5734_v13 = vrot.slane %v5733_v36, 1 }
 0x91e   : > { %v5735_v32 = vadd.f32 %v5734_v13, %v5733_v36 }
 0x920   : > { %v5742_v30 = vrot.slane %v5735_v32, 5 }
 0x922   : > { %v5746_v16 = vsel %vm5745_vm15, %v5741_v33, %v5742_v30 }
 0x923   : > { %v5748_v44 = vsel %vm5747_vm14, %v5744_v20, %v5746_v16 }
 0x924   : > { %5754 = vst.msk [vmem:[%s230_s13] sm:$0xf] %vm5752_vm2, %v5748_v44 }
 0x925   : > { %6657 = shalt.err (!%p6654_p7)
}
 0x926   : > { %6158 = dma.vmem_to_hbm [thread:$0]  (%p6775_p11), %s5769_s20, 64, %s5771_s22, %s5756_s19  }
 0x927 PF: > { %s5782_s7 = sand.u32 1, %s6684_s15   ;;  %p15348_p5 = scmp.ge.s32.totalorder %s6696_s18, 2 }
 0x928   : > { %s5783_s8 = scalar_lea.sflag [#allocation4], %s5782_s7 }
 0x929   : > { %p6165_p8 = pnand %p15348_p5, %p6779_p12 }
 0x92b   : > { %p6166_p10 = pneg %p6165_p8 }
 0x92d   : > { %6679 = dma.done.wait (%p6166_p10), %s5783_s8, 64  }
 0x92e   : > { %6681 = vsyncadd (%p6166_p10), %s5783_s8, 4294967232  ;;  %p17_p2 = scmp.ge.s32.totalorder %s6750_s21, 4   ;;  %s15349_s15 = smov %s6688_s16 }
 0x92f   : > { %s15350_s16 = smov %s6692_s17  ;;  %s15351_s17 = smov %s6762_s24 }
 0x930   : > { %s15352_s18 = smov %s6750_s21  ;;  %19 = sbr.rel (!%p17_p2) target bundleno = 5 (0x5), region = 84 }
 0x935   :  { %5789 = vsyncpa [#allocation3], 1 }
 0x936   :  { %5791 = vsyncpa [#allocation3 + $0x1], 1 }
 0x937   :  { %5792 = vsyncpa [#allocation4], 1 }
 0x938   :  { %5794 = vsyncpa [#allocation4 + $0x1], 1 }

</bundles_post_ra>
